<compile_context>
chip_gen: v7x
topology: tpu7x:2x2x1
jax: 0.10.0
libtpu: 0.0.40
codegen_flags: <defaults>
</compile_context>

<pallas_src>
import functools
import math

import jax
import jax.numpy as jnp
from jax.experimental import pallas as pl
from jax.experimental.pallas import tpu as pltpu

NUM_HEADS = 8
EMBED = 512
AUDIO_HID = 768
AUDIO_WIN = 320   # stand-in wav2vec2 framing stride
LANES = 128
ROW_TARGET = 256  # frame-token rows per grid step (fills v6e/v7x 256-row MXU;
                  # also >=2 full 128-row passes on v5e)


# ----------------------------------------------------------------------------
# Frozen-backbone stand-ins (plain JAX glue; real backbones are untranslatable).
# ----------------------------------------------------------------------------
def visual_backbone_stub(video, w_vstub):
    # TODO(synk): frozen pretrained r3d_18 not reproduced; stand-in matches the
    # output shape (B, 512, T//8): spatial mean-pool + temporal avg-pool (x8) +
    # fixed linear C->512.
    B, C, T, H, W = video.shape
    Tp = T // 8
    feat = video.mean(axis=(3, 4))                                  # (B, C, T)
    feat = feat[:, :, : Tp * 8].reshape(B, C, Tp, 8).mean(axis=-1)  # (B, C, Tp)
    return jnp.einsum("bct,dc->bdt", feat, w_vstub)                 # (B, 512, Tp)


def audio_backbone_stub(audio, w_astub):
    # TODO(synk): frozen pretrained Wav2Vec2 not reproduced; stand-in frames the
    # waveform (stride 320) and projects to hidden 768, matching
    # last_hidden_state's (B, S, 768) shape.
    B, L = audio.shape
    S = L // AUDIO_WIN
    frames = audio[:, : S * AUDIO_WIN].reshape(B, S, AUDIO_WIN)
    return jnp.einsum("bsw,hw->bsh", frames, w_astub)               # (B, S, 768)


# ----------------------------------------------------------------------------
# Pallas kernel: classification head for b_tile batch elements per grid step.
# ----------------------------------------------------------------------------
def head_kernel(vf_ref, af_ref,
                bias_ref, pool_ref,        # (R,R) block-diag bias, (BT,R) mean-pool
                wp_ref, bp_ref,            # frame_projection^T (D,D),(1,D)
                wqkv_ref, bqkv_ref,        # attn in_proj^T (D,3D),(1,3D)
                wo_ref, bo_ref,            # attn out_proj^T (D,D),(1,D)
                g_ref, be_ref,             # layer_norm gamma/beta (1,D)
                wa_ref, ba_ref,            # audio_projection^T (768,D),(1,D)
                wc1v_ref, wc1a_ref, bc1_ref,  # classifier L1^T split (D,D)x2,(1,D)
                wc2_ref, bc2_ref,          # classifier L2^T (D,Cp),(1,Cp)
                out_ref,                   # (BT, Cp)
                ctx_ref):                  # VMEM scratch (R, D) f32
    D = wp_ref.shape[0]
    hd = D // NUM_HEADS
    scale = 1.0 / math.sqrt(hd)

    # ---- frame_projection + QKV: big MXU matmuls over all rows at once ----
    x = vf_ref[...]                                                   # (R, D) bf16
    x = jnp.dot(x, wp_ref[...], preferred_element_type=jnp.float32) + bp_ref[...]
    qkv = jnp.dot(x.astype(jnp.bfloat16), wqkv_ref[...],
                  preferred_element_type=jnp.float32) + bqkv_ref[...]  # (R, 3D)

    # scale folded into q; ONE hoisted transpose of K (per-head slices of K^T
    # are 64-row sublane-aligned, so no per-head XLU transposes).
    q = (qkv[:, :D] * scale).astype(jnp.bfloat16)                      # (R, D)
    kT = jnp.transpose(qkv[:, D:2 * D]).astype(jnp.bfloat16)           # (D, R)
    v = qkv[:, 2 * D:].astype(jnp.bfloat16)                            # (R, D)

    # additive block-diagonal bias (0 within an element, -1e30 across elements)
    bias = bias_ref[...]                                               # (R, R) f32

    # multi-head self-attention (eval mode -> dropout is identity).
    # Heads are processed in pairs so each ctx write is a full 128-lane store.
    for hp in range(NUM_HEADS // 2):
        halves = []
        for h in (2 * hp, 2 * hp + 1):
            lo = h * hd
            s = jnp.dot(q[:, lo:lo + hd], kT[lo:lo + hd, :],
                        preferred_element_type=jnp.float32) + bias     # (R, R)
            s = s - jnp.max(s, axis=-1, keepdims=True)
            p = jnp.exp(s)
            p = p * pl.reciprocal(jnp.sum(p, axis=-1, keepdims=True), approx=True)
            halves.append(jnp.dot(p.astype(jnp.bfloat16), v[:, lo:lo + hd],
                                  preferred_element_type=jnp.float32))  # (R, hd)
        ctx_ref[:, hp * 2 * hd:(hp + 1) * 2 * hd] = jnp.concatenate(halves, axis=-1)

    # single fused out_proj over all heads (== concat + matmul)
    attn = jnp.dot(ctx_ref[...].astype(jnp.bfloat16), wo_ref[...],
                   preferred_element_type=jnp.float32) + bo_ref[...]    # (R, D)

    # per-element mean over frame tokens as a tiny (BT,R) @ (R,D) matmul
    pooled = jnp.dot(pool_ref[...], attn,
                     preferred_element_type=jnp.float32)                # (BT, D)

    # LayerNorm(512) in f32
    mu = jnp.mean(pooled, axis=-1, keepdims=True)
    xc = pooled - mu
    var = jnp.mean(xc * xc, axis=-1, keepdims=True)
    vis = xc * jax.lax.rsqrt(var + 1e-5) * g_ref[...] + be_ref[...]     # (BT, D)

    # audio: Linear(768 -> 512) + ReLU (time-mean already done in wrapper)
    a = jnp.dot(af_ref[...], wa_ref[...],
                preferred_element_type=jnp.float32) + ba_ref[...]       # (BT, D)
    a = jnp.maximum(a, 0.0)

    # classifier on concat([vis, a]) realised as split matmul; dropout = eval no-op
    h1 = (jnp.dot(vis.astype(jnp.bfloat16), wc1v_ref[...],
                  preferred_element_type=jnp.float32)
          + jnp.dot(a.astype(jnp.bfloat16), wc1a_ref[...],
                    preferred_element_type=jnp.float32)
          + bc1_ref[...])
    h1 = jnp.maximum(h1, 0.0)
    out_ref[...] = jnp.dot(h1.astype(jnp.bfloat16), wc2_ref[...],
                           preferred_element_type=jnp.float32) + bc2_ref[...]


# ----------------------------------------------------------------------------
# One-time parameter packing (hoisted out of the per-call path).
# ----------------------------------------------------------------------------
def pack_params(p):
    D = EMBED
    C = p["wc2_t"].shape[1]
    c_pad = ((C + LANES - 1) // LANES) * LANES
    bf16 = lambda a: a.astype(jnp.bfloat16)
    wc2 = jnp.zeros((D, c_pad), jnp.bfloat16).at[:, :C].set(bf16(p["wc2_t"]))
    bc2 = jnp.zeros((1, c_pad), jnp.float32).at[:, :C].set(p["bc2"])
    return {
        # plain-JAX backbone stand-ins stay f32
        "w_vstub": p["w_vstub"], "w_astub": p["w_astub"],
        # kernel weights, pre-cast to bf16 / pre-split / pre-padded
        "wp": bf16(p["wp_t"]), "bp": p["bp"],
        "wqkv": bf16(p["wqkv_t"]), "bqkv": p["bqkv"],
        "wo": bf16(p["wo_t"]), "bo": p["bo"],
        "ln_g": p["ln_g"], "ln_b": p["ln_b"],
        "wa": bf16(p["wa_t"]), "ba": p["ba"],
        "wc1v": bf16(p["wc1_t"][:D, :]), "wc1a": bf16(p["wc1_t"][D:, :]),
        "bc1": p["bc1"],
        "wc2": wc2, "bc2": bc2,
        "num_classes": int(C), "c_pad": int(c_pad),
    }


# ----------------------------------------------------------------------------
# Wrapper: batch tiling, padding, mask/pool construction, pallas_call.
# ----------------------------------------------------------------------------
def head_pallas(vf, af_pooled, pk):
    """vf: (B, Tp, 512) frame features, af_pooled: (B, 768) time-pooled audio."""
    B, Tp, D = vf.shape
    DA = af_pooled.shape[1]
    C = pk["num_classes"]
    c_pad = pk["c_pad"]
    assert Tp >= 1

    # --- batch tiling: pack enough elements per grid step for a full MXU pass ---
    b_elems = max(1, ROW_TARGET // Tp)
    if b_elems < B:
        b_tile = ((b_elems + 7) // 8) * 8          # multi-block: sublane-align blocks
    else:
        lcmf = 8 // math.gcd(Tp, 8)                # single block: make R multiple of 8
        b_tile = ((B + lcmf - 1) // lcmf) * lcmf
    Bp = ((B + b_tile - 1) // b_tile) * b_tile
    num_blocks = Bp // b_tile
    R = b_tile * Tp                                # frame-token rows per grid step

    # Lane-dense frame-token slab + padded pooled audio (activations in bf16).
    vf_flat = vf.reshape(B * Tp, D)
    if Bp != B:
        vf_flat = jnp.pad(vf_flat, ((0, (Bp - B) * Tp), (0, 0)))
        af_pooled = jnp.pad(af_pooled, ((0, Bp - B), (0, 0)))
    vf_flat = vf_flat.astype(jnp.bfloat16)
    af_pooled = af_pooled.astype(jnp.bfloat16)

    # Block-diagonal additive bias + mean-pool matrix, built once in the wrapper
    # (identical for every grid block), instead of in-kernel iota/div/compare.
    row_elem = jnp.arange(R, dtype=jnp.int32) // Tp
    same = row_elem[:, None] == row_elem[None, :]
    mask_bias = jnp.where(same, 0.0, -1e30).astype(jnp.float32)        # (R, R)
    pool = (row_elem[None, :] == jnp.arange(b_tile, dtype=jnp.int32)[:, None])
    pool = pool.astype(jnp.float32) / Tp                               # (b_tile, R)

    full = lambda i: (0, 0)
    in_specs = [
        pl.BlockSpec((R, D), lambda i: (i, 0)),           # frame tokens
        pl.BlockSpec((b_tile, DA), lambda i: (i, 0)),     # pooled audio
        pl.BlockSpec((R, R), full),                       # attention bias
        pl.BlockSpec((b_tile, R), full),                  # mean-pool matrix
        pl.BlockSpec((D, D), full), pl.BlockSpec((1, D), full),            # wp, bp
        pl.BlockSpec((D, 3 * D), full), pl.BlockSpec((1, 3 * D), full),    # wqkv, bqkv
        pl.BlockSpec((D, D), full), pl.BlockSpec((1, D), full),            # wo, bo
        pl.BlockSpec((1, D), full), pl.BlockSpec((1, D), full),            # ln g, b
        pl.BlockSpec((DA, D), full), pl.BlockSpec((1, D), full),           # wa, ba
        pl.BlockSpec((D, D), full), pl.BlockSpec((D, D), full),            # wc1v, wc1a
        pl.BlockSpec((1, D), full),                                        # bc1
        pl.BlockSpec((D, c_pad), full), pl.BlockSpec((1, c_pad), full),    # wc2, bc2
    ]

    # Megacore only when there are >=2 full-MXU blocks; for small (single-block)
    # B don't duplicate the constant-weight DMA across both v7x TensorCores.
    semantics = ("parallel",) if num_blocks > 1 else ("arbitrary",)

    out = pl.pallas_call(
        head_kernel,
        out_shape=jax.ShapeDtypeStruct((Bp, c_pad), jnp.float32),
        grid_spec=pltpu.PrefetchScalarGridSpec(
            num_scalar_prefetch=0,
            grid=(num_blocks,),
            in_specs=in_specs,
            out_specs=pl.BlockSpec((b_tile, c_pad), lambda i: (i, 0)),
            scratch_shapes=[pltpu.VMEM((R, D), jnp.float32)],
        ),
        compiler_params=pltpu.CompilerParams(
            dimension_semantics=semantics,
        ),
    )(vf_flat, af_pooled, mask_bias, pool,
      pk["wp"], pk["bp"],
      pk["wqkv"], pk["bqkv"],
      pk["wo"], pk["bo"],
      pk["ln_g"], pk["ln_b"],
      pk["wa"], pk["ba"],
      pk["wc1v"], pk["wc1a"], pk["bc1"],
      pk["wc2"], pk["bc2"])
    return out[:B, :C]                                                 # (B, C)


# ----------------------------------------------------------------------------
# Deterministic parameter init (synthetic; shapes match the nn.Module).
# ----------------------------------------------------------------------------
def init_params(key, num_classes=4, c_in=3):
    D, DA = EMBED, AUDIO_HID
    ks = jax.random.split(key, 10)
    s = 0.02
    return {
        # backbone stand-ins
        "w_vstub": jax.random.normal(ks[0], (D, c_in), jnp.float32) * s,
        "w_astub": jax.random.normal(ks[1], (DA, AUDIO_WIN), jnp.float32) * s,
        # frame_projection: Linear(512, 512)
        "wp_t": jax.random.normal(ks[2], (D, D), jnp.float32) * s,
        "bp": jnp.zeros((1, D), jnp.float32),
        # MultiheadAttention(512, 8): in_proj (3*512, 512), out_proj (512, 512)
        "wqkv_t": jax.random.normal(ks[3], (D, 3 * D), jnp.float32) * s,
        "bqkv": jnp.zeros((1, 3 * D), jnp.float32),
        "wo_t": jax.random.normal(ks[4], (D, D), jnp.float32) * s,
        "bo": jnp.zeros((1, D), jnp.float32),
        # LayerNorm(512)
        "ln_g": jnp.ones((1, D), jnp.float32),
        "ln_b": jnp.zeros((1, D), jnp.float32),
        # audio_projection: Linear(768, 512) + ReLU
        "wa_t": jax.random.normal(ks[5], (DA, D), jnp.float32) * s,
        "ba": jnp.zeros((1, D), jnp.float32),
        # classifier: Linear(1024, 512) + ReLU + Dropout + Linear(512, num_classes)
        "wc1_t": jax.random.normal(ks[6], (2 * D, D), jnp.float32) * s,
        "bc1": jnp.zeros((1, D), jnp.float32),
        "wc2_t": jax.random.normal(ks[7], (D, num_classes), jnp.float32) * s,
        "bc2": jnp.zeros((1, num_classes), jnp.float32),
    }


def random_frame_classifier_forward(video_frames, audio, packed):
    vf = visual_backbone_stub(video_frames, packed["w_vstub"])   # (B, 512, T//8)
    vf = jnp.transpose(vf, (0, 2, 1))                            # .permute(0, 2, 1)
    af = audio_backbone_stub(audio, packed["w_astub"])           # (B, S, 768)
    af_pooled = jnp.mean(af, axis=1)                             # audio mean hoisted
    return head_pallas(vf, af_pooled, packed)                    # (B, num_classes)


if __name__ == "__main__":
    key = jax.random.PRNGKey(0)
    k_v, k_a, k_p = jax.random.split(key, 3)

    B, C, T, H, W = 2, 3, 16, 16, 16          # -> Tp = T // 8 = 2 frame tokens
    L = AUDIO_WIN * 8                         # -> S = 8 audio frames
    num_classes = 4

    video_frames = jax.random.normal(k_v, (B, C, T, H, W), jnp.float32)
    audio = jax.random.normal(k_a, (B, L), jnp.float32)

    params = init_params(k_p, num_classes=num_classes, c_in=C)
    packed = pack_params(params)              # one-time weight packing (hoisted)
    packed = jax.tree_util.tree_map(
        lambda a: jax.block_until_ready(a) if isinstance(a, jax.Array) else a, packed)

    logits = random_frame_classifier_forward(video_frames, audio, packed)
    logits = jax.block_until_ready(logits)
    assert logits.shape == (B, num_classes), logits.shape
    assert bool(jnp.all(jnp.isfinite(logits)))
    print("KERNEL_OK")
</pallas_src>

<mosaic_0001>
module attributes {stable_mosaic.version = 11 : i64} {
  func.func @head_kernel(%arg0: i32, %arg1: memref<8x512xbf16, #tpu.memory_space<vmem>>, %arg2: memref<4x768xbf16, #tpu.memory_space<vmem>>, %arg3: memref<8x8xf32, #tpu.memory_space<vmem>>, %arg4: memref<4x8xf32, #tpu.memory_space<vmem>>, %arg5: memref<512x512xbf16, #tpu.memory_space<vmem>>, %arg6: memref<1x512xf32, #tpu.memory_space<vmem>>, %arg7: memref<512x1536xbf16, #tpu.memory_space<vmem>>, %arg8: memref<1x1536xf32, #tpu.memory_space<vmem>>, %arg9: memref<512x512xbf16, #tpu.memory_space<vmem>>, %arg10: memref<1x512xf32, #tpu.memory_space<vmem>>, %arg11: memref<1x512xf32, #tpu.memory_space<vmem>>, %arg12: memref<1x512xf32, #tpu.memory_space<vmem>>, %arg13: memref<768x512xbf16, #tpu.memory_space<vmem>>, %arg14: memref<1x512xf32, #tpu.memory_space<vmem>>, %arg15: memref<512x512xbf16, #tpu.memory_space<vmem>>, %arg16: memref<512x512xbf16, #tpu.memory_space<vmem>>, %arg17: memref<1x512xf32, #tpu.memory_space<vmem>>, %arg18: memref<512x128xbf16, #tpu.memory_space<vmem>>, %arg19: memref<1x128xf32, #tpu.memory_space<vmem>>, %arg20: memref<4x128xf32, #tpu.memory_space<vmem>>, %arg21: memref<8x512xf32, #tpu.memory_space<vmem>>) attributes {dimension_semantics = [#tpu.dimension_semantics<arbitrary>], iteration_bounds = array<i64: 1>, scalar_prefetch = 0 : i64, scratch_operands = 1 : i64, tpu.core_type = #tpu.core_type<tc>, window_params = [{transform_indices = @transform_0, window_bounds = array<i64: 8, 512>}, {transform_indices = @transform_1, window_bounds = array<i64: 4, 768>}, {pipeline_mode = #tpu.pipeline_mode<synchronous>, transform_indices = @transform_2, window_bounds = array<i64: 8, 8>}, {pipeline_mode = #tpu.pipeline_mode<synchronous>, transform_indices = @transform_3, window_bounds = array<i64: 4, 8>}, {pipeline_mode = #tpu.pipeline_mode<synchronous>, transform_indices = @transform_4, window_bounds = array<i64: 512, 512>}, {pipeline_mode = #tpu.pipeline_mode<synchronous>, transform_indices = @transform_5, window_bounds = array<i64: 1, 512>}, {pipeline_mode = #tpu.pipeline_mode<synchronous>, transform_indices = @transform_6, window_bounds = array<i64: 512, 1536>}, {pipeline_mode = #tpu.pipeline_mode<synchronous>, transform_indices = @transform_7, window_bounds = array<i64: 1, 1536>}, {pipeline_mode = #tpu.pipeline_mode<synchronous>, transform_indices = @transform_8, window_bounds = array<i64: 512, 512>}, {pipeline_mode = #tpu.pipeline_mode<synchronous>, transform_indices = @transform_9, window_bounds = array<i64: 1, 512>}, {pipeline_mode = #tpu.pipeline_mode<synchronous>, transform_indices = @transform_10, window_bounds = array<i64: 1, 512>}, {pipeline_mode = #tpu.pipeline_mode<synchronous>, transform_indices = @transform_11, window_bounds = array<i64: 1, 512>}, {pipeline_mode = #tpu.pipeline_mode<synchronous>, transform_indices = @transform_12, window_bounds = array<i64: 768, 512>}, {pipeline_mode = #tpu.pipeline_mode<synchronous>, transform_indices = @transform_13, window_bounds = array<i64: 1, 512>}, {pipeline_mode = #tpu.pipeline_mode<synchronous>, transform_indices = @transform_14, window_bounds = array<i64: 512, 512>}, {pipeline_mode = #tpu.pipeline_mode<synchronous>, transform_indices = @transform_15, window_bounds = array<i64: 512, 512>}, {pipeline_mode = #tpu.pipeline_mode<synchronous>, transform_indices = @transform_16, window_bounds = array<i64: 1, 512>}, {pipeline_mode = #tpu.pipeline_mode<synchronous>, transform_indices = @transform_17, window_bounds = array<i64: 512, 128>}, {pipeline_mode = #tpu.pipeline_mode<synchronous>, transform_indices = @transform_18, window_bounds = array<i64: 1, 128>}, {transform_indices = @transform_19, window_bounds = array<i64: 4, 128>}]} {
    %c0 = arith.constant 0 : index
    %c0_0 = arith.constant 0 : index
    %0 = vector.load %arg1[%c0, %c0_0] : memref<8x512xbf16, #tpu.memory_space<vmem>>, vector<8x512xbf16>
    %c0_1 = arith.constant 0 : index
    %c0_2 = arith.constant 0 : index
    %1 = vector.load %arg5[%c0_1, %c0_2] : memref<512x512xbf16, #tpu.memory_space<vmem>>, vector<512x512xbf16>
    %cst = arith.constant dense<0.000000e+00> : vector<8x512xf32>
    %2 = tpu.matmul %0, %1, %cst {dimension_numbers = #tpu.dot_dimension_numbers<[1], [0], [0], [1], [0, 0, 1, 1], [], []>} : vector<8x512xbf16>, vector<512x512xbf16>, vector<8x512xf32> -> vector<8x512xf32>
    %c0_3 = arith.constant 0 : index
    %c0_4 = arith.constant 0 : index
    %3 = vector.load %arg6[%c0_3, %c0_4] : memref<1x512xf32, #tpu.memory_space<vmem>>, vector<1x512xf32>
    %4 = vector.broadcast %3 : vector<1x512xf32> to vector<8x512xf32>
    %5 = arith.addf %2, %4 : vector<8x512xf32>
    %6 = arith.truncf %5 : vector<8x512xf32> to vector<8x512xbf16>
    %c0_5 = arith.constant 0 : index
    %c0_6 = arith.constant 0 : index
    %7 = vector.load %arg7[%c0_5, %c0_6] : memref<512x1536xbf16, #tpu.memory_space<vmem>>, vector<512x1536xbf16>
    %cst_7 = arith.constant dense<0.000000e+00> : vector<8x1536xf32>
    %8 = tpu.matmul %6, %7, %cst_7 {dimension_numbers = #tpu.dot_dimension_numbers<[1], [0], [0], [1], [0, 0, 1, 1], [], []>} : vector<8x512xbf16>, vector<512x1536xbf16>, vector<8x1536xf32> -> vector<8x1536xf32>
    %c0_8 = arith.constant 0 : index
    %c0_9 = arith.constant 0 : index
    %9 = vector.load %arg8[%c0_8, %c0_9] : memref<1x1536xf32, #tpu.memory_space<vmem>>, vector<1x1536xf32>
    %10 = vector.broadcast %9 : vector<1x1536xf32> to vector<8x1536xf32>
    %11 = arith.addf %8, %10 : vector<8x1536xf32>
    %12 = vector.extract_strided_slice %11 {offsets = [0, 0], sizes = [8, 512], strides = [1, 1]} : vector<8x1536xf32> to vector<8x512xf32>
    %cst_10 = arith.constant 1.250000e-01 : f32
    %13 = vector.broadcast %cst_10 : f32 to vector<8x512xf32>
    %14 = arith.mulf %12, %13 : vector<8x512xf32>
    %15 = arith.truncf %14 : vector<8x512xf32> to vector<8x512xbf16>
    %16 = vector.extract_strided_slice %11 {offsets = [0, 512], sizes = [8, 512], strides = [1, 1]} : vector<8x1536xf32> to vector<8x512xf32>
    %17 = tpu.transpose %16, [1, 0] : vector<8x512xf32> -> vector<512x8xf32>
    %18 = arith.truncf %17 : vector<512x8xf32> to vector<512x8xbf16>
    %19 = vector.extract_strided_slice %11 {offsets = [0, 1024], sizes = [8, 512], strides = [1, 1]} : vector<8x1536xf32> to vector<8x512xf32>
    %20 = arith.truncf %19 : vector<8x512xf32> to vector<8x512xbf16>
    %c0_11 = arith.constant 0 : index
    %c0_12 = arith.constant 0 : index
    %21 = vector.load %arg3[%c0_11, %c0_12] : memref<8x8xf32, #tpu.memory_space<vmem>>, vector<8x8xf32>
    %22 = vector.extract_strided_slice %15 {offsets = [0, 0], sizes = [8, 64], strides = [1, 1]} : vector<8x512xbf16> to vector<8x64xbf16>
    %23 = vector.extract_strided_slice %18 {offsets = [0, 0], sizes = [64, 8], strides = [1, 1]} : vector<512x8xbf16> to vector<64x8xbf16>
    %cst_13 = arith.constant dense<0.000000e+00> : vector<8x8xf32>
    %24 = tpu.matmul %22, %23, %cst_13 {dimension_numbers = #tpu.dot_dimension_numbers<[1], [0], [0], [1], [0, 0, 1, 1], [], []>} : vector<8x64xbf16>, vector<64x8xbf16>, vector<8x8xf32> -> vector<8x8xf32>
    %25 = arith.addf %24, %21 : vector<8x8xf32>
    %cst_14 = arith.constant dense<0xFF800000> : vector<8xf32>
    %26 = vector.multi_reduction <maximumf>, %25, %cst_14 [1] : vector<8x8xf32> to vector<8xf32>
    %27 = vector.shape_cast %26 : vector<8xf32> to vector<8x1xf32>
    %28 = vector.broadcast %27 : vector<8x1xf32> to vector<8x8xf32>
    %29 = arith.subf %25, %28 : vector<8x8xf32>
    %30 = math.exp %29 : vector<8x8xf32>
    %cst_15 = arith.constant dense<0.000000e+00> : vector<8xf32>
    %31 = vector.multi_reduction <add>, %30, %cst_15 [1] : vector<8x8xf32> to vector<8xf32>
    %32 = vector.shape_cast %31 : vector<8xf32> to vector<8x1xf32>
    %33 = tpu.reciprocal %32 {approx = true} : vector<8x1xf32> -> vector<8x1xf32>
    %34 = vector.broadcast %33 : vector<8x1xf32> to vector<8x8xf32>
    %35 = arith.mulf %30, %34 : vector<8x8xf32>
    %36 = arith.truncf %35 : vector<8x8xf32> to vector<8x8xbf16>
    %37 = vector.extract_strided_slice %20 {offsets = [0, 0], sizes = [8, 64], strides = [1, 1]} : vector<8x512xbf16> to vector<8x64xbf16>
    %cst_16 = arith.constant dense<0.000000e+00> : vector<8x64xf32>
    %38 = tpu.matmul %36, %37, %cst_16 {dimension_numbers = #tpu.dot_dimension_numbers<[1], [0], [0], [1], [0, 0, 1, 1], [], []>} : vector<8x8xbf16>, vector<8x64xbf16>, vector<8x64xf32> -> vector<8x64xf32>
    %39 = vector.extract_strided_slice %15 {offsets = [0, 64], sizes = [8, 64], strides = [1, 1]} : vector<8x512xbf16> to vector<8x64xbf16>
    %40 = vector.extract_strided_slice %18 {offsets = [64, 0], sizes = [64, 8], strides = [1, 1]} : vector<512x8xbf16> to vector<64x8xbf16>
    %cst_17 = arith.constant dense<0.000000e+00> : vector<8x8xf32>
    %41 = tpu.matmul %39, %40, %cst_17 {dimension_numbers = #tpu.dot_dimension_numbers<[1], [0], [0], [1], [0, 0, 1, 1], [], []>} : vector<8x64xbf16>, vector<64x8xbf16>, vector<8x8xf32> -> vector<8x8xf32>
    %42 = arith.addf %41, %21 : vector<8x8xf32>
    %cst_18 = arith.constant dense<0xFF800000> : vector<8xf32>
    %43 = vector.multi_reduction <maximumf>, %42, %cst_18 [1] : vector<8x8xf32> to vector<8xf32>
    %44 = vector.shape_cast %43 : vector<8xf32> to vector<8x1xf32>
    %45 = vector.broadcast %44 : vector<8x1xf32> to vector<8x8xf32>
    %46 = arith.subf %42, %45 : vector<8x8xf32>
    %47 = math.exp %46 : vector<8x8xf32>
    %cst_19 = arith.constant dense<0.000000e+00> : vector<8xf32>
    %48 = vector.multi_reduction <add>, %47, %cst_19 [1] : vector<8x8xf32> to vector<8xf32>
    %49 = vector.shape_cast %48 : vector<8xf32> to vector<8x1xf32>
    %50 = tpu.reciprocal %49 {approx = true} : vector<8x1xf32> -> vector<8x1xf32>
    %51 = vector.broadcast %50 : vector<8x1xf32> to vector<8x8xf32>
    %52 = arith.mulf %47, %51 : vector<8x8xf32>
    %53 = arith.truncf %52 : vector<8x8xf32> to vector<8x8xbf16>
    %54 = vector.extract_strided_slice %20 {offsets = [0, 64], sizes = [8, 64], strides = [1, 1]} : vector<8x512xbf16> to vector<8x64xbf16>
    %cst_20 = arith.constant dense<0.000000e+00> : vector<8x64xf32>
    %55 = tpu.matmul %53, %54, %cst_20 {dimension_numbers = #tpu.dot_dimension_numbers<[1], [0], [0], [1], [0, 0, 1, 1], [], []>} : vector<8x8xbf16>, vector<8x64xbf16>, vector<8x64xf32> -> vector<8x64xf32>
    %56 = tpu.concatenate %38, %55 in 1 : vector<8x64xf32>, vector<8x64xf32> -> vector<8x128xf32>
    %c0_21 = arith.constant 0 : index
    %c0_22 = arith.constant 0 : index
    %57 = vector.load %arg21[%c0_21, %c0_22] : memref<8x512xf32, #tpu.memory_space<vmem>>, vector<8x128xf32>
    tpu.vector_store %arg21[%c0_21, %c0_22], %56 {strides = array<i32>} : memref<8x512xf32, #tpu.memory_space<vmem>>, vector<8x128xf32>,
    %58 = vector.extract_strided_slice %15 {offsets = [0, 128], sizes = [8, 64], strides = [1, 1]} : vector<8x512xbf16> to vector<8x64xbf16>
    %59 = vector.extract_strided_slice %18 {offsets = [128, 0], sizes = [64, 8], strides = [1, 1]} : vector<512x8xbf16> to vector<64x8xbf16>
    %cst_23 = arith.constant dense<0.000000e+00> : vector<8x8xf32>
    %60 = tpu.matmul %58, %59, %cst_23 {dimension_numbers = #tpu.dot_dimension_numbers<[1], [0], [0], [1], [0, 0, 1, 1], [], []>} : vector<8x64xbf16>, vector<64x8xbf16>, vector<8x8xf32> -> vector<8x8xf32>
    %61 = arith.addf %60, %21 : vector<8x8xf32>
    %cst_24 = arith.constant dense<0xFF800000> : vector<8xf32>
    %62 = vector.multi_reduction <maximumf>, %61, %cst_24 [1] : vector<8x8xf32> to vector<8xf32>
    %63 = vector.shape_cast %62 : vector<8xf32> to vector<8x1xf32>
    %64 = vector.broadcast %63 : vector<8x1xf32> to vector<8x8xf32>
    %65 = arith.subf %61, %64 : vector<8x8xf32>
    %66 = math.exp %65 : vector<8x8xf32>
    %cst_25 = arith.constant dense<0.000000e+00> : vector<8xf32>
    %67 = vector.multi_reduction <add>, %66, %cst_25 [1] : vector<8x8xf32> to vector<8xf32>
    %68 = vector.shape_cast %67 : vector<8xf32> to vector<8x1xf32>
    %69 = tpu.reciprocal %68 {approx = true} : vector<8x1xf32> -> vector<8x1xf32>
    %70 = vector.broadcast %69 : vector<8x1xf32> to vector<8x8xf32>
    %71 = arith.mulf %66, %70 : vector<8x8xf32>
    %72 = arith.truncf %71 : vector<8x8xf32> to vector<8x8xbf16>
    %73 = vector.extract_strided_slice %20 {offsets = [0, 128], sizes = [8, 64], strides = [1, 1]} : vector<8x512xbf16> to vector<8x64xbf16>
    %cst_26 = arith.constant dense<0.000000e+00> : vector<8x64xf32>
    %74 = tpu.matmul %72, %73, %cst_26 {dimension_numbers = #tpu.dot_dimension_numbers<[1], [0], [0], [1], [0, 0, 1, 1], [], []>} : vector<8x8xbf16>, vector<8x64xbf16>, vector<8x64xf32> -> vector<8x64xf32>
    %75 = vector.extract_strided_slice %15 {offsets = [0, 192], sizes = [8, 64], strides = [1, 1]} : vector<8x512xbf16> to vector<8x64xbf16>
    %76 = vector.extract_strided_slice %18 {offsets = [192, 0], sizes = [64, 8], strides = [1, 1]} : vector<512x8xbf16> to vector<64x8xbf16>
    %cst_27 = arith.constant dense<0.000000e+00> : vector<8x8xf32>
    %77 = tpu.matmul %75, %76, %cst_27 {dimension_numbers = #tpu.dot_dimension_numbers<[1], [0], [0], [1], [0, 0, 1, 1], [], []>} : vector<8x64xbf16>, vector<64x8xbf16>, vector<8x8xf32> -> vector<8x8xf32>
    %78 = arith.addf %77, %21 : vector<8x8xf32>
    %cst_28 = arith.constant dense<0xFF800000> : vector<8xf32>
    %79 = vector.multi_reduction <maximumf>, %78, %cst_28 [1] : vector<8x8xf32> to vector<8xf32>
    %80 = vector.shape_cast %79 : vector<8xf32> to vector<8x1xf32>
    %81 = vector.broadcast %80 : vector<8x1xf32> to vector<8x8xf32>
    %82 = arith.subf %78, %81 : vector<8x8xf32>
    %83 = math.exp %82 : vector<8x8xf32>
    %cst_29 = arith.constant dense<0.000000e+00> : vector<8xf32>
    %84 = vector.multi_reduction <add>, %83, %cst_29 [1] : vector<8x8xf32> to vector<8xf32>
    %85 = vector.shape_cast %84 : vector<8xf32> to vector<8x1xf32>
    %86 = tpu.reciprocal %85 {approx = true} : vector<8x1xf32> -> vector<8x1xf32>
    %87 = vector.broadcast %86 : vector<8x1xf32> to vector<8x8xf32>
    %88 = arith.mulf %83, %87 : vector<8x8xf32>
    %89 = arith.truncf %88 : vector<8x8xf32> to vector<8x8xbf16>
    %90 = vector.extract_strided_slice %20 {offsets = [0, 192], sizes = [8, 64], strides = [1, 1]} : vector<8x512xbf16> to vector<8x64xbf16>
    %cst_30 = arith.constant dense<0.000000e+00> : vector<8x64xf32>
    %91 = tpu.matmul %89, %90, %cst_30 {dimension_numbers = #tpu.dot_dimension_numbers<[1], [0], [0], [1], [0, 0, 1, 1], [], []>} : vector<8x8xbf16>, vector<8x64xbf16>, vector<8x64xf32> -> vector<8x64xf32>
    %92 = tpu.concatenate %74, %91 in 1 : vector<8x64xf32>, vector<8x64xf32> -> vector<8x128xf32>
    %c0_31 = arith.constant 0 : index
    %c128 = arith.constant 128 : index
    %93 = vector.load %arg21[%c0_31, %c128] : memref<8x512xf32, #tpu.memory_space<vmem>>, vector<8x128xf32>
    tpu.vector_store %arg21[%c0_31, %c128], %92 {strides = array<i32>} : memref<8x512xf32, #tpu.memory_space<vmem>>, vector<8x128xf32>,
    %94 = vector.extract_strided_slice %15 {offsets = [0, 256], sizes = [8, 64], strides = [1, 1]} : vector<8x512xbf16> to vector<8x64xbf16>
    %95 = vector.extract_strided_slice %18 {offsets = [256, 0], sizes = [64, 8], strides = [1, 1]} : vector<512x8xbf16> to vector<64x8xbf16>
    %cst_32 = arith.constant dense<0.000000e+00> : vector<8x8xf32>
    %96 = tpu.matmul %94, %95, %cst_32 {dimension_numbers = #tpu.dot_dimension_numbers<[1], [0], [0], [1], [0, 0, 1, 1], [], []>} : vector<8x64xbf16>, vector<64x8xbf16>, vector<8x8xf32> -> vector<8x8xf32>
    %97 = arith.addf %96, %21 : vector<8x8xf32>
    %cst_33 = arith.constant dense<0xFF800000> : vector<8xf32>
    %98 = vector.multi_reduction <maximumf>, %97, %cst_33 [1] : vector<8x8xf32> to vector<8xf32>
    %99 = vector.shape_cast %98 : vector<8xf32> to vector<8x1xf32>
    %100 = vector.broadcast %99 : vector<8x1xf32> to vector<8x8xf32>
    %101 = arith.subf %97, %100 : vector<8x8xf32>
    %102 = math.exp %101 : vector<8x8xf32>
    %cst_34 = arith.constant dense<0.000000e+00> : vector<8xf32>
    %103 = vector.multi_reduction <add>, %102, %cst_34 [1] : vector<8x8xf32> to vector<8xf32>
    %104 = vector.shape_cast %103 : vector<8xf32> to vector<8x1xf32>
    %105 = tpu.reciprocal %104 {approx = true} : vector<8x1xf32> -> vector<8x1xf32>
    %106 = vector.broadcast %105 : vector<8x1xf32> to vector<8x8xf32>
    %107 = arith.mulf %102, %106 : vector<8x8xf32>
    %108 = arith.truncf %107 : vector<8x8xf32> to vector<8x8xbf16>
    %109 = vector.extract_strided_slice %20 {offsets = [0, 256], sizes = [8, 64], strides = [1, 1]} : vector<8x512xbf16> to vector<8x64xbf16>
    %cst_35 = arith.constant dense<0.000000e+00> : vector<8x64xf32>
    %110 = tpu.matmul %108, %109, %cst_35 {dimension_numbers = #tpu.dot_dimension_numbers<[1], [0], [0], [1], [0, 0, 1, 1], [], []>} : vector<8x8xbf16>, vector<8x64xbf16>, vector<8x64xf32> -> vector<8x64xf32>
    %111 = vector.extract_strided_slice %15 {offsets = [0, 320], sizes = [8, 64], strides = [1, 1]} : vector<8x512xbf16> to vector<8x64xbf16>
    %112 = vector.extract_strided_slice %18 {offsets = [320, 0], sizes = [64, 8], strides = [1, 1]} : vector<512x8xbf16> to vector<64x8xbf16>
    %cst_36 = arith.constant dense<0.000000e+00> : vector<8x8xf32>
    %113 = tpu.matmul %111, %112, %cst_36 {dimension_numbers = #tpu.dot_dimension_numbers<[1], [0], [0], [1], [0, 0, 1, 1], [], []>} : vector<8x64xbf16>, vector<64x8xbf16>, vector<8x8xf32> -> vector<8x8xf32>
    %114 = arith.addf %113, %21 : vector<8x8xf32>
    %cst_37 = arith.constant dense<0xFF800000> : vector<8xf32>
    %115 = vector.multi_reduction <maximumf>, %114, %cst_37 [1] : vector<8x8xf32> to vector<8xf32>
    %116 = vector.shape_cast %115 : vector<8xf32> to vector<8x1xf32>
    %117 = vector.broadcast %116 : vector<8x1xf32> to vector<8x8xf32>
    %118 = arith.subf %114, %117 : vector<8x8xf32>
    %119 = math.exp %118 : vector<8x8xf32>
    %cst_38 = arith.constant dense<0.000000e+00> : vector<8xf32>
    %120 = vector.multi_reduction <add>, %119, %cst_38 [1] : vector<8x8xf32> to vector<8xf32>
    %121 = vector.shape_cast %120 : vector<8xf32> to vector<8x1xf32>
    %122 = tpu.reciprocal %121 {approx = true} : vector<8x1xf32> -> vector<8x1xf32>
    %123 = vector.broadcast %122 : vector<8x1xf32> to vector<8x8xf32>
    %124 = arith.mulf %119, %123 : vector<8x8xf32>
    %125 = arith.truncf %124 : vector<8x8xf32> to vector<8x8xbf16>
    %126 = vector.extract_strided_slice %20 {offsets = [0, 320], sizes = [8, 64], strides = [1, 1]} : vector<8x512xbf16> to vector<8x64xbf16>
    %cst_39 = arith.constant dense<0.000000e+00> : vector<8x64xf32>
    %127 = tpu.matmul %125, %126, %cst_39 {dimension_numbers = #tpu.dot_dimension_numbers<[1], [0], [0], [1], [0, 0, 1, 1], [], []>} : vector<8x8xbf16>, vector<8x64xbf16>, vector<8x64xf32> -> vector<8x64xf32>
    %128 = tpu.concatenate %110, %127 in 1 : vector<8x64xf32>, vector<8x64xf32> -> vector<8x128xf32>
    %c0_40 = arith.constant 0 : index
    %c256 = arith.constant 256 : index
    %129 = vector.load %arg21[%c0_40, %c256] : memref<8x512xf32, #tpu.memory_space<vmem>>, vector<8x128xf32>
    tpu.vector_store %arg21[%c0_40, %c256], %128 {strides = array<i32>} : memref<8x512xf32, #tpu.memory_space<vmem>>, vector<8x128xf32>,
    %130 = vector.extract_strided_slice %15 {offsets = [0, 384], sizes = [8, 64], strides = [1, 1]} : vector<8x512xbf16> to vector<8x64xbf16>
    %131 = vector.extract_strided_slice %18 {offsets = [384, 0], sizes = [64, 8], strides = [1, 1]} : vector<512x8xbf16> to vector<64x8xbf16>
    %cst_41 = arith.constant dense<0.000000e+00> : vector<8x8xf32>
    %132 = tpu.matmul %130, %131, %cst_41 {dimension_numbers = #tpu.dot_dimension_numbers<[1], [0], [0], [1], [0, 0, 1, 1], [], []>} : vector<8x64xbf16>, vector<64x8xbf16>, vector<8x8xf32> -> vector<8x8xf32>
    %133 = arith.addf %132, %21 : vector<8x8xf32>
    %cst_42 = arith.constant dense<0xFF800000> : vector<8xf32>
    %134 = vector.multi_reduction <maximumf>, %133, %cst_42 [1] : vector<8x8xf32> to vector<8xf32>
    %135 = vector.shape_cast %134 : vector<8xf32> to vector<8x1xf32>
    %136 = vector.broadcast %135 : vector<8x1xf32> to vector<8x8xf32>
    %137 = arith.subf %133, %136 : vector<8x8xf32>
    %138 = math.exp %137 : vector<8x8xf32>
    %cst_43 = arith.constant dense<0.000000e+00> : vector<8xf32>
    %139 = vector.multi_reduction <add>, %138, %cst_43 [1] : vector<8x8xf32> to vector<8xf32>
    %140 = vector.shape_cast %139 : vector<8xf32> to vector<8x1xf32>
    %141 = tpu.reciprocal %140 {approx = true} : vector<8x1xf32> -> vector<8x1xf32>
    %142 = vector.broadcast %141 : vector<8x1xf32> to vector<8x8xf32>
    %143 = arith.mulf %138, %142 : vector<8x8xf32>
    %144 = arith.truncf %143 : vector<8x8xf32> to vector<8x8xbf16>
    %145 = vector.extract_strided_slice %20 {offsets = [0, 384], sizes = [8, 64], strides = [1, 1]} : vector<8x512xbf16> to vector<8x64xbf16>
    %cst_44 = arith.constant dense<0.000000e+00> : vector<8x64xf32>
    %146 = tpu.matmul %144, %145, %cst_44 {dimension_numbers = #tpu.dot_dimension_numbers<[1], [0], [0], [1], [0, 0, 1, 1], [], []>} : vector<8x8xbf16>, vector<8x64xbf16>, vector<8x64xf32> -> vector<8x64xf32>
    %147 = vector.extract_strided_slice %15 {offsets = [0, 448], sizes = [8, 64], strides = [1, 1]} : vector<8x512xbf16> to vector<8x64xbf16>
    %148 = vector.extract_strided_slice %18 {offsets = [448, 0], sizes = [64, 8], strides = [1, 1]} : vector<512x8xbf16> to vector<64x8xbf16>
    %cst_45 = arith.constant dense<0.000000e+00> : vector<8x8xf32>
    %149 = tpu.matmul %147, %148, %cst_45 {dimension_numbers = #tpu.dot_dimension_numbers<[1], [0], [0], [1], [0, 0, 1, 1], [], []>} : vector<8x64xbf16>, vector<64x8xbf16>, vector<8x8xf32> -> vector<8x8xf32>
    %150 = arith.addf %149, %21 : vector<8x8xf32>
    %cst_46 = arith.constant dense<0xFF800000> : vector<8xf32>
    %151 = vector.multi_reduction <maximumf>, %150, %cst_46 [1] : vector<8x8xf32> to vector<8xf32>
    %152 = vector.shape_cast %151 : vector<8xf32> to vector<8x1xf32>
    %153 = vector.broadcast %152 : vector<8x1xf32> to vector<8x8xf32>
    %154 = arith.subf %150, %153 : vector<8x8xf32>
    %155 = math.exp %154 : vector<8x8xf32>
    %cst_47 = arith.constant dense<0.000000e+00> : vector<8xf32>
    %156 = vector.multi_reduction <add>, %155, %cst_47 [1] : vector<8x8xf32> to vector<8xf32>
    %157 = vector.shape_cast %156 : vector<8xf32> to vector<8x1xf32>
    %158 = tpu.reciprocal %157 {approx = true} : vector<8x1xf32> -> vector<8x1xf32>
    %159 = vector.broadcast %158 : vector<8x1xf32> to vector<8x8xf32>
    %160 = arith.mulf %155, %159 : vector<8x8xf32>
    %161 = arith.truncf %160 : vector<8x8xf32> to vector<8x8xbf16>
    %162 = vector.extract_strided_slice %20 {offsets = [0, 448], sizes = [8, 64], strides = [1, 1]} : vector<8x512xbf16> to vector<8x64xbf16>
    %cst_48 = arith.constant dense<0.000000e+00> : vector<8x64xf32>
    %163 = tpu.matmul %161, %162, %cst_48 {dimension_numbers = #tpu.dot_dimension_numbers<[1], [0], [0], [1], [0, 0, 1, 1], [], []>} : vector<8x8xbf16>, vector<8x64xbf16>, vector<8x64xf32> -> vector<8x64xf32>
    %164 = tpu.concatenate %146, %163 in 1 : vector<8x64xf32>, vector<8x64xf32> -> vector<8x128xf32>
    %c0_49 = arith.constant 0 : index
    %c384 = arith.constant 384 : index
    %165 = vector.load %arg21[%c0_49, %c384] : memref<8x512xf32, #tpu.memory_space<vmem>>, vector<8x128xf32>
    tpu.vector_store %arg21[%c0_49, %c384], %164 {strides = array<i32>} : memref<8x512xf32, #tpu.memory_space<vmem>>, vector<8x128xf32>,
    %c0_50 = arith.constant 0 : index
    %c0_51 = arith.constant 0 : index
    %166 = vector.load %arg21[%c0_50, %c0_51] : memref<8x512xf32, #tpu.memory_space<vmem>>, vector<8x512xf32>
    %167 = arith.truncf %166 : vector<8x512xf32> to vector<8x512xbf16>
    %c0_52 = arith.constant 0 : index
    %c0_53 = arith.constant 0 : index
    %168 = vector.load %arg9[%c0_52, %c0_53] : memref<512x512xbf16, #tpu.memory_space<vmem>>, vector<512x512xbf16>
    %cst_54 = arith.constant dense<0.000000e+00> : vector<8x512xf32>
    %169 = tpu.matmul %167, %168, %cst_54 {dimension_numbers = #tpu.dot_dimension_numbers<[1], [0], [0], [1], [0, 0, 1, 1], [], []>} : vector<8x512xbf16>, vector<512x512xbf16>, vector<8x512xf32> -> vector<8x512xf32>
    %c0_55 = arith.constant 0 : index
    %c0_56 = arith.constant 0 : index
    %170 = vector.load %arg10[%c0_55, %c0_56] : memref<1x512xf32, #tpu.memory_space<vmem>>, vector<1x512xf32>
    %171 = vector.broadcast %170 : vector<1x512xf32> to vector<8x512xf32>
    %172 = arith.addf %169, %171 : vector<8x512xf32>
    %c0_57 = arith.constant 0 : index
    %c0_58 = arith.constant 0 : index
    %173 = vector.load %arg4[%c0_57, %c0_58] : memref<4x8xf32, #tpu.memory_space<vmem>>, vector<4x8xf32>
    %cst_59 = arith.constant dense<0.000000e+00> : vector<4x512xf32>
    %174 = tpu.matmul %173, %172, %cst_59 {dimension_numbers = #tpu.dot_dimension_numbers<[1], [0], [0], [1], [0, 0, 1, 1], [], []>} : vector<4x8xf32>, vector<8x512xf32>, vector<4x512xf32> -> vector<4x512xf32>
    %cst_60 = arith.constant dense<0.000000e+00> : vector<4xf32>
    %175 = vector.multi_reduction <add>, %174, %cst_60 [1] : vector<4x512xf32> to vector<4xf32>
    %176 = vector.shape_cast %175 : vector<4xf32> to vector<4x1xf32>
    %cst_61 = arith.constant 5.120000e+02 : f32
    %177 = vector.broadcast %cst_61 : f32 to vector<4x1xf32>
    %178 = arith.divf %176, %177 : vector<4x1xf32>
    %179 = vector.broadcast %178 : vector<4x1xf32> to vector<4x512xf32>
    %180 = arith.subf %174, %179 : vector<4x512xf32>
    %181 = arith.mulf %180, %180 : vector<4x512xf32>
    %cst_62 = arith.constant dense<0.000000e+00> : vector<4xf32>
    %182 = vector.multi_reduction <add>, %181, %cst_62 [1] : vector<4x512xf32> to vector<4xf32>
    %183 = vector.shape_cast %182 : vector<4xf32> to vector<4x1xf32>
    %cst_63 = arith.constant 5.120000e+02 : f32
    %184 = vector.broadcast %cst_63 : f32 to vector<4x1xf32>
    %185 = arith.divf %183, %184 : vector<4x1xf32>
    %cst_64 = arith.constant 9.99999974E-6 : f32
    %186 = vector.broadcast %cst_64 : f32 to vector<4x1xf32>
    %187 = arith.addf %185, %186 : vector<4x1xf32>
    %188 = math.rsqrt %187 : vector<4x1xf32>
    %189 = vector.broadcast %188 : vector<4x1xf32> to vector<4x512xf32>
    %190 = arith.mulf %180, %189 : vector<4x512xf32>
    %c0_65 = arith.constant 0 : index
    %c0_66 = arith.constant 0 : index
    %191 = vector.load %arg11[%c0_65, %c0_66] : memref<1x512xf32, #tpu.memory_space<vmem>>, vector<1x512xf32>
    %192 = vector.broadcast %191 : vector<1x512xf32> to vector<4x512xf32>
    %193 = arith.mulf %190, %192 : vector<4x512xf32>
    %c0_67 = arith.constant 0 : index
    %c0_68 = arith.constant 0 : index
    %194 = vector.load %arg12[%c0_67, %c0_68] : memref<1x512xf32, #tpu.memory_space<vmem>>, vector<1x512xf32>
    %195 = vector.broadcast %194 : vector<1x512xf32> to vector<4x512xf32>
    %196 = arith.addf %193, %195 : vector<4x512xf32>
    %c0_69 = arith.constant 0 : index
    %c0_70 = arith.constant 0 : index
    %197 = vector.load %arg2[%c0_69, %c0_70] : memref<4x768xbf16, #tpu.memory_space<vmem>>, vector<4x768xbf16>
    %c0_71 = arith.constant 0 : index
    %c0_72 = arith.constant 0 : index
    %198 = vector.load %arg13[%c0_71, %c0_72] : memref<768x512xbf16, #tpu.memory_space<vmem>>, vector<768x512xbf16>
    %cst_73 = arith.constant dense<0.000000e+00> : vector<4x512xf32>
    %199 = tpu.matmul %197, %198, %cst_73 {dimension_numbers = #tpu.dot_dimension_numbers<[1], [0], [0], [1], [0, 0, 1, 1], [], []>} : vector<4x768xbf16>, vector<768x512xbf16>, vector<4x512xf32> -> vector<4x512xf32>
    %c0_74 = arith.constant 0 : index
    %c0_75 = arith.constant 0 : index
    %200 = vector.load %arg14[%c0_74, %c0_75] : memref<1x512xf32, #tpu.memory_space<vmem>>, vector<1x512xf32>
    %201 = vector.broadcast %200 : vector<1x512xf32> to vector<4x512xf32>
    %202 = arith.addf %199, %201 : vector<4x512xf32>
    %cst_76 = arith.constant 0.000000e+00 : f32
    %203 = vector.broadcast %cst_76 : f32 to vector<4x512xf32>
    %204 = arith.maximumf %202, %203 : vector<4x512xf32>
    %205 = arith.truncf %196 : vector<4x512xf32> to vector<4x512xbf16>
    %c0_77 = arith.constant 0 : index
    %c0_78 = arith.constant 0 : index
    %206 = vector.load %arg15[%c0_77, %c0_78] : memref<512x512xbf16, #tpu.memory_space<vmem>>, vector<512x512xbf16>
    %cst_79 = arith.constant dense<0.000000e+00> : vector<4x512xf32>
    %207 = tpu.matmul %205, %206, %cst_79 {dimension_numbers = #tpu.dot_dimension_numbers<[1], [0], [0], [1], [0, 0, 1, 1], [], []>} : vector<4x512xbf16>, vector<512x512xbf16>, vector<4x512xf32> -> vector<4x512xf32>
    %208 = arith.truncf %204 : vector<4x512xf32> to vector<4x512xbf16>
    %c0_80 = arith.constant 0 : index
    %c0_81 = arith.constant 0 : index
    %209 = vector.load %arg16[%c0_80, %c0_81] : memref<512x512xbf16, #tpu.memory_space<vmem>>, vector<512x512xbf16>
    %cst_82 = arith.constant dense<0.000000e+00> : vector<4x512xf32>
    %210 = tpu.matmul %208, %209, %cst_82 {dimension_numbers = #tpu.dot_dimension_numbers<[1], [0], [0], [1], [0, 0, 1, 1], [], []>} : vector<4x512xbf16>, vector<512x512xbf16>, vector<4x512xf32> -> vector<4x512xf32>
    %211 = arith.addf %207, %210 : vector<4x512xf32>
    %c0_83 = arith.constant 0 : index
    %c0_84 = arith.constant 0 : index
    %212 = vector.load %arg17[%c0_83, %c0_84] : memref<1x512xf32, #tpu.memory_space<vmem>>, vector<1x512xf32>
    %213 = vector.broadcast %212 : vector<1x512xf32> to vector<4x512xf32>
    %214 = arith.addf %211, %213 : vector<4x512xf32>
    %cst_85 = arith.constant 0.000000e+00 : f32
    %215 = vector.broadcast %cst_85 : f32 to vector<4x512xf32>
    %216 = arith.maximumf %214, %215 : vector<4x512xf32>
    %217 = arith.truncf %216 : vector<4x512xf32> to vector<4x512xbf16>
    %c0_86 = arith.constant 0 : index
    %c0_87 = arith.constant 0 : index
    %218 = vector.load %arg18[%c0_86, %c0_87] : memref<512x128xbf16, #tpu.memory_space<vmem>>, vector<512x128xbf16>
    %cst_88 = arith.constant dense<0.000000e+00> : vector<4x128xf32>
    %219 = tpu.matmul %217, %218, %cst_88 {dimension_numbers = #tpu.dot_dimension_numbers<[1], [0], [0], [1], [0, 0, 1, 1], [], []>} : vector<4x512xbf16>, vector<512x128xbf16>, vector<4x128xf32> -> vector<4x128xf32>
    %c0_89 = arith.constant 0 : index
    %c0_90 = arith.constant 0 : index
    %220 = vector.load %arg19[%c0_89, %c0_90] : memref<1x128xf32, #tpu.memory_space<vmem>>, vector<1x128xf32>
    %221 = vector.broadcast %220 : vector<1x128xf32> to vector<4x128xf32>
    %222 = arith.addf %219, %221 : vector<4x128xf32>
    %c0_91 = arith.constant 0 : index
    %c0_92 = arith.constant 0 : index
    %223 = vector.load %arg20[%c0_91, %c0_92] : memref<4x128xf32, #tpu.memory_space<vmem>>, vector<4x128xf32>
    tpu.vector_store %arg20[%c0_91, %c0_92], %222 {strides = array<i32>} : memref<4x128xf32, #tpu.memory_space<vmem>>, vector<4x128xf32>,
    return
  }
  func.func @transform_0(%arg0: i32) -> (i32, i32) {
    %c0_i32 = arith.constant 0 : i32
    %c0_i32_0 = arith.constant 0 : i32
    return %arg0, %c0_i32 : i32, i32
  }
  func.func @transform_1(%arg0: i32) -> (i32, i32) {
    %c0_i32 = arith.constant 0 : i32
    %c0_i32_0 = arith.constant 0 : i32
    return %arg0, %c0_i32 : i32, i32
  }
  func.func @transform_2(%arg0: i32) -> (i32, i32) {
    %c0_i32 = arith.constant 0 : i32
    %c0_i32_0 = arith.constant 0 : i32
    %c0_i32_1 = arith.constant 0 : i32
    return %c0_i32, %c0_i32_0 : i32, i32
  }
  func.func @transform_3(%arg0: i32) -> (i32, i32) {
    %c0_i32 = arith.constant 0 : i32
    %c0_i32_0 = arith.constant 0 : i32
    %c0_i32_1 = arith.constant 0 : i32
    return %c0_i32, %c0_i32_0 : i32, i32
  }
  func.func @transform_4(%arg0: i32) -> (i32, i32) {
    %c0_i32 = arith.constant 0 : i32
    %c0_i32_0 = arith.constant 0 : i32
    %c0_i32_1 = arith.constant 0 : i32
    return %c0_i32, %c0_i32_0 : i32, i32
  }
  func.func @transform_5(%arg0: i32) -> (i32, i32) {
    %c0_i32 = arith.constant 0 : i32
    %c0_i32_0 = arith.constant 0 : i32
    %c0_i32_1 = arith.constant 0 : i32
    return %c0_i32, %c0_i32_0 : i32, i32
  }
  func.func @transform_6(%arg0: i32) -> (i32, i32) {
    %c0_i32 = arith.constant 0 : i32
    %c0_i32_0 = arith.constant 0 : i32
    %c0_i32_1 = arith.constant 0 : i32
    return %c0_i32, %c0_i32_0 : i32, i32
  }
  func.func @transform_7(%arg0: i32) -> (i32, i32) {
    %c0_i32 = arith.constant 0 : i32
    %c0_i32_0 = arith.constant 0 : i32
    %c0_i32_1 = arith.constant 0 : i32
    return %c0_i32, %c0_i32_0 : i32, i32
  }
  func.func @transform_8(%arg0: i32) -> (i32, i32) {
    %c0_i32 = arith.constant 0 : i32
    %c0_i32_0 = arith.constant 0 : i32
    %c0_i32_1 = arith.constant 0 : i32
    return %c0_i32, %c0_i32_0 : i32, i32
  }
  func.func @transform_9(%arg0: i32) -> (i32, i32) {
    %c0_i32 = arith.constant 0 : i32
    %c0_i32_0 = arith.constant 0 : i32
    %c0_i32_1 = arith.constant 0 : i32
    return %c0_i32, %c0_i32_0 : i32, i32
  }
  func.func @transform_10(%arg0: i32) -> (i32, i32) {
    %c0_i32 = arith.constant 0 : i32
    %c0_i32_0 = arith.constant 0 : i32
    %c0_i32_1 = arith.constant 0 : i32
    return %c0_i32, %c0_i32_0 : i32, i32
  }
  func.func @transform_11(%arg0: i32) -> (i32, i32) {
    %c0_i32 = arith.constant 0 : i32
    %c0_i32_0 = arith.constant 0 : i32
    %c0_i32_1 = arith.constant 0 : i32
    return %c0_i32, %c0_i32_0 : i32, i32
  }
  func.func @transform_12(%arg0: i32) -> (i32, i32) {
    %c0_i32 = arith.constant 0 : i32
    %c0_i32_0 = arith.constant 0 : i32
    %c0_i32_1 = arith.constant 0 : i32
    return %c0_i32, %c0_i32_0 : i32, i32
  }
  func.func @transform_13(%arg0: i32) -> (i32, i32) {
    %c0_i32 = arith.constant 0 : i32
    %c0_i32_0 = arith.constant 0 : i32
    %c0_i32_1 = arith.constant 0 : i32
    return %c0_i32, %c0_i32_0 : i32, i32
  }
  func.func @transform_14(%arg0: i32) -> (i32, i32) {
    %c0_i32 = arith.constant 0 : i32
    %c0_i32_0 = arith.constant 0 : i32
    %c0_i32_1 = arith.constant 0 : i32
    return %c0_i32, %c0_i32_0 : i32, i32
  }
  func.func @transform_15(%arg0: i32) -> (i32, i32) {
    %c0_i32 = arith.constant 0 : i32
    %c0_i32_0 = arith.constant 0 : i32
    %c0_i32_1 = arith.constant 0 : i32
    return %c0_i32, %c0_i32_0 : i32, i32
  }
  func.func @transform_16(%arg0: i32) -> (i32, i32) {
    %c0_i32 = arith.constant 0 : i32
    %c0_i32_0 = arith.constant 0 : i32
    %c0_i32_1 = arith.constant 0 : i32
    return %c0_i32, %c0_i32_0 : i32, i32
  }
  func.func @transform_17(%arg0: i32) -> (i32, i32) {
    %c0_i32 = arith.constant 0 : i32
    %c0_i32_0 = arith.constant 0 : i32
    %c0_i32_1 = arith.constant 0 : i32
    return %c0_i32, %c0_i32_0 : i32, i32
  }
  func.func @transform_18(%arg0: i32) -> (i32, i32) {
    %c0_i32 = arith.constant 0 : i32
    %c0_i32_0 = arith.constant 0 : i32
    %c0_i32_1 = arith.constant 0 : i32
    return %c0_i32, %c0_i32_0 : i32, i32
  }
  func.func @transform_19(%arg0: i32) -> (i32, i32) {
    %c0_i32 = arith.constant 0 : i32
    %c0_i32_0 = arith.constant 0 : i32
    return %arg0, %c0_i32 : i32, i32
  }
}

</mosaic_0001>

<bundles_post_ra>
// kernel: tpu_custom_call.1
= control target key start
LH: loop header
LB: loop body
LE: loop exit
PB: predicated region body
PF: predicated region fallthrough
CT: control target
= control target key end

     0   :  { %s14570_s0 = inlined_call_operand.hbm [shape: bf16[8,512], index: 0, kind: input, shape index: {}]   ;;  %s14571_s1 = inlined_call_operand.hbm [shape: bf16[4,768], index: 1, kind: input, shape index: {}]   ;;  %s14572_s2 = inlined_call_operand.hbm [shape: f32[8,8], index: 2, kind: input, shape index: {}]   ;;  %s14573_s3 = inlined_call_operand.hbm [shape: f32[4,8], index: 3, kind: input, shape index: {}]   ;;  %s14574_s4 = inlined_call_operand.hbm [shape: bf16[512,512], index: 4, kind: input, shape index: {}]   ;;  %s14575_s5 = inlined_call_operand.hbm [shape: f32[1,512], index: 5, kind: input, shape index: {}]   ;;  %s14576_s6 = inlined_call_operand.hbm [shape: bf16[512,1536], index: 6, kind: input, shape index: {}]   ;;  %s14577_s7 = inlined_call_operand.hbm [shape: f32[1,1536], index: 7, kind: input, shape index: {}]   ;;  %s14578_s8 = inlined_call_operand.hbm [shape: bf16[512,512], index: 8, kind: input, shape index: {}]   ;;  %s14579_s9 = inlined_call_operand.hbm [shape: f32[1,512], index: 9, kind: input, shape index: {}]   ;;  %s14580_s10 = inlined_call_operand.hbm [shape: f32[1,512], index: 10, kind: input, shape index: {}]   ;;  %s14581_s11 = inlined_call_operand.hbm [shape: f32[1,512], index: 11, kind: input, shape index: {}]   ;;  %s14582_s12 = inlined_call_operand.hbm [shape: bf16[768,512], index: 12, kind: input, shape index: {}]   ;;  %s14583_s13 = inlined_call_operand.hbm [shape: f32[1,512], index: 13, kind: input, shape index: {}]   ;;  %s14584_s14 = inlined_call_operand.hbm [shape: bf16[512,512], index: 14, kind: input, shape index: {}]   ;;  %s14585_s15 = inlined_call_operand.hbm [shape: bf16[512,512], index: 15, kind: input, shape index: {}]   ;;  %s14586_s16 = inlined_call_operand.hbm [shape: f32[1,512], index: 16, kind: input, shape index: {}]   ;;  %s14587_s17 = inlined_call_operand.hbm [shape: bf16[512,128], index: 17, kind: input, shape index: {}]   ;;  %s14588_s18 = inlined_call_operand.hbm [shape: f32[1,128], index: 18, kind: input, shape index: {}]   ;;  %s14589_s19 = inlined_call_operand.hbm [shape: f32[4,128], index: 19, kind: output, shape index: {}]  }
   0x1   :  { %14594 = sst [smem:[#allocation45_spill]] %s14570_s0 }
   0x2   :  { %14595 = sst [smem:[#allocation46_spill]] %s14571_s1 }
   0x3   :  { %14596 = sst [smem:[#allocation47_spill]] %s14572_s2 }
   0x4   :  { %14597 = sst [smem:[#allocation48_spill]] %s14573_s3 }
   0x5   :  { %24 = vsyncpa [#allocation4], 0 }
   0x6   :  { %25 = vsyncpa [#allocation7], 0 }
   0x7   :  { %26 = vsyncpa [#allocation10], 0 }
   0x8   :  { %27 = vsyncpa [#allocation13], 0 }
   0x9   :  { %28 = vsyncpa [#allocation16], 0 }
   0xa   :  { %29 = vsyncpa [#allocation19], 0 }
   0xb   :  { %30 = vsyncpa [#allocation22], 0 }
   0xc   :  { %31 = vsyncpa [#allocation25], 0 }
   0xd   :  { %32 = vsyncpa [#allocation28], 0 }
   0xe   :  { %33 = vsyncpa [#allocation31], 0 }
   0xf   :  { %34 = vsyncpa [#allocation5], 0  ;;  %s13763_s0 = smov [#allocation6]   ;;  %s13764_s20 = smov [#allocation9]  }
  0x10   :  { %s51_s30 = sshll.u32 %s13763_s0, 4  ;;  %s71_s21 = sshll.u32 %s13764_s20, 4  ;;  %s52_s30 = int_to_ptr.vmem [resolvable:$true] %s51_s30  ;;  %s72_s21 = int_to_ptr.vmem [resolvable:$true] %s71_s21 }
  0x11   :  { %s14598_s2 = sld [smem:[#allocation46_spill]] }
  0x17   :  { %s13301_s23 = scalar_lea.hbm %s14598_s2, 192 }
  0x18   :  { %p13302_p0 = scmp.ne.s32.totalorder %s14598_s2, %s13301_s23  ;;  %p13305_p1 = scmp.lt.u32.totalorder %s13301_s23, %s14598_s2 }
  0x1a   :  { %p13307_p2 = pnand %p13305_p1, %p13302_p0 }
  0x1c   :  { %13310 = shalt.err (!%p13307_p2)
}
  0x1d   :  { %s13311_s27 = scalar_lea.vmem %s52_s30, 192  ;;  %p13316_p4 = scmp.lt.s32.totalorder %s52_s30, %s52_s30 }
  0x1e   :  { %p13312_p3 = scmp.ne.s32.totalorder %s52_s30, %s13311_s27  ;;  %p13317_p5 = scmp.lt.s32.totalorder %s13311_s27, %s13311_s27 }
  0x20   :  { %p13318_p6 = por %p13317_p5, %p13316_p4 }
  0x22   :  { %p13319_p7 = pnand %p13318_p6, %p13312_p3 }
  0x24   :  { %13322 = shalt.err (!%p13319_p7)
}
  0x25   :  { %54 = dma.hbm_to_vmem [thread:$0]  %s14598_s2, 192, %s52_s30, [#allocation7]  }
  0x26   :  { %s14599_s1 = sld [smem:[#allocation48_spill]] }
  0x2c   :  { %s13323_s22 = scalar_lea.hbm %s14599_s1, 64 }
  0x2d   :  { %p13324_p8 = scmp.ne.s32.totalorder %s14599_s1, %s13323_s22  ;;  %p13327_p9 = scmp.lt.u32.totalorder %s13323_s22, %s14599_s1 }
  0x2f   :  { %p13329_p10 = pnand %p13327_p9, %p13324_p8 }
  0x31   :  { %13332 = shalt.err (!%p13329_p10)
}
  0x32   :  { %s13333_s26 = scalar_lea.vmem %s72_s21, 64  ;;  %p13338_p12 = scmp.lt.s32.totalorder %s72_s21, %s72_s21 }
  0x33   :  { %p13334_p11 = scmp.ne.s32.totalorder %s72_s21, %s13333_s26  ;;  %p13339_p13 = scmp.lt.s32.totalorder %s13333_s26, %s13333_s26 }
  0x35   :  { %p13340_p0 = por %p13339_p13, %p13338_p12 }
  0x37   :  { %p13341_p1 = pnand %p13340_p0, %p13334_p11 }
  0x39   :  { %13344 = shalt.err (!%p13341_p1)
}
  0x3a   :  { %74 = dma.hbm_to_vmem [thread:$0]  %s14599_s1, 64, %s72_s21, [#allocation10]  }
  0x3b   :  { %s13765_s27 = smov [#allocation12]   ;;  %s13766_s29 = smov [#allocation15]  }
  0x3c   :  { %s93_s28 = sshll.u32 %s13765_s27, 4  ;;  %s115_s0 = sshll.u32 %s13766_s29, 4  ;;  %s94_s28 = int_to_ptr.vmem [resolvable:$true] %s93_s28  ;;  %s116_s0 = int_to_ptr.vmem [resolvable:$true] %s115_s0 }
  0x3d   :  { %s13345_s24 = scalar_lea.hbm %s14575_s5, 64 }
  0x3e   :  { %p13346_p2 = scmp.ne.s32.totalorder %s14575_s5, %s13345_s24  ;;  %p13349_p3 = scmp.lt.u32.totalorder %s13345_s24, %s14575_s5 }
  0x40   :  { %p13351_p4 = pnand %p13349_p3, %p13346_p2 }
  0x42   :  { %13354 = shalt.err (!%p13351_p4)
}
  0x43   :  { %s13355_s21 = scalar_lea.vmem %s94_s28, 64  ;;  %p13360_p6 = scmp.lt.s32.totalorder %s94_s28, %s94_s28 }
  0x44   :  { %p13356_p5 = scmp.ne.s32.totalorder %s94_s28, %s13355_s21  ;;  %p13361_p7 = scmp.lt.s32.totalorder %s13355_s21, %s13355_s21 }
  0x46   :  { %p13362_p8 = por %p13361_p7, %p13360_p6 }
  0x48   :  { %p13363_p9 = pnand %p13362_p8, %p13356_p5 }
  0x4a   :  { %13366 = shalt.err (!%p13363_p9)
}
  0x4b   :  { %96 = dma.hbm_to_vmem [thread:$0]  %s14575_s5, 64, %s94_s28, [#allocation13]  }
  0x4c   :  { %s13367_s29 = scalar_lea.hbm %s14577_s7, 192 }
  0x4d   :  { %p13368_p10 = scmp.ne.s32.totalorder %s14577_s7, %s13367_s29  ;;  %p13371_p11 = scmp.lt.u32.totalorder %s13367_s29, %s14577_s7 }
  0x4f   :  { %p13373_p12 = pnand %p13371_p11, %p13368_p10 }
  0x51   :  { %13376 = shalt.err (!%p13373_p12)
}
  0x52   :  { %s13377_s23 = scalar_lea.vmem %s116_s0, 192  ;;  %p13382_p0 = scmp.lt.s32.totalorder %s116_s0, %s116_s0 }
  0x53   :  { %p13378_p13 = scmp.ne.s32.totalorder %s116_s0, %s13377_s23  ;;  %p13383_p1 = scmp.lt.s32.totalorder %s13377_s23, %s13377_s23 }
  0x55   :  { %p13384_p2 = por %p13383_p1, %p13382_p0 }
  0x57   :  { %p13385_p3 = pnand %p13384_p2, %p13378_p13 }
  0x59   :  { %13388 = shalt.err (!%p13385_p3)
}
  0x5a   :  { %118 = dma.hbm_to_vmem [thread:$0]  %s14577_s7, 192, %s116_s0, [#allocation16]  }
  0x5b   :  { %s13767_s3 = smov [#allocation18]   ;;  %s13768_s21 = smov [#allocation21]  }
  0x5c   :  { %s137_s26 = sshll.u32 %s13767_s3, 4  ;;  %s157_s1 = sshll.u32 %s13768_s21, 4  ;;  %s138_s26 = int_to_ptr.vmem [resolvable:$true] %s137_s26  ;;  %s158_s1 = int_to_ptr.vmem [resolvable:$true] %s157_s1 }
  0x5d   :  { %s13389_s27 = scalar_lea.hbm %s14579_s9, 64 }
  0x5e   :  { %p13390_p4 = scmp.ne.s32.totalorder %s14579_s9, %s13389_s27  ;;  %p13393_p5 = scmp.lt.u32.totalorder %s13389_s27, %s14579_s9 }
  0x60   :  { %p13395_p6 = pnand %p13393_p5, %p13390_p4 }
  0x62   :  { %13398 = shalt.err (!%p13395_p6)
}
  0x63   :  { %s13399_s7 = scalar_lea.vmem %s138_s26, 64  ;;  %p13404_p8 = scmp.lt.s32.totalorder %s138_s26, %s138_s26 }
  0x64   :  { %p13400_p7 = scmp.ne.s32.totalorder %s138_s26, %s13399_s7  ;;  %p13405_p9 = scmp.lt.s32.totalorder %s13399_s7, %s13399_s7 }
  0x66   :  { %p13406_p10 = por %p13405_p9, %p13404_p8 }
  0x68   :  { %p13407_p11 = pnand %p13406_p10, %p13400_p7 }
  0x6a   :  { %13410 = shalt.err (!%p13407_p11)
}
  0x6b   :  { %140 = dma.hbm_to_vmem [thread:$0]  %s14579_s9, 64, %s138_s26, [#allocation19]  }
  0x6c   :  { %s13411_s28 = scalar_lea.hbm %s14581_s11, 64 }
  0x6d   :  { %p13412_p12 = scmp.ne.s32.totalorder %s14581_s11, %s13411_s28  ;;  %p13415_p13 = scmp.lt.u32.totalorder %s13411_s28, %s14581_s11 }
  0x6f   :  { %p13417_p0 = pnand %p13415_p13, %p13412_p12 }
  0x71   :  { %13420 = shalt.err (!%p13417_p0)
}
  0x72   :  { %s13421_s27 = scalar_lea.vmem %s158_s1, 64  ;;  %p13426_p2 = scmp.lt.s32.totalorder %s158_s1, %s158_s1 }
  0x73   :  { %p13422_p1 = scmp.ne.s32.totalorder %s158_s1, %s13421_s27  ;;  %p13427_p3 = scmp.lt.s32.totalorder %s13421_s27, %s13421_s27 }
  0x75   :  { %p13428_p4 = por %p13427_p3, %p13426_p2 }
  0x77   :  { %p13429_p5 = pnand %p13428_p4, %p13422_p1 }
  0x79   :  { %13432 = shalt.err (!%p13429_p5)
}
  0x7a   :  { %160 = dma.hbm_to_vmem [thread:$0]  %s14581_s11, 64, %s158_s1, [#allocation22]  }
  0x7b   :  { %s13769_s29 = smov [#allocation24]   ;;  %s13433_s7 = scalar_lea.hbm %s14583_s13, 64 }
  0x7c   :  { %s179_s20 = sshll.u32 %s13769_s29, 4  ;;  %p13434_p6 = scmp.ne.s32.totalorder %s14583_s13, %s13433_s7  ;;  %s180_s20 = int_to_ptr.vmem [resolvable:$true] %s179_s20 }
  0x7d   :  { %p13437_p7 = scmp.lt.u32.totalorder %s13433_s7, %s14583_s13 }
  0x7f   :  { %p13439_p8 = pnand %p13437_p7, %p13434_p6 }
  0x81   :  { %13442 = shalt.err (!%p13439_p8)
}
  0x82   :  { %s13443_s28 = scalar_lea.vmem %s180_s20, 64  ;;  %p13448_p10 = scmp.lt.s32.totalorder %s180_s20, %s180_s20 }
  0x83   :  { %p13444_p9 = scmp.ne.s32.totalorder %s180_s20, %s13443_s28  ;;  %p13449_p11 = scmp.lt.s32.totalorder %s13443_s28, %s13443_s28 }
  0x85   :  { %p13450_p12 = por %p13449_p11, %p13448_p10 }
  0x87   :  { %p13451_p13 = pnand %p13450_p12, %p13444_p9 }
  0x89   :  { %13454 = shalt.err (!%p13451_p13)
}
  0x8a   :  { %182 = dma.hbm_to_vmem [thread:$0]  %s14583_s13, 64, %s180_s20, [#allocation25]  }
  0x8b   :  { %s13770_s3 = smov [#allocation27]   ;;  %s13771_s30 = smov [#allocation30]  }
  0x8c   :  { %s200_s21 = sshll.u32 %s13770_s3, 4  ;;  %s222_s2 = sshll.u32 %s13771_s30, 4  ;;  %s201_s21 = int_to_ptr.vmem [resolvable:$true] %s200_s21  ;;  %s223_s2 = int_to_ptr.vmem [resolvable:$true] %s222_s2 }
  0x8d   :  { %s13455_s26 = scalar_lea.hbm %s14585_s15, 16384 }
  0x8e   :  { %p13456_p0 = scmp.ne.s32.totalorder %s14585_s15, %s13455_s26  ;;  %p13459_p1 = scmp.lt.u32.totalorder %s13455_s26, %s14585_s15 }
  0x90   :  { %p13461_p2 = pnand %p13459_p1, %p13456_p0 }
  0x92   :  { %13464 = shalt.err (!%p13461_p2)
}
  0x93   :  { %s13465_s13 = scalar_lea.vmem %s201_s21, 16384  ;;  %p13470_p4 = scmp.lt.s32.totalorder %s201_s21, %s201_s21 }
  0x94   :  { %p13466_p3 = scmp.ne.s32.totalorder %s201_s21, %s13465_s13  ;;  %p13471_p5 = scmp.lt.s32.totalorder %s13465_s13, %s13465_s13 }
  0x96   :  { %p13472_p6 = por %p13471_p5, %p13470_p4 }
  0x98   :  { %p13473_p7 = pnand %p13472_p6, %p13466_p3 }
  0x9a   :  { %13476 = shalt.err (!%p13473_p7)
}
  0x9b   :  { %s13772_s20 = smov 256   ;;  %s13773_s0 = smov 16  }
  0x9c   :  { %206 = dma.hbm_to_vmem [thread:$0]  %s14585_s15, 16384, %s201_s21, [#allocation28], %s13772_s20, %s13772_s20, %s13773_s0  }
  0x9d   :  { %s13477_s11 = scalar_lea.hbm %s14587_s17, 4096 }
  0x9e   :  { %p13478_p8 = scmp.ne.s32.totalorder %s14587_s17, %s13477_s11  ;;  %p13481_p9 = scmp.lt.u32.totalorder %s13477_s11, %s14587_s17 }
  0xa0   :  { %p13483_p10 = pnand %p13481_p9, %p13478_p8 }
  0xa2   :  { %13486 = shalt.err (!%p13483_p10)
}
  0xa3   :  { %s13487_s9 = scalar_lea.vmem %s223_s2, 4096  ;;  %p13492_p12 = scmp.lt.s32.totalorder %s223_s2, %s223_s2 }
  0xa4   :  { %p13488_p11 = scmp.ne.s32.totalorder %s223_s2, %s13487_s9  ;;  %p13493_p13 = scmp.lt.s32.totalorder %s13487_s9, %s13487_s9 }
  0xa6   :  { %p13494_p0 = por %p13493_p13, %p13492_p12 }
  0xa8   :  { %p13495_p1 = pnand %p13494_p0, %p13488_p11 }
  0xaa   :  { %13498 = shalt.err (!%p13495_p1)
}
  0xab   :  { %s13774_s15 = smov 64   ;;  %s13775_s21 = smov 4  }
  0xac   :  { %228 = dma.hbm_to_vmem [thread:$0]  %s14587_s17, 4096, %s223_s2, [#allocation31], %s13774_s15, %s13774_s15, %s13775_s21  }
  0xad   :  { %s13776_s22 = smov [#allocation3]   ;;  %s13777_s7 = smov [#allocation8]  }
  0xae   :  { %s41_s24 = sshll.u32 %s13776_s22, 4  ;;  %s61_s13 = sshll.u32 %s13777_s7, 4  ;;  %s42_s24 = int_to_ptr.vmem [resolvable:$true] %s41_s24  ;;  %s62_s13 = int_to_ptr.vmem [resolvable:$true] %s61_s13 }
  0xaf   :  { %s14600_s5 = sld [smem:[#allocation45_spill]] }
  0xb5   :  { %s13499_s28 = scalar_lea.hbm %s14600_s5, 256 }
  0xb6   :  { %p13500_p2 = scmp.ne.s32.totalorder %s14600_s5, %s13499_s28  ;;  %p13503_p3 = scmp.lt.u32.totalorder %s13499_s28, %s14600_s5 }
  0xb8   :  { %p13505_p4 = pnand %p13503_p3, %p13500_p2 }
  0xba   :  { %13508 = shalt.err (!%p13505_p4)
}
  0xbb   :  { %s13509_s17 = scalar_lea.vmem %s42_s24, 256  ;;  %p13514_p6 = scmp.lt.s32.totalorder %s42_s24, %s42_s24 }
  0xbc   :  { %p13510_p5 = scmp.ne.s32.totalorder %s42_s24, %s13509_s17  ;;  %p13515_p7 = scmp.lt.s32.totalorder %s13509_s17, %s13509_s17 }
  0xbe   :  { %p13516_p8 = por %p13515_p7, %p13514_p6 }
  0xc0   :  { %p13517_p9 = pnand %p13516_p8, %p13510_p5 }
  0xc2   :  { %13520 = shalt.err (!%p13517_p9)
}
  0xc3   :  { %44 = dma.hbm_to_vmem [thread:$0]  %s14600_s5, 256, %s42_s24, [#allocation4]  }
  0xc4   :  { %s14601_s26 = sld [smem:[#allocation47_spill]] }
  0xca   :  { %s13521_s29 = scalar_lea.hbm %s14601_s26, 128 }
  0xcb   :  { %p13522_p10 = scmp.ne.s32.totalorder %s14601_s26, %s13521_s29  ;;  %p13525_p11 = scmp.lt.u32.totalorder %s13521_s29, %s14601_s26 }
  0xcd   :  { %p13527_p12 = pnand %p13525_p11, %p13522_p10 }
  0xcf   :  { %13530 = shalt.err (!%p13527_p12)
}
  0xd0   :  { %s13531_s28 = scalar_lea.vmem %s62_s13, 128  ;;  %p13536_p0 = scmp.lt.s32.totalorder %s62_s13, %s62_s13 }
  0xd1   :  { %p13532_p13 = scmp.ne.s32.totalorder %s62_s13, %s13531_s28  ;;  %p13537_p1 = scmp.lt.s32.totalorder %s13531_s28, %s13531_s28 }
  0xd3   :  { %p13538_p2 = por %p13537_p1, %p13536_p0 }
  0xd5   :  { %p13539_p3 = pnand %p13538_p2, %p13532_p13 }
  0xd7   :  { %13542 = shalt.err (!%p13539_p3)
}
  0xd8   :  { %64 = dma.hbm_to_vmem [thread:$0]  %s14601_s26, 128, %s62_s13, [#allocation7]  }
  0xd9   :  { %s13778_s11 = smov [#allocation11]   ;;  %s13779_s3 = smov [#allocation14]  }
  0xda   :  { %s80_s1 = sshll.u32 %s13778_s11, 4  ;;  %s102_s30 = sshll.u32 %s13779_s3, 4  ;;  %s81_s1 = int_to_ptr.vmem [resolvable:$true] %s80_s1  ;;  %s103_s30 = int_to_ptr.vmem [resolvable:$true] %s102_s30 }
  0xdb   :  { %s13543_s27 = scalar_lea.hbm %s14574_s4, 16384 }
  0xdc   :  { %p13544_p4 = scmp.ne.s32.totalorder %s14574_s4, %s13543_s27  ;;  %p13547_p5 = scmp.lt.u32.totalorder %s13543_s27, %s14574_s4 }
  0xde   :  { %p13549_p6 = pnand %p13547_p5, %p13544_p4 }
  0xe0   :  { %13552 = shalt.err (!%p13549_p6)
}
  0xe1   :  { %s13553_s13 = scalar_lea.vmem %s81_s1, 16384  ;;  %p13558_p8 = scmp.lt.s32.totalorder %s81_s1, %s81_s1 }
  0xe2   :  { %p13554_p7 = scmp.ne.s32.totalorder %s81_s1, %s13553_s13  ;;  %p13559_p9 = scmp.lt.s32.totalorder %s13553_s13, %s13553_s13 }
  0xe4   :  { %p13560_p10 = por %p13559_p9, %p13558_p8 }
  0xe6   :  { %p13561_p11 = pnand %p13560_p10, %p13554_p7 }
  0xe8   :  { %13564 = shalt.err (!%p13561_p11)
}
  0xe9   :  { %86 = dma.hbm_to_vmem [thread:$0]  %s14574_s4, 16384, %s81_s1, [#allocation10], %s13772_s20, %s13772_s20, %s13773_s0  }
  0xea   :  { %s13565_s28 = scalar_lea.hbm %s14576_s6, 49152 }
  0xeb   :  { %p13566_p12 = scmp.ne.s32.totalorder %s14576_s6, %s13565_s28  ;;  %p13569_p13 = scmp.lt.u32.totalorder %s13565_s28, %s14576_s6 }
  0xed   :  { %p13571_p0 = pnand %p13569_p13, %p13566_p12 }
  0xef   :  { %13574 = shalt.err (!%p13571_p0)
}
  0xf0   :  { %s13575_s17 = scalar_lea.vmem %s103_s30, 49152  ;;  %p13580_p2 = scmp.lt.s32.totalorder %s103_s30, %s103_s30 }
  0xf1   :  { %p13576_p1 = scmp.ne.s32.totalorder %s103_s30, %s13575_s17  ;;  %p13581_p3 = scmp.lt.s32.totalorder %s13575_s17, %s13575_s17 }
  0xf3   :  { %p13582_p4 = por %p13581_p3, %p13580_p2 }
  0xf5   :  { %p13583_p5 = pnand %p13582_p4, %p13576_p1 }
  0xf7   :  { %13586 = shalt.err (!%p13583_p5)
}
  0xf8   :  { %s13780_s4 = smov 768   ;;  %s13781_s1 = smov 48  }
  0xf9   :  { %108 = dma.hbm_to_vmem [thread:$0]  %s14576_s6, 49152, %s103_s30, [#allocation13], %s13780_s4, %s13780_s4, %s13781_s1  }
  0xfa   :  { %s13782_s9 = smov [#allocation17]   ;;  %s13783_s29 = smov [#allocation20]  }
  0xfb   :  { %s124_s21 = sshll.u32 %s13782_s9, 4  ;;  %s147_s22 = sshll.u32 %s13783_s29, 4  ;;  %s125_s21 = int_to_ptr.vmem [resolvable:$true] %s124_s21  ;;  %s148_s22 = int_to_ptr.vmem [resolvable:$true] %s147_s22 }
  0xfc   :  { %s13587_s7 = scalar_lea.hbm %s14578_s8, 16384 }
  0xfd   :  { %p13588_p6 = scmp.ne.s32.totalorder %s14578_s8, %s13587_s7  ;;  %p13591_p7 = scmp.lt.u32.totalorder %s13587_s7, %s14578_s8 }
  0xff   :  { %p13593_p8 = pnand %p13591_p7, %p13588_p6 }
 0x101   :  { %13596 = shalt.err (!%p13593_p8)
}
 0x102   :  { %s13597_s6 = scalar_lea.vmem %s125_s21, 16384  ;;  %p13602_p10 = scmp.lt.s32.totalorder %s125_s21, %s125_s21 }
 0x103   :  { %p13598_p9 = scmp.ne.s32.totalorder %s125_s21, %s13597_s6  ;;  %p13603_p11 = scmp.lt.s32.totalorder %s13597_s6, %s13597_s6 }
 0x105   :  { %p13604_p12 = por %p13603_p11, %p13602_p10 }
 0x107   :  { %p13605_p13 = pnand %p13604_p12, %p13598_p9 }
 0x109   :  { %13608 = shalt.err (!%p13605_p13)
}
 0x10a   :  { %130 = dma.hbm_to_vmem [thread:$0]  %s14578_s8, 16384, %s125_s21, [#allocation16], %s13772_s20, %s13772_s20, %s13773_s0  }
 0x10b   :  { %s13609_s17 = scalar_lea.hbm %s14580_s10, 64 }
 0x10c   :  { %p13610_p0 = scmp.ne.s32.totalorder %s14580_s10, %s13609_s17  ;;  %p13613_p1 = scmp.lt.u32.totalorder %s13609_s17, %s14580_s10 }
 0x10e   :  { %p13615_p2 = pnand %p13613_p1, %p13610_p0 }
 0x110   :  { %13618 = shalt.err (!%p13615_p2)
}
 0x111   :  { %s13619_s9 = scalar_lea.vmem %s148_s22, 64  ;;  %p13624_p4 = scmp.lt.s32.totalorder %s148_s22, %s148_s22 }
 0x112   :  { %p13620_p3 = scmp.ne.s32.totalorder %s148_s22, %s13619_s9  ;;  %p13625_p5 = scmp.lt.s32.totalorder %s13619_s9, %s13619_s9 }
 0x114   :  { %p13626_p6 = por %p13625_p5, %p13624_p4 }
 0x116   :  { %p13627_p7 = pnand %p13626_p6, %p13620_p3 }
 0x118   :  { %13630 = shalt.err (!%p13627_p7)
}
 0x119   :  { %150 = dma.hbm_to_vmem [thread:$0]  %s14580_s10, 64, %s148_s22, [#allocation19]  }
 0x11a   :  { %s13784_s29 = smov [#allocation23]   ;;  %s13785_s26 = smov [#allocation26]  }
 0x11b   :  { %s166_s13 = sshll.u32 %s13784_s29, 4  ;;  %s188_s7 = sshll.u32 %s13785_s26, 4  ;;  %s167_s13 = int_to_ptr.vmem [resolvable:$true] %s166_s13  ;;  %s189_s7 = int_to_ptr.vmem [resolvable:$true] %s188_s7 }
 0x11c   :  { %s13631_s28 = scalar_lea.hbm %s14582_s12, 24576 }
 0x11d   :  { %p13632_p8 = scmp.ne.s32.totalorder %s14582_s12, %s13631_s28  ;;  %p13635_p9 = scmp.lt.u32.totalorder %s13631_s28, %s14582_s12 }
 0x11f   :  { %p13637_p10 = pnand %p13635_p9, %p13632_p8 }
 0x121   :  { %13640 = shalt.err (!%p13637_p10)
}
 0x122   :  { %s13641_s10 = scalar_lea.vmem %s167_s13, 24576  ;;  %p13646_p12 = scmp.lt.s32.totalorder %s167_s13, %s167_s13 }
 0x123   :  { %p13642_p11 = scmp.ne.s32.totalorder %s167_s13, %s13641_s10  ;;  %p13647_p13 = scmp.lt.s32.totalorder %s13641_s10, %s13641_s10 }
 0x125   :  { %p13648_p0 = por %p13647_p13, %p13646_p12 }
 0x127   :  { %p13649_p1 = pnand %p13648_p0, %p13642_p11 }
 0x129   :  { %13652 = shalt.err (!%p13649_p1)
}
 0x12a   :  { %172 = dma.hbm_to_vmem [thread:$0]  %s14582_s12, 24576, %s167_s13, [#allocation22], %s13772_s20, %s13772_s20, %s13773_s0  }
 0x12b   :  { %s13653_s4 = scalar_lea.hbm %s14584_s14, 16384 }
 0x12c   :  { %p13654_p2 = scmp.ne.s32.totalorder %s14584_s14, %s13653_s4  ;;  %p13657_p3 = scmp.lt.u32.totalorder %s13653_s4, %s14584_s14 }
 0x12e   :  { %p13659_p4 = pnand %p13657_p3, %p13654_p2 }
 0x130   :  { %13662 = shalt.err (!%p13659_p4)
}
 0x131   :  { %s13663_s8 = scalar_lea.vmem %s189_s7, 16384  ;;  %p13668_p6 = scmp.lt.s32.totalorder %s189_s7, %s189_s7 }
 0x132   :  { %p13664_p5 = scmp.ne.s32.totalorder %s189_s7, %s13663_s8  ;;  %p13669_p7 = scmp.lt.s32.totalorder %s13663_s8, %s13663_s8 }
 0x134   :  { %p13670_p8 = por %p13669_p7, %p13668_p6 }
 0x136   :  { %p13671_p9 = pnand %p13670_p8, %p13664_p5 }
 0x138   :  { %13674 = shalt.err (!%p13671_p9)
}
 0x139   :  { %194 = dma.hbm_to_vmem [thread:$0]  %s14584_s14, 16384, %s189_s7, [#allocation25], %s13772_s20, %s13772_s20, %s13773_s0  }
 0x13a   :  { %s13786_s29 = smov [#allocation29]   ;;  %s13787_s26 = smov [#allocation32]  }
 0x13b   :  { %s213_s13 = sshll.u32 %s13786_s29, 4  ;;  %s235_s25 = sshll.u32 %s13787_s26, 4  ;;  %s214_s13 = int_to_ptr.vmem [resolvable:$true] %s213_s13  ;;  %s236_s25 = int_to_ptr.vmem [resolvable:$true] %s235_s25 }
 0x13c   :  { %s13675_s24 = scalar_lea.hbm %s14586_s16, 64 }
 0x13d   :  { %p13676_p10 = scmp.ne.s32.totalorder %s14586_s16, %s13675_s24  ;;  %p13679_p11 = scmp.lt.u32.totalorder %s13675_s24, %s14586_s16 }
 0x13f   :  { %p13681_p12 = pnand %p13679_p11, %p13676_p10 }
 0x141   :  { %13684 = shalt.err (!%p13681_p12)
}
 0x142   :  { %s13685_s14 = scalar_lea.vmem %s214_s13, 64  ;;  %p13690_p0 = scmp.lt.s32.totalorder %s214_s13, %s214_s13 }
 0x143   :  { %p13686_p13 = scmp.ne.s32.totalorder %s214_s13, %s13685_s14  ;;  %p13691_p1 = scmp.lt.s32.totalorder %s13685_s14, %s13685_s14 }
 0x145   :  { %p13692_p2 = por %p13691_p1, %p13690_p0 }
 0x147   :  { %p13693_p3 = pnand %p13692_p2, %p13686_p13 }
 0x149   :  { %13696 = shalt.err (!%p13693_p3)
}
 0x14a   :  { %216 = dma.hbm_to_vmem [thread:$0]  %s14586_s16, 64, %s214_s13, [#allocation28]  }
 0x14b   :  { %s13697_s11 = scalar_lea.hbm %s14588_s18, 16 }
 0x14c   :  { %p13698_p4 = scmp.ne.s32.totalorder %s14588_s18, %s13697_s11  ;;  %p13701_p5 = scmp.lt.u32.totalorder %s13697_s11, %s14588_s18 }
 0x14e   :  { %p13703_p6 = pnand %p13701_p5, %p13698_p4 }
 0x150   :  { %13706 = shalt.err (!%p13703_p6)
}
 0x151   :  { %s13707_s2 = scalar_lea.vmem %s236_s25, 16  ;;  %s13711_s27 = scalar_lea.vmem %s236_s25, 32 }
 0x152   :  { %p13708_p7 = scmp.ne.s32.totalorder %s236_s25, %s13707_s2  ;;  %p13712_p8 = scmp.lt.s32.totalorder %s236_s25, %s236_s25 }
 0x153   :  { %p13713_p9 = scmp.lt.s32.totalorder %s13711_s27, %s13707_s2 }
 0x155   :  { %p13714_p10 = por %p13713_p9, %p13712_p8 }
 0x157   :  { %p13715_p11 = pnand %p13714_p10, %p13708_p7 }
 0x159   :  { %13718 = shalt.err (!%p13715_p11)
}
 0x15a   :  { %238 = dma.hbm_to_vmem [thread:$0]  %s14588_s18, 16, %s236_s25, [#allocation31]  }
 0x15b   :  { %13741 = dma.done.wait [#allocation4], 256  }
 0x15c   :  { %13742 = vsyncadd [#allocation4], 4294967040 }
 0x15d   :  { %13743 = dma.done.wait [#allocation7], 320  }
 0x15e   :  { %13744 = vsyncadd [#allocation7], 4294966976 }
 0x15f   :  { %13745 = dma.done.wait [#allocation10], 16448  }
 0x160   :  { %13746 = vsyncadd [#allocation10], 4294950848 }
 0x161   :  { %13747 = dma.done.wait [#allocation13], 49216  }
 0x162   :  { %13748 = vsyncadd [#allocation13], 4294918080 }
 0x163   :  { %13749 = dma.done.wait [#allocation16], 16576  }
 0x164   :  { %13750 = vsyncadd [#allocation16], 4294950720 }
 0x165   :  { %13751 = dma.done.wait [#allocation19], 128  }
 0x166   :  { %13752 = vsyncadd [#allocation19], 4294967168 }
 0x167   :  { %13753 = dma.done.wait [#allocation22], 24640  }
 0x168   :  { %13754 = vsyncadd [#allocation22], 4294942656 }
 0x169   :  { %13755 = dma.done.wait [#allocation25], 16448  }
 0x16a   :  { %13756 = vsyncadd [#allocation25], 4294950848 }
 0x16b   :  { %13757 = dma.done.wait [#allocation28], 16448  }
 0x16c   :  { %13758 = vsyncadd [#allocation28], 4294950848 }
 0x16d   :  { %13759 = dma.done.wait [#allocation31], 4112  }
 0x16e   :  { %13760 = vsyncadd [#allocation31], 4294963184  ;;  %v11598_v0 = vld [vmem:[#allocation11 + $0x4] ss:$16 sps:$4 sm:$0xff]   ;;  %v11600_v1 = vld [vmem:[#allocation11 + $0xc] ss:$16 sps:$4 sm:$0xff]  }
 0x16f   :  { %1103 = vmatprep.subr.bf16.mxu0 %v11598_v0  ;;  %v11602_v2 = vld [vmem:[#allocation11] ss:$16 sps:$4 sm:$0xff]   ;;  %v11603_v3 = vld [vmem:[#allocation11 + $0x8] ss:$16 sps:$4 sm:$0xff]   ;;  %1185 = vmatprep.subr.bf16.mxu1 %v11600_v1  ;;  %v11604_v4 = vld [vmem:[#allocation11 + $0x24] ss:$16 sps:$4 sm:$0xff]  }
 0x170   :  { %1104 = vmatpush1.bf16.msra.mxu0 %v11602_v2  ;;  %1186 = vmatpush1.bf16.msra.mxu1 %v11603_v3  ;;  %v11606_v5 = vld [vmem:[#allocation11 + $0x2c] ss:$16 sps:$4 sm:$0xff]   ;;  %v11608_v6 = vld [vmem:[#allocation11 + $0x20] ss:$16 sps:$4 sm:$0xff]   ;;  %v11609_v7 = vld [vmem:[#allocation11 + $0x28] ss:$16 sps:$4 sm:$0xff]  }
 0x171   :  { %1105 = vmatprep.subr.bf16.mxu0 %v11604_v4  ;;  %1187 = vmatprep.subr.bf16.mxu1 %v11606_v5  ;;  %v11610_v8 = vld [vmem:[#allocation11 + $0x44] ss:$16 sps:$4 sm:$0xff]   ;;  %v11612_v9 = vld [vmem:[#allocation11 + $0x4c] ss:$16 sps:$4 sm:$0xff]   ;;  %v11614_v10 = vld [vmem:[#allocation11 + $0x40] ss:$16 sps:$4 sm:$0xff]  }
 0x172   :  { %v11615_v11 = vld [vmem:[#allocation11 + $0x48] ss:$16 sps:$4 sm:$0xff]   ;;  %v11616_v12 = vld [vmem:[#allocation11 + $0x64] ss:$16 sps:$4 sm:$0xff]   ;;  %v11618_v13 = vld [vmem:[#allocation11 + $0x6c] ss:$16 sps:$4 sm:$0xff]  }
 0x173   :  { %v11620_v14 = vld [vmem:[#allocation11 + $0x60] ss:$16 sps:$4 sm:$0xff]   ;;  %v11621_v15 = vld [vmem:[#allocation11 + $0x68] ss:$16 sps:$4 sm:$0xff]   ;;  %v11622_v16 = vld [vmem:[#allocation11 + $0x84] ss:$16 sps:$4 sm:$0xff]  }
 0x174   :  { %1106 = vmatpush1.bf16.msra.mxu0 %v11608_v6  ;;  %1188 = vmatpush1.bf16.msra.mxu1 %v11609_v7  ;;  %v11624_v17 = vld [vmem:[#allocation11 + $0x8c] ss:$16 sps:$4 sm:$0xff]   ;;  %v11626_v18 = vld [vmem:[#allocation11 + $0x80] ss:$16 sps:$4 sm:$0xff]   ;;  %v11627_v19 = vld [vmem:[#allocation11 + $0x88] ss:$16 sps:$4 sm:$0xff]  }
 0x175   :  { %1107 = vmatprep.subr.bf16.mxu0 %v11610_v8  ;;  %1189 = vmatprep.subr.bf16.mxu1 %v11612_v9  ;;  %v11628_v20 = vld [vmem:[#allocation11 + $0xa4] ss:$16 sps:$4 sm:$0xff]   ;;  %v11630_v21 = vld [vmem:[#allocation11 + $0xac] ss:$16 sps:$4 sm:$0xff]   ;;  %v11632_v22 = vld [vmem:[#allocation11 + $0xa0] ss:$16 sps:$4 sm:$0xff]  }
 0x176   :  { %v11633_v23 = vld [vmem:[#allocation11 + $0xa8] ss:$16 sps:$4 sm:$0xff]   ;;  %v11634_v24 = vld [vmem:[#allocation11 + $0xc4] ss:$16 sps:$4 sm:$0xff]   ;;  %v11636_v25 = vld [vmem:[#allocation11 + $0xcc] ss:$16 sps:$4 sm:$0xff]  }
 0x177   :  { %v11638_v26 = vld [vmem:[#allocation11 + $0xc0] ss:$16 sps:$4 sm:$0xff]   ;;  %v11639_v27 = vld [vmem:[#allocation11 + $0xc8] ss:$16 sps:$4 sm:$0xff]   ;;  %v11640_v28 = vld [vmem:[#allocation11 + $0xe4] ss:$16 sps:$4 sm:$0xff]  }
 0x178   :  { %1108 = vmatpush1.bf16.msra.mxu0 %v11614_v10  ;;  %1190 = vmatpush1.bf16.msra.mxu1 %v11615_v11  ;;  %v11642_v29 = vld [vmem:[#allocation11 + $0xec] ss:$16 sps:$4 sm:$0xff]   ;;  %v11644_v30 = vld [vmem:[#allocation11 + $0xe0] ss:$16 sps:$4 sm:$0xff]   ;;  %v11645_v31 = vld [vmem:[#allocation11 + $0xe8] ss:$16 sps:$4 sm:$0xff]  }
 0x179   :  { %1109 = vmatprep.subr.bf16.mxu0 %v11616_v12  ;;  %1191 = vmatprep.subr.bf16.mxu1 %v11618_v13  ;;  %v11646_v32 = vld [vmem:[#allocation11 + $0x104] ss:$16 sps:$4 sm:$0xff]   ;;  %v11648_v33 = vld [vmem:[#allocation11 + $0x10c] ss:$16 sps:$4 sm:$0xff]   ;;  %v11650_v34 = vld [vmem:[#allocation11 + $0x100] ss:$16 sps:$4 sm:$0xff]  }
 0x17a   :  { %v11651_v35 = vld [vmem:[#allocation11 + $0x108] ss:$16 sps:$4 sm:$0xff]   ;;  %v11652_v36 = vld [vmem:[#allocation11 + $0x124] ss:$16 sps:$4 sm:$0xff]   ;;  %v11654_v37 = vld [vmem:[#allocation11 + $0x12c] ss:$16 sps:$4 sm:$0xff]  }
 0x17b   :  { %v11656_v38 = vld [vmem:[#allocation11 + $0x120] ss:$16 sps:$4 sm:$0xff]   ;;  %v11657_v39 = vld [vmem:[#allocation11 + $0x128] ss:$16 sps:$4 sm:$0xff]   ;;  %v11658_v40 = vld [vmem:[#allocation11 + $0x144] ss:$16 sps:$4 sm:$0xff]  }
 0x17c   :  { %1110 = vmatpush1.bf16.msra.mxu0 %v11620_v14  ;;  %1192 = vmatpush1.bf16.msra.mxu1 %v11621_v15  ;;  %v11660_v41 = vld [vmem:[#allocation11 + $0x14c] ss:$16 sps:$4 sm:$0xff]   ;;  %v11662_v42 = vld [vmem:[#allocation11 + $0x140] ss:$16 sps:$4 sm:$0xff]   ;;  %v11663_v43 = vld [vmem:[#allocation11 + $0x148] ss:$16 sps:$4 sm:$0xff]  }
 0x17d   :  { %1111 = vmatprep.subr.bf16.mxu0 %v11622_v16  ;;  %1193 = vmatprep.subr.bf16.mxu1 %v11624_v17  ;;  %v11664_v44 = vld [vmem:[#allocation11 + $0x164] ss:$16 sps:$4 sm:$0xff]   ;;  %v11666_v45 = vld [vmem:[#allocation11 + $0x16c] ss:$16 sps:$4 sm:$0xff]   ;;  %v11668_v47 = vld [vmem:[#allocation11 + $0x160] ss:$16 sps:$4 sm:$0xff]  }
 0x17e   :  { %v297_v46 = vld [vmem:[#allocation3] sm:$0xff]  ;;  %v11670_v50 = vld [vmem:[#allocation11 + $0x184] ss:$16 sps:$4 sm:$0xff]   ;;  %v11674_v52 = vld [vmem:[#allocation11 + $0x180] ss:$16 sps:$4 sm:$0xff]   ;;  %vm13789_vm0 = vmmov 0  }
 0x17f   :  { %v10092_v48 = vcombine.high %v297_v46, %v297_v46  ;;  %v11669_v49 = vld [vmem:[#allocation11 + $0x168] ss:$16 sps:$4 sm:$0xff]   ;;  %v11672_v51 = vld [vmem:[#allocation11 + $0x18c] ss:$16 sps:$4 sm:$0xff]   ;;  %v11676_v54 = vld [vmem:[#allocation11 + $0x1a4] ss:$16 sps:$4 sm:$0xff]   ;;  %v10091_v4 = vcombine.low %v297_v46, %v297_v46 }
 0x180   :  { %1112 = vmatpush1.bf16.msra.mxu0 %v11626_v18  ;;  %1194 = vmatpush1.bf16.msra.mxu1 %v11627_v19  ;;  %v11675_v53 = vld [vmem:[#allocation11 + $0x188] ss:$16 sps:$4 sm:$0xff]   ;;  %v11678_v55 = vld [vmem:[#allocation11 + $0x1ac] ss:$16 sps:$4 sm:$0xff]   ;;  %v11680_v56 = vld [vmem:[#allocation11 + $0x1a0] ss:$16 sps:$4 sm:$0xff]  }
 0x181   :  { %1113 = vmatprep.subr.bf16.mxu0 %v11628_v20  ;;  %1195 = vmatprep.subr.bf16.mxu1 %v11630_v21  ;;  %v11681_v57 = vld [vmem:[#allocation11 + $0x1a8] ss:$16 sps:$4 sm:$0xff]   ;;  %v11682_v58 = vld [vmem:[#allocation11 + $0x1c4] ss:$16 sps:$4 sm:$0xff]   ;;  %v11684_v59 = vld [vmem:[#allocation11 + $0x1cc] ss:$16 sps:$4 sm:$0xff]  }
 0x182   :  { %1135 = vmatprep.mubr.bf16.mxu0 %v10092_v48  ;;  %1217 = vmatprep.mubr.bf16.mxu1 %v10092_v48  ;;  %v11686_v60 = vld [vmem:[#allocation11 + $0x1c0] ss:$16 sps:$4 sm:$0xff]   ;;  %v11687_v61 = vld [vmem:[#allocation11 + $0x1c8] ss:$16 sps:$4 sm:$0xff]   ;;  %v11688_v62 = vld [vmem:[#allocation11 + $0x1e4] ss:$16 sps:$4 sm:$0xff]  }
 0x183   :  { %v11690_v63 = vld [vmem:[#allocation11 + $0x1ec] ss:$16 sps:$4 sm:$0xff]   ;;  %v11692_v0 = vld [vmem:[#allocation11 + $0x1e0] ss:$16 sps:$4 sm:$0xff]   ;;  %v11693_v1 = vld [vmem:[#allocation11 + $0x1e8] ss:$16 sps:$4 sm:$0xff]  }
 0x184   :  { %1114 = vmatpush1.bf16.msra.mxu0 %v11632_v22  ;;  %1196 = vmatpush1.bf16.msra.mxu1 %v11633_v23  ;;  %v11698_v2 = vld [vmem:[#allocation11 + $0x204] ss:$16 sps:$4 sm:$0xff]   ;;  %v11701_v3 = vld [vmem:[#allocation11 + $0x20c] ss:$16 sps:$4 sm:$0xff]   ;;  %v11696_v5 = vld [vmem:[#allocation11 + $0x200] ss:$16 sps:$4 sm:$0xff]  }
 0x185   :  { %1115 = vmatprep.subr.bf16.mxu0 %v11634_v24  ;;  %1197 = vmatprep.subr.bf16.mxu1 %v11636_v25  ;;  %v11699_v6 = vld [vmem:[#allocation11 + $0x208] ss:$16 sps:$4 sm:$0xff]   ;;  %v11704_v7 = vld [vmem:[#allocation11 + $0x224] ss:$16 sps:$4 sm:$0xff]   ;;  %v11707_v8 = vld [vmem:[#allocation11 + $0x22c] ss:$16 sps:$4 sm:$0xff]  }
 0x186   :  { %v11702_v9 = vld [vmem:[#allocation11 + $0x220] ss:$16 sps:$4 sm:$0xff]   ;;  %v11705_v10 = vld [vmem:[#allocation11 + $0x228] ss:$16 sps:$4 sm:$0xff]   ;;  %v11710_v11 = vld [vmem:[#allocation11 + $0x244] ss:$16 sps:$4 sm:$0xff]  }
 0x187   :  { %v11713_v12 = vld [vmem:[#allocation11 + $0x24c] ss:$16 sps:$4 sm:$0xff]   ;;  %v11708_v13 = vld [vmem:[#allocation11 + $0x240] ss:$16 sps:$4 sm:$0xff]   ;;  %v11711_v14 = vld [vmem:[#allocation11 + $0x248] ss:$16 sps:$4 sm:$0xff]  }
 0x188   :  { %1116 = vmatpush1.bf16.msra.mxu0 %v11638_v26  ;;  %1198 = vmatpush1.bf16.msra.mxu1 %v11639_v27  ;;  %v11716_v15 = vld [vmem:[#allocation11 + $0x264] ss:$16 sps:$4 sm:$0xff]   ;;  %v11719_v16 = vld [vmem:[#allocation11 + $0x26c] ss:$16 sps:$4 sm:$0xff]   ;;  %v11714_v17 = vld [vmem:[#allocation11 + $0x260] ss:$16 sps:$4 sm:$0xff]  }
 0x189   :  { %1117 = vmatprep.subr.bf16.mxu0 %v11640_v28  ;;  %1199 = vmatprep.subr.bf16.mxu1 %v11642_v29  ;;  %v11717_v18 = vld [vmem:[#allocation11 + $0x268] ss:$16 sps:$4 sm:$0xff]   ;;  %v11722_v19 = vld [vmem:[#allocation11 + $0x284] ss:$16 sps:$4 sm:$0xff]   ;;  %v11725_v20 = vld [vmem:[#allocation11 + $0x28c] ss:$16 sps:$4 sm:$0xff]  }
 0x18a   :  { %v11720_v21 = vld [vmem:[#allocation11 + $0x280] ss:$16 sps:$4 sm:$0xff]   ;;  %v11723_v22 = vld [vmem:[#allocation11 + $0x288] ss:$16 sps:$4 sm:$0xff]   ;;  %v11728_v23 = vld [vmem:[#allocation11 + $0x2a4] ss:$16 sps:$4 sm:$0xff]  }
 0x18b   :  { %v11731_v24 = vld [vmem:[#allocation11 + $0x2ac] ss:$16 sps:$4 sm:$0xff]   ;;  %v11726_v25 = vld [vmem:[#allocation11 + $0x2a0] ss:$16 sps:$4 sm:$0xff]   ;;  %v11729_v26 = vld [vmem:[#allocation11 + $0x2a8] ss:$16 sps:$4 sm:$0xff]  }
 0x18c   :  { %1118 = vmatpush1.bf16.msra.mxu0 %v11644_v30  ;;  %1200 = vmatpush1.bf16.msra.mxu1 %v11645_v31  ;;  %v11734_v27 = vld [vmem:[#allocation11 + $0x2c4] ss:$16 sps:$4 sm:$0xff]   ;;  %v11737_v28 = vld [vmem:[#allocation11 + $0x2cc] ss:$16 sps:$4 sm:$0xff]   ;;  %v11732_v31 = vld [vmem:[#allocation11 + $0x2c0] ss:$16 sps:$4 sm:$0xff]  }
 0x18d   :  { %1119 = vmatprep.subr.bf16.mxu0 %v11646_v32  ;;  %1201 = vmatprep.subr.bf16.mxu1 %v11648_v33  ;;  %v14137_v29 = vld [vmem:[#allocation3 + $0x8] sm:$0xff]  ;;  %v11735_v32 = vld [vmem:[#allocation11 + $0x2c8] ss:$16 sps:$4 sm:$0xff]   ;;  %v11761_v46 = vld [vmem:[#allocation11 + $0x34c] ss:$16 sps:$4 sm:$0xff]   ;;  %vm4364_vm1 = vcmask 1043456  }
 0x18e   :  { %v10094_v30 = vcombine.high %v14137_v29, %v14137_v29  ;;  %v11740_v33 = vld [vmem:[#allocation11 + $0x2e4] ss:$16 sps:$4 sm:$0xff]   ;;  %v11759_v48 = vld [vmem:[#allocation11 + $0x348] ss:$16 sps:$4 sm:$0xff]   ;;  %vm4304_vm2 = vcmask 523264   ;;  %vm4348_vm3 = vcmask 64512  }
 0x18f   :  { %s13791_s18 = smov [#allocation33]  }
 0x190   :  { %1120 = vmatpush1.bf16.msra.mxu0 %v11650_v34  ;;  %1202 = vmatpush1.bf16.msra.mxu1 %v11651_v35  ;;  %v11743_v34 = vld [vmem:[#allocation11 + $0x2ec] ss:$16 sps:$4 sm:$0xff]   ;;  %v11738_v35 = vld [vmem:[#allocation11 + $0x2e0] ss:$16 sps:$4 sm:$0xff]  }
 0x191   :  { %1121 = vmatprep.subr.bf16.mxu0 %v11652_v36  ;;  %1203 = vmatprep.subr.bf16.mxu1 %v11654_v37  ;;  %v11741_v36 = vld [vmem:[#allocation11 + $0x2e8] ss:$16 sps:$4 sm:$0xff]   ;;  %v11746_v37 = vld [vmem:[#allocation11 + $0x304] ss:$16 sps:$4 sm:$0xff]  }
 0x194   :  { %1122 = vmatpush1.bf16.msra.mxu0 %v11656_v38  ;;  %1204 = vmatpush1.bf16.msra.mxu1 %v11657_v39  ;;  %v11749_v38 = vld [vmem:[#allocation11 + $0x30c] ss:$16 sps:$4 sm:$0xff]   ;;  %v11744_v39 = vld [vmem:[#allocation11 + $0x300] ss:$16 sps:$4 sm:$0xff]  }
 0x195   :  { %1123 = vmatprep.subr.bf16.mxu0 %v11658_v40  ;;  %1205 = vmatprep.subr.bf16.mxu1 %v11660_v41  ;;  %v11747_v40 = vld [vmem:[#allocation11 + $0x308] ss:$16 sps:$4 sm:$0xff]   ;;  %v11752_v41 = vld [vmem:[#allocation11 + $0x324] ss:$16 sps:$4 sm:$0xff]  }
 0x198   :  { %1124 = vmatpush1.bf16.msra.mxu0 %v11662_v42  ;;  %1206 = vmatpush1.bf16.msra.mxu1 %v11663_v43  ;;  %v11755_v42 = vld [vmem:[#allocation11 + $0x32c] ss:$16 sps:$4 sm:$0xff]   ;;  %v11750_v43 = vld [vmem:[#allocation11 + $0x320] ss:$16 sps:$4 sm:$0xff]  }
 0x199   :  { %1125 = vmatprep.subr.bf16.mxu0 %v11664_v44  ;;  %1207 = vmatprep.subr.bf16.mxu1 %v11666_v45  ;;  %v11753_v44 = vld [vmem:[#allocation11 + $0x328] ss:$16 sps:$4 sm:$0xff]   ;;  %v11758_v45 = vld [vmem:[#allocation11 + $0x344] ss:$16 sps:$4 sm:$0xff]  }
 0x19c   :  { %1126 = vmatpush1.bf16.msra.mxu0 %v11668_v47  ;;  %1208 = vmatpush1.bf16.msra.mxu1 %v11669_v49  ;;  %v11756_v47 = vld [vmem:[#allocation11 + $0x340] ss:$16 sps:$4 sm:$0xff]   ;;  %v11764_v49 = vld [vmem:[#allocation11 + $0x364] ss:$16 sps:$4 sm:$0xff]  }
 0x19d   :  { %1127 = vmatprep.subr.bf16.mxu0 %v11670_v50  ;;  %1209 = vmatprep.subr.bf16.mxu1 %v11672_v51  ;;  %v11767_v50 = vld [vmem:[#allocation11 + $0x36c] ss:$16 sps:$4 sm:$0xff]   ;;  %v11762_v51 = vld [vmem:[#allocation11 + $0x360] ss:$16 sps:$4 sm:$0xff]  }
 0x1a0   :  { %1128 = vmatpush1.bf16.msra.mxu0 %v11674_v52  ;;  %1210 = vmatpush1.bf16.msra.mxu1 %v11675_v53  ;;  %v11765_v52 = vld [vmem:[#allocation11 + $0x368] ss:$16 sps:$4 sm:$0xff]   ;;  %v11770_v53 = vld [vmem:[#allocation11 + $0x384] ss:$16 sps:$4 sm:$0xff]  }
 0x1a1   :  { %1129 = vmatprep.subr.bf16.mxu0 %v11676_v54  ;;  %1211 = vmatprep.subr.bf16.mxu1 %v11678_v55  ;;  %v11773_v54 = vld [vmem:[#allocation11 + $0x38c] ss:$16 sps:$4 sm:$0xff]   ;;  %v11768_v55 = vld [vmem:[#allocation11 + $0x380] ss:$16 sps:$4 sm:$0xff]  }
 0x1a4   :  { %1130 = vmatpush1.bf16.msra.mxu0 %v11680_v56  ;;  %1212 = vmatpush1.bf16.msra.mxu1 %v11681_v57  ;;  %v11771_v56 = vld [vmem:[#allocation11 + $0x388] ss:$16 sps:$4 sm:$0xff]   ;;  %v11776_v57 = vld [vmem:[#allocation11 + $0x3a4] ss:$16 sps:$4 sm:$0xff]  }
 0x1a5   :  { %1131 = vmatprep.subr.bf16.mxu0 %v11682_v58  ;;  %1213 = vmatprep.subr.bf16.mxu1 %v11684_v59  ;;  %v11779_v58 = vld [vmem:[#allocation11 + $0x3ac] ss:$16 sps:$4 sm:$0xff]   ;;  %v11774_v59 = vld [vmem:[#allocation11 + $0x3a0] ss:$16 sps:$4 sm:$0xff]  }
 0x1a8   :  { %1132 = vmatpush1.bf16.msra.mxu0 %v11686_v60  ;;  %1214 = vmatpush1.bf16.msra.mxu1 %v11687_v61  ;;  %v11777_v60 = vld [vmem:[#allocation11 + $0x3a8] ss:$16 sps:$4 sm:$0xff]   ;;  %v11782_v61 = vld [vmem:[#allocation11 + $0x3c4] ss:$16 sps:$4 sm:$0xff]  }
 0x1a9   :  { %1133 = vmatprep.subr.bf16.mxu0 %v11688_v62  ;;  %1215 = vmatprep.subr.bf16.mxu1 %v11690_v63  ;;  %v11785_v62 = vld [vmem:[#allocation11 + $0x3cc] ss:$16 sps:$4 sm:$0xff]   ;;  %v11780_v63 = vld [vmem:[#allocation11 + $0x3c0] ss:$16 sps:$4 sm:$0xff]  }
 0x1ac   :  { %1134 = vmatpush1.bf16.msra.mxu0 %v11692_v0  ;;  %1216 = vmatpush1.bf16.msra.mxu1 %v11693_v1  ;;  %v11783_v0 = vld [vmem:[#allocation11 + $0x3c8] ss:$16 sps:$4 sm:$0xff]   ;;  %v11788_v1 = vld [vmem:[#allocation11 + $0x3e4] ss:$16 sps:$4 sm:$0xff]  }
 0x1ad   :  { %1144 = vmatprep.subr.bf16.mxu0 %v11698_v2  ;;  %1226 = vmatprep.subr.bf16.mxu1 %v11701_v3  ;;  %v11791_v2 = vld [vmem:[#allocation11 + $0x3ec] ss:$16 sps:$4 sm:$0xff]   ;;  %v11786_v3 = vld [vmem:[#allocation11 + $0x3e0] ss:$16 sps:$4 sm:$0xff]  }
 0x1af   :  { %1136 = vmatmul.mubr.bf16.vlgmr.msra.gmra.mrb[0].mxu0 %v10091_v4  ;;  %1218 = vmatmul.mubr.bf16.vlgmr.msra.gmra.mrb[0].mxu1 %v10091_v4  ;;  %v11789_v4 = vld [vmem:[#allocation11 + $0x3e8] ss:$16 sps:$4 sm:$0xff]  }
 0x1b0   :  { %1145 = vmatpush1.bf16.msra.mxu0 %v11696_v5  ;;  %1227 = vmatpush1.bf16.msra.mxu1 %v11699_v6  ;;  %v11796_v5 = vld [vmem:[#allocation14 + $0x4] ss:$48 sps:$4 sm:$0xff]   ;;  %v11799_v6 = vld [vmem:[#allocation14 + $0xc] ss:$48 sps:$4 sm:$0xff]  }
 0x1b1   :  { %1146 = vmatprep.subr.bf16.mxu0 %v11704_v7  ;;  %1228 = vmatprep.subr.bf16.mxu1 %v11707_v8  ;;  %v11794_v7 = vld [vmem:[#allocation14] ss:$48 sps:$4 sm:$0xff]   ;;  %v11797_v8 = vld [vmem:[#allocation14 + $0x8] ss:$48 sps:$4 sm:$0xff]  }
 0x1b2   :  { %1176 = vmatprep.mubr.bf16.mxu0 %v10094_v30  ;;  %1258 = vmatprep.mubr.bf16.mxu1 %v10094_v30  ;;  %v11832_v30 = vld [vmem:[#allocation14 + $0x244] ss:$48 sps:$4 sm:$0xff]  }
 0x1b4   :  { %1147 = vmatpush1.bf16.msra.mxu0 %v11702_v9  ;;  %1229 = vmatpush1.bf16.msra.mxu1 %v11705_v10  ;;  %v10093_v9 = vcombine.low %v14137_v29, %v14137_v29  ;;  %v11802_v10 = vld [vmem:[#allocation14 + $0x64] ss:$48 sps:$4 sm:$0xff]   ;;  %v11827_v29 = vld [vmem:[#allocation14 + $0x1e8] ss:$48 sps:$4 sm:$0xff]  }
 0x1b5   :  { %1148 = vmatprep.subr.bf16.mxu0 %v11710_v11  ;;  %1230 = vmatprep.subr.bf16.mxu1 %v11713_v12  ;;  %v11805_v11 = vld [vmem:[#allocation14 + $0x6c] ss:$48 sps:$4 sm:$0xff]   ;;  %v11800_v12 = vld [vmem:[#allocation14 + $0x60] ss:$48 sps:$4 sm:$0xff]  }
 0x1b8   :  { %1149 = vmatpush1.bf16.msra.mxu0 %v11708_v13  ;;  %1231 = vmatpush1.bf16.msra.mxu1 %v11711_v14  ;;  %v11803_v13 = vld [vmem:[#allocation14 + $0x68] ss:$48 sps:$4 sm:$0xff]   ;;  %v11808_v14 = vld [vmem:[#allocation14 + $0xc4] ss:$48 sps:$4 sm:$0xff]  }
 0x1b9   :  { %1150 = vmatprep.subr.bf16.mxu0 %v11716_v15  ;;  %1232 = vmatprep.subr.bf16.mxu1 %v11719_v16  ;;  %v11811_v15 = vld [vmem:[#allocation14 + $0xcc] ss:$48 sps:$4 sm:$0xff]   ;;  %v11806_v16 = vld [vmem:[#allocation14 + $0xc0] ss:$48 sps:$4 sm:$0xff]  }
 0x1bc   :  { %1151 = vmatpush1.bf16.msra.mxu0 %v11714_v17  ;;  %1233 = vmatpush1.bf16.msra.mxu1 %v11717_v18  ;;  %v11809_v17 = vld [vmem:[#allocation14 + $0xc8] ss:$48 sps:$4 sm:$0xff]   ;;  %v11814_v18 = vld [vmem:[#allocation14 + $0x124] ss:$48 sps:$4 sm:$0xff]  }
 0x1bd   :  { %1152 = vmatprep.subr.bf16.mxu0 %v11722_v19  ;;  %1234 = vmatprep.subr.bf16.mxu1 %v11725_v20  ;;  %v11817_v19 = vld [vmem:[#allocation14 + $0x12c] ss:$48 sps:$4 sm:$0xff]   ;;  %v11812_v20 = vld [vmem:[#allocation14 + $0x120] ss:$48 sps:$4 sm:$0xff]  }
 0x1c0   :  { %1153 = vmatpush1.bf16.msra.mxu0 %v11720_v21  ;;  %1235 = vmatpush1.bf16.msra.mxu1 %v11723_v22  ;;  %v11815_v21 = vld [vmem:[#allocation14 + $0x128] ss:$48 sps:$4 sm:$0xff]   ;;  %v11820_v22 = vld [vmem:[#allocation14 + $0x184] ss:$48 sps:$4 sm:$0xff]  }
 0x1c1   :  { %1154 = vmatprep.subr.bf16.mxu0 %v11728_v23  ;;  %1236 = vmatprep.subr.bf16.mxu1 %v11731_v24  ;;  %v11823_v23 = vld [vmem:[#allocation14 + $0x18c] ss:$48 sps:$4 sm:$0xff]   ;;  %v11818_v24 = vld [vmem:[#allocation14 + $0x180] ss:$48 sps:$4 sm:$0xff]  }
 0x1c4   :  { %1155 = vmatpush1.bf16.msra.mxu0 %v11726_v25  ;;  %1237 = vmatpush1.bf16.msra.mxu1 %v11729_v26  ;;  %v11821_v25 = vld [vmem:[#allocation14 + $0x188] ss:$48 sps:$4 sm:$0xff]   ;;  %v11826_v26 = vld [vmem:[#allocation14 + $0x1e4] ss:$48 sps:$4 sm:$0xff]  }
 0x1c5   :  { %1156 = vmatprep.subr.bf16.mxu0 %v11734_v27  ;;  %1238 = vmatprep.subr.bf16.mxu1 %v11737_v28  ;;  %v11829_v27 = vld [vmem:[#allocation14 + $0x1ec] ss:$48 sps:$4 sm:$0xff]   ;;  %v11824_v28 = vld [vmem:[#allocation14 + $0x1e0] ss:$48 sps:$4 sm:$0xff]  }
 0x1c8   :  { %1157 = vmatpush1.bf16.msra.mxu0 %v11732_v31  ;;  %1239 = vmatpush1.bf16.msra.mxu1 %v11735_v32  ;;  %v11835_v31 = vld [vmem:[#allocation14 + $0x24c] ss:$48 sps:$4 sm:$0xff]   ;;  %v11830_v32 = vld [vmem:[#allocation14 + $0x240] ss:$48 sps:$4 sm:$0xff]  }
 0x1c9   :  { %1158 = vmatprep.subr.bf16.mxu0 %v11740_v33  ;;  %1240 = vmatprep.subr.bf16.mxu1 %v11743_v34  ;;  %v11833_v33 = vld [vmem:[#allocation14 + $0x248] ss:$48 sps:$4 sm:$0xff]   ;;  %v11838_v34 = vld [vmem:[#allocation14 + $0x2a4] ss:$48 sps:$4 sm:$0xff]  }
 0x1cc   :  { %1159 = vmatpush1.bf16.msra.mxu0 %v11738_v35  ;;  %1241 = vmatpush1.bf16.msra.mxu1 %v11741_v36  ;;  %v11841_v35 = vld [vmem:[#allocation14 + $0x2ac] ss:$48 sps:$4 sm:$0xff]   ;;  %v11836_v36 = vld [vmem:[#allocation14 + $0x2a0] ss:$48 sps:$4 sm:$0xff]  }
 0x1cd   :  { %1160 = vmatprep.subr.bf16.mxu0 %v11746_v37  ;;  %1242 = vmatprep.subr.bf16.mxu1 %v11749_v38  ;;  %v11839_v37 = vld [vmem:[#allocation14 + $0x2a8] ss:$48 sps:$4 sm:$0xff]   ;;  %v11844_v38 = vld [vmem:[#allocation14 + $0x304] ss:$48 sps:$4 sm:$0xff]  }
 0x1d0   :  { %1161 = vmatpush1.bf16.msra.mxu0 %v11744_v39  ;;  %1243 = vmatpush1.bf16.msra.mxu1 %v11747_v40  ;;  %v11847_v39 = vld [vmem:[#allocation14 + $0x30c] ss:$48 sps:$4 sm:$0xff]   ;;  %v11842_v40 = vld [vmem:[#allocation14 + $0x300] ss:$48 sps:$4 sm:$0xff]  }
 0x1d1   :  { %1162 = vmatprep.subr.bf16.mxu0 %v11752_v41  ;;  %1244 = vmatprep.subr.bf16.mxu1 %v11755_v42  ;;  %v11845_v41 = vld [vmem:[#allocation14 + $0x308] ss:$48 sps:$4 sm:$0xff]   ;;  %v11850_v42 = vld [vmem:[#allocation14 + $0x364] ss:$48 sps:$4 sm:$0xff]  }
 0x1d4   :  { %1163 = vmatpush1.bf16.msra.mxu0 %v11750_v43  ;;  %1245 = vmatpush1.bf16.msra.mxu1 %v11753_v44  ;;  %v11853_v43 = vld [vmem:[#allocation14 + $0x36c] ss:$48 sps:$4 sm:$0xff]   ;;  %v11848_v44 = vld [vmem:[#allocation14 + $0x360] ss:$48 sps:$4 sm:$0xff]  }
 0x1d5   :  { %1164 = vmatprep.subr.bf16.mxu0 %v11758_v45  ;;  %1246 = vmatprep.subr.bf16.mxu1 %v11761_v46  ;;  %v11851_v45 = vld [vmem:[#allocation14 + $0x368] ss:$48 sps:$4 sm:$0xff]   ;;  %v11856_v46 = vld [vmem:[#allocation14 + $0x3c4] ss:$48 sps:$4 sm:$0xff]  }
 0x1d8   :  { %1165 = vmatpush1.bf16.msra.mxu0 %v11756_v47  ;;  %1247 = vmatpush1.bf16.msra.mxu1 %v11759_v48  ;;  %v11859_v47 = vld [vmem:[#allocation14 + $0x3cc] ss:$48 sps:$4 sm:$0xff]   ;;  %v11854_v48 = vld [vmem:[#allocation14 + $0x3c0] ss:$48 sps:$4 sm:$0xff]  }
 0x1d9   :  { %1166 = vmatprep.subr.bf16.mxu0 %v11764_v49  ;;  %1248 = vmatprep.subr.bf16.mxu1 %v11767_v50  ;;  %v11857_v49 = vld [vmem:[#allocation14 + $0x3c8] ss:$48 sps:$4 sm:$0xff]   ;;  %v11862_v50 = vld [vmem:[#allocation14 + $0x424] ss:$48 sps:$4 sm:$0xff]  }
 0x1dc   :  { %1167 = vmatpush1.bf16.msra.mxu0 %v11762_v51  ;;  %1249 = vmatpush1.bf16.msra.mxu1 %v11765_v52  ;;  %v11865_v51 = vld [vmem:[#allocation14 + $0x42c] ss:$48 sps:$4 sm:$0xff]   ;;  %v11860_v52 = vld [vmem:[#allocation14 + $0x420] ss:$48 sps:$4 sm:$0xff]  }
 0x1dd   :  { %1168 = vmatprep.subr.bf16.mxu0 %v11770_v53  ;;  %1250 = vmatprep.subr.bf16.mxu1 %v11773_v54  ;;  %v11863_v53 = vld [vmem:[#allocation14 + $0x428] ss:$48 sps:$4 sm:$0xff]   ;;  %v11868_v54 = vld [vmem:[#allocation14 + $0x484] ss:$48 sps:$4 sm:$0xff]  }
 0x1e0   :  { %1169 = vmatpush1.bf16.msra.mxu0 %v11768_v55  ;;  %1251 = vmatpush1.bf16.msra.mxu1 %v11771_v56  ;;  %v11871_v55 = vld [vmem:[#allocation14 + $0x48c] ss:$48 sps:$4 sm:$0xff]   ;;  %v11866_v56 = vld [vmem:[#allocation14 + $0x480] ss:$48 sps:$4 sm:$0xff]  }
 0x1e1   :  { %1170 = vmatprep.subr.bf16.mxu0 %v11776_v57  ;;  %1252 = vmatprep.subr.bf16.mxu1 %v11779_v58  ;;  %v11869_v57 = vld [vmem:[#allocation14 + $0x488] ss:$48 sps:$4 sm:$0xff]   ;;  %v11874_v58 = vld [vmem:[#allocation14 + $0x4e4] ss:$48 sps:$4 sm:$0xff]  }
 0x1e4   :  { %1171 = vmatpush1.bf16.msra.mxu0 %v11774_v59  ;;  %1253 = vmatpush1.bf16.msra.mxu1 %v11777_v60  ;;  %v11877_v59 = vld [vmem:[#allocation14 + $0x4ec] ss:$48 sps:$4 sm:$0xff]   ;;  %v11872_v60 = vld [vmem:[#allocation14 + $0x4e0] ss:$48 sps:$4 sm:$0xff]  }
 0x1e5   :  { %1172 = vmatprep.subr.bf16.mxu0 %v11782_v61  ;;  %1254 = vmatprep.subr.bf16.mxu1 %v11785_v62  ;;  %v11875_v61 = vld [vmem:[#allocation14 + $0x4e8] ss:$48 sps:$4 sm:$0xff]   ;;  %v11880_v62 = vld [vmem:[#allocation14 + $0x544] ss:$48 sps:$4 sm:$0xff]  }
 0x1e8   :  { %1173 = vmatpush1.bf16.msra.mxu0 %v11780_v63  ;;  %1255 = vmatpush1.bf16.msra.mxu1 %v11783_v0  ;;  %v11883_v63 = vld [vmem:[#allocation14 + $0x54c] ss:$48 sps:$4 sm:$0xff]   ;;  %v11878_v0 = vld [vmem:[#allocation14 + $0x540] ss:$48 sps:$4 sm:$0xff]  }
 0x1e9   :  { %1174 = vmatprep.subr.bf16.mxu0 %v11788_v1  ;;  %1256 = vmatprep.subr.bf16.mxu1 %v11791_v2  ;;  %v11881_v1 = vld [vmem:[#allocation14 + $0x548] ss:$48 sps:$4 sm:$0xff]   ;;  %v11886_v2 = vld [vmem:[#allocation14 + $0x5a4] ss:$48 sps:$4 sm:$0xff]  }
 0x1ec   :  { %1175 = vmatpush1.bf16.msra.mxu0 %v11786_v3  ;;  %1257 = vmatpush1.bf16.msra.mxu1 %v11789_v4  ;;  %v11889_v3 = vld [vmem:[#allocation14 + $0x5ac] ss:$48 sps:$4 sm:$0xff]   ;;  %v11884_v4 = vld [vmem:[#allocation14 + $0x5a0] ss:$48 sps:$4 sm:$0xff]  }
 0x1ed   :  { %3639 = vmatprep.subr.bf16.mxu0 %v11796_v5  ;;  %3721 = vmatprep.subr.bf16.mxu1 %v11799_v6  ;;  %v11887_v5 = vld [vmem:[#allocation14 + $0x5a8] ss:$48 sps:$4 sm:$0xff]   ;;  %v11892_v6 = vld [vmem:[#allocation14 + $0x604] ss:$48 sps:$4 sm:$0xff]  }
 0x1ef   :  { %1177 = vmatmul.mubr.bf16.vlgmr.msra.gmra.mrb[0].mxu0 %v10093_v9  ;;  %1259 = vmatmul.mubr.bf16.vlgmr.msra.gmra.mrb[0].mxu1 %v10093_v9 }
 0x1f0   :  { %3640 = vmatpush1.bf16.msra.mxu0 %v11794_v7  ;;  %3722 = vmatpush1.bf16.msra.mxu1 %v11797_v8  ;;  %v11895_v7 = vld [vmem:[#allocation14 + $0x60c] ss:$48 sps:$4 sm:$0xff]   ;;  %v429_v8 = vlaneseq }
 0x1f1   :  { %3641 = vmatprep.subr.bf16.mxu0 %v11802_v10  ;;  %3723 = vmatprep.subr.bf16.mxu1 %v11805_v11  ;;  %v14148_v11 = vld [vmem:[#allocation12] sm:$0xf] }
 0x1f2   :  { %v14143_v9 = vshrl.u32 %v429_v8, 7  ;;  %v11953_v8 = vld [vmem:[#allocation14 + $0x9c8] ss:$48 sps:$4 sm:$0xff]  }
 0x1f4   :  { %3642 = vmatpush1.bf16.msra.mxu0 %v11800_v12  ;;  %3724 = vmatpush1.bf16.msra.mxu1 %v11803_v13  ;;  %v14146_v10 = vsub.s32 0, %v14143_v9  ;;  %v14151_v12 = vsub.s32 1, %v14143_v9  ;;  %v14154_v13 = vsub.s32 3, %v14143_v9 }
 0x1f5   :  { %3643 = vmatprep.subr.bf16.mxu0 %v11808_v14  ;;  %3725 = vmatprep.subr.bf16.mxu1 %v11811_v15 }
 0x1f6   :  { %v432_v14 = vrot.slane %v14148_v11, %v14146_v10  ;;  %v436_v15 = vrot.slane %v14148_v11, %v14151_v12 }
 0x1f8   :  { %3644 = vmatpush1.bf16.msra.mxu0 %v11806_v16  ;;  %3726 = vmatpush1.bf16.msra.mxu1 %v11809_v17  ;;  %v444_v16 = vrot.slane %v14148_v11, %v14154_v13 }
 0x1f9   :  { %3645 = vmatprep.subr.bf16.mxu0 %v11814_v18  ;;  %3727 = vmatprep.subr.bf16.mxu1 %v11817_v19 }
 0x1fc   :  { %3646 = vmatpush1.bf16.msra.mxu0 %v11812_v20  ;;  %3728 = vmatpush1.bf16.msra.mxu1 %v11815_v21 }
 0x1fd   :  { %3647 = vmatprep.subr.bf16.mxu0 %v11820_v22  ;;  %3729 = vmatprep.subr.bf16.mxu1 %v11823_v23 }
 0x200   :  { %3648 = vmatpush1.bf16.msra.mxu0 %v11818_v24  ;;  %3730 = vmatpush1.bf16.msra.mxu1 %v11821_v25  ;;  %v11890_v25 = vld [vmem:[#allocation14 + $0x600] ss:$48 sps:$4 sm:$0xff]  }
 0x201   :  { %3649 = vmatprep.subr.bf16.mxu0 %v11826_v26  ;;  %3731 = vmatprep.subr.bf16.mxu1 %v11829_v27  ;;  %v11893_v26 = vld [vmem:[#allocation14 + $0x608] ss:$48 sps:$4 sm:$0xff]  }
 0x204   :  { %3650 = vmatpush1.bf16.msra.mxu0 %v11824_v28  ;;  %3732 = vmatpush1.bf16.msra.mxu1 %v11827_v29 }
 0x205   :  { %3651 = vmatprep.subr.bf16.mxu0 %v11832_v30  ;;  %3733 = vmatprep.subr.bf16.mxu1 %v11835_v31  ;;  %v11898_v31 = vld [vmem:[#allocation14 + $0x664] ss:$48 sps:$4 sm:$0xff]  }
 0x208   :  { %3652 = vmatpush1.bf16.msra.mxu0 %v11830_v32  ;;  %3734 = vmatpush1.bf16.msra.mxu1 %v11833_v33  ;;  %v11896_v33 = vld [vmem:[#allocation14 + $0x660] ss:$48 sps:$4 sm:$0xff]  }
 0x209   :  { %3653 = vmatprep.subr.bf16.mxu0 %v11838_v34  ;;  %3735 = vmatprep.subr.bf16.mxu1 %v11841_v35  ;;  %v11899_v34 = vld [vmem:[#allocation14 + $0x668] ss:$48 sps:$4 sm:$0xff]   ;;  %v11901_v35 = vld [vmem:[#allocation14 + $0x66c] ss:$48 sps:$4 sm:$0xff]  }
 0x20c   :  { %3654 = vmatpush1.bf16.msra.mxu0 %v11836_v36  ;;  %3736 = vmatpush1.bf16.msra.mxu1 %v11839_v37  ;;  %v11904_v37 = vld [vmem:[#allocation14 + $0x6c4] ss:$48 sps:$4 sm:$0xff]  }
 0x20d   :  { %3655 = vmatprep.subr.bf16.mxu0 %v11844_v38  ;;  %3737 = vmatprep.subr.bf16.mxu1 %v11847_v39  ;;  %v11907_v38 = vld [vmem:[#allocation14 + $0x6cc] ss:$48 sps:$4 sm:$0xff]   ;;  %v11902_v39 = vld [vmem:[#allocation14 + $0x6c0] ss:$48 sps:$4 sm:$0xff]  }
 0x210   :  { %3656 = vmatpush1.bf16.msra.mxu0 %v11842_v40  ;;  %3738 = vmatpush1.bf16.msra.mxu1 %v11845_v41  ;;  %v11905_v40 = vld [vmem:[#allocation14 + $0x6c8] ss:$48 sps:$4 sm:$0xff]   ;;  %v11910_v41 = vld [vmem:[#allocation14 + $0x724] ss:$48 sps:$4 sm:$0xff]  }
 0x211   :  { %3657 = vmatprep.subr.bf16.mxu0 %v11850_v42  ;;  %3739 = vmatprep.subr.bf16.mxu1 %v11853_v43  ;;  %v11913_v42 = vld [vmem:[#allocation14 + $0x72c] ss:$48 sps:$4 sm:$0xff]   ;;  %v11908_v43 = vld [vmem:[#allocation14 + $0x720] ss:$48 sps:$4 sm:$0xff]  }
 0x214   :  { %3658 = vmatpush1.bf16.msra.mxu0 %v11848_v44  ;;  %3740 = vmatpush1.bf16.msra.mxu1 %v11851_v45  ;;  %v11911_v44 = vld [vmem:[#allocation14 + $0x728] ss:$48 sps:$4 sm:$0xff]   ;;  %v11916_v45 = vld [vmem:[#allocation14 + $0x784] ss:$48 sps:$4 sm:$0xff]  }
 0x215   :  { %3659 = vmatprep.subr.bf16.mxu0 %v11856_v46  ;;  %3741 = vmatprep.subr.bf16.mxu1 %v11859_v47  ;;  %v11919_v46 = vld [vmem:[#allocation14 + $0x78c] ss:$48 sps:$4 sm:$0xff]   ;;  %v11914_v47 = vld [vmem:[#allocation14 + $0x780] ss:$48 sps:$4 sm:$0xff]  }
 0x218   :  { %3660 = vmatpush1.bf16.msra.mxu0 %v11854_v48  ;;  %3742 = vmatpush1.bf16.msra.mxu1 %v11857_v49  ;;  %v11917_v48 = vld [vmem:[#allocation14 + $0x788] ss:$48 sps:$4 sm:$0xff]   ;;  %v11922_v49 = vld [vmem:[#allocation14 + $0x7e4] ss:$48 sps:$4 sm:$0xff]  }
 0x219   :  { %3661 = vmatprep.subr.bf16.mxu0 %v11862_v50  ;;  %3743 = vmatprep.subr.bf16.mxu1 %v11865_v51  ;;  %v11925_v50 = vld [vmem:[#allocation14 + $0x7ec] ss:$48 sps:$4 sm:$0xff]   ;;  %v11920_v51 = vld [vmem:[#allocation14 + $0x7e0] ss:$48 sps:$4 sm:$0xff]  }
 0x21c   :  { %3662 = vmatpush1.bf16.msra.mxu0 %v11860_v52  ;;  %3744 = vmatpush1.bf16.msra.mxu1 %v11863_v53  ;;  %v11923_v52 = vld [vmem:[#allocation14 + $0x7e8] ss:$48 sps:$4 sm:$0xff]   ;;  %v11928_v53 = vld [vmem:[#allocation14 + $0x844] ss:$48 sps:$4 sm:$0xff]  }
 0x21d   :  { %3663 = vmatprep.subr.bf16.mxu0 %v11868_v54  ;;  %3745 = vmatprep.subr.bf16.mxu1 %v11871_v55  ;;  %v11931_v54 = vld [vmem:[#allocation14 + $0x84c] ss:$48 sps:$4 sm:$0xff]   ;;  %v11926_v55 = vld [vmem:[#allocation14 + $0x840] ss:$48 sps:$4 sm:$0xff]  }
 0x220   :  { %3664 = vmatpush1.bf16.msra.mxu0 %v11866_v56  ;;  %3746 = vmatpush1.bf16.msra.mxu1 %v11869_v57  ;;  %v11929_v56 = vld [vmem:[#allocation14 + $0x848] ss:$48 sps:$4 sm:$0xff]   ;;  %v11934_v57 = vld [vmem:[#allocation14 + $0x8a4] ss:$48 sps:$4 sm:$0xff]  }
 0x221   :  { %3665 = vmatprep.subr.bf16.mxu0 %v11874_v58  ;;  %3747 = vmatprep.subr.bf16.mxu1 %v11877_v59  ;;  %v11937_v58 = vld [vmem:[#allocation14 + $0x8ac] ss:$48 sps:$4 sm:$0xff]   ;;  %v11932_v59 = vld [vmem:[#allocation14 + $0x8a0] ss:$48 sps:$4 sm:$0xff]  }
 0x224   :  { %3666 = vmatpush1.bf16.msra.mxu0 %v11872_v60  ;;  %3748 = vmatpush1.bf16.msra.mxu1 %v11875_v61  ;;  %v11935_v60 = vld [vmem:[#allocation14 + $0x8a8] ss:$48 sps:$4 sm:$0xff]   ;;  %v11940_v61 = vld [vmem:[#allocation14 + $0x904] ss:$48 sps:$4 sm:$0xff]  }
 0x225   :  { %3667 = vmatprep.subr.bf16.mxu0 %v11880_v62  ;;  %3749 = vmatprep.subr.bf16.mxu1 %v11883_v63  ;;  %v11943_v62 = vld [vmem:[#allocation14 + $0x90c] ss:$48 sps:$4 sm:$0xff]   ;;  %v11938_v63 = vld [vmem:[#allocation14 + $0x900] ss:$48 sps:$4 sm:$0xff]  }
 0x228   :  { %3668 = vmatpush1.bf16.msra.mxu0 %v11878_v0  ;;  %3750 = vmatpush1.bf16.msra.mxu1 %v11881_v1  ;;  %v11941_v0 = vld [vmem:[#allocation14 + $0x908] ss:$48 sps:$4 sm:$0xff]   ;;  %v11946_v1 = vld [vmem:[#allocation14 + $0x964] ss:$48 sps:$4 sm:$0xff]  }
 0x229   :  { %3669 = vmatprep.subr.bf16.mxu0 %v11886_v2  ;;  %3751 = vmatprep.subr.bf16.mxu1 %v11889_v3  ;;  %v11949_v2 = vld [vmem:[#allocation14 + $0x96c] ss:$48 sps:$4 sm:$0xff]   ;;  %v11944_v3 = vld [vmem:[#allocation14 + $0x960] ss:$48 sps:$4 sm:$0xff]  }
 0x22c   :  { %3670 = vmatpush1.bf16.msra.mxu0 %v11884_v4  ;;  %3752 = vmatpush1.bf16.msra.mxu1 %v11887_v5  ;;  %v11947_v4 = vld [vmem:[#allocation14 + $0x968] ss:$48 sps:$4 sm:$0xff]   ;;  %v11952_v5 = vld [vmem:[#allocation14 + $0x9c4] ss:$48 sps:$4 sm:$0xff]  }
 0x22d   :  { %3680 = vmatprep.subr.bf16.mxu0 %v11892_v6  ;;  %3762 = vmatprep.subr.bf16.mxu1 %v11895_v7  ;;  %v11955_v6 = vld [vmem:[#allocation14 + $0x9cc] ss:$48 sps:$4 sm:$0xff]   ;;  %v11950_v7 = vld [vmem:[#allocation14 + $0x9c0] ss:$48 sps:$4 sm:$0xff]  }
 0x2c2   :  { %v1178_v17 = vpop.f32.mrb[0].mxu0  ;;  %v14162_v18 = vpop.f32.mrb[0].mxu1 }
 0x2c3   :  { %v11479_v19 = vadd.f32 %v1178_v17, %v432_v14  ;;  %v1180_v20 = vpop.f32.mrb[1].mxu0  ;;  %v1262_v21 = vpop.f32.mrb[1].mxu1  ;;  %v11958_v14 = vld [vmem:[#allocation14 + $0xa24] ss:$48 sps:$4 sm:$0xff]   ;;  %v11959_v17 = vld [vmem:[#allocation14 + $0xa28] ss:$48 sps:$4 sm:$0xff]  }
 0x2c4   :  { %v11480_v22 = vadd.f32 %v1180_v20, %v436_v15  ;;  %v1182_v23 = vpop.f32.mrb[2].mxu0  ;;  %v1264_v24 = vpop.f32.mrb[2].mxu1  ;;  %v11482_v27 = vadd.f32 %v1262_v21, %v444_v16  ;;  %v11961_v15 = vld [vmem:[#allocation14 + $0xa2c] ss:$48 sps:$4 sm:$0xff]   ;;  %v11956_v16 = vld [vmem:[#allocation14 + $0xa20] ss:$48 sps:$4 sm:$0xff]  }
 0x2c5   :  { %v1183_v28 = vpop.f32.mrb[3].mxu0  ;;  %v1265_v29 = vpop.f32.mrb[3].mxu1  ;;  %v14166_v32 = vpack.c.bf16 %v11479_v19, %v11479_v19  ;;  %v11964_v19 = vld [vmem:[#allocation14 + $0xa84] ss:$48 sps:$4 sm:$0xff]   ;;  %v11967_v20 = vld [vmem:[#allocation14 + $0xa8c] ss:$48 sps:$4 sm:$0xff]  }
 0x2c6   :  { %v14164_v30 = vpack.c.bf16 %v11480_v22, %v11480_v22  ;;  %v14170_v36 = vpack.c.bf16 %v11482_v27, %v11482_v27  ;;  %v11962_v21 = vld [vmem:[#allocation14 + $0xa80] ss:$48 sps:$4 sm:$0xff]   ;;  %v11965_v22 = vld [vmem:[#allocation14 + $0xa88] ss:$48 sps:$4 sm:$0xff]   ;;  %v11970_v23 = vld [vmem:[#allocation14 + $0xae4] ss:$48 sps:$4 sm:$0xff]  }
 0x2c7   :  { %v11973_v24 = vld [vmem:[#allocation14 + $0xaec] ss:$48 sps:$4 sm:$0xff]   ;;  %v14177_v27 = vsub.s32 2, %v14143_v9  ;;  %v11976_v28 = vld [vmem:[#allocation14 + $0xb44] ss:$48 sps:$4 sm:$0xff]  }
 0x2c8   :  { %3671 = vmatprep.mubr.bf16.mxu0 %v14164_v30  ;;  %3753 = vmatprep.mubr.bf16.mxu1 %v14164_v30  ;;  %v11979_v29 = vld [vmem:[#allocation14 + $0xb4c] ss:$48 sps:$4 sm:$0xff]  }
 0x2c9   :  { %3672 = vmatmul.mubr.bf16.vlgmr.msra.gmra.mrb[4].mxu0 %v14166_v32  ;;  %3754 = vmatmul.mubr.bf16.vlgmr.msra.gmra.mrb[4].mxu1 %v14166_v32 }
 0x2ca   :  { %3681 = vmatpush1.bf16.msra.mxu0 %v11890_v25  ;;  %3763 = vmatpush1.bf16.msra.mxu1 %v11893_v26  ;;  %v11968_v25 = vld [vmem:[#allocation14 + $0xae0] ss:$48 sps:$4 sm:$0xff]   ;;  %v11971_v26 = vld [vmem:[#allocation14 + $0xae8] ss:$48 sps:$4 sm:$0xff]  }
 0x2cb   :  { %3712 = vmatprep.mubr.bf16.mxu0 %v14170_v36  ;;  %3794 = vmatprep.mubr.bf16.mxu1 %v14170_v36 }
 0x2cc   :  { %3682 = vmatprep.subr.bf16.mxu0 %v11898_v31  ;;  %3764 = vmatprep.subr.bf16.mxu1 %v11901_v35  ;;  %v11974_v31 = vld [vmem:[#allocation14 + $0xb40] ss:$48 sps:$4 sm:$0xff]   ;;  %v11982_v35 = vld [vmem:[#allocation14 + $0xba4] ss:$48 sps:$4 sm:$0xff]  }
 0x2ce   :  { %3683 = vmatpush1.bf16.msra.mxu0 %v11896_v33  ;;  %3765 = vmatpush1.bf16.msra.mxu1 %v11899_v34  ;;  %v11977_v33 = vld [vmem:[#allocation14 + $0xb48] ss:$48 sps:$4 sm:$0xff]   ;;  %v440_v34 = vrot.slane %v14148_v11, %v14177_v27  ;;  %v11997_v11 = vld [vmem:[#allocation14 + $0x7c] ss:$48 sps:$4 sm:$0xff]  }
 0x2cf   :  { %3684 = vmatprep.subr.bf16.mxu0 %v11904_v37  ;;  %3766 = vmatprep.subr.bf16.mxu1 %v11907_v38  ;;  %v11985_v37 = vld [vmem:[#allocation14 + $0xbac] ss:$48 sps:$4 sm:$0xff]   ;;  %v11980_v38 = vld [vmem:[#allocation14 + $0xba0] ss:$48 sps:$4 sm:$0xff]  }
 0x2d2   :  { %3685 = vmatpush1.bf16.msra.mxu0 %v11902_v39  ;;  %3767 = vmatpush1.bf16.msra.mxu1 %v11905_v40  ;;  %v11983_v39 = vld [vmem:[#allocation14 + $0xba8] ss:$48 sps:$4 sm:$0xff]   ;;  %v11481_v40 = vadd.f32 %v14162_v18, %v440_v34  ;;  %v12058_v34 = vld [vmem:[#allocation14 + $0x490] ss:$48 sps:$4 sm:$0xff]  }
 0x2d3   :  { %3686 = vmatprep.subr.bf16.mxu0 %v11910_v41  ;;  %3768 = vmatprep.subr.bf16.mxu1 %v11913_v42  ;;  %v11988_v41 = vld [vmem:[#allocation14 + $0x14] ss:$48 sps:$4 sm:$0xff]   ;;  %v11991_v42 = vld [vmem:[#allocation14 + $0x1c] ss:$48 sps:$4 sm:$0xff]   ;;  %v11995_v18 = vld [vmem:[#allocation14 + $0x78] ss:$48 sps:$4 sm:$0xff]  }
 0x2d6   :  { %3687 = vmatpush1.bf16.msra.mxu0 %v11908_v43  ;;  %3769 = vmatpush1.bf16.msra.mxu1 %v11911_v44  ;;  %v11986_v43 = vld [vmem:[#allocation14 + $0x10] ss:$48 sps:$4 sm:$0xff]   ;;  %v11989_v44 = vld [vmem:[#allocation14 + $0x18] ss:$48 sps:$4 sm:$0xff]  }
 0x2d7   :  { %3688 = vmatprep.subr.bf16.mxu0 %v11916_v45  ;;  %3770 = vmatprep.subr.bf16.mxu1 %v11919_v46  ;;  %v11994_v45 = vld [vmem:[#allocation14 + $0x74] ss:$48 sps:$4 sm:$0xff]   ;;  %v14182_v46 = vpack.c.bf16 %v11481_v40, %v11481_v40  ;;  %v12069_v40 = vld [vmem:[#allocation14 + $0x4fc] ss:$48 sps:$4 sm:$0xff]  }
 0x2da   :  { %3689 = vmatpush1.bf16.msra.mxu0 %v11914_v47  ;;  %3771 = vmatpush1.bf16.msra.mxu1 %v11917_v48  ;;  %v11992_v47 = vld [vmem:[#allocation14 + $0x70] ss:$48 sps:$4 sm:$0xff]   ;;  %v12000_v48 = vld [vmem:[#allocation14 + $0xd4] ss:$48 sps:$4 sm:$0xff]  }
 0x2db   :  { %3690 = vmatprep.subr.bf16.mxu0 %v11922_v49  ;;  %3772 = vmatprep.subr.bf16.mxu1 %v11925_v50  ;;  %v12003_v49 = vld [vmem:[#allocation14 + $0xdc] ss:$48 sps:$4 sm:$0xff]   ;;  %v11998_v50 = vld [vmem:[#allocation14 + $0xd0] ss:$48 sps:$4 sm:$0xff]  }
 0x2de   :  { %3691 = vmatpush1.bf16.msra.mxu0 %v11920_v51  ;;  %3773 = vmatpush1.bf16.msra.mxu1 %v11923_v52  ;;  %v12001_v51 = vld [vmem:[#allocation14 + $0xd8] ss:$48 sps:$4 sm:$0xff]   ;;  %v12006_v52 = vld [vmem:[#allocation14 + $0x134] ss:$48 sps:$4 sm:$0xff]  }
 0x2df   :  { %3692 = vmatprep.subr.bf16.mxu0 %v11928_v53  ;;  %3774 = vmatprep.subr.bf16.mxu1 %v11931_v54  ;;  %v12004_v53 = vld [vmem:[#allocation14 + $0x130] ss:$48 sps:$4 sm:$0xff]   ;;  %v12009_v54 = vld [vmem:[#allocation14 + $0x13c] ss:$48 sps:$4 sm:$0xff]  }
 0x2e2   :  { %3693 = vmatpush1.bf16.msra.mxu0 %v11926_v55  ;;  %3775 = vmatpush1.bf16.msra.mxu1 %v11929_v56  ;;  %v12007_v55 = vld [vmem:[#allocation14 + $0x138] ss:$48 sps:$4 sm:$0xff]   ;;  %v12012_v56 = vld [vmem:[#allocation14 + $0x194] ss:$48 sps:$4 sm:$0xff]  }
 0x2e3   :  { %3694 = vmatprep.subr.bf16.mxu0 %v11934_v57  ;;  %3776 = vmatprep.subr.bf16.mxu1 %v11937_v58  ;;  %v12010_v57 = vld [vmem:[#allocation14 + $0x190] ss:$48 sps:$4 sm:$0xff]   ;;  %v12015_v58 = vld [vmem:[#allocation14 + $0x19c] ss:$48 sps:$4 sm:$0xff]  }
 0x2e6   :  { %3695 = vmatpush1.bf16.msra.mxu0 %v11932_v59  ;;  %3777 = vmatpush1.bf16.msra.mxu1 %v11935_v60  ;;  %v12013_v59 = vld [vmem:[#allocation14 + $0x198] ss:$48 sps:$4 sm:$0xff]   ;;  %v12018_v60 = vld [vmem:[#allocation14 + $0x1f4] ss:$48 sps:$4 sm:$0xff]  }
 0x2e7   :  { %3696 = vmatprep.subr.bf16.mxu0 %v11940_v61  ;;  %3778 = vmatprep.subr.bf16.mxu1 %v11943_v62  ;;  %v12016_v61 = vld [vmem:[#allocation14 + $0x1f0] ss:$48 sps:$4 sm:$0xff]   ;;  %v12021_v62 = vld [vmem:[#allocation14 + $0x1fc] ss:$48 sps:$4 sm:$0xff]  }
 0x2ea   :  { %3697 = vmatpush1.bf16.msra.mxu0 %v11938_v63  ;;  %3779 = vmatpush1.bf16.msra.mxu1 %v11941_v0  ;;  %v12019_v63 = vld [vmem:[#allocation14 + $0x1f8] ss:$48 sps:$4 sm:$0xff]   ;;  %v12024_v0 = vld [vmem:[#allocation14 + $0x254] ss:$48 sps:$4 sm:$0xff]  }
 0x2eb   :  { %3698 = vmatprep.subr.bf16.mxu0 %v11946_v1  ;;  %3780 = vmatprep.subr.bf16.mxu1 %v11949_v2  ;;  %v12022_v1 = vld [vmem:[#allocation14 + $0x250] ss:$48 sps:$4 sm:$0xff]   ;;  %v12027_v2 = vld [vmem:[#allocation14 + $0x25c] ss:$48 sps:$4 sm:$0xff]  }
 0x2ee   :  { %3699 = vmatpush1.bf16.msra.mxu0 %v11944_v3  ;;  %3781 = vmatpush1.bf16.msra.mxu1 %v11947_v4  ;;  %v12025_v3 = vld [vmem:[#allocation14 + $0x258] ss:$48 sps:$4 sm:$0xff]   ;;  %v12030_v4 = vld [vmem:[#allocation14 + $0x2b4] ss:$48 sps:$4 sm:$0xff]  }
 0x2ef   :  { %3700 = vmatprep.subr.bf16.mxu0 %v11952_v5  ;;  %3782 = vmatprep.subr.bf16.mxu1 %v11955_v6  ;;  %v12028_v5 = vld [vmem:[#allocation14 + $0x2b0] ss:$48 sps:$4 sm:$0xff]   ;;  %v12033_v6 = vld [vmem:[#allocation14 + $0x2bc] ss:$48 sps:$4 sm:$0xff]  }
 0x2f2   :  { %3701 = vmatpush1.bf16.msra.mxu0 %v11950_v7  ;;  %3783 = vmatpush1.bf16.msra.mxu1 %v11953_v8  ;;  %v12031_v7 = vld [vmem:[#allocation14 + $0x2b8] ss:$48 sps:$4 sm:$0xff]   ;;  %v12036_v8 = vld [vmem:[#allocation14 + $0x314] ss:$48 sps:$4 sm:$0xff]  }
 0x2f3   :  { %3702 = vmatprep.subr.bf16.mxu0 %v11958_v14  ;;  %3784 = vmatprep.subr.bf16.mxu1 %v11961_v15  ;;  %v12034_v14 = vld [vmem:[#allocation14 + $0x310] ss:$48 sps:$4 sm:$0xff]   ;;  %v12039_v15 = vld [vmem:[#allocation14 + $0x31c] ss:$48 sps:$4 sm:$0xff]  }
 0x2f6   :  { %3703 = vmatpush1.bf16.msra.mxu0 %v11956_v16  ;;  %3785 = vmatpush1.bf16.msra.mxu1 %v11959_v17  ;;  %v12037_v16 = vld [vmem:[#allocation14 + $0x318] ss:$48 sps:$4 sm:$0xff]   ;;  %v12042_v17 = vld [vmem:[#allocation14 + $0x374] ss:$48 sps:$4 sm:$0xff]  }
 0x2f7   :  { %3704 = vmatprep.subr.bf16.mxu0 %v11964_v19  ;;  %3786 = vmatprep.subr.bf16.mxu1 %v11967_v20  ;;  %v12040_v19 = vld [vmem:[#allocation14 + $0x370] ss:$48 sps:$4 sm:$0xff]   ;;  %v12045_v20 = vld [vmem:[#allocation14 + $0x37c] ss:$48 sps:$4 sm:$0xff]  }
 0x2fa   :  { %3705 = vmatpush1.bf16.msra.mxu0 %v11962_v21  ;;  %3787 = vmatpush1.bf16.msra.mxu1 %v11965_v22  ;;  %v12043_v21 = vld [vmem:[#allocation14 + $0x378] ss:$48 sps:$4 sm:$0xff]   ;;  %v12048_v22 = vld [vmem:[#allocation14 + $0x3d4] ss:$48 sps:$4 sm:$0xff]  }
 0x2fb   :  { %3706 = vmatprep.subr.bf16.mxu0 %v11970_v23  ;;  %3788 = vmatprep.subr.bf16.mxu1 %v11973_v24  ;;  %v12046_v23 = vld [vmem:[#allocation14 + $0x3d0] ss:$48 sps:$4 sm:$0xff]   ;;  %v12051_v24 = vld [vmem:[#allocation14 + $0x3dc] ss:$48 sps:$4 sm:$0xff]  }
 0x2fe   :  { %3707 = vmatpush1.bf16.msra.mxu0 %v11968_v25  ;;  %3789 = vmatpush1.bf16.msra.mxu1 %v11971_v26  ;;  %v12049_v25 = vld [vmem:[#allocation14 + $0x3d8] ss:$48 sps:$4 sm:$0xff]   ;;  %v12054_v26 = vld [vmem:[#allocation14 + $0x434] ss:$48 sps:$4 sm:$0xff]  }
 0x2ff   :  { %3708 = vmatprep.subr.bf16.mxu0 %v11976_v28  ;;  %3790 = vmatprep.subr.bf16.mxu1 %v11979_v29  ;;  %v12052_v28 = vld [vmem:[#allocation14 + $0x430] ss:$48 sps:$4 sm:$0xff]   ;;  %v12057_v29 = vld [vmem:[#allocation14 + $0x43c] ss:$48 sps:$4 sm:$0xff]  }
 0x302   :  { %3709 = vmatpush1.bf16.msra.mxu0 %v11974_v31  ;;  %3791 = vmatpush1.bf16.msra.mxu1 %v11977_v33  ;;  %v12055_v31 = vld [vmem:[#allocation14 + $0x438] ss:$48 sps:$4 sm:$0xff]   ;;  %v12060_v33 = vld [vmem:[#allocation14 + $0x494] ss:$48 sps:$4 sm:$0xff]  }
 0x303   :  { %3710 = vmatprep.subr.bf16.mxu0 %v11982_v35  ;;  %3792 = vmatprep.subr.bf16.mxu1 %v11985_v37  ;;  %v12063_v35 = vld [vmem:[#allocation14 + $0x49c] ss:$48 sps:$4 sm:$0xff]   ;;  %v12061_v37 = vld [vmem:[#allocation14 + $0x498] ss:$48 sps:$4 sm:$0xff]  }
 0x306   :  { %3711 = vmatpush1.bf16.msra.mxu0 %v11980_v38  ;;  %3793 = vmatpush1.bf16.msra.mxu1 %v11983_v39  ;;  %v12066_v38 = vld [vmem:[#allocation14 + $0x4f4] ss:$48 sps:$4 sm:$0xff]   ;;  %v12064_v39 = vld [vmem:[#allocation14 + $0x4f0] ss:$48 sps:$4 sm:$0xff]  }
 0x307   :  { %3803 = vmatprep.subr.bf16.mxu0 %v11988_v41  ;;  %3885 = vmatprep.subr.bf16.mxu1 %v11991_v42  ;;  %v12067_v41 = vld [vmem:[#allocation14 + $0x4f8] ss:$48 sps:$4 sm:$0xff]   ;;  %v12072_v42 = vld [vmem:[#allocation14 + $0x554] ss:$48 sps:$4 sm:$0xff]  }
 0x309   :  { %3713 = vmatmul.mubr.bf16.vlgmr.msra.gmra.mrb[4].mxu0 %v14182_v46  ;;  %3795 = vmatmul.mubr.bf16.vlgmr.msra.gmra.mrb[4].mxu1 %v14182_v46 }
 0x30a   :  { %3804 = vmatpush1.bf16.msra.mxu0 %v11986_v43  ;;  %3835 = vmatprep.mubr.bf16.mxu0 %v14164_v30  ;;  %v12070_v43 = vld [vmem:[#allocation14 + $0x550] ss:$48 sps:$4 sm:$0xff]  }
 0x30b   :  { %3886 = vmatpush1.bf16.msra.mxu1 %v11989_v44  ;;  %3917 = vmatprep.mubr.bf16.mxu1 %v14164_v30  ;;  %v12075_v44 = vld [vmem:[#allocation14 + $0x55c] ss:$48 sps:$4 sm:$0xff]  }
 0x30c   :  { %3805 = vmatprep.subr.bf16.mxu0 %v11994_v45  ;;  %3887 = vmatprep.subr.bf16.mxu1 %v11997_v11  ;;  %v12073_v45 = vld [vmem:[#allocation14 + $0x558] ss:$48 sps:$4 sm:$0xff]   ;;  %v12078_v11 = vld [vmem:[#allocation14 + $0x5b4] ss:$48 sps:$4 sm:$0xff]  }
 0x30e   :  { %3806 = vmatpush1.bf16.msra.mxu0 %v11992_v47  ;;  %v12076_v47 = vld [vmem:[#allocation14 + $0x5b0] ss:$48 sps:$4 sm:$0xff]  }
 0x30f   :  { %3888 = vmatpush1.bf16.msra.mxu1 %v11995_v18  ;;  %3807 = vmatprep.subr.bf16.mxu0 %v12000_v48  ;;  %v12081_v18 = vld [vmem:[#allocation14 + $0x5bc] ss:$48 sps:$4 sm:$0xff]   ;;  %v12079_v48 = vld [vmem:[#allocation14 + $0x5b8] ss:$48 sps:$4 sm:$0xff]  }
 0x310   :  { %3889 = vmatprep.subr.bf16.mxu1 %v12003_v49  ;;  %v12084_v49 = vld [vmem:[#allocation14 + $0x614] ss:$48 sps:$4 sm:$0xff]  }
 0x312   :  { %3808 = vmatpush1.bf16.msra.mxu0 %v11998_v50  ;;  %v12087_v50 = vld [vmem:[#allocation14 + $0x61c] ss:$48 sps:$4 sm:$0xff]  }
 0x313   :  { %3890 = vmatpush1.bf16.msra.mxu1 %v12001_v51  ;;  %3809 = vmatprep.subr.bf16.mxu0 %v12006_v52  ;;  %v12082_v51 = vld [vmem:[#allocation14 + $0x610] ss:$48 sps:$4 sm:$0xff]   ;;  %v12085_v52 = vld [vmem:[#allocation14 + $0x618] ss:$48 sps:$4 sm:$0xff]  }
 0x314   :  { %3891 = vmatprep.subr.bf16.mxu1 %v12009_v54  ;;  %v12088_v54 = vld [vmem:[#allocation14 + $0x670] ss:$48 sps:$4 sm:$0xff]  }
 0x316   :  { %3810 = vmatpush1.bf16.msra.mxu0 %v12004_v53  ;;  %v12090_v53 = vld [vmem:[#allocation14 + $0x674] ss:$48 sps:$4 sm:$0xff]  }
 0x317   :  { %3892 = vmatpush1.bf16.msra.mxu1 %v12007_v55  ;;  %3811 = vmatprep.subr.bf16.mxu0 %v12012_v56  ;;  %v12091_v55 = vld [vmem:[#allocation14 + $0x678] ss:$48 sps:$4 sm:$0xff]   ;;  %v12093_v56 = vld [vmem:[#allocation14 + $0x67c] ss:$48 sps:$4 sm:$0xff]  }
 0x318   :  { %3893 = vmatprep.subr.bf16.mxu1 %v12015_v58  ;;  %v12099_v58 = vld [vmem:[#allocation14 + $0x6dc] ss:$48 sps:$4 sm:$0xff]  }
 0x31a   :  { %3812 = vmatpush1.bf16.msra.mxu0 %v12010_v57  ;;  %v12096_v57 = vld [vmem:[#allocation14 + $0x6d4] ss:$48 sps:$4 sm:$0xff]  }
 0x31b   :  { %3894 = vmatpush1.bf16.msra.mxu1 %v12013_v59  ;;  %3813 = vmatprep.subr.bf16.mxu0 %v12018_v60  ;;  %v12094_v59 = vld [vmem:[#allocation14 + $0x6d0] ss:$48 sps:$4 sm:$0xff]   ;;  %v12097_v60 = vld [vmem:[#allocation14 + $0x6d8] ss:$48 sps:$4 sm:$0xff]  }
 0x31c   :  { %3895 = vmatprep.subr.bf16.mxu1 %v12021_v62  ;;  %v12100_v62 = vld [vmem:[#allocation14 + $0x730] ss:$48 sps:$4 sm:$0xff]  }
 0x31e   :  { %3814 = vmatpush1.bf16.msra.mxu0 %v12016_v61  ;;  %v12102_v61 = vld [vmem:[#allocation14 + $0x734] ss:$48 sps:$4 sm:$0xff]  }
 0x31f   :  { %3896 = vmatpush1.bf16.msra.mxu1 %v12019_v63  ;;  %3815 = vmatprep.subr.bf16.mxu0 %v12024_v0  ;;  %v12105_v63 = vld [vmem:[#allocation14 + $0x73c] ss:$48 sps:$4 sm:$0xff]   ;;  %v12103_v0 = vld [vmem:[#allocation14 + $0x738] ss:$48 sps:$4 sm:$0xff]  }
 0x320   :  { %3897 = vmatprep.subr.bf16.mxu1 %v12027_v2  ;;  %v12106_v2 = vld [vmem:[#allocation14 + $0x790] ss:$48 sps:$4 sm:$0xff]  }
 0x322   :  { %3816 = vmatpush1.bf16.msra.mxu0 %v12022_v1  ;;  %v12108_v1 = vld [vmem:[#allocation14 + $0x794] ss:$48 sps:$4 sm:$0xff]  }
 0x323   :  { %3898 = vmatpush1.bf16.msra.mxu1 %v12025_v3  ;;  %3817 = vmatprep.subr.bf16.mxu0 %v12030_v4  ;;  %v12111_v3 = vld [vmem:[#allocation14 + $0x79c] ss:$48 sps:$4 sm:$0xff]   ;;  %v12109_v4 = vld [vmem:[#allocation14 + $0x798] ss:$48 sps:$4 sm:$0xff]  }
 0x324   :  { %3899 = vmatprep.subr.bf16.mxu1 %v12033_v6  ;;  %v12112_v6 = vld [vmem:[#allocation14 + $0x7f0] ss:$48 sps:$4 sm:$0xff]  }
 0x326   :  { %3818 = vmatpush1.bf16.msra.mxu0 %v12028_v5  ;;  %v12114_v5 = vld [vmem:[#allocation14 + $0x7f4] ss:$48 sps:$4 sm:$0xff]  }
 0x327   :  { %3900 = vmatpush1.bf16.msra.mxu1 %v12031_v7  ;;  %3819 = vmatprep.subr.bf16.mxu0 %v12036_v8  ;;  %v12117_v7 = vld [vmem:[#allocation14 + $0x7fc] ss:$48 sps:$4 sm:$0xff]   ;;  %v12115_v8 = vld [vmem:[#allocation14 + $0x7f8] ss:$48 sps:$4 sm:$0xff]  }
 0x328   :  { %3901 = vmatprep.subr.bf16.mxu1 %v12039_v15  ;;  %v12123_v15 = vld [vmem:[#allocation14 + $0x85c] ss:$48 sps:$4 sm:$0xff]  }
 0x32a   :  { %3820 = vmatpush1.bf16.msra.mxu0 %v12034_v14  ;;  %v12120_v14 = vld [vmem:[#allocation14 + $0x854] ss:$48 sps:$4 sm:$0xff]  }
 0x32b   :  { %3902 = vmatpush1.bf16.msra.mxu1 %v12037_v16  ;;  %3821 = vmatprep.subr.bf16.mxu0 %v12042_v17  ;;  %v12118_v16 = vld [vmem:[#allocation14 + $0x850] ss:$48 sps:$4 sm:$0xff]   ;;  %v12121_v17 = vld [vmem:[#allocation14 + $0x858] ss:$48 sps:$4 sm:$0xff]  }
 0x32c   :  { %3903 = vmatprep.subr.bf16.mxu1 %v12045_v20  ;;  %v12129_v20 = vld [vmem:[#allocation14 + $0x8bc] ss:$48 sps:$4 sm:$0xff]  }
 0x32e   :  { %3822 = vmatpush1.bf16.msra.mxu0 %v12040_v19  ;;  %v12126_v19 = vld [vmem:[#allocation14 + $0x8b4] ss:$48 sps:$4 sm:$0xff]  }
 0x32f   :  { %3904 = vmatpush1.bf16.msra.mxu1 %v12043_v21  ;;  %3823 = vmatprep.subr.bf16.mxu0 %v12048_v22  ;;  %v12124_v21 = vld [vmem:[#allocation14 + $0x8b0] ss:$48 sps:$4 sm:$0xff]   ;;  %v12127_v22 = vld [vmem:[#allocation14 + $0x8b8] ss:$48 sps:$4 sm:$0xff]  }
 0x330   :  { %3905 = vmatprep.subr.bf16.mxu1 %v12051_v24  ;;  %v12130_v24 = vld [vmem:[#allocation14 + $0x910] ss:$48 sps:$4 sm:$0xff]  }
 0x332   :  { %3824 = vmatpush1.bf16.msra.mxu0 %v12046_v23  ;;  %v12132_v23 = vld [vmem:[#allocation14 + $0x914] ss:$48 sps:$4 sm:$0xff]  }
 0x333   :  { %3906 = vmatpush1.bf16.msra.mxu1 %v12049_v25  ;;  %3825 = vmatprep.subr.bf16.mxu0 %v12054_v26  ;;  %v12135_v25 = vld [vmem:[#allocation14 + $0x91c] ss:$48 sps:$4 sm:$0xff]   ;;  %v12133_v26 = vld [vmem:[#allocation14 + $0x918] ss:$48 sps:$4 sm:$0xff]  }
 0x334   :  { %3907 = vmatprep.subr.bf16.mxu1 %v12057_v29  ;;  %v12136_v29 = vld [vmem:[#allocation14 + $0x970] ss:$48 sps:$4 sm:$0xff]  }
 0x336   :  { %3826 = vmatpush1.bf16.msra.mxu0 %v12052_v28  ;;  %v12138_v28 = vld [vmem:[#allocation14 + $0x974] ss:$48 sps:$4 sm:$0xff]  }
 0x337   :  { %3908 = vmatpush1.bf16.msra.mxu1 %v12055_v31  ;;  %3827 = vmatprep.subr.bf16.mxu0 %v12060_v33  ;;  %v12141_v31 = vld [vmem:[#allocation14 + $0x97c] ss:$48 sps:$4 sm:$0xff]   ;;  %v12139_v33 = vld [vmem:[#allocation14 + $0x978] ss:$48 sps:$4 sm:$0xff]  }
 0x338   :  { %3909 = vmatprep.subr.bf16.mxu1 %v12063_v35  ;;  %v12142_v35 = vld [vmem:[#allocation14 + $0x9d0] ss:$48 sps:$4 sm:$0xff]  }
 0x33a   :  { %3828 = vmatpush1.bf16.msra.mxu0 %v12058_v34  ;;  %v12144_v34 = vld [vmem:[#allocation14 + $0x9d4] ss:$48 sps:$4 sm:$0xff]  }
 0x33b   :  { %3910 = vmatpush1.bf16.msra.mxu1 %v12061_v37  ;;  %3829 = vmatprep.subr.bf16.mxu0 %v12066_v38  ;;  %v12147_v37 = vld [vmem:[#allocation14 + $0x9dc] ss:$48 sps:$4 sm:$0xff]   ;;  %v12145_v38 = vld [vmem:[#allocation14 + $0x9d8] ss:$48 sps:$4 sm:$0xff]  }
 0x33c   :  { %3911 = vmatprep.subr.bf16.mxu1 %v12069_v40  ;;  %v12148_v40 = vld [vmem:[#allocation14 + $0xa30] ss:$48 sps:$4 sm:$0xff]  }
 0x33e   :  { %3830 = vmatpush1.bf16.msra.mxu0 %v12064_v39  ;;  %v12150_v39 = vld [vmem:[#allocation14 + $0xa34] ss:$48 sps:$4 sm:$0xff]  }
 0x33f   :  { %3912 = vmatpush1.bf16.msra.mxu1 %v12067_v41  ;;  %3831 = vmatprep.subr.bf16.mxu0 %v12072_v42  ;;  %v12153_v41 = vld [vmem:[#allocation14 + $0xa3c] ss:$48 sps:$4 sm:$0xff]   ;;  %v12151_v42 = vld [vmem:[#allocation14 + $0xa38] ss:$48 sps:$4 sm:$0xff]  }
 0x340   :  { %3913 = vmatprep.subr.bf16.mxu1 %v12075_v44  ;;  %v12154_v44 = vld [vmem:[#allocation14 + $0xa90] ss:$48 sps:$4 sm:$0xff]  }
 0x342   :  { %3832 = vmatpush1.bf16.msra.mxu0 %v12070_v43  ;;  %v12156_v43 = vld [vmem:[#allocation14 + $0xa94] ss:$48 sps:$4 sm:$0xff]  }
 0x343   :  { %3914 = vmatpush1.bf16.msra.mxu1 %v12073_v45  ;;  %3833 = vmatprep.subr.bf16.mxu0 %v12078_v11  ;;  %v12159_v45 = vld [vmem:[#allocation14 + $0xa9c] ss:$48 sps:$4 sm:$0xff]   ;;  %v12157_v11 = vld [vmem:[#allocation14 + $0xa98] ss:$48 sps:$4 sm:$0xff]  }
 0x344   :  { %3915 = vmatprep.subr.bf16.mxu1 %v12081_v18  ;;  %v12160_v18 = vld [vmem:[#allocation14 + $0xaf0] ss:$48 sps:$4 sm:$0xff]  }
 0x346   :  { %3834 = vmatpush1.bf16.msra.mxu0 %v12076_v47  ;;  %v12162_v47 = vld [vmem:[#allocation14 + $0xaf4] ss:$48 sps:$4 sm:$0xff]  }
 0x347   :  { %3916 = vmatpush1.bf16.msra.mxu1 %v12079_v48  ;;  %3844 = vmatprep.subr.bf16.mxu0 %v12084_v49  ;;  %v12165_v48 = vld [vmem:[#allocation14 + $0xafc] ss:$48 sps:$4 sm:$0xff]   ;;  %v12163_v49 = vld [vmem:[#allocation14 + $0xaf8] ss:$48 sps:$4 sm:$0xff]  }
 0x348   :  { %3926 = vmatprep.subr.bf16.mxu1 %v12087_v50  ;;  %v12168_v50 = vld [vmem:[#allocation14 + $0xb54] ss:$48 sps:$4 sm:$0xff]  }
 0x349   :  { %3836 = vmatmul.mubr.bf16.vlgmr.msra.gmra.mrb[8].mxu0 %v14166_v32 }
 0x34a   :  { %3918 = vmatmul.mubr.bf16.vlgmr.msra.gmra.mrb[8].mxu1 %v14166_v32  ;;  %3845 = vmatpush1.bf16.msra.mxu0 %v12082_v51  ;;  %v12166_v51 = vld [vmem:[#allocation14 + $0xb50] ss:$48 sps:$4 sm:$0xff]  }
 0x34b   :  { %3876 = vmatprep.mubr.bf16.mxu0 %v14170_v36  ;;  %3927 = vmatpush1.bf16.msra.mxu1 %v12085_v52  ;;  %v12171_v52 = vld [vmem:[#allocation14 + $0xb5c] ss:$48 sps:$4 sm:$0xff]  }
 0x34c   :  { %3958 = vmatprep.mubr.bf16.mxu1 %v14170_v36  ;;  %3846 = vmatprep.subr.bf16.mxu0 %v12090_v53  ;;  %v12169_v53 = vld [vmem:[#allocation14 + $0xb58] ss:$48 sps:$4 sm:$0xff]  }
 0x34d   :  { %3928 = vmatprep.subr.bf16.mxu1 %v12093_v56  ;;  %v12177_v56 = vld [vmem:[#allocation14 + $0xbbc] ss:$48 sps:$4 sm:$0xff]  }
 0x34e   :  { %3847 = vmatpush1.bf16.msra.mxu0 %v12088_v54  ;;  %v12174_v54 = vld [vmem:[#allocation14 + $0xbb4] ss:$48 sps:$4 sm:$0xff]  }
 0x34f   :  { %3929 = vmatpush1.bf16.msra.mxu1 %v12091_v55  ;;  %3848 = vmatprep.subr.bf16.mxu0 %v12096_v57  ;;  %v12172_v55 = vld [vmem:[#allocation14 + $0xbb0] ss:$48 sps:$4 sm:$0xff]   ;;  %v12175_v57 = vld [vmem:[#allocation14 + $0xbb8] ss:$48 sps:$4 sm:$0xff]  }
 0x350   :  { %3930 = vmatprep.subr.bf16.mxu1 %v12099_v58  ;;  %v12180_v58 = vld [vmem:[#allocation14 + $0x24] ss:$48 sps:$4 sm:$0xff]  }
 0x352   :  { %3849 = vmatpush1.bf16.msra.mxu0 %v12094_v59  ;;  %v12183_v59 = vld [vmem:[#allocation14 + $0x2c] ss:$48 sps:$4 sm:$0xff]  }
 0x353   :  { %3931 = vmatpush1.bf16.msra.mxu1 %v12097_v60  ;;  %3850 = vmatprep.subr.bf16.mxu0 %v12102_v61  ;;  %v12178_v60 = vld [vmem:[#allocation14 + $0x20] ss:$48 sps:$4 sm:$0xff]   ;;  %v12181_v61 = vld [vmem:[#allocation14 + $0x28] ss:$48 sps:$4 sm:$0xff]  }
 0x354   :  { %3932 = vmatprep.subr.bf16.mxu1 %v12105_v63  ;;  %v12189_v63 = vld [vmem:[#allocation14 + $0x8c] ss:$48 sps:$4 sm:$0xff]  }
 0x356   :  { %3851 = vmatpush1.bf16.msra.mxu0 %v12100_v62  ;;  %v12186_v62 = vld [vmem:[#allocation14 + $0x84] ss:$48 sps:$4 sm:$0xff]  }
 0x357   :  { %3933 = vmatpush1.bf16.msra.mxu1 %v12103_v0  ;;  %3852 = vmatprep.subr.bf16.mxu0 %v12108_v1  ;;  %v12184_v0 = vld [vmem:[#allocation14 + $0x80] ss:$48 sps:$4 sm:$0xff]   ;;  %v12187_v1 = vld [vmem:[#allocation14 + $0x88] ss:$48 sps:$4 sm:$0xff]  }
 0x358   :  { %3934 = vmatprep.subr.bf16.mxu1 %v12111_v3  ;;  %v12195_v3 = vld [vmem:[#allocation14 + $0xec] ss:$48 sps:$4 sm:$0xff]  }
 0x35a   :  { %3853 = vmatpush1.bf16.msra.mxu0 %v12106_v2  ;;  %v12192_v2 = vld [vmem:[#allocation14 + $0xe4] ss:$48 sps:$4 sm:$0xff]  }
 0x35b   :  { %3935 = vmatpush1.bf16.msra.mxu1 %v12109_v4  ;;  %3854 = vmatprep.subr.bf16.mxu0 %v12114_v5  ;;  %v12190_v4 = vld [vmem:[#allocation14 + $0xe0] ss:$48 sps:$4 sm:$0xff]   ;;  %v12193_v5 = vld [vmem:[#allocation14 + $0xe8] ss:$48 sps:$4 sm:$0xff]  }
 0x35c   :  { %3936 = vmatprep.subr.bf16.mxu1 %v12117_v7  ;;  %v12201_v7 = vld [vmem:[#allocation14 + $0x14c] ss:$48 sps:$4 sm:$0xff]  }
 0x35e   :  { %3855 = vmatpush1.bf16.msra.mxu0 %v12112_v6  ;;  %v12198_v6 = vld [vmem:[#allocation14 + $0x144] ss:$48 sps:$4 sm:$0xff]  }
 0x35f   :  { %3937 = vmatpush1.bf16.msra.mxu1 %v12115_v8  ;;  %3856 = vmatprep.subr.bf16.mxu0 %v12120_v14  ;;  %v12196_v8 = vld [vmem:[#allocation14 + $0x140] ss:$48 sps:$4 sm:$0xff]   ;;  %v12199_v14 = vld [vmem:[#allocation14 + $0x148] ss:$48 sps:$4 sm:$0xff]  }
 0x360   :  { %3938 = vmatprep.subr.bf16.mxu1 %v12123_v15  ;;  %v12204_v15 = vld [vmem:[#allocation14 + $0x1a4] ss:$48 sps:$4 sm:$0xff]  }
 0x362   :  { %3857 = vmatpush1.bf16.msra.mxu0 %v12118_v16  ;;  %v12207_v16 = vld [vmem:[#allocation14 + $0x1ac] ss:$48 sps:$4 sm:$0xff]  }
 0x363   :  { %3939 = vmatpush1.bf16.msra.mxu1 %v12121_v17  ;;  %3858 = vmatprep.subr.bf16.mxu0 %v12126_v19  ;;  %v12202_v17 = vld [vmem:[#allocation14 + $0x1a0] ss:$48 sps:$4 sm:$0xff]   ;;  %v12210_v19 = vld [vmem:[#allocation14 + $0x204] ss:$48 sps:$4 sm:$0xff]  }
 0x364   :  { %3940 = vmatprep.subr.bf16.mxu1 %v12129_v20  ;;  %v12213_v20 = vld [vmem:[#allocation14 + $0x20c] ss:$48 sps:$4 sm:$0xff]  }
 0x366   :  { %3859 = vmatpush1.bf16.msra.mxu0 %v12124_v21  ;;  %v12208_v21 = vld [vmem:[#allocation14 + $0x200] ss:$48 sps:$4 sm:$0xff]  }
 0x367   :  { %3941 = vmatpush1.bf16.msra.mxu1 %v12127_v22  ;;  %3860 = vmatprep.subr.bf16.mxu0 %v12132_v23  ;;  %v12211_v22 = vld [vmem:[#allocation14 + $0x208] ss:$48 sps:$4 sm:$0xff]   ;;  %v12216_v23 = vld [vmem:[#allocation14 + $0x264] ss:$48 sps:$4 sm:$0xff]  }
 0x368   :  { %3942 = vmatprep.subr.bf16.mxu1 %v12135_v25  ;;  %v12214_v25 = vld [vmem:[#allocation14 + $0x260] ss:$48 sps:$4 sm:$0xff]  }
 0x36a   :  { %3861 = vmatpush1.bf16.msra.mxu0 %v12130_v24  ;;  %v12219_v24 = vld [vmem:[#allocation14 + $0x26c] ss:$48 sps:$4 sm:$0xff]  }
 0x36b   :  { %3943 = vmatpush1.bf16.msra.mxu1 %v12133_v26  ;;  %3862 = vmatprep.subr.bf16.mxu0 %v12138_v28  ;;  %v12217_v26 = vld [vmem:[#allocation14 + $0x268] ss:$48 sps:$4 sm:$0xff]   ;;  %v12222_v28 = vld [vmem:[#allocation14 + $0x2c4] ss:$48 sps:$4 sm:$0xff]  }
 0x36c   :  { %3944 = vmatprep.subr.bf16.mxu1 %v12141_v31  ;;  %v12220_v31 = vld [vmem:[#allocation14 + $0x2c0] ss:$48 sps:$4 sm:$0xff]  }
 0x36e   :  { %3863 = vmatpush1.bf16.msra.mxu0 %v12136_v29  ;;  %v12225_v29 = vld [vmem:[#allocation14 + $0x2cc] ss:$48 sps:$4 sm:$0xff]  }
 0x36f   :  { %3945 = vmatpush1.bf16.msra.mxu1 %v12139_v33  ;;  %3864 = vmatprep.subr.bf16.mxu0 %v12144_v34  ;;  %v12223_v33 = vld [vmem:[#allocation14 + $0x2c8] ss:$48 sps:$4 sm:$0xff]   ;;  %v12228_v34 = vld [vmem:[#allocation14 + $0x324] ss:$48 sps:$4 sm:$0xff]  }
 0x370   :  { %3946 = vmatprep.subr.bf16.mxu1 %v12147_v37  ;;  %v12226_v37 = vld [vmem:[#allocation14 + $0x320] ss:$48 sps:$4 sm:$0xff]  }
 0x372   :  { %3865 = vmatpush1.bf16.msra.mxu0 %v12142_v35  ;;  %v12231_v35 = vld [vmem:[#allocation14 + $0x32c] ss:$48 sps:$4 sm:$0xff]  }
 0x373   :  { %3947 = vmatpush1.bf16.msra.mxu1 %v12145_v38  ;;  %3866 = vmatprep.subr.bf16.mxu0 %v12150_v39  ;;  %v12229_v38 = vld [vmem:[#allocation14 + $0x328] ss:$48 sps:$4 sm:$0xff]   ;;  %v12234_v39 = vld [vmem:[#allocation14 + $0x384] ss:$48 sps:$4 sm:$0xff]  }
 0x374   :  { %3948 = vmatprep.subr.bf16.mxu1 %v12153_v41  ;;  %v12232_v41 = vld [vmem:[#allocation14 + $0x380] ss:$48 sps:$4 sm:$0xff]  }
 0x376   :  { %3867 = vmatpush1.bf16.msra.mxu0 %v12148_v40  ;;  %v12237_v40 = vld [vmem:[#allocation14 + $0x38c] ss:$48 sps:$4 sm:$0xff]  }
 0x377   :  { %3949 = vmatpush1.bf16.msra.mxu1 %v12151_v42  ;;  %3868 = vmatprep.subr.bf16.mxu0 %v12156_v43  ;;  %v12235_v42 = vld [vmem:[#allocation14 + $0x388] ss:$48 sps:$4 sm:$0xff]   ;;  %v12240_v43 = vld [vmem:[#allocation14 + $0x3e4] ss:$48 sps:$4 sm:$0xff]  }
 0x378   :  { %3950 = vmatprep.subr.bf16.mxu1 %v12159_v45  ;;  %v12238_v45 = vld [vmem:[#allocation14 + $0x3e0] ss:$48 sps:$4 sm:$0xff]  }
 0x37a   :  { %3869 = vmatpush1.bf16.msra.mxu0 %v12154_v44  ;;  %v12243_v44 = vld [vmem:[#allocation14 + $0x3ec] ss:$48 sps:$4 sm:$0xff]  }
 0x37b   :  { %3951 = vmatpush1.bf16.msra.mxu1 %v12157_v11  ;;  %3870 = vmatprep.subr.bf16.mxu0 %v12162_v47  ;;  %v12241_v11 = vld [vmem:[#allocation14 + $0x3e8] ss:$48 sps:$4 sm:$0xff]   ;;  %v12246_v47 = vld [vmem:[#allocation14 + $0x444] ss:$48 sps:$4 sm:$0xff]  }
 0x37c   :  { %3952 = vmatprep.subr.bf16.mxu1 %v12165_v48  ;;  %v12244_v48 = vld [vmem:[#allocation14 + $0x440] ss:$48 sps:$4 sm:$0xff]  }
 0x37e   :  { %3871 = vmatpush1.bf16.msra.mxu0 %v12160_v18  ;;  %v12249_v18 = vld [vmem:[#allocation14 + $0x44c] ss:$48 sps:$4 sm:$0xff]  }
 0x37f   :  { %3953 = vmatpush1.bf16.msra.mxu1 %v12163_v49  ;;  %3872 = vmatprep.subr.bf16.mxu0 %v12168_v50  ;;  %v12247_v49 = vld [vmem:[#allocation14 + $0x448] ss:$48 sps:$4 sm:$0xff]   ;;  %v12252_v50 = vld [vmem:[#allocation14 + $0x4a4] ss:$48 sps:$4 sm:$0xff]  }
 0x380   :  { %3954 = vmatprep.subr.bf16.mxu1 %v12171_v52  ;;  %v12250_v52 = vld [vmem:[#allocation14 + $0x4a0] ss:$48 sps:$4 sm:$0xff]  }
 0x382   :  { %3873 = vmatpush1.bf16.msra.mxu0 %v12166_v51  ;;  %v12255_v51 = vld [vmem:[#allocation14 + $0x4ac] ss:$48 sps:$4 sm:$0xff]  }
 0x383   :  { %3955 = vmatpush1.bf16.msra.mxu1 %v12169_v53  ;;  %3874 = vmatprep.subr.bf16.mxu0 %v12174_v54  ;;  %v12253_v53 = vld [vmem:[#allocation14 + $0x4a8] ss:$48 sps:$4 sm:$0xff]   ;;  %v12258_v54 = vld [vmem:[#allocation14 + $0x504] ss:$48 sps:$4 sm:$0xff]  }
 0x384   :  { %3956 = vmatprep.subr.bf16.mxu1 %v12177_v56  ;;  %v12256_v56 = vld [vmem:[#allocation14 + $0x500] ss:$48 sps:$4 sm:$0xff]  }
 0x386   :  { %3875 = vmatpush1.bf16.msra.mxu0 %v12172_v55  ;;  %v12261_v55 = vld [vmem:[#allocation14 + $0x50c] ss:$48 sps:$4 sm:$0xff]  }
 0x387   :  { %3957 = vmatpush1.bf16.msra.mxu1 %v12175_v57  ;;  %3967 = vmatprep.subr.bf16.mxu0 %v12180_v58  ;;  %v12259_v57 = vld [vmem:[#allocation14 + $0x508] ss:$48 sps:$4 sm:$0xff]   ;;  %v12264_v58 = vld [vmem:[#allocation14 + $0x564] ss:$48 sps:$4 sm:$0xff]  }
 0x388   :  { %4049 = vmatprep.subr.bf16.mxu1 %v12183_v59  ;;  %v12267_v59 = vld [vmem:[#allocation14 + $0x56c] ss:$48 sps:$4 sm:$0xff]  }
 0x389   :  { %3877 = vmatmul.mubr.bf16.vlgmr.msra.gmra.mrb[8].mxu0 %v14182_v46 }
 0x38a   :  { %3959 = vmatmul.mubr.bf16.vlgmr.msra.gmra.mrb[8].mxu1 %v14182_v46  ;;  %3968 = vmatpush1.bf16.msra.mxu0 %v12178_v60  ;;  %v12262_v60 = vld [vmem:[#allocation14 + $0x560] ss:$48 sps:$4 sm:$0xff]  }
 0x38b   :  { %3999 = vmatprep.mubr.bf16.mxu0 %v14164_v30  ;;  %4050 = vmatpush1.bf16.msra.mxu1 %v12181_v61  ;;  %v12265_v61 = vld [vmem:[#allocation14 + $0x568] ss:$48 sps:$4 sm:$0xff]  }
 0x38c   :  { %4081 = vmatprep.mubr.bf16.mxu1 %v14164_v30  ;;  %3969 = vmatprep.subr.bf16.mxu0 %v12186_v62  ;;  %v12205_v30 = vld [vmem:[#allocation14 + $0x1a8] ss:$48 sps:$4 sm:$0xff]   ;;  %v12270_v62 = vld [vmem:[#allocation14 + $0x5c4] ss:$48 sps:$4 sm:$0xff]  }
 0x38d   :  { %4051 = vmatprep.subr.bf16.mxu1 %v12189_v63  ;;  %v12273_v63 = vld [vmem:[#allocation14 + $0x5cc] ss:$48 sps:$4 sm:$0xff]  }
 0x38e   :  { %3970 = vmatpush1.bf16.msra.mxu0 %v12184_v0  ;;  %v12268_v0 = vld [vmem:[#allocation14 + $0x5c0] ss:$48 sps:$4 sm:$0xff]  }
 0x38f   :  { %4052 = vmatpush1.bf16.msra.mxu1 %v12187_v1  ;;  %3971 = vmatprep.subr.bf16.mxu0 %v12192_v2  ;;  %v12271_v1 = vld [vmem:[#allocation14 + $0x5c8] ss:$48 sps:$4 sm:$0xff]   ;;  %v12276_v2 = vld [vmem:[#allocation14 + $0x624] ss:$48 sps:$4 sm:$0xff]  }
 0x390   :  { %4053 = vmatprep.subr.bf16.mxu1 %v12195_v3  ;;  %v12279_v3 = vld [vmem:[#allocation14 + $0x62c] ss:$48 sps:$4 sm:$0xff]  }
 0x392   :  { %3972 = vmatpush1.bf16.msra.mxu0 %v12190_v4  ;;  %v12274_v4 = vld [vmem:[#allocation14 + $0x620] ss:$48 sps:$4 sm:$0xff]  }
 0x393   :  { %4054 = vmatpush1.bf16.msra.mxu1 %v12193_v5  ;;  %3973 = vmatprep.subr.bf16.mxu0 %v12198_v6  ;;  %v12277_v5 = vld [vmem:[#allocation14 + $0x628] ss:$48 sps:$4 sm:$0xff]   ;;  %v12282_v6 = vld [vmem:[#allocation14 + $0x684] ss:$48 sps:$4 sm:$0xff]  }
 0x394   :  { %4055 = vmatprep.subr.bf16.mxu1 %v12201_v7  ;;  %v12285_v7 = vld [vmem:[#allocation14 + $0x68c] ss:$48 sps:$4 sm:$0xff]  }
 0x396   :  { %3974 = vmatpush1.bf16.msra.mxu0 %v12196_v8  ;;  %v12280_v8 = vld [vmem:[#allocation14 + $0x680] ss:$48 sps:$4 sm:$0xff]  }
 0x397   :  { %4056 = vmatpush1.bf16.msra.mxu1 %v12199_v14  ;;  %3975 = vmatprep.subr.bf16.mxu0 %v12204_v15  ;;  %v12283_v14 = vld [vmem:[#allocation14 + $0x688] ss:$48 sps:$4 sm:$0xff]   ;;  %v12288_v15 = vld [vmem:[#allocation14 + $0x6e4] ss:$48 sps:$4 sm:$0xff]  }
 0x398   :  { %4057 = vmatprep.subr.bf16.mxu1 %v12207_v16  ;;  %v12291_v16 = vld [vmem:[#allocation14 + $0x6ec] ss:$48 sps:$4 sm:$0xff]  }
 0x39a   :  { %3976 = vmatpush1.bf16.msra.mxu0 %v12202_v17  ;;  %v12286_v17 = vld [vmem:[#allocation14 + $0x6e0] ss:$48 sps:$4 sm:$0xff]  }
 0x39b   :  { %4058 = vmatpush1.bf16.msra.mxu1 %v12205_v30  ;;  %3977 = vmatprep.subr.bf16.mxu0 %v12210_v19  ;;  %v12289_v30 = vld [vmem:[#allocation14 + $0x6e8] ss:$48 sps:$4 sm:$0xff]   ;;  %v12294_v19 = vld [vmem:[#allocation14 + $0x744] ss:$48 sps:$4 sm:$0xff]  }
 0x39c   :  { %4059 = vmatprep.subr.bf16.mxu1 %v12213_v20  ;;  %v12292_v20 = vld [vmem:[#allocation14 + $0x740] ss:$48 sps:$4 sm:$0xff]  }
 0x39e   :  { %3978 = vmatpush1.bf16.msra.mxu0 %v12208_v21  ;;  %v12295_v21 = vld [vmem:[#allocation14 + $0x748] ss:$48 sps:$4 sm:$0xff]  }
 0x39f   :  { %4060 = vmatpush1.bf16.msra.mxu1 %v12211_v22  ;;  %3979 = vmatprep.subr.bf16.mxu0 %v12216_v23  ;;  %v12300_v22 = vld [vmem:[#allocation14 + $0x7a4] ss:$48 sps:$4 sm:$0xff]   ;;  %v12303_v23 = vld [vmem:[#allocation14 + $0x7ac] ss:$48 sps:$4 sm:$0xff]  }
 0x3a0   :  { %4061 = vmatprep.subr.bf16.mxu1 %v12219_v24  ;;  %v12301_v24 = vld [vmem:[#allocation14 + $0x7a8] ss:$48 sps:$4 sm:$0xff]  }
 0x3a2   :  { %3980 = vmatpush1.bf16.msra.mxu0 %v12214_v25  ;;  %v12306_v25 = vld [vmem:[#allocation14 + $0x804] ss:$48 sps:$4 sm:$0xff]  }
 0x3a3   :  { %4062 = vmatpush1.bf16.msra.mxu1 %v12217_v26  ;;  %3981 = vmatprep.subr.bf16.mxu0 %v12222_v28  ;;  %v12309_v26 = vld [vmem:[#allocation14 + $0x80c] ss:$48 sps:$4 sm:$0xff]   ;;  %v12304_v28 = vld [vmem:[#allocation14 + $0x800] ss:$48 sps:$4 sm:$0xff]  }
 0x3a4   :  { %4063 = vmatprep.subr.bf16.mxu1 %v12225_v29  ;;  %v12307_v29 = vld [vmem:[#allocation14 + $0x808] ss:$48 sps:$4 sm:$0xff]  }
 0x3a6   :  { %3982 = vmatpush1.bf16.msra.mxu0 %v12220_v31  ;;  %v12312_v31 = vld [vmem:[#allocation14 + $0x864] ss:$48 sps:$4 sm:$0xff]  }
 0x3a7   :  { %4064 = vmatpush1.bf16.msra.mxu1 %v12223_v33  ;;  %3983 = vmatprep.subr.bf16.mxu0 %v12228_v34 }
 0x3a8   :  { %4065 = vmatprep.subr.bf16.mxu1 %v12231_v35  ;;  %v12315_v35 = vld [vmem:[#allocation14 + $0x86c] ss:$48 sps:$4 sm:$0xff]  }
 0x3aa   :  { %3984 = vmatpush1.bf16.msra.mxu0 %v12226_v37 }
 0x3ab   :  { %4066 = vmatpush1.bf16.msra.mxu1 %v12229_v38  ;;  %3985 = vmatprep.subr.bf16.mxu0 %v12234_v39 }
 0x3ac   :  { %4067 = vmatprep.subr.bf16.mxu1 %v12237_v40 }
 0x3ae   :  { %3986 = vmatpush1.bf16.msra.mxu0 %v12232_v41  ;;  %v12310_v41 = vld [vmem:[#allocation14 + $0x860] ss:$48 sps:$4 sm:$0xff]  }
 0x3af   :  { %4068 = vmatpush1.bf16.msra.mxu1 %v12235_v42  ;;  %3987 = vmatprep.subr.bf16.mxu0 %v12240_v43 }
 0x3b0   :  { %4069 = vmatprep.subr.bf16.mxu1 %v12243_v44  ;;  %v12313_v44 = vld [vmem:[#allocation14 + $0x868] ss:$48 sps:$4 sm:$0xff]  }
 0x3b2   :  { %3988 = vmatpush1.bf16.msra.mxu0 %v12238_v45  ;;  %v12318_v45 = vld [vmem:[#allocation14 + $0x8c4] ss:$48 sps:$4 sm:$0xff]  }
 0x3b3   :  { %4070 = vmatpush1.bf16.msra.mxu1 %v12241_v11  ;;  %3989 = vmatprep.subr.bf16.mxu0 %v12246_v47  ;;  %v12321_v11 = vld [vmem:[#allocation14 + $0x8cc] ss:$48 sps:$4 sm:$0xff]   ;;  %v12316_v47 = vld [vmem:[#allocation14 + $0x8c0] ss:$48 sps:$4 sm:$0xff]  }
 0x3b4   :  { %4071 = vmatprep.subr.bf16.mxu1 %v12249_v18  ;;  %v12319_v18 = vld [vmem:[#allocation14 + $0x8c8] ss:$48 sps:$4 sm:$0xff]  }
 0x3b6   :  { %3990 = vmatpush1.bf16.msra.mxu0 %v12244_v48  ;;  %v12324_v48 = vld [vmem:[#allocation14 + $0x924] ss:$48 sps:$4 sm:$0xff]  }
 0x3b7   :  { %4072 = vmatpush1.bf16.msra.mxu1 %v12247_v49  ;;  %3991 = vmatprep.subr.bf16.mxu0 %v12252_v50  ;;  %v12327_v49 = vld [vmem:[#allocation14 + $0x92c] ss:$48 sps:$4 sm:$0xff]   ;;  %v12322_v50 = vld [vmem:[#allocation14 + $0x920] ss:$48 sps:$4 sm:$0xff]  }
 0x3b8   :  { %4073 = vmatprep.subr.bf16.mxu1 %v12255_v51  ;;  %v12325_v51 = vld [vmem:[#allocation14 + $0x928] ss:$48 sps:$4 sm:$0xff]  }
 0x3ba   :  { %3992 = vmatpush1.bf16.msra.mxu0 %v12250_v52  ;;  %v12330_v52 = vld [vmem:[#allocation14 + $0x984] ss:$48 sps:$4 sm:$0xff]  }
 0x3bb   :  { %4074 = vmatpush1.bf16.msra.mxu1 %v12253_v53  ;;  %3993 = vmatprep.subr.bf16.mxu0 %v12258_v54  ;;  %v12333_v53 = vld [vmem:[#allocation14 + $0x98c] ss:$48 sps:$4 sm:$0xff]   ;;  %v12328_v54 = vld [vmem:[#allocation14 + $0x980] ss:$48 sps:$4 sm:$0xff]  }
 0x3bc   :  { %4075 = vmatprep.subr.bf16.mxu1 %v12261_v55  ;;  %v12331_v55 = vld [vmem:[#allocation14 + $0x988] ss:$48 sps:$4 sm:$0xff]  }
 0x3be   :  { %3994 = vmatpush1.bf16.msra.mxu0 %v12256_v56  ;;  %v12336_v56 = vld [vmem:[#allocation14 + $0x9e4] ss:$48 sps:$4 sm:$0xff]  }
 0x3bf   :  { %4076 = vmatpush1.bf16.msra.mxu1 %v12259_v57  ;;  %3995 = vmatprep.subr.bf16.mxu0 %v12264_v58  ;;  %v12339_v57 = vld [vmem:[#allocation14 + $0x9ec] ss:$48 sps:$4 sm:$0xff]   ;;  %v12334_v58 = vld [vmem:[#allocation14 + $0x9e0] ss:$48 sps:$4 sm:$0xff]  }
 0x3c0   :  { %4077 = vmatprep.subr.bf16.mxu1 %v12267_v59  ;;  %v12337_v59 = vld [vmem:[#allocation14 + $0x9e8] ss:$48 sps:$4 sm:$0xff]  }
 0x3c2   :  { %3996 = vmatpush1.bf16.msra.mxu0 %v12262_v60  ;;  %v12342_v60 = vld [vmem:[#allocation14 + $0xa44] ss:$48 sps:$4 sm:$0xff]  }
 0x3c3   :  { %4078 = vmatpush1.bf16.msra.mxu1 %v12265_v61  ;;  %3997 = vmatprep.subr.bf16.mxu0 %v12270_v62  ;;  %v12345_v61 = vld [vmem:[#allocation14 + $0xa4c] ss:$48 sps:$4 sm:$0xff]   ;;  %v12340_v62 = vld [vmem:[#allocation14 + $0xa40] ss:$48 sps:$4 sm:$0xff]  }
 0x3c4   :  { %4079 = vmatprep.subr.bf16.mxu1 %v12273_v63  ;;  %v12343_v63 = vld [vmem:[#allocation14 + $0xa48] ss:$48 sps:$4 sm:$0xff]  }
 0x3c6   :  { %3998 = vmatpush1.bf16.msra.mxu0 %v12268_v0  ;;  %v12348_v0 = vld [vmem:[#allocation14 + $0xaa4] ss:$48 sps:$4 sm:$0xff]  }
 0x3c7   :  { %4080 = vmatpush1.bf16.msra.mxu1 %v12271_v1  ;;  %4008 = vmatprep.subr.bf16.mxu0 %v12276_v2  ;;  %v12351_v1 = vld [vmem:[#allocation14 + $0xaac] ss:$48 sps:$4 sm:$0xff]   ;;  %v12346_v2 = vld [vmem:[#allocation14 + $0xaa0] ss:$48 sps:$4 sm:$0xff]  }
 0x3c8   :  { %4090 = vmatprep.subr.bf16.mxu1 %v12279_v3  ;;  %v12349_v3 = vld [vmem:[#allocation14 + $0xaa8] ss:$48 sps:$4 sm:$0xff]  }
 0x3c9   :  { %4000 = vmatmul.mubr.bf16.vlgmr.msra.gmra.mrb[12].mxu0 %v14166_v32 }
 0x3ca   :  { %4082 = vmatmul.mubr.bf16.vlgmr.msra.gmra.mrb[12].mxu1 %v14166_v32  ;;  %4009 = vmatpush1.bf16.msra.mxu0 %v12274_v4  ;;  %v12297_v32 = vld [vmem:[#allocation14 + $0x74c] ss:$48 sps:$4 sm:$0xff]   ;;  %v12354_v4 = vld [vmem:[#allocation14 + $0xb04] ss:$48 sps:$4 sm:$0xff]  }
 0x3cb   :  { %4040 = vmatprep.mubr.bf16.mxu0 %v14170_v36  ;;  %4091 = vmatpush1.bf16.msra.mxu1 %v12277_v5  ;;  %v12357_v5 = vld [vmem:[#allocation14 + $0xb0c] ss:$48 sps:$4 sm:$0xff]  }
 0x3cc   :  { %4122 = vmatprep.mubr.bf16.mxu1 %v14170_v36  ;;  %4010 = vmatprep.subr.bf16.mxu0 %v12282_v6  ;;  %v12298_v36 = vld [vmem:[#allocation14 + $0x7a0] ss:$48 sps:$4 sm:$0xff]  }
 0x3cd   :  { %4092 = vmatprep.subr.bf16.mxu1 %v12285_v7  ;;  %v12352_v6 = vld [vmem:[#allocation14 + $0xb00] ss:$48 sps:$4 sm:$0xff]   ;;  %v12355_v7 = vld [vmem:[#allocation14 + $0xb08] ss:$48 sps:$4 sm:$0xff]  }
 0x3ce   :  { %4011 = vmatpush1.bf16.msra.mxu0 %v12280_v8  ;;  %v12360_v8 = vld [vmem:[#allocation14 + $0xb64] ss:$48 sps:$4 sm:$0xff]  }
 0x3cf   :  { %4093 = vmatpush1.bf16.msra.mxu1 %v12283_v14  ;;  %4012 = vmatprep.subr.bf16.mxu0 %v12288_v15  ;;  %v12363_v14 = vld [vmem:[#allocation14 + $0xb6c] ss:$48 sps:$4 sm:$0xff]   ;;  %v12358_v15 = vld [vmem:[#allocation14 + $0xb60] ss:$48 sps:$4 sm:$0xff]  }
 0x3d0   :  { %4094 = vmatprep.subr.bf16.mxu1 %v12291_v16  ;;  %v12361_v16 = vld [vmem:[#allocation14 + $0xb68] ss:$48 sps:$4 sm:$0xff]  }
 0x3d2   :  { %4013 = vmatpush1.bf16.msra.mxu0 %v12286_v17  ;;  %v12366_v17 = vld [vmem:[#allocation14 + $0xbc4] ss:$48 sps:$4 sm:$0xff]  }
 0x3d3   :  { %4095 = vmatpush1.bf16.msra.mxu1 %v12289_v30  ;;  %4014 = vmatprep.subr.bf16.mxu0 %v12294_v19  ;;  %v12369_v30 = vld [vmem:[#allocation14 + $0xbcc] ss:$48 sps:$4 sm:$0xff]   ;;  %v12364_v19 = vld [vmem:[#allocation14 + $0xbc0] ss:$48 sps:$4 sm:$0xff]  }
 0x3d4   :  { %4096 = vmatprep.subr.bf16.mxu1 %v12297_v32  ;;  %v12367_v32 = vld [vmem:[#allocation14 + $0xbc8] ss:$48 sps:$4 sm:$0xff]  }
 0x3d6   :  { %4015 = vmatpush1.bf16.msra.mxu0 %v12292_v20  ;;  %v1677_v20 = vsub.s32 4, %v14143_v9 }
 0x3d7   :  { %4097 = vmatpush1.bf16.msra.mxu1 %v12295_v21  ;;  %4016 = vmatprep.subr.bf16.mxu0 %v12300_v22  ;;  %v14211_v21 = vld [vmem:[#allocation15] sm:$0xff] }
 0x3d8   :  { %4098 = vmatprep.subr.bf16.mxu1 %v12303_v23  ;;  %v1678_v22 = vrot.slane %v14211_v21, %v1677_v20 }
 0x3da   :  { %4017 = vmatpush1.bf16.msra.mxu0 %v12298_v36 }
 0x3db   :  { %4099 = vmatpush1.bf16.msra.mxu1 %v12301_v24  ;;  %4018 = vmatprep.subr.bf16.mxu0 %v12306_v25 }
 0x3dc   :  { %v14200_v33 = vpop.f32.mrb[4].mxu0  ;;  %v14202_v34 = vpop.f32.mrb[4].mxu1  ;;  %4100 = vmatprep.subr.bf16.mxu1 %v12309_v26 }
 0x3dd   :  { %v14204_v37 = vpop.f32.mrb[5].mxu0  ;;  %v14206_v38 = vpop.f32.mrb[5].mxu1 }
 0x3de   :  { %v3718_v39 = vpop.f32.mrb[6].mxu0  ;;  %v3800_v40 = vpop.f32.mrb[6].mxu1  ;;  %4019 = vmatpush1.bf16.msra.mxu0 %v12304_v28 }
 0x3df   :  { %4101 = vmatpush1.bf16.msra.mxu1 %v12307_v29  ;;  %v3719_v42 = vpop.f32.mrb[7].mxu0  ;;  %v3801_v43 = vpop.f32.mrb[7].mxu1  ;;  %4020 = vmatprep.subr.bf16.mxu0 %v12312_v31  ;;  %v14226_v39 = vld [vmem:[#allocation15 + $0x8] sm:$0xf] }
 0x3e0   :  { %4102 = vmatprep.subr.bf16.mxu1 %v12315_v35  ;;  %v1694_v40 = vrot.slane %v14226_v39, %v14146_v10 }
 0x3e2   :  { %4021 = vmatpush1.bf16.msra.mxu0 %v12310_v41 }
 0x3e3   :  { %4103 = vmatpush1.bf16.msra.mxu1 %v12313_v44  ;;  %4022 = vmatprep.subr.bf16.mxu0 %v12318_v45 }
 0x3e4   :  { %4104 = vmatprep.subr.bf16.mxu1 %v12321_v11 }
 0x3e6   :  { %4023 = vmatpush1.bf16.msra.mxu0 %v12316_v47 }
 0x3e7   :  { %4105 = vmatpush1.bf16.msra.mxu1 %v12319_v18  ;;  %4024 = vmatprep.subr.bf16.mxu0 %v12324_v48 }
 0x3e8   :  { %4106 = vmatprep.subr.bf16.mxu1 %v12327_v49 }
 0x3ea   :  { %4025 = vmatpush1.bf16.msra.mxu0 %v12322_v50 }
 0x3eb   :  { %4107 = vmatpush1.bf16.msra.mxu1 %v12325_v51  ;;  %4026 = vmatprep.subr.bf16.mxu0 %v12330_v52 }
 0x3ec   :  { %4108 = vmatprep.subr.bf16.mxu1 %v12333_v53 }
 0x3ee   :  { %4027 = vmatpush1.bf16.msra.mxu0 %v12328_v54 }
 0x3ef   :  { %4109 = vmatpush1.bf16.msra.mxu1 %v12331_v55  ;;  %4028 = vmatprep.subr.bf16.mxu0 %v12336_v56 }
 0x3f0   :  { %4110 = vmatprep.subr.bf16.mxu1 %v12339_v57 }
 0x3f2   :  { %4029 = vmatpush1.bf16.msra.mxu0 %v12334_v58  ;;  %v1662_v58 = vrot.slane %v14211_v21, %v14146_v10 }
 0x3f3   :  { %4111 = vmatpush1.bf16.msra.mxu1 %v12337_v59  ;;  %4030 = vmatprep.subr.bf16.mxu0 %v12342_v60 }
 0x3f4   :  { %4112 = vmatprep.subr.bf16.mxu1 %v12345_v61  ;;  %v11483_v61 = vadd.f32 %v14200_v33, %v1662_v58 }
 0x3f6   :  { %4031 = vmatpush1.bf16.msra.mxu0 %v12340_v62 }
 0x3f7   :  { %4113 = vmatpush1.bf16.msra.mxu1 %v12343_v63  ;;  %4032 = vmatprep.subr.bf16.mxu0 %v12348_v0  ;;  %v4131_v63 = vmul.f32 0.125, %v11483_v61 }
 0x3f8   :  { %4114 = vmatprep.subr.bf16.mxu1 %v12351_v1 }
 0x3fa   :  { %4033 = vmatpush1.bf16.msra.mxu0 %v12346_v2  ;;  %v4135_v2 = vpack.c.bf16 %v4131_v63, %v4131_v63 }
 0x3fb   :  { %4115 = vmatpush1.bf16.msra.mxu1 %v12349_v3  ;;  %4034 = vmatprep.subr.bf16.mxu0 %v12354_v4 }
 0x3fc   :  { %4116 = vmatprep.subr.bf16.mxu1 %v12357_v5 }
 0x3fe   :  { %4035 = vmatpush1.bf16.msra.mxu0 %v12352_v6 }
 0x3ff   :  { %4117 = vmatpush1.bf16.msra.mxu1 %v12355_v7  ;;  %4036 = vmatprep.subr.bf16.mxu0 %v12360_v8 }
 0x400   :  { %4118 = vmatprep.subr.bf16.mxu1 %v12363_v14 }
 0x402   :  { %4037 = vmatpush1.bf16.msra.mxu0 %v12358_v15 }
 0x403   :  { %4119 = vmatpush1.bf16.msra.mxu1 %v12361_v16  ;;  %4038 = vmatprep.subr.bf16.mxu0 %v12366_v17  ;;  %v14251_v16 = vld [vmem:[#allocation8] sm:$0xff] }
 0x404   :  { %4120 = vmatprep.subr.bf16.mxu1 %v12369_v30 }
 0x406   :  { %4039 = vmatpush1.bf16.msra.mxu0 %v12364_v19 }
 0x407   :  { %4121 = vmatpush1.bf16.msra.mxu1 %v12367_v32 }
 0x409   :  { %4041 = vmatmul.mubr.bf16.vlgmr.msra.gmra.mrb[12].mxu0 %v14182_v46 }
 0x40a   :  { %4123 = vmatmul.mubr.bf16.vlgmr.msra.gmra.mrb[12].mxu1 %v14182_v46  ;;  %v13788_v46 = vmov 0.0  }
 0x40b   :  { %11347 = vmatprep.subr.bf16.mxu1 %v13788_v46  ;;  %11335 = vmatprep.subr.bf16.mxu0 %v13788_v46 }
 0x40c   :  { %11343 = vmatprep.mubr.msk.bf16.mxu0 %vm13789_vm0, %v13788_v46  ;;  %11349 = vmatprep.mubr.msk.bf16.mxu1 %vm13789_vm0, %v13788_v46 }
 0x45c   :  { %v3878_v23 = vpop.f32.mrb[8].mxu0 }
 0x45d   :  { %v14214_v36 = vpop.f32.mrb[8].mxu1  ;;  %v14216_v24 = vpop.f32.mrb[9].mxu0  ;;  %v11487_v25 = vadd.f32 %v3878_v23, %v1678_v22 }
 0x45e   :  { %v14218_v26 = vpop.f32.mrb[9].mxu1  ;;  %v3882_v28 = vpop.f32.mrb[10].mxu0 }
 0x45f   :  { %v3964_v29 = vpop.f32.mrb[10].mxu1  ;;  %v3883_v31 = vpop.f32.mrb[11].mxu0  ;;  %4139 = vxpose.xlu0.b32.start.end [1/1] (short) %v11487_v25, 128 }
 0x460   :  { %v3965_v35 = vpop.f32.mrb[11].mxu1 }
 0x4dc   :  { %v4042_v41 = vpop.f32.mrb[12].mxu0 }
 0x4dd   :  { %v11491_v42 = vadd.f32 %v4042_v41, %v1694_v40  ;;  %v14230_v43 = vpop.f32.mrb[12].mxu1  ;;  %v14232_v44 = vpop.f32.mrb[13].mxu0 }
 0x4de   :  { %v14234_v45 = vpop.f32.mrb[13].mxu1  ;;  %v4046_v11 = vpop.f32.mrb[14].mxu0 }
 0x4df   :  { %v14236_v47 = vpack.c.bf16 %v11491_v42, %v11491_v42  ;;  %v4128_v18 = vpop.f32.mrb[14].mxu1  ;;  %v4047_v48 = vpop.f32.mrb[15].mxu0 }
 0x4e0   :  { %v4129_v49 = vpop.f32.mrb[15].mxu1  ;;  %v4155_v50 = vpop.trf.xlu0  ;;  %v1698_v48 = vrot.slane %v14226_v39, %v14151_v12 }
 0x4e1   :  { %v4366_v51 = vsel %vm4364_vm1, %v14236_v47, 0 }
 0x4e2   :  { %11348 = vmatpush3.bf16.msra.mxu1 %v4366_v51  ;;  %v11492_v49 = vadd.f32 %v14232_v44, %v1698_v48 }
 0x4e3   :  { %11353 = vmatprep.subr.bf16.mxu1 %v13788_v46 }
 0x4e4   :  { %v4156_v52 = vpop.trf.xlu0  ;;  %v14266_v51 = vpack.c.bf16 %v11492_v49, %v11492_v49 }
 0x4e5   :  { %v4267_v53 = vpack.c.bf16 %v4156_v52, %v4155_v50 }
 0x4e7   :  { %11336 = vmatpush3.bf16.msra.mxu0 %v4267_v53  ;;  %v4580_v53 = vsel %vm4364_vm1, %v14266_v51, 0 }
 0x4e8   :  { %v4157_v54 = vpop.trf.xlu0  ;;  %11337 = vmatprep.subr.bf16.mxu0 %v13788_v46 }
 0x4ec   :  { %v4158_v55 = vpop.trf.xlu0 }
 0x4ed   :  { %v4268_v56 = vpack.c.bf16 %v4158_v55, %v4157_v54 }
 0x4ef   :  { %11338 = vmatpush3.bf16.msra.mxu0 %v4268_v56 }
 0x4f0   :  { %v4159_v57 = vpop.trf.xlu0  ;;  %11339 = vmatprep.subr.bf16.mxu0 %v13788_v46 }
 0x4f4   :  { %v4160_v59 = vpop.trf.xlu0 }
 0x4f5   :  { %v4269_v60 = vpack.c.bf16 %v4160_v59, %v4159_v57 }
 0x4f7   :  { %11340 = vmatpush3.bf16.msra.mxu0 %v4269_v60 }
 0x4f8   :  { %v4161_v62 = vpop.trf.xlu0  ;;  %11341 = vmatprep.subr.bf16.mxu0 %v13788_v46 }
 0x4fc   :  { %v4162_v0 = vpop.trf.xlu0 }
 0x4fd   :  { %v4270_v1 = vpack.c.bf16 %v4162_v0, %v4161_v62 }
 0x4ff   :  { %11342 = vmatpush3.bf16.msra.mxu0 %v4270_v1 }
 0x500   :  { %11365 = vmatprep.subr.bf16.mxu0 %v13788_v46  ;;  %v4163_v3 = vpop.trf.xlu0 }
 0x502   :  { %11344 = vmatmul.mubr.msk.bf16.vlgmr.msra.gmra.mrb[16].mxu0 %vm4304_vm2, %v4135_v2 }
 0x503   :  { %11367 = vmatprep.mubr.msk.bf16.mxu0 %vm13789_vm0, %v13788_v46 }
 0x504   :  { %v4164_v4 = vpop.trf.xlu0 }
 0x505   :  { %v4271_v5 = vpack.c.bf16 %v4164_v4, %v4163_v3 }
 0x508   :  { %v4165_v33 = vpop.trf.xlu0 }
 0x50c   :  { %v4166_v6 = vpop.trf.xlu0 }
 0x50d   :  { %v4272_v7 = vpack.c.bf16 %v4166_v6, %v4165_v33  ;;  %v1681_v33 = vsub.s32 5, %v14143_v9 }
 0x50f   :  { %v1682_v6 = vrot.slane %v14211_v21, %v1681_v33 }
 0x510   :  { %v4167_v8 = vpop.trf.xlu0 }
 0x514   :  { %v4168_v14 = vpop.trf.xlu0 }
 0x515   :  { %v4273_v15 = vpack.c.bf16 %v4168_v14, %v4167_v8 }
 0x518   :  { %v4169_v23 = vpop.trf.xlu0 }
 0x51c   :  { %v4170_v25 = vpop.trf.xlu0 }
 0x51d   :  { %v4274_v50 = vpack.c.bf16 %v4170_v25, %v4169_v23  ;;  %v1666_v23 = vrot.slane %v14211_v21, %v14151_v12 }
 0x5d5   :  { %v4342_v17 = vpop.f32.mrb[16].mxu0 }
 0x5d6   :  { %v4343_v30 = vadd.f32 %v4342_v17, %v14251_v16  ;;  %v11345_v19 = vpop.f32.mrb[17].mxu0 }
 0x5d7   :  { %v4345_v32 = vpop.f32.mrb[18].mxu0 }
 0x5d8   :  { %v11346_v20 = vpop.f32.mrb[19].mxu0  ;;  %v4349_v22 = vsel %vm4348_vm3, %v4343_v30, -inf }
 0x5d9   :  { %4350 = vmax.xlane.f32.xlu0 %v4349_v22 }
 0x666   :  { %v4351_v28 = vpop.xlane.xlu0 %4350 }
 0x667   :  { %v4352_v29 = vsub.f32 %v4343_v30, %v4351_v28 }
 0x669   :  { %v4353_v31 = vmul.f32 1.442695, %v4352_v29  ;;  %v11484_v29 = vadd.f32 %v14204_v37, %v1666_v23 }
 0x66b   :  { %13267 = vpow2.f32 %v4353_v31 }
 0x675   :  { %v13268_v35 = vpop.eup %13267 }
 0x676   :  { %v4355_v40 = vsel %vm4348_vm3, %v13268_v35, 0.0 }
 0x677   :  { %4356 = vadd.xlane.f32.xlu1 %v4355_v40 }
 0x688   :  { %4409 = vrot.lane.b32.xlu1 %v4135_v2, %s13774_s15 }
 0x704   :  { %v4357_v41 = vpop.xlane.xlu1 %4356 }
 0x705   :  { %13269 = vrcp.f32 %v4357_v41 }
 0x708   :  { %v4410_v52 = vpop.permute.xlu1 %4409 }
 0x70f   :  { %v13270_v42 = vpop.eup %13269 }
 0x710   :  { %v4359_v11 = vmul.f32 %v13270_v42, %v13268_v35  ;;  %v4132_v35 = vmul.f32 0.125, %v11484_v29 }
 0x712   :  { %v4360_v18 = vpack.c.bf16 %v4359_v11, %v4359_v11  ;;  %v4136_v42 = vpack.c.bf16 %v4132_v35, %v4132_v35 }
 0x714   :  { %11350 = vmatmul.mubr.msk.bf16.vlgmr.msra.gmra.mrb[16].mxu1 %vm4348_vm3, %v4360_v18 }
 0x715   :  { %11354 = vmatpush3.bf16.msra.mxu1 %v4271_v5  ;;  %11361 = vmatprep.mubr.msk.bf16.mxu1 %vm13789_vm0, %v13788_v46 }
 0x716   :  { %11355 = vmatprep.subr.bf16.mxu1 %v13788_v46 }
 0x719   :  { %11356 = vmatpush3.bf16.msra.mxu1 %v4272_v7 }
 0x71a   :  { %11357 = vmatprep.subr.bf16.mxu1 %v13788_v46 }
 0x71d   :  { %11358 = vmatpush3.bf16.msra.mxu1 %v4273_v15 }
 0x71e   :  { %11359 = vmatprep.subr.bf16.mxu1 %v13788_v46 }
 0x721   :  { %11360 = vmatpush3.bf16.msra.mxu1 %v4274_v50 }
 0x722   :  { %11383 = vmatprep.subr.bf16.mxu1 %v13788_v46 }
 0x724   :  { %11362 = vmatmul.mubr.msk.bf16.vlgmr.msra.gmra.mrb[20].mxu1 %vm4304_vm2, %v4410_v52 }
 0x725   :  { %11384 = vmatpush3.bf16.msra.mxu1 %v4580_v53  ;;  %11385 = vmatprep.mubr.msk.bf16.mxu1 %vm13789_vm0, %v13788_v46 }
 0x726   :  { %11389 = vmatprep.subr.bf16.mxu1 %v13788_v46 }
 0x7e7   :  { %v14275_v44 = vpop.f32.mrb[16].mxu1 }
 0x7e8   :  { %v11351_v54 = vpop.f32.mrb[17].mxu1 }
 0x7e9   :  { %v4405_v55 = vpop.f32.mrb[18].mxu1 }
 0x7ea   :  { %v11352_v56 = vpop.f32.mrb[19].mxu1 }
 0x7f7   :  { %v4448_v57 = vpop.f32.mrb[20].mxu1 }
 0x7f8   :  { %v4449_v58 = vadd.f32 %v4448_v57, %v14251_v16  ;;  %v11363_v59 = vpop.f32.mrb[21].mxu1 }
 0x7f9   :  { %v4451_v60 = vpop.f32.mrb[22].mxu1 }
 0x7fa   :  { %v11364_v61 = vpop.f32.mrb[23].mxu1  ;;  %v4454_v62 = vsel %vm4348_vm3, %v4449_v58, -inf }
 0x7fb   :  { %4455 = vmax.xlane.f32.xlu1 %v4454_v62 }
 0x80c   :  { %4467 = vrot.lane.b32.xlu1 %v14236_v47, %s13774_s15  ;;  %v11488_v47 = vadd.f32 %v14216_v24, %v1682_v6 }
 0x888   :  { %v4456_v63 = vpop.xlane.xlu1 %4455 }
 0x889   :  { %v4457_v0 = vsub.f32 %v4449_v58, %v4456_v63 }
 0x88b   :  { %v4458_v1 = vmul.f32 1.442695, %v4457_v0 }
 0x88c   :  { %v4468_v2 = vpop.permute.xlu1 %4467 }
 0x88d   :  { %13271 = vpow2.f32 %v4458_v1  ;;  %v4473_v3 = vsel %vm4364_vm1, %v4468_v2, 0 }
 0x88e   :  { %11366 = vmatpush3.bf16.msra.mxu0 %v4473_v3 }
 0x88f   :  { %11371 = vmatprep.subr.bf16.mxu0 %v13788_v46 }
 0x897   :  { %v13272_v4 = vpop.eup %13271 }
 0x898   :  { %v4460_v5 = vsel %vm4348_vm3, %v13272_v4, 0.0 }
 0x899   :  { %4461 = vadd.xlane.f32.xlu1 %v4460_v5 }
 0x8cc   :  { %4171 = vxpose.xlu1.b32.start.end [1/1] (short) %v11488_v47, 128 }
 0x926   :  { %v4462_v7 = vpop.xlane.xlu1 %4461 }
 0x927   :  { %13273 = vrcp.f32 %v4462_v7 }
 0x931   :  { %v13274_v8 = vpop.eup %13273 }
 0x932   :  { %v4464_v14 = vmul.f32 %v13274_v8, %v13272_v4  ;;  %v1702_v8 = vrot.slane %v14226_v39, %v14177_v27 }
 0x934   :  { %v4465_v15 = vpack.c.bf16 %v4464_v14, %v4464_v14 }
 0x936   :  { %11368 = vmatmul.mubr.msk.bf16.vlgmr.msra.gmra.mrb[20].mxu0 %vm4348_vm3, %v4465_v15  ;;  %v11493_v15 = vadd.f32 %v14230_v43, %v1702_v8 }
 0x937   :  { %11379 = vmatprep.mubr.msk.bf16.mxu0 %vm13789_vm0, %v13788_v46 }
 0x94c   :  { %v4187_v17 = vpop.trf.xlu1 }
 0x950   :  { %v4188_v30 = vpop.trf.xlu1 }
 0x951   :  { %v4275_v19 = vpack.c.bf16 %v4188_v30, %v4187_v17 }
 0x953   :  { %11372 = vmatpush3.bf16.msra.mxu0 %v4275_v19  ;;  %v14315_v19 = vpack.c.bf16 %v11493_v15, %v11493_v15 }
 0x954   :  { %v4189_v32 = vpop.trf.xlu1  ;;  %11373 = vmatprep.subr.bf16.mxu0 %v13788_v46 }
 0x958   :  { %v4190_v20 = vpop.trf.xlu1 }
 0x959   :  { %v4276_v24 = vpack.c.bf16 %v4190_v20, %v4189_v32  ;;  %v4794_v20 = vsel %vm4364_vm1, %v14315_v19, 0 }
 0x95b   :  { %11374 = vmatpush3.bf16.msra.mxu0 %v4276_v24 }
 0x95c   :  { %v4191_v22 = vpop.trf.xlu1  ;;  %11375 = vmatprep.subr.bf16.mxu0 %v13788_v46 }
 0x960   :  { %v4192_v25 = vpop.trf.xlu1 }
 0x961   :  { %v4277_v28 = vpack.c.bf16 %v4192_v25, %v4191_v22 }
 0x963   :  { %11376 = vmatpush3.bf16.msra.mxu0 %v4277_v28 }
 0x964   :  { %v4193_v31 = vpop.trf.xlu1  ;;  %11377 = vmatprep.subr.bf16.mxu0 %v13788_v46 }
 0x968   :  { %v4194_v40 = vpop.trf.xlu1 }
 0x969   :  { %v4278_v41 = vpack.c.bf16 %v4194_v40, %v4193_v31 }
 0x96b   :  { %11378 = vmatpush3.bf16.msra.mxu0 %v4278_v41 }
 0x96c   :  { %11401 = vmatprep.subr.bf16.mxu0 %v13788_v46  ;;  %v4195_v61 = vpop.trf.xlu1 }
 0x96e   :  { %11380 = vmatmul.mubr.msk.bf16.vlgmr.msra.gmra.mrb[24].mxu0 %vm4304_vm2, %v4136_v42 }
 0x96f   :  { %11403 = vmatprep.mubr.msk.bf16.mxu0 %vm13789_vm0, %v13788_v46 }
 0x970   :  { %v4196_v62 = vpop.trf.xlu1 }
 0x971   :  { %v4279_v6 = vpack.c.bf16 %v4196_v62, %v4195_v61 }
 0x974   :  { %v4197_v63 = vpop.trf.xlu1 }
 0x978   :  { %v4198_v1 = vpop.trf.xlu1 }
 0x979   :  { %v4280_v7 = vpack.c.bf16 %v4198_v1, %v4197_v63 }
 0x97c   :  { %v4199_v2 = vpop.trf.xlu1 }
 0x980   :  { %v4200_v5 = vpop.trf.xlu1 }
 0x981   :  { %v4281_v14 = vpack.c.bf16 %v4200_v5, %v4199_v2 }
 0x984   :  { %v4201_v47 = vpop.trf.xlu1 }
 0x988   :  { %v4202_v17 = vpop.trf.xlu1 }
 0x989   :  { %v4282_v30 = vpack.c.bf16 %v4202_v17, %v4201_v47 }
 0xa09   :  { %v14300_v11 = vpop.f32.mrb[20].mxu0 }
 0xa0a   :  { %v11369_v18 = vpop.f32.mrb[21].mxu0 }
 0xa0b   :  { %v4512_v48 = vpop.f32.mrb[22].mxu0 }
 0xa0c   :  { %v11370_v37 = vpop.f32.mrb[23].mxu0 }
 0xa41   :  { %v4558_v49 = vpop.f32.mrb[24].mxu0 }
 0xa42   :  { %v4559_v50 = vadd.f32 %v4558_v49, %v14251_v16  ;;  %v11381_v52 = vpop.f32.mrb[25].mxu0  ;;  %v1685_v49 = vsub.s32 6, %v14143_v9 }
 0xa43   :  { %v4561_v53 = vpop.f32.mrb[26].mxu0 }
 0xa44   :  { %v11382_v54 = vpop.f32.mrb[27].mxu0  ;;  %v4564_v55 = vsel %vm4348_vm3, %v4559_v50, -inf }
 0xa45   :  { %4565 = vmax.xlane.f32.xlu0 %v4564_v55 }
 0xad2   :  { %v4566_v56 = vpop.xlane.xlu0 %4565 }
 0xad3   :  { %v4567_v57 = vsub.f32 %v4559_v50, %v4566_v56  ;;  %v1686_v50 = vrot.slane %v14211_v21, %v1685_v49 }
 0xad5   :  { %v4568_v58 = vmul.f32 1.442695, %v4567_v57  ;;  %v11489_v52 = vadd.f32 %v14214_v36, %v1686_v50 }
 0xad7   :  { %13275 = vpow2.f32 %v4568_v58 }
 0xae1   :  { %v13276_v59 = vpop.eup %13275 }
 0xae2   :  { %v4570_v60 = vsel %vm4348_vm3, %v13276_v59, 0.0 }
 0xae3   :  { %4571 = vadd.xlane.f32.xlu0 %v4570_v60 }
 0xaf9   :  { %4623 = vrot.lane.b32.xlu0 %v4136_v42, %s13774_s15 }
 0xb70   :  { %v4572_v0 = vpop.xlane.xlu0 %4571 }
 0xb71   :  { %13277 = vrcp.f32 %v4572_v0  ;;  %v1670_v0 = vrot.slane %v14211_v21, %v14177_v27 }
 0xb74   :  { %v4624_v32 = vpop.permute.xlu0 %4623 }
 0xb7b   :  { %v13278_v3 = vpop.eup %13277 }
 0xb7c   :  { %v4574_v4 = vmul.f32 %v13278_v3, %v13276_v59  ;;  %v11485_v3 = vadd.f32 %v14202_v34, %v1670_v0 }
 0xb7e   :  { %v4575_v33 = vpack.c.bf16 %v4574_v4, %v4574_v4  ;;  %v4133_v5 = vmul.f32 0.125, %v11485_v3 }
 0xb80   :  { %11386 = vmatmul.mubr.msk.bf16.vlgmr.msra.gmra.mrb[24].mxu1 %vm4348_vm3, %v4575_v33  ;;  %v4137_v47 = vpack.c.bf16 %v4133_v5, %v4133_v5 }
 0xb81   :  { %11390 = vmatpush3.bf16.msra.mxu1 %v4279_v6  ;;  %11397 = vmatprep.mubr.msk.bf16.mxu1 %vm13789_vm0, %v13788_v46 }
 0xb82   :  { %11391 = vmatprep.subr.bf16.mxu1 %v13788_v46 }
 0xb85   :  { %11392 = vmatpush3.bf16.msra.mxu1 %v4280_v7 }
 0xb86   :  { %11393 = vmatprep.subr.bf16.mxu1 %v13788_v46 }
 0xb89   :  { %11394 = vmatpush3.bf16.msra.mxu1 %v4281_v14 }
 0xb8a   :  { %11395 = vmatprep.subr.bf16.mxu1 %v13788_v46 }
 0xb8d   :  { %11396 = vmatpush3.bf16.msra.mxu1 %v4282_v30 }
 0xb8e   :  { %11419 = vmatprep.subr.bf16.mxu1 %v13788_v46 }
 0xb90   :  { %11398 = vmatmul.mubr.msk.bf16.vlgmr.msra.gmra.mrb[28].mxu1 %vm4304_vm2, %v4624_v32 }
 0xb91   :  { %11420 = vmatpush3.bf16.msra.mxu1 %v4794_v20  ;;  %11421 = vmatprep.mubr.msk.bf16.mxu1 %vm13789_vm0, %v13788_v46 }
 0xb92   :  { %11425 = vmatprep.subr.bf16.mxu1 %v13788_v46 }
 0xc53   :  { %v14324_v43 = vpop.f32.mrb[24].mxu1 }
 0xc54   :  { %v11387_v24 = vpop.f32.mrb[25].mxu1 }
 0xc55   :  { %v4619_v22 = vpop.f32.mrb[26].mxu1 }
 0xc56   :  { %v11388_v23 = vpop.f32.mrb[27].mxu1 }
 0xc63   :  { %v4662_v25 = vpop.f32.mrb[28].mxu1 }
 0xc64   :  { %v4663_v28 = vadd.f32 %v4662_v25, %v14251_v16  ;;  %v11399_v29 = vpop.f32.mrb[29].mxu1 }
 0xc65   :  { %v4665_v31 = vpop.f32.mrb[30].mxu1 }
 0xc66   :  { %v11400_v35 = vpop.f32.mrb[31].mxu1  ;;  %v4668_v40 = vsel %vm4348_vm3, %v4663_v28, -inf }
 0xc67   :  { %4669 = vmax.xlane.f32.xlu1 %v4668_v40 }
 0xcf4   :  { %v4670_v41 = vpop.xlane.xlu1 %4669 }
 0xcf5   :  { %v4671_v42 = vsub.f32 %v4663_v28, %v4670_v41 }
 0xcf7   :  { %v4672_v18 = vmul.f32 1.442695, %v4671_v42 }
 0xcf9   :  { %13279 = vpow2.f32 %v4672_v18 }
 0xd03   :  { %v13280_v48 = vpop.eup %13279 }
 0xd04   :  { %v4674_v37 = vsel %vm4348_vm3, %v13280_v48, 0.0 }
 0xd05   :  { %4675 = vadd.xlane.f32.xlu0 %v4674_v37 }
 0xd1b   :  { %4681 = vrot.lane.b32.xlu0 %v14266_v51, %s13774_s15 }
 0xd39   :  { %4203 = vxpose.xlu0.b32.start.end [1/1] (short) %v11489_v52, 128 }
 0xd92   :  { %v4676_v53 = vpop.xlane.xlu0 %4675 }
 0xd93   :  { %13281 = vrcp.f32 %v4676_v53 }
 0xd96   :  { %v4682_v54 = vpop.permute.xlu0 %4681 }
 0xd97   :  { %v4687_v55 = vsel %vm4364_vm1, %v4682_v54, 0 }
 0xd98   :  { %11402 = vmatpush3.bf16.msra.mxu0 %v4687_v55 }
 0xd99   :  { %11407 = vmatprep.subr.bf16.mxu0 %v13788_v46 }
 0xd9d   :  { %v13282_v56 = vpop.eup %13281 }
 0xd9e   :  { %v4678_v57 = vmul.f32 %v13282_v56, %v13280_v48 }
 0xda0   :  { %v4679_v58 = vpack.c.bf16 %v4678_v57, %v4678_v57  ;;  %v1706_v57 = vrot.slane %v14226_v39, %v14154_v13 }
 0xda2   :  { %11404 = vmatmul.mubr.msk.bf16.vlgmr.msra.gmra.mrb[28].mxu0 %vm4348_vm3, %v4679_v58 }
 0xda3   :  { %11415 = vmatprep.mubr.msk.bf16.mxu0 %vm13789_vm0, %v13788_v46 }
 0xdb9   :  { %v4219_v51 = vpop.trf.xlu0 }
 0xdbd   :  { %v4220_v59 = vpop.trf.xlu0 }
 0xdbe   :  { %v4283_v36 = vpack.c.bf16 %v4220_v59, %v4219_v51  ;;  %v11494_v51 = vadd.f32 %v14234_v45, %v1706_v57 }
 0xdc0   :  { %11408 = vmatpush3.bf16.msra.mxu0 %v4283_v36  ;;  %v14366_v36 = vpack.c.bf16 %v11494_v51, %v11494_v51 }
 0xdc1   :  { %v4221_v60 = vpop.trf.xlu0  ;;  %11409 = vmatprep.subr.bf16.mxu0 %v13788_v46 }
 0xdc5   :  { %v4222_v61 = vpop.trf.xlu0 }
 0xdc6   :  { %v4284_v62 = vpack.c.bf16 %v4222_v61, %v4221_v60  ;;  %v5008_v61 = vsel %vm4364_vm1, %v14366_v36, 0 }
 0xdc8   :  { %11410 = vmatpush3.bf16.msra.mxu0 %v4284_v62 }
 0xdc9   :  { %v4223_v63 = vpop.trf.xlu0  ;;  %11411 = vmatprep.subr.bf16.mxu0 %v13788_v46 }
 0xdcd   :  { %v4224_v1 = vpop.trf.xlu0 }
 0xdce   :  { %v4285_v2 = vpack.c.bf16 %v4224_v1, %v4223_v63 }
 0xdd0   :  { %11412 = vmatpush3.bf16.msra.mxu0 %v4285_v2 }
 0xdd1   :  { %v4225_v4 = vpop.trf.xlu0  ;;  %11413 = vmatprep.subr.bf16.mxu0 %v13788_v46 }
 0xdd5   :  { %v4226_v33 = vpop.trf.xlu0 }
 0xdd6   :  { %v4286_v6 = vpack.c.bf16 %v4226_v33, %v4225_v4 }
 0xdd8   :  { %11414 = vmatpush3.bf16.msra.mxu0 %v4286_v6 }
 0xdd9   :  { %11437 = vmatprep.subr.bf16.mxu0 %v13788_v46  ;;  %v4227_v35 = vpop.trf.xlu0 }
 0xddb   :  { %11416 = vmatmul.mubr.msk.bf16.vlgmr.msra.gmra.mrb[32].mxu0 %vm4304_vm2, %v4137_v47 }
 0xddc   :  { %11439 = vmatprep.mubr.msk.bf16.mxu0 %vm13789_vm0, %v13788_v46 }
 0xddd   :  { %v4228_v40 = vpop.trf.xlu0 }
 0xdde   :  { %v4287_v55 = vpack.c.bf16 %v4228_v40, %v4227_v35 }
 0xde1   :  { %v4229_v41 = vpop.trf.xlu0 }
 0xde5   :  { %v4230_v42 = vpop.trf.xlu0 }
 0xde6   :  { %v4288_v56 = vpack.c.bf16 %v4230_v42, %v4229_v41  ;;  %v1674_v41 = vrot.slane %v14211_v21, %v14154_v13 }
 0xde9   :  { %v4231_v18 = vpop.trf.xlu0 }
 0xded   :  { %v4232_v48 = vpop.trf.xlu0 }
 0xdee   :  { %v4289_v58 = vpack.c.bf16 %v4232_v48, %v4231_v18  ;;  %v11486_v48 = vadd.f32 %v14206_v38, %v1674_v41 }
 0xdf1   :  { %v4233_v37 = vpop.trf.xlu0 }
 0xdf5   :  { %v4234_v49 = vpop.trf.xlu0 }
 0xdf6   :  { %v4290_v59 = vpack.c.bf16 %v4234_v49, %v4233_v37  ;;  %v4134_v49 = vmul.f32 0.125, %v11486_v48  ;;  %v12375_v48 = vld [vmem:[#allocation17 + $0x2c] ss:$16 sps:$4 sm:$0xff]  }
 0xe75   :  { %v14349_v7 = vpop.f32.mrb[28].mxu0 }
 0xe76   :  { %v11588_v34 = vpack.i.bf16 %v14300_v11, %v14349_v7  ;;  %v11405_v8 = vpop.f32.mrb[29].mxu0 }
 0xe77   :  { %v4726_v14 = vpop.f32.mrb[30].mxu0 }
 0xe78   :  { %v11406_v15 = vpop.f32.mrb[31].mxu0 }
 0xeae   :  { %v4772_v17 = vpop.f32.mrb[32].mxu0 }
 0xeaf   :  { %v4773_v30 = vadd.f32 %v4772_v17, %v14251_v16  ;;  %v11417_v32 = vpop.f32.mrb[33].mxu0 }
 0xeb0   :  { %v4775_v20 = vpop.f32.mrb[34].mxu0 }
 0xeb1   :  { %v11418_v24 = vpop.f32.mrb[35].mxu0  ;;  %v4778_v22 = vsel %vm4348_vm3, %v4773_v30, -inf }
 0xeb2   :  { %4779 = vmax.xlane.f32.xlu1 %v4778_v22 }
 0xec3   :  { %4837 = vrot.lane.b32.xlu1 %v4137_v47, %s13774_s15 }
 0xf3f   :  { %v4780_v23 = vpop.xlane.xlu1 %4779 }
 0xf40   :  { %v4781_v25 = vsub.f32 %v4773_v30, %v4780_v23  ;;  %v1689_v30 = vsub.s32 7, %v14143_v9 }
 0xf42   :  { %v4782_v28 = vmul.f32 1.442695, %v4781_v25  ;;  %v1690_v32 = vrot.slane %v14211_v21, %v1689_v30 }
 0xf43   :  { %v4838_v60 = vpop.permute.xlu1 %4837 }
 0xf44   :  { %13283 = vpow2.f32 %v4782_v28 }
 0xf4e   :  { %v13284_v29 = vpop.eup %13283 }
 0xf4f   :  { %v4784_v31 = vsel %vm4348_vm3, %v13284_v29, 0.0 }
 0xf50   :  { %4785 = vadd.xlane.f32.xlu0 %v4784_v31 }
 0xfdd   :  { %v4786_v50 = vpop.xlane.xlu0 %4785 }
 0xfde   :  { %13285 = vrcp.f32 %v4786_v50 }
 0xfe8   :  { %v13286_v52 = vpop.eup %13285 }
 0xfe9   :  { %v4788_v53 = vmul.f32 %v13286_v52, %v13284_v29 }
 0xfeb   :  { %v4789_v54 = vpack.c.bf16 %v4788_v53, %v4788_v53  ;;  %v4138_v53 = vpack.c.bf16 %v4134_v49, %v4134_v49  ;;  %v12378_v49 = vld [vmem:[#allocation17 + $0x4c] ss:$16 sps:$4 sm:$0xff]  }
 0xfed   :  { %11422 = vmatmul.mubr.msk.bf16.vlgmr.msra.gmra.mrb[32].mxu1 %vm4348_vm3, %v4789_v54 }
 0xfee   :  { %11426 = vmatpush3.bf16.msra.mxu1 %v4287_v55  ;;  %11433 = vmatprep.mubr.msk.bf16.mxu1 %vm13789_vm0, %v13788_v46 }
 0xfef   :  { %11427 = vmatprep.subr.bf16.mxu1 %v13788_v46 }
 0xff2   :  { %11428 = vmatpush3.bf16.msra.mxu1 %v4288_v56 }
 0xff3   :  { %11429 = vmatprep.subr.bf16.mxu1 %v13788_v46 }
 0xff6   :  { %11430 = vmatpush3.bf16.msra.mxu1 %v4289_v58 }
 0xff7   :  { %11431 = vmatprep.subr.bf16.mxu1 %v13788_v46 }
 0xffa   :  { %11432 = vmatpush3.bf16.msra.mxu1 %v4290_v59 }
 0xffb   :  { %11455 = vmatprep.subr.bf16.mxu1 %v13788_v46 }
 0xffd   :  { %11434 = vmatmul.mubr.msk.bf16.vlgmr.msra.gmra.mrb[36].mxu1 %vm4304_vm2, %v4838_v60 }
 0xffe   :  { %11456 = vmatpush3.bf16.msra.mxu1 %v5008_v61  ;;  %11457 = vmatprep.mubr.msk.bf16.mxu1 %vm13789_vm0, %v13788_v46 }
 0xfff   :  { %11461 = vmatprep.subr.bf16.mxu1 %v13788_v46 }
0x10c0   :  { %v14375_v39 = vpop.f32.mrb[32].mxu1 }
0x10c1   :  { %v11423_v45 = vpop.f32.mrb[33].mxu1 }
0x10c2   :  { %v4833_v62 = vpop.f32.mrb[34].mxu1 }
0x10c3   :  { %v11424_v63 = vpop.f32.mrb[35].mxu1 }
0x10d0   :  { %v4876_v0 = vpop.f32.mrb[36].mxu1 }
0x10d1   :  { %v4877_v1 = vadd.f32 %v4876_v0, %v14251_v16  ;;  %v11435_v2 = vpop.f32.mrb[37].mxu1 }
0x10d2   :  { %v4879_v3 = vpop.f32.mrb[38].mxu1 }
0x10d3   :  { %v11436_v4 = vpop.f32.mrb[39].mxu1  ;;  %v4882_v5 = vsel %vm4348_vm3, %v4877_v1, -inf }
0x10d4   :  { %4883 = vmax.xlane.f32.xlu1 %v4882_v5 }
0x10e5   :  { %4895 = vrot.lane.b32.xlu1 %v14315_v19, %s13774_s15  ;;  %v11490_v19 = vadd.f32 %v14218_v26, %v1690_v32 }
0x1161   :  { %v4884_v33 = vpop.xlane.xlu1 %4883 }
0x1162   :  { %v4885_v6 = vsub.f32 %v4877_v1, %v4884_v33 }
0x1164   :  { %v4886_v47 = vmul.f32 1.442695, %v4885_v6 }
0x1165   :  { %v4896_v8 = vpop.permute.xlu1 %4895 }
0x1166   :  { %13287 = vpow2.f32 %v4886_v47  ;;  %v4901_v14 = vsel %vm4364_vm1, %v4896_v8, 0 }
0x1167   :  { %11438 = vmatpush3.bf16.msra.mxu0 %v4901_v14 }
0x1168   :  { %11443 = vmatprep.subr.bf16.mxu0 %v13788_v46 }
0x1170   :  { %v13288_v15 = vpop.eup %13287 }
0x1171   :  { %v4888_v17 = vsel %vm4348_vm3, %v13288_v15, 0.0 }
0x1172   :  { %4889 = vadd.xlane.f32.xlu1 %v4888_v17 }
0x11a5   :  { %4235 = vxpose.xlu1.b32.start.end [1/1] (short) %v11490_v19, 128 }
0x11ff   :  { %v4890_v20 = vpop.xlane.xlu1 %4889 }
0x1200   :  { %13289 = vrcp.f32 %v4890_v20 }
0x120a   :  { %v13290_v24 = vpop.eup %13289 }
0x120b   :  { %v4892_v22 = vmul.f32 %v13290_v24, %v13288_v15 }
0x120d   :  { %v4893_v23 = vpack.c.bf16 %v4892_v22, %v4892_v22 }
0x120f   :  { %11440 = vmatmul.mubr.msk.bf16.vlgmr.msra.gmra.mrb[36].mxu0 %vm4348_vm3, %v4893_v23 }
0x1210   :  { %11451 = vmatprep.mubr.msk.bf16.mxu0 %vm13789_vm0, %v13788_v46 }
0x1225   :  { %v4251_v25 = vpop.trf.xlu1 }
0x1229   :  { %v4252_v28 = vpop.trf.xlu1 }
0x122a   :  { %v4291_v29 = vpack.c.bf16 %v4252_v28, %v4251_v25 }
0x122c   :  { %11444 = vmatpush3.bf16.msra.mxu0 %v4291_v29 }
0x122d   :  { %v4253_v31 = vpop.trf.xlu1  ;;  %11445 = vmatprep.subr.bf16.mxu0 %v13788_v46 }
0x1231   :  { %v4254_v35 = vpop.trf.xlu1 }
0x1232   :  { %v4292_v26 = vpack.c.bf16 %v4254_v35, %v4253_v31 }
0x1234   :  { %11446 = vmatpush3.bf16.msra.mxu0 %v4292_v26 }
0x1235   :  { %v4255_v40 = vpop.trf.xlu1  ;;  %11447 = vmatprep.subr.bf16.mxu0 %v13788_v46 }
0x1239   :  { %v4256_v42 = vpop.trf.xlu1 }
0x123a   :  { %v4293_v18 = vpack.c.bf16 %v4256_v42, %v4255_v40  ;;  %v12370_v42 = vld [vmem:[#allocation17 + $0x8] ss:$16 sps:$4 sm:$0xff]  }
0x123c   :  { %11448 = vmatpush3.bf16.msra.mxu0 %v4293_v18  ;;  %v12372_v18 = vld [vmem:[#allocation17 + $0xc] ss:$16 sps:$4 sm:$0xff]  }
0x123d   :  { %v4257_v37 = vpop.trf.xlu1  ;;  %11449 = vmatprep.subr.bf16.mxu0 %v13788_v46 }
0x1241   :  { %v4258_v50 = vpop.trf.xlu1 }
0x1242   :  { %v4294_v52 = vpack.c.bf16 %v4258_v50, %v4257_v37  ;;  %v12373_v37 = vld [vmem:[#allocation17 + $0x28] ss:$16 sps:$4 sm:$0xff]  }
0x1243   :  { %v12376_v50 = vld [vmem:[#allocation17 + $0x48] ss:$16 sps:$4 sm:$0xff]  }
0x1244   :  { %11450 = vmatpush3.bf16.msra.mxu0 %v4294_v52  ;;  %v12381_v52 = vld [vmem:[#allocation17 + $0x6c] ss:$16 sps:$4 sm:$0xff]  }
0x1245   :  { %11473 = vmatprep.subr.bf16.mxu0 %v13788_v46  ;;  %v4259_v1 = vpop.trf.xlu1 }
0x1247   :  { %11452 = vmatmul.mubr.msk.bf16.vlgmr.msra.gmra.mrb[40].mxu0 %vm4304_vm2, %v4138_v53 }
0x1248   :  { %11475 = vmatprep.mubr.msk.bf16.mxu0 %vm13789_vm0, %v13788_v46 }
0x1249   :  { %v4260_v2 = vpop.trf.xlu1 }
0x124a   :  { %v4295_v15 = vpack.c.bf16 %v4260_v2, %v4259_v1  ;;  %v12403_v1 = vld [vmem:[#allocation17 + $0x168] ss:$16 sps:$4 sm:$0xff]   ;;  %v12408_v2 = vld [vmem:[#allocation17 + $0x18c] ss:$16 sps:$4 sm:$0xff]  }
0x124d   :  { %v4261_v3 = vpop.trf.xlu1 }
0x1251   :  { %v4262_v5 = vpop.trf.xlu1 }
0x1252   :  { %v4296_v30 = vpack.c.bf16 %v4262_v5, %v4261_v3  ;;  %v12406_v3 = vld [vmem:[#allocation17 + $0x188] ss:$16 sps:$4 sm:$0xff]  }
0x1255   :  { %v4263_v33 = vpop.trf.xlu1 }
0x1259   :  { %v4264_v8 = vpop.trf.xlu1 }
0x125a   :  { %v4297_v32 = vpack.c.bf16 %v4264_v8, %v4263_v33  ;;  %v12411_v8 = vld [vmem:[#allocation17 + $0x1ac] ss:$16 sps:$4 sm:$0xff]  }
0x125d   :  { %v4265_v17 = vpop.trf.xlu1 }
0x1261   :  { %v4266_v19 = vpop.trf.xlu1 }
0x1262   :  { %v4298_v20 = vpack.c.bf16 %v4266_v19, %v4265_v17  ;;  %v12412_v17 = vld [vmem:[#allocation17 + $0x1c8] ss:$16 sps:$4 sm:$0xff]  }
0x12e2   :  { %v14400_v21 = vpop.f32.mrb[36].mxu0 }
0x12e3   :  { %v11441_v54 = vpop.f32.mrb[37].mxu0 }
0x12e4   :  { %v4940_v55 = vpop.f32.mrb[38].mxu0  ;;  %v12382_v54 = vld [vmem:[#allocation17 + $0x88] ss:$16 sps:$4 sm:$0xff]  }
0x12e5   :  { %v11442_v38 = vpop.f32.mrb[39].mxu0  ;;  %v12387_v55 = vld [vmem:[#allocation17 + $0xac] ss:$16 sps:$4 sm:$0xff]  }
0x12e6   :  { %v12385_v38 = vld [vmem:[#allocation17 + $0xa8] ss:$16 sps:$4 sm:$0xff]  }
0x131a   :  { %v4986_v56 = vpop.f32.mrb[40].mxu0 }
0x131b   :  { %v4987_v57 = vadd.f32 %v4986_v56, %v14251_v16  ;;  %v11453_v58 = vpop.f32.mrb[41].mxu0  ;;  %v12390_v56 = vld [vmem:[#allocation17 + $0xcc] ss:$16 sps:$4 sm:$0xff]  }
0x131c   :  { %v4989_v51 = vpop.f32.mrb[42].mxu0  ;;  %v12393_v58 = vld [vmem:[#allocation17 + $0xec] ss:$16 sps:$4 sm:$0xff]  }
0x131d   :  { %v11454_v59 = vpop.f32.mrb[43].mxu0  ;;  %v4992_v60 = vsel %vm4348_vm3, %v4987_v57, -inf  ;;  %v12391_v51 = vld [vmem:[#allocation17 + $0xe8] ss:$16 sps:$4 sm:$0xff]  }
0x131e   :  { %4993 = vmax.xlane.f32.xlu0 %v4992_v60  ;;  %v12396_v59 = vld [vmem:[#allocation17 + $0x10c] ss:$16 sps:$4 sm:$0xff]   ;;  %v12394_v60 = vld [vmem:[#allocation17 + $0x108] ss:$16 sps:$4 sm:$0xff]  }
0x13ab   :  { %v4994_v61 = vpop.xlane.xlu0 %4993 }
0x13ac   :  { %v4995_v45 = vsub.f32 %v4987_v57, %v4994_v61  ;;  %v12388_v57 = vld [vmem:[#allocation17 + $0xc8] ss:$16 sps:$4 sm:$0xff]   ;;  %v12399_v61 = vld [vmem:[#allocation17 + $0x12c] ss:$16 sps:$4 sm:$0xff]  }
0x13ae   :  { %v4996_v62 = vmul.f32 1.442695, %v4995_v45  ;;  %v12397_v45 = vld [vmem:[#allocation17 + $0x128] ss:$16 sps:$4 sm:$0xff]  }
0x13b0   :  { %13291 = vpow2.f32 %v4996_v62  ;;  %v12402_v62 = vld [vmem:[#allocation17 + $0x14c] ss:$16 sps:$4 sm:$0xff]  }
0x13ba   :  { %v13292_v63 = vpop.eup %13291 }
0x13bb   :  { %v4998_v0 = vsel %vm4348_vm3, %v13292_v63, 0.0 }
0x13bc   :  { %4999 = vadd.xlane.f32.xlu0 %v4998_v0  ;;  %v12405_v0 = vld [vmem:[#allocation17 + $0x16c] ss:$16 sps:$4 sm:$0xff]  }
0x13d2   :  { %5051 = vrot.lane.b32.xlu0 %v4138_v53, %s13774_s15  ;;  %v12384_v53 = vld [vmem:[#allocation17 + $0x8c] ss:$16 sps:$4 sm:$0xff]  }
0x1449   :  { %v5000_v4 = vpop.xlane.xlu0 %4999 }
0x144a   :  { %13293 = vrcp.f32 %v5000_v4 }
0x144d   :  { %v5052_v24 = vpop.permute.xlu0 %5051 }
0x1454   :  { %v13294_v6 = vpop.eup %13293 }
0x1455   :  { %v5002_v47 = vmul.f32 %v13294_v6, %v13292_v63  ;;  %v12400_v63 = vld [vmem:[#allocation17 + $0x148] ss:$16 sps:$4 sm:$0xff]  }
0x1457   :  { %v5003_v14 = vpack.c.bf16 %v5002_v47, %v5002_v47 }
0x1459   :  { %11458 = vmatmul.mubr.msk.bf16.vlgmr.msra.gmra.mrb[40].mxu1 %vm4348_vm3, %v5003_v14  ;;  %v12409_v14 = vld [vmem:[#allocation17 + $0x1a8] ss:$16 sps:$4 sm:$0xff]  }
0x145a   :  { %11462 = vmatpush3.bf16.msra.mxu1 %v4295_v15  ;;  %11469 = vmatprep.mubr.msk.bf16.mxu1 %vm13789_vm0, %v13788_v46  ;;  %v12414_v15 = vld [vmem:[#allocation17 + $0x1cc] ss:$16 sps:$4 sm:$0xff]  }
0x145b   :  { %11463 = vmatprep.subr.bf16.mxu1 %v13788_v46 }
0x145e   :  { %11464 = vmatpush3.bf16.msra.mxu1 %v4296_v30  ;;  %v12417_v30 = vld [vmem:[#allocation17 + $0x1ec] ss:$16 sps:$4 sm:$0xff]  }
0x145f   :  { %11465 = vmatprep.subr.bf16.mxu1 %v13788_v46 }
0x1462   :  { %11466 = vmatpush3.bf16.msra.mxu1 %v4297_v32  ;;  %v12415_v32 = vld [vmem:[#allocation17 + $0x1e8] ss:$16 sps:$4 sm:$0xff]  }
0x1463   :  { %11467 = vmatprep.subr.bf16.mxu1 %v13788_v46 }
0x1466   :  { %11468 = vmatpush3.bf16.msra.mxu1 %v4298_v20  ;;  %v12420_v20 = vld [vmem:[#allocation17 + $0x4] ss:$16 sps:$4 sm:$0xff]  }
0x1467   :  { %6043 = vmatprep.subr.bf16.mxu1 %v12372_v18  ;;  %v12424_v18 = vld [vmem:[#allocation17 + $0x40] ss:$16 sps:$4 sm:$0xff]  }
0x1469   :  { %11470 = vmatmul.mubr.msk.bf16.vlgmr.msra.gmra.mrb[44].mxu1 %vm4304_vm2, %v5052_v24 }
0x146a   :  { %6044 = vmatpush1.bf16.msra.mxu1 %v12370_v42  ;;  %v12421_v42 = vld [vmem:[#allocation17 + $0x20] ss:$16 sps:$4 sm:$0xff]  }
0x146b   :  { %6045 = vmatprep.subr.bf16.mxu1 %v12375_v48  ;;  %v12427_v48 = vld [vmem:[#allocation17 + $0x60] ss:$16 sps:$4 sm:$0xff]  }
0x146e   :  { %6046 = vmatpush1.bf16.msra.mxu1 %v12373_v37  ;;  %v12432_v37 = vld [vmem:[#allocation17 + $0x84] ss:$16 sps:$4 sm:$0xff]  }
0x146f   :  { %6047 = vmatprep.subr.bf16.mxu1 %v12378_v49  ;;  %v12430_v49 = vld [vmem:[#allocation17 + $0x80] ss:$16 sps:$4 sm:$0xff]  }
0x1472   :  { %6048 = vmatpush1.bf16.msra.mxu1 %v12376_v50  ;;  %v12435_v50 = vld [vmem:[#allocation17 + $0xa4] ss:$16 sps:$4 sm:$0xff]  }
0x1473   :  { %6049 = vmatprep.subr.bf16.mxu1 %v12381_v52  ;;  %v12433_v52 = vld [vmem:[#allocation17 + $0xa0] ss:$16 sps:$4 sm:$0xff]  }
0x152c   :  { %v14413_v22 = vpop.f32.mrb[40].mxu1 }
0x152d   :  { %v11459_v23 = vpop.f32.mrb[41].mxu1 }
0x152e   :  { %v5047_v25 = vpop.f32.mrb[42].mxu1 }
0x152f   :  { %v11460_v28 = vpop.f32.mrb[43].mxu1 }
0x153c   :  { %v5090_v29 = vpop.f32.mrb[44].mxu1 }
0x153d   :  { %v5091_v31 = vadd.f32 %v5090_v29, %v14251_v16  ;;  %v11471_v35 = vpop.f32.mrb[45].mxu1  ;;  %v12379_v16 = vld [vmem:[#allocation17 + $0x68] ss:$16 sps:$4 sm:$0xff]  }
0x153e   :  { %v5093_v26 = vpop.f32.mrb[46].mxu1  ;;  %6050 = vmatpush1.bf16.msra.mxu1 %v12379_v16  ;;  %v12438_v16 = vld [vmem:[#allocation17 + $0xc4] ss:$16 sps:$4 sm:$0xff]  }
0x153f   :  { %v11472_v40 = vpop.f32.mrb[47].mxu1  ;;  %v5096_v41 = vsel %vm4348_vm3, %v5091_v31, -inf  ;;  %6051 = vmatprep.subr.bf16.mxu1 %v12384_v53  ;;  %v12418_v26 = vld [vmem:[#allocation17] ss:$16 sps:$4 sm:$0xff]  }
0x1540   :  { %5097 = vmax.xlane.f32.xlu1 %v5096_v41  ;;  %v12423_v41 = vld [vmem:[#allocation17 + $0x24] ss:$16 sps:$4 sm:$0xff]   ;;  %v12436_v53 = vld [vmem:[#allocation17 + $0xc0] ss:$16 sps:$4 sm:$0xff]  }
0x1542   :  { %6052 = vmatpush1.bf16.msra.mxu1 %v12382_v54  ;;  %v12441_v54 = vld [vmem:[#allocation17 + $0xe4] ss:$16 sps:$4 sm:$0xff]  }
0x1543   :  { %6053 = vmatprep.subr.bf16.mxu1 %v12387_v55  ;;  %v12439_v55 = vld [vmem:[#allocation17 + $0xe0] ss:$16 sps:$4 sm:$0xff]  }
0x1546   :  { %6054 = vmatpush1.bf16.msra.mxu1 %v12385_v38  ;;  %v12444_v38 = vld [vmem:[#allocation17 + $0x104] ss:$16 sps:$4 sm:$0xff]  }
0x1547   :  { %6055 = vmatprep.subr.bf16.mxu1 %v12390_v56  ;;  %v12442_v56 = vld [vmem:[#allocation17 + $0x100] ss:$16 sps:$4 sm:$0xff]  }
0x154a   :  { %6056 = vmatpush1.bf16.msra.mxu1 %v12388_v57  ;;  %v12447_v57 = vld [vmem:[#allocation17 + $0x124] ss:$16 sps:$4 sm:$0xff]  }
0x154b   :  { %6057 = vmatprep.subr.bf16.mxu1 %v12393_v58  ;;  %v12445_v58 = vld [vmem:[#allocation17 + $0x120] ss:$16 sps:$4 sm:$0xff]  }
0x154e   :  { %6058 = vmatpush1.bf16.msra.mxu1 %v12391_v51  ;;  %v12450_v51 = vld [vmem:[#allocation17 + $0x144] ss:$16 sps:$4 sm:$0xff]  }
0x154f   :  { %6059 = vmatprep.subr.bf16.mxu1 %v12396_v59  ;;  %v12448_v59 = vld [vmem:[#allocation17 + $0x140] ss:$16 sps:$4 sm:$0xff]  }
0x1552   :  { %6060 = vmatpush1.bf16.msra.mxu1 %v12394_v60  ;;  %v12453_v60 = vld [vmem:[#allocation17 + $0x164] ss:$16 sps:$4 sm:$0xff]  }
0x1553   :  { %6061 = vmatprep.subr.bf16.mxu1 %v12399_v61  ;;  %v12451_v61 = vld [vmem:[#allocation17 + $0x160] ss:$16 sps:$4 sm:$0xff]  }
0x1556   :  { %6062 = vmatpush1.bf16.msra.mxu1 %v12397_v45  ;;  %v12456_v45 = vld [vmem:[#allocation17 + $0x184] ss:$16 sps:$4 sm:$0xff]  }
0x1557   :  { %6063 = vmatprep.subr.bf16.mxu1 %v12402_v62  ;;  %v12454_v62 = vld [vmem:[#allocation17 + $0x180] ss:$16 sps:$4 sm:$0xff]  }
0x155a   :  { %6064 = vmatpush1.bf16.msra.mxu1 %v12400_v63  ;;  %v12459_v63 = vld [vmem:[#allocation17 + $0x1a4] ss:$16 sps:$4 sm:$0xff]  }
0x155b   :  { %6065 = vmatprep.subr.bf16.mxu1 %v12405_v0  ;;  %v12457_v0 = vld [vmem:[#allocation17 + $0x1a0] ss:$16 sps:$4 sm:$0xff]  }
0x155e   :  { %6066 = vmatpush1.bf16.msra.mxu1 %v12403_v1  ;;  %v12462_v1 = vld [vmem:[#allocation17 + $0x1c4] ss:$16 sps:$4 sm:$0xff]  }
0x155f   :  { %6067 = vmatprep.subr.bf16.mxu1 %v12408_v2  ;;  %v12460_v2 = vld [vmem:[#allocation17 + $0x1c0] ss:$16 sps:$4 sm:$0xff]  }
0x1562   :  { %6068 = vmatpush1.bf16.msra.mxu1 %v12406_v3  ;;  %v12465_v3 = vld [vmem:[#allocation17 + $0x1e4] ss:$16 sps:$4 sm:$0xff]  }
0x1563   :  { %6069 = vmatprep.subr.bf16.mxu1 %v12411_v8  ;;  %v12474_v8 = vld [vmem:[#allocation17 + $0x224] ss:$16 sps:$4 sm:$0xff]  }
0x1566   :  { %6070 = vmatpush1.bf16.msra.mxu1 %v12409_v14  ;;  %v12477_v14 = vld [vmem:[#allocation17 + $0x22c] ss:$16 sps:$4 sm:$0xff]  }
0x1567   :  { %6071 = vmatprep.subr.bf16.mxu1 %v12414_v15  ;;  %v12472_v15 = vld [vmem:[#allocation17 + $0x220] ss:$16 sps:$4 sm:$0xff]  }
0x156a   :  { %6072 = vmatpush1.bf16.msra.mxu1 %v12412_v17  ;;  %v12475_v17 = vld [vmem:[#allocation17 + $0x228] ss:$16 sps:$4 sm:$0xff]  }
0x156b   :  { %6073 = vmatprep.subr.bf16.mxu1 %v12417_v30  ;;  %v12480_v30 = vld [vmem:[#allocation17 + $0x244] ss:$16 sps:$4 sm:$0xff]  }
0x156e   :  { %6074 = vmatpush1.bf16.msra.mxu1 %v12415_v32  ;;  %v12483_v32 = vld [vmem:[#allocation17 + $0x24c] ss:$16 sps:$4 sm:$0xff]  }
0x15cd   :  { %v5098_v4 = vpop.xlane.xlu1 %5097 }
0x15ce   :  { %v5099_v5 = vsub.f32 %v5091_v31, %v5098_v4  ;;  %v12463_v4 = vld [vmem:[#allocation17 + $0x1e0] ss:$16 sps:$4 sm:$0xff]  }
0x15d0   :  { %v5100_v33 = vmul.f32 1.442695, %v5099_v5  ;;  %v12466_v5 = vld [vmem:[#allocation17 + $0x200] ss:$16 sps:$4 sm:$0xff]  }
0x15d2   :  { %13295 = vpow2.f32 %v5100_v33  ;;  %v12468_v33 = vld [vmem:[#allocation17 + $0x204] ss:$16 sps:$4 sm:$0xff]  }
0x15dc   :  { %v13296_v6 = vpop.eup %13295 }
0x15dd   :  { %v5102_v47 = vsel %vm4348_vm3, %v13296_v6, 0.0 }
0x15de   :  { %5103 = vadd.xlane.f32.xlu0 %v5102_v47  ;;  %v12471_v47 = vld [vmem:[#allocation17 + $0x20c] ss:$16 sps:$4 sm:$0xff]  }
0x15df   :  { %6084 = vmatprep.subr.bf16.mxu1 %v12471_v47  ;;  %v12550_v47 = vld [vmem:[#allocation17 + $0x3c0] ss:$16 sps:$4 sm:$0xff]  }
0x15f4   :  { %5109 = vrot.lane.b32.xlu0 %v14366_v36, %s13774_s15 }
0x15f8   :  { %11589 = vrot.lane.b32.xlu0 %v11588_v34, %s13774_s15 }
0x166b   :  { %v5104_v19 = vpop.xlane.xlu0 %5103 }
0x166c   :  { %13297 = vrcp.f32 %v5104_v19  ;;  %v12478_v19 = vld [vmem:[#allocation17 + $0x240] ss:$16 sps:$4 sm:$0xff]  }
0x166f   :  { %v5110_v24 = vpop.permute.xlu0 %5109 }
0x1670   :  { %v5115_v23 = vsel %vm4364_vm1, %v5110_v24, 0  ;;  %v12486_v24 = vld [vmem:[#allocation17 + $0x264] ss:$16 sps:$4 sm:$0xff]  }
0x1671   :  { %11474 = vmatpush3.bf16.msra.mxu0 %v5115_v23  ;;  %v12489_v23 = vld [vmem:[#allocation17 + $0x26c] ss:$16 sps:$4 sm:$0xff]  }
0x1672   :  { %5961 = vmatprep.subr.bf16.mxu0 %v12420_v20  ;;  %v12481_v20 = vld [vmem:[#allocation17 + $0x248] ss:$16 sps:$4 sm:$0xff]  }
0x1673   :  { %v11590_v25 = vpop.permute.xlu0 %11589 }
0x1674   :  { %v11592_v28 = vunpack.i.h.bf16 %v11590_v25  ;;  %v11591_v36 = vunpack.i.l.bf16 %v11590_v25  ;;  %v12484_v25 = vld [vmem:[#allocation17 + $0x260] ss:$16 sps:$4 sm:$0xff]  }
0x1676   :  { %v13298_v29 = vpop.eup %13297  ;;  %v4519_v31 = vsel %vm4304_vm2, %v14275_v44, %v11592_v28  ;;  %v4733_v35 = vsel %vm4304_vm2, %v14324_v43, %v11591_v36  ;;  %v12426_v44 = vld [vmem:[#allocation17 + $0x44] ss:$16 sps:$4 sm:$0xff]   ;;  %v12487_v28 = vld [vmem:[#allocation17 + $0x268] ss:$16 sps:$4 sm:$0xff]  }
0x1677   :  { %v5106_v11 = vmul.f32 %v13298_v29, %v13296_v6  ;;  %v14429_v7 = vpack.c.bf16 %v4519_v31, %v4519_v31  ;;  %v5168_v34 = vpack.c.bf16 %v4733_v35, %v4733_v35  ;;  %v12429_v43 = vld [vmem:[#allocation17 + $0x64] ss:$16 sps:$4 sm:$0xff]   ;;  %v12469_v6 = vld [vmem:[#allocation17 + $0x208] ss:$16 sps:$4 sm:$0xff]   ;;  %v12495_v29 = vld [vmem:[#allocation17 + $0x28c] ss:$16 sps:$4 sm:$0xff]  }
0x1678   :  { %v12492_v36 = vld [vmem:[#allocation17 + $0x284] ss:$16 sps:$4 sm:$0xff]   ;;  %v12490_v31 = vld [vmem:[#allocation17 + $0x280] ss:$16 sps:$4 sm:$0xff]   ;;  %v12493_v35 = vld [vmem:[#allocation17 + $0x288] ss:$16 sps:$4 sm:$0xff]  }
0x1679   :  { %6075 = vmatprep.mubr.bf16.mxu1 %v5168_v34  ;;  %v5107_v40 = vpack.c.bf16 %v5106_v11, %v5106_v11  ;;  %v12498_v11 = vld [vmem:[#allocation17 + $0x2a4] ss:$16 sps:$4 sm:$0xff]  }
0x167a   :  { %6076 = vmatmul.mubr.bf16.vlgmr.msra.gmra.mrb[48].mxu1 %v14429_v7 }
0x167b   :  { %11476 = vmatmul.mubr.msk.bf16.vlgmr.msra.gmra.mrb[44].mxu0 %vm4348_vm3, %v5107_v40  ;;  %6085 = vmatpush1.bf16.msra.mxu1 %v12469_v6  ;;  %v12504_v40 = vld [vmem:[#allocation17 + $0x2c4] ss:$16 sps:$4 sm:$0xff]   ;;  %v12555_v6 = vld [vmem:[#allocation17 + $0x3cc] ss:$16 sps:$4 sm:$0xff]  }
0x167c   :  { %5962 = vmatpush1.bf16.msra.mxu0 %v12418_v26  ;;  %5993 = vmatprep.mubr.bf16.mxu0 %v5168_v34  ;;  %v12496_v34 = vld [vmem:[#allocation17 + $0x2a0] ss:$16 sps:$4 sm:$0xff]   ;;  %v12499_v26 = vld [vmem:[#allocation17 + $0x2a8] ss:$16 sps:$4 sm:$0xff]  }
0x167d   :  { %5963 = vmatprep.subr.bf16.mxu0 %v12423_v41  ;;  %6086 = vmatprep.subr.bf16.mxu1 %v12477_v14  ;;  %v12507_v41 = vld [vmem:[#allocation17 + $0x2cc] ss:$16 sps:$4 sm:$0xff]   ;;  %v12558_v14 = vld [vmem:[#allocation17 + $0x3e4] ss:$16 sps:$4 sm:$0xff]  }
0x167f   :  { %6087 = vmatpush1.bf16.msra.mxu1 %v12475_v17  ;;  %v12556_v17 = vld [vmem:[#allocation17 + $0x3e0] ss:$16 sps:$4 sm:$0xff]  }
0x1680   :  { %5964 = vmatpush1.bf16.msra.mxu0 %v12421_v42  ;;  %6088 = vmatprep.subr.bf16.mxu1 %v12483_v32  ;;  %v12502_v42 = vld [vmem:[#allocation17 + $0x2c0] ss:$16 sps:$4 sm:$0xff]  }
0x1681   :  { %5965 = vmatprep.subr.bf16.mxu0 %v12426_v44  ;;  %v12505_v44 = vld [vmem:[#allocation17 + $0x2c8] ss:$16 sps:$4 sm:$0xff]  }
0x1683   :  { %6089 = vmatpush1.bf16.msra.mxu1 %v12481_v20 }
0x1684   :  { %5966 = vmatpush1.bf16.msra.mxu0 %v12424_v18  ;;  %6090 = vmatprep.subr.bf16.mxu1 %v12489_v23  ;;  %v12510_v18 = vld [vmem:[#allocation17 + $0x2e4] ss:$16 sps:$4 sm:$0xff]  }
0x1685   :  { %5967 = vmatprep.subr.bf16.mxu0 %v12429_v43  ;;  %v12513_v43 = vld [vmem:[#allocation17 + $0x2ec] ss:$16 sps:$4 sm:$0xff]  }
0x1687   :  { %6091 = vmatpush1.bf16.msra.mxu1 %v12487_v28 }
0x1688   :  { %5968 = vmatpush1.bf16.msra.mxu0 %v12427_v48  ;;  %6092 = vmatprep.subr.bf16.mxu1 %v12495_v29  ;;  %v12508_v48 = vld [vmem:[#allocation17 + $0x2e0] ss:$16 sps:$4 sm:$0xff]  }
0x1689   :  { %5969 = vmatprep.subr.bf16.mxu0 %v12432_v37  ;;  %v12511_v37 = vld [vmem:[#allocation17 + $0x2e8] ss:$16 sps:$4 sm:$0xff]  }
0x168b   :  { %6093 = vmatpush1.bf16.msra.mxu1 %v12493_v35 }
0x168c   :  { %5970 = vmatpush1.bf16.msra.mxu0 %v12430_v49  ;;  %v12516_v49 = vld [vmem:[#allocation17 + $0x304] ss:$16 sps:$4 sm:$0xff]  }
0x168d   :  { %5971 = vmatprep.subr.bf16.mxu0 %v12435_v50  ;;  %v12519_v50 = vld [vmem:[#allocation17 + $0x30c] ss:$16 sps:$4 sm:$0xff]  }
0x1690   :  { %5972 = vmatpush1.bf16.msra.mxu0 %v12433_v52  ;;  %v12514_v52 = vld [vmem:[#allocation17 + $0x300] ss:$16 sps:$4 sm:$0xff]  }
0x1691   :  { %5973 = vmatprep.subr.bf16.mxu0 %v12438_v16  ;;  %v12517_v16 = vld [vmem:[#allocation17 + $0x308] ss:$16 sps:$4 sm:$0xff]  }
0x1694   :  { %5974 = vmatpush1.bf16.msra.mxu0 %v12436_v53  ;;  %v12522_v53 = vld [vmem:[#allocation17 + $0x324] ss:$16 sps:$4 sm:$0xff]  }
0x1695   :  { %5975 = vmatprep.subr.bf16.mxu0 %v12441_v54  ;;  %v12525_v54 = vld [vmem:[#allocation17 + $0x32c] ss:$16 sps:$4 sm:$0xff]  }
0x1698   :  { %5976 = vmatpush1.bf16.msra.mxu0 %v12439_v55  ;;  %v12520_v55 = vld [vmem:[#allocation17 + $0x320] ss:$16 sps:$4 sm:$0xff]  }
0x1699   :  { %5977 = vmatprep.subr.bf16.mxu0 %v12444_v38  ;;  %v12523_v38 = vld [vmem:[#allocation17 + $0x328] ss:$16 sps:$4 sm:$0xff]  }
0x169c   :  { %5978 = vmatpush1.bf16.msra.mxu0 %v12442_v56  ;;  %v12528_v56 = vld [vmem:[#allocation17 + $0x344] ss:$16 sps:$4 sm:$0xff]  }
0x169d   :  { %5979 = vmatprep.subr.bf16.mxu0 %v12447_v57  ;;  %v12531_v57 = vld [vmem:[#allocation17 + $0x34c] ss:$16 sps:$4 sm:$0xff]  }
0x16a0   :  { %5980 = vmatpush1.bf16.msra.mxu0 %v12445_v58  ;;  %v12526_v58 = vld [vmem:[#allocation17 + $0x340] ss:$16 sps:$4 sm:$0xff]  }
0x16a1   :  { %5981 = vmatprep.subr.bf16.mxu0 %v12450_v51  ;;  %v12529_v51 = vld [vmem:[#allocation17 + $0x348] ss:$16 sps:$4 sm:$0xff]  }
0x16a4   :  { %5982 = vmatpush1.bf16.msra.mxu0 %v12448_v59  ;;  %v12534_v59 = vld [vmem:[#allocation17 + $0x364] ss:$16 sps:$4 sm:$0xff]  }
0x16a5   :  { %5983 = vmatprep.subr.bf16.mxu0 %v12453_v60  ;;  %v12537_v60 = vld [vmem:[#allocation17 + $0x36c] ss:$16 sps:$4 sm:$0xff]  }
0x16a8   :  { %5984 = vmatpush1.bf16.msra.mxu0 %v12451_v61  ;;  %v12532_v61 = vld [vmem:[#allocation17 + $0x360] ss:$16 sps:$4 sm:$0xff]  }
0x16a9   :  { %5985 = vmatprep.subr.bf16.mxu0 %v12456_v45  ;;  %v12535_v45 = vld [vmem:[#allocation17 + $0x368] ss:$16 sps:$4 sm:$0xff]  }
0x16ac   :  { %5986 = vmatpush1.bf16.msra.mxu0 %v12454_v62  ;;  %v12540_v62 = vld [vmem:[#allocation17 + $0x384] ss:$16 sps:$4 sm:$0xff]  }
0x16ad   :  { %5987 = vmatprep.subr.bf16.mxu0 %v12459_v63  ;;  %v12543_v63 = vld [vmem:[#allocation17 + $0x38c] ss:$16 sps:$4 sm:$0xff]  }
0x16b0   :  { %5988 = vmatpush1.bf16.msra.mxu0 %v12457_v0  ;;  %v12538_v0 = vld [vmem:[#allocation17 + $0x380] ss:$16 sps:$4 sm:$0xff]  }
0x16b1   :  { %5989 = vmatprep.subr.bf16.mxu0 %v12462_v1  ;;  %v12541_v1 = vld [vmem:[#allocation17 + $0x388] ss:$16 sps:$4 sm:$0xff]  }
0x16b4   :  { %5990 = vmatpush1.bf16.msra.mxu0 %v12460_v2  ;;  %v12546_v2 = vld [vmem:[#allocation17 + $0x3a4] ss:$16 sps:$4 sm:$0xff]  }
0x16b5   :  { %5991 = vmatprep.subr.bf16.mxu0 %v12465_v3  ;;  %v12549_v3 = vld [vmem:[#allocation17 + $0x3ac] ss:$16 sps:$4 sm:$0xff]  }
0x16b8   :  { %5992 = vmatpush1.bf16.msra.mxu0 %v12463_v4  ;;  %v12544_v4 = vld [vmem:[#allocation17 + $0x3a0] ss:$16 sps:$4 sm:$0xff]  }
0x16b9   :  { %6002 = vmatprep.subr.bf16.mxu0 %v12468_v33  ;;  %v12552_v33 = vld [vmem:[#allocation17 + $0x3c4] ss:$16 sps:$4 sm:$0xff]  }
0x16bb   :  { %5994 = vmatmul.mubr.bf16.vlgmr.msra.gmra.mrb[48].mxu0 %v14429_v7  ;;  %v12501_v7 = vld [vmem:[#allocation17 + $0x2ac] ss:$16 sps:$4 sm:$0xff]  }
0x16bc   :  { %6003 = vmatpush1.bf16.msra.mxu0 %v12466_v5  ;;  %6094 = vmatprep.subr.bf16.mxu1 %v12501_v7  ;;  %v12547_v5 = vld [vmem:[#allocation17 + $0x3a8] ss:$16 sps:$4 sm:$0xff]  }
0x16bd   :  { %6004 = vmatprep.subr.bf16.mxu0 %v12474_v8  ;;  %6095 = vmatpush1.bf16.msra.mxu1 %v12499_v26  ;;  %v12553_v8 = vld [vmem:[#allocation17 + $0x3c8] ss:$16 sps:$4 sm:$0xff]   ;;  %v5299_v26 = vld [vmem:[#allocation18] sm:$0xf] }
0x16be   :  { %6096 = vmatprep.subr.bf16.mxu1 %v12507_v41  ;;  %v5304_v41 = vrot.slane %v5299_v26, %v14146_v10 }
0x16c0   :  { %6005 = vmatpush1.bf16.msra.mxu0 %v12472_v15  ;;  %v12561_v15 = vld [vmem:[#allocation17 + $0x3ec] ss:$16 sps:$4 sm:$0xff]  }
0x16c1   :  { %6006 = vmatprep.subr.bf16.mxu0 %v12480_v30  ;;  %6097 = vmatpush1.bf16.msra.mxu1 %v12505_v44  ;;  %v12559_v30 = vld [vmem:[#allocation17 + $0x3e8] ss:$16 sps:$4 sm:$0xff]  }
0x16c2   :  { %6098 = vmatprep.subr.bf16.mxu1 %v12513_v43  ;;  %v14449_v44 = vld [vmem:[#allocation6] sm:$0xff] }
0x16c4   :  { %6007 = vmatpush1.bf16.msra.mxu0 %v12478_v19 }
0x16c5   :  { %6008 = vmatprep.subr.bf16.mxu0 %v12486_v24  ;;  %6099 = vmatpush1.bf16.msra.mxu1 %v12511_v37 }
0x16c6   :  { %6100 = vmatprep.subr.bf16.mxu1 %v12519_v50 }
0x16c8   :  { %6009 = vmatpush1.bf16.msra.mxu0 %v12484_v25 }
0x16c9   :  { %6010 = vmatprep.subr.bf16.mxu0 %v12492_v36  ;;  %6101 = vmatpush1.bf16.msra.mxu1 %v12517_v16  ;;  %v12564_v16 = vld [vmem:[#allocation23 + $0x4] ss:$16 sps:$4 sm:$0xff]  }
0x16ca   :  { %6102 = vmatprep.subr.bf16.mxu1 %v12525_v54 }
0x16cc   :  { %6011 = vmatpush1.bf16.msra.mxu0 %v12490_v31 }
0x16cd   :  { %6012 = vmatprep.subr.bf16.mxu0 %v12498_v11  ;;  %6103 = vmatpush1.bf16.msra.mxu1 %v12523_v38 }
0x16ce   :  { %6104 = vmatprep.subr.bf16.mxu1 %v12531_v57  ;;  %v12567_v57 = vld [vmem:[#allocation23 + $0xc] ss:$16 sps:$4 sm:$0xff]  }
0x16d0   :  { %6013 = vmatpush1.bf16.msra.mxu0 %v12496_v34 }
0x16d1   :  { %6014 = vmatprep.subr.bf16.mxu0 %v12504_v40  ;;  %6105 = vmatpush1.bf16.msra.mxu1 %v12529_v51  ;;  %v5308_v40 = vrot.slane %v5299_v26, %v14151_v12  ;;  %v12565_v51 = vld [vmem:[#allocation23 + $0x8] ss:$16 sps:$4 sm:$0xff]  }
0x16d2   :  { %6106 = vmatprep.subr.bf16.mxu1 %v12537_v60  ;;  %v12573_v60 = vld [vmem:[#allocation23 + $0x2c] ss:$16 sps:$4 sm:$0xff]  }
0x16d4   :  { %6015 = vmatpush1.bf16.msra.mxu0 %v12502_v42  ;;  %v5312_v42 = vrot.slane %v5299_v26, %v14177_v27 }
0x16d5   :  { %6016 = vmatprep.subr.bf16.mxu0 %v12510_v18  ;;  %6107 = vmatpush1.bf16.msra.mxu1 %v12535_v45  ;;  %v12568_v45 = vld [vmem:[#allocation23 + $0x20] ss:$16 sps:$4 sm:$0xff]  }
0x16d6   :  { %6108 = vmatprep.subr.bf16.mxu1 %v12543_v63  ;;  %v12576_v63 = vld [vmem:[#allocation23 + $0x44] ss:$16 sps:$4 sm:$0xff]  }
0x16d8   :  { %6017 = vmatpush1.bf16.msra.mxu0 %v12508_v48 }
0x16d9   :  { %6018 = vmatprep.subr.bf16.mxu0 %v12516_v49  ;;  %6109 = vmatpush1.bf16.msra.mxu1 %v12541_v1  ;;  %v12574_v1 = vld [vmem:[#allocation23 + $0x40] ss:$16 sps:$4 sm:$0xff]  }
0x16da   :  { %6110 = vmatprep.subr.bf16.mxu1 %v12549_v3  ;;  %v12582_v3 = vld [vmem:[#allocation23 + $0x64] ss:$16 sps:$4 sm:$0xff]  }
0x16dc   :  { %6019 = vmatpush1.bf16.msra.mxu0 %v12514_v52 }
0x16dd   :  { %6020 = vmatprep.subr.bf16.mxu0 %v12522_v53  ;;  %6111 = vmatpush1.bf16.msra.mxu1 %v12547_v5  ;;  %v12580_v5 = vld [vmem:[#allocation23 + $0x60] ss:$16 sps:$4 sm:$0xff]  }
0x16de   :  { %6112 = vmatprep.subr.bf16.mxu1 %v12555_v6  ;;  %v12588_v6 = vld [vmem:[#allocation23 + $0x84] ss:$16 sps:$4 sm:$0xff]  }
0x16e0   :  { %6021 = vmatpush1.bf16.msra.mxu0 %v12520_v55 }
0x16e1   :  { %6022 = vmatprep.subr.bf16.mxu0 %v12528_v56  ;;  %6113 = vmatpush1.bf16.msra.mxu1 %v12553_v8  ;;  %v6125_v56 = vld [vmem:[#allocation9] sm:$0xf] }
0x16e2   :  { %6114 = vmatprep.subr.bf16.mxu1 %v12561_v15  ;;  %v12586_v8 = vld [vmem:[#allocation23 + $0x80] ss:$16 sps:$4 sm:$0xff]   ;;  %v12594_v15 = vld [vmem:[#allocation23 + $0xa4] ss:$16 sps:$4 sm:$0xff]  }
0x16e4   :  { %6023 = vmatpush1.bf16.msra.mxu0 %v12526_v58  ;;  %v12562_v58 = vld [vmem:[#allocation23] ss:$16 sps:$4 sm:$0xff]  }
0x16e5   :  { %6024 = vmatprep.subr.bf16.mxu0 %v12534_v59  ;;  %6115 = vmatpush1.bf16.msra.mxu1 %v12559_v30  ;;  %v12570_v59 = vld [vmem:[#allocation23 + $0x24] ss:$16 sps:$4 sm:$0xff]   ;;  %v12592_v30 = vld [vmem:[#allocation23 + $0xa0] ss:$16 sps:$4 sm:$0xff]  }
0x16e8   :  { %6025 = vmatpush1.bf16.msra.mxu0 %v12532_v61 }
0x16e9   :  { %6026 = vmatprep.subr.bf16.mxu0 %v12540_v62  ;;  %v12571_v62 = vld [vmem:[#allocation23 + $0x28] ss:$16 sps:$4 sm:$0xff]  }
0x16ec   :  { %6027 = vmatpush1.bf16.msra.mxu0 %v12538_v0  ;;  %v12579_v0 = vld [vmem:[#allocation23 + $0x4c] ss:$16 sps:$4 sm:$0xff]  }
0x16ed   :  { %6028 = vmatprep.subr.bf16.mxu0 %v12546_v2  ;;  %v12577_v2 = vld [vmem:[#allocation23 + $0x48] ss:$16 sps:$4 sm:$0xff]  }
0x16f0   :  { %6029 = vmatpush1.bf16.msra.mxu0 %v12544_v4  ;;  %v12585_v4 = vld [vmem:[#allocation23 + $0x6c] ss:$16 sps:$4 sm:$0xff]  }
0x16f1   :  { %6030 = vmatprep.subr.bf16.mxu0 %v12552_v33  ;;  %v12583_v33 = vld [vmem:[#allocation23 + $0x68] ss:$16 sps:$4 sm:$0xff]  }
0x16f4   :  { %6031 = vmatpush1.bf16.msra.mxu0 %v12550_v47  ;;  %v12591_v47 = vld [vmem:[#allocation23 + $0x8c] ss:$16 sps:$4 sm:$0xff]  }
0x16f5   :  { %6032 = vmatprep.subr.bf16.mxu0 %v12558_v14  ;;  %v12589_v14 = vld [vmem:[#allocation23 + $0x88] ss:$16 sps:$4 sm:$0xff]  }
0x16f8   :  { %6033 = vmatpush1.bf16.msra.mxu0 %v12556_v17  ;;  %v12597_v17 = vld [vmem:[#allocation23 + $0xac] ss:$16 sps:$4 sm:$0xff]  }
0x174e   :  { %v5151_v32 = vpop.f32.mrb[44].mxu0 }
0x174f   :  { %v11593_v19 = vpack.i.bf16 %v14400_v21, %v5151_v32  ;;  %v11477_v20 = vpop.f32.mrb[45].mxu0  ;;  %v13790_v21 = vmov 1983009808   ;;  %v12595_v32 = vld [vmem:[#allocation23 + $0xa8] ss:$16 sps:$4 sm:$0xff]  }
0x1750   :  { %v5154_v24 = vpop.f32.mrb[46].mxu0  ;;  %v6578_v7 = vunpack.c.l.s4 %v13790_v21  ;;  %v12603_v20 = vld [vmem:[#allocation23 + $0xcc] ss:$16 sps:$4 sm:$0xff]   ;;  %v12613_v21 = vld [vmem:[#allocation23 + $0x108] ss:$16 sps:$4 sm:$0xff]  }
0x1751   :  { %11594 = vrot.lane.b32.xlu0 %v11593_v19, %s13774_s15  ;;  %v11478_v23 = vpop.f32.mrb[47].mxu0  ;;  %v12600_v19 = vld [vmem:[#allocation23 + $0xc4] ss:$16 sps:$4 sm:$0xff]   ;;  %v12598_v24 = vld [vmem:[#allocation23 + $0xc0] ss:$16 sps:$4 sm:$0xff]   ;;  %s10073_s15 = sshll.u32 %s13791_s18, 4  ;;  %s10074_s15 = int_to_ptr.vmem [resolvable:$true] %s10073_s15 }
0x1752   :  { %v6579_v34 = vunpack.c.0.s8 %v6578_v7  ;;  %v12601_v23 = vld [vmem:[#allocation23 + $0xc8] ss:$16 sps:$4 sm:$0xff]   ;;  %v12618_v7 = vld [vmem:[#allocation23 + $0x124] ss:$16 sps:$4 sm:$0xff]   ;;  %s13719_s8 = scalar_lea.vmem %s10074_s15, 64  ;;  %p13724_p13 = scmp.lt.s32.totalorder %s10074_s15, %s10074_s15 }
0x1753   :  { %p13720_p12 = scmp.ne.s32.totalorder %s10074_s15, %s13719_s8  ;;  %p13725_p0 = scmp.lt.s32.totalorder %s13719_s8, %s13719_s8 }
0x1755   :  { %p13726_p1 = por %p13725_p0, %p13724_p13 }
0x1757   :  { %p13727_p2 = pnand %p13726_p1, %p13720_p12 }
0x17c3   :  { %v11595_v25 = vpop.permute.xlu0 %11594 }
0x17c4   :  { %v11597_v28 = vunpack.i.h.bf16 %v11595_v25  ;;  %v11596_v36 = vunpack.i.l.bf16 %v11595_v25  ;;  %v12606_v25 = vld [vmem:[#allocation23 + $0xe4] ss:$16 sps:$4 sm:$0xff]  }
0x17c6   :  { %v4947_v29 = vsel %vm4304_vm2, %v14375_v39, %v11597_v28  ;;  %v5161_v31 = vsel %vm4304_vm2, %v14413_v22, %v11596_v36  ;;  %v5316_v39 = vrot.slane %v5299_v26, %v14154_v13  ;;  %v14445_v22 = vsub.s32 %v6579_v34, %v14143_v9  ;;  %v12609_v28 = vld [vmem:[#allocation23 + $0xec] ss:$16 sps:$4 sm:$0xff]   ;;  %v12604_v36 = vld [vmem:[#allocation23 + $0xe0] ss:$16 sps:$4 sm:$0xff]  }
0x17c7   :  { %v5169_v35 = vpack.c.bf16 %v4947_v29, %v4947_v29  ;;  %v5170_v11 = vpack.c.bf16 %v5161_v31, %v5161_v31  ;;  %v12607_v29 = vld [vmem:[#allocation23 + $0xe8] ss:$16 sps:$4 sm:$0xff]   ;;  %v12612_v31 = vld [vmem:[#allocation23 + $0x104] ss:$16 sps:$4 sm:$0xff]   ;;  %v12621_v34 = vld [vmem:[#allocation23 + $0x12c] ss:$16 sps:$4 sm:$0xff]  }
0x17c8   :  { %v14453_v53 = vrot.slane %v14449_v44, %v14445_v22  ;;  %v12616_v26 = vld [vmem:[#allocation23 + $0x120] ss:$16 sps:$4 sm:$0xff]  }
0x17c9   :  { %6034 = vmatprep.mubr.bf16.mxu0 %v5170_v11  ;;  %6116 = vmatprep.mubr.bf16.mxu1 %v5170_v11  ;;  %v12610_v11 = vld [vmem:[#allocation23 + $0x100] ss:$16 sps:$4 sm:$0xff]  }
0x17ca   :  { %6035 = vmatmul.mubr.bf16.vlgmr.msra.gmra.mrb[48].mxu0 %v5169_v35  ;;  %6117 = vmatmul.mubr.bf16.vlgmr.msra.gmra.mrb[48].mxu1 %v5169_v35  ;;  %v6591_v61 = vcombine.high %v14453_v53, %v14453_v53  ;;  %v12615_v35 = vld [vmem:[#allocation23 + $0x10c] ss:$16 sps:$4 sm:$0xff]  }
0x17cb   :  { %6193 = vmatprep.mubr.f32.mxu0 %v13788_v46  ;;  %6264 = vmatprep.mubr.f32.mxu1 %v13788_v46 }
0x189d   :  { %v6036_v18 = vpop.f32.mrb[48].mxu0  ;;  %v6118_v43 = vpop.f32.mrb[48].mxu1 }
0x189e   :  { %v6038_v46 = vpop.f32.mrb[49].mxu0  ;;  %v6120_v48 = vpop.f32.mrb[49].mxu1  ;;  %v11495_v9 = vadd.f32 %v6036_v18, %v5304_v41  ;;  %v11497_v54 = vadd.f32 %v6118_v43, %v5312_v42  ;;  %v12627_v41 = vld [vmem:[#allocation23 + $0x14c] ss:$16 sps:$4 sm:$0xff]   ;;  %v12622_v42 = vld [vmem:[#allocation23 + $0x140] ss:$16 sps:$4 sm:$0xff]  }
0x189f   :  { %v11496_v37 = vadd.f32 %v6038_v46, %v5308_v40  ;;  %v11498_v49 = vadd.f32 %v6120_v48, %v5316_v39  ;;  %v6040_v50 = vpop.f32.mrb[50].mxu0  ;;  %v6122_v52 = vpop.f32.mrb[50].mxu1  ;;  %v12619_v40 = vld [vmem:[#allocation23 + $0x128] ss:$16 sps:$4 sm:$0xff]   ;;  %v12624_v39 = vld [vmem:[#allocation23 + $0x144] ss:$16 sps:$4 sm:$0xff]  }
0x18a0   :  { %v6041_v55 = vpop.f32.mrb[51].mxu0  ;;  %v6123_v38 = vpop.f32.mrb[51].mxu1  ;;  %v12625_v18 = vld [vmem:[#allocation23 + $0x148] ss:$16 sps:$4 sm:$0xff]   ;;  %v12630_v43 = vld [vmem:[#allocation23 + $0x164] ss:$16 sps:$4 sm:$0xff]  }
0x18a1   :  { %6129 = vmatprep.subr.mxu0 %v11496_v37  ;;  %6200 = vmatprep.subr.mxu1 %v11498_v49  ;;  %v12633_v46 = vld [vmem:[#allocation23 + $0x16c] ss:$16 sps:$4 sm:$0xff]   ;;  %v12628_v48 = vld [vmem:[#allocation23 + $0x160] ss:$16 sps:$4 sm:$0xff]   ;;  %v12631_v37 = vld [vmem:[#allocation23 + $0x168] ss:$16 sps:$4 sm:$0xff]  }
0x18a2   :  { %6130 = vmatpush1.msra.mxu0 %v11495_v9  ;;  %6201 = vmatpush1.msra.mxu1 %v11497_v54  ;;  %v12636_v49 = vld [vmem:[#allocation23 + $0x184] ss:$16 sps:$4 sm:$0xff]   ;;  %v12639_v50 = vld [vmem:[#allocation23 + $0x18c] ss:$16 sps:$4 sm:$0xff]   ;;  %v12634_v52 = vld [vmem:[#allocation23 + $0x180] ss:$16 sps:$4 sm:$0xff]  }
0x18a3   :  { %10751 = vmatmul.mubr.msk.f32.vlgmr.msra.gmra.mrb[52].mxu0 %vm4348_vm3, %v6125_v56  ;;  %7567 = vmatprep.subr.bf16.mxu0 %v12564_v16  ;;  %v12637_v16 = vld [vmem:[#allocation23 + $0x188] ss:$16 sps:$4 sm:$0xff]   ;;  %v12642_v9 = vld [vmem:[#allocation23 + $0x1a4] ss:$16 sps:$4 sm:$0xff]   ;;  %v12645_v54 = vld [vmem:[#allocation23 + $0x1ac] ss:$16 sps:$4 sm:$0xff]  }
0x18a4   :  { %7690 = vmatprep.subr.bf16.mxu1 %v12567_v57  ;;  %10752 = vmatmul.mubr.msk.f32.vlgmr.msra.gmra.mrb[52].mxu1 %vm4348_vm3, %v6125_v56  ;;  %v12640_v55 = vld [vmem:[#allocation23 + $0x1a0] ss:$16 sps:$4 sm:$0xff]   ;;  %v12643_v38 = vld [vmem:[#allocation23 + $0x1a8] ss:$16 sps:$4 sm:$0xff]   ;;  %v12648_v56 = vld [vmem:[#allocation23 + $0x1c4] ss:$16 sps:$4 sm:$0xff]  }
0x18a5   :  { %7568 = vmatpush1.bf16.msra.mxu0 %v12562_v58  ;;  %7691 = vmatpush1.bf16.msra.mxu1 %v12565_v51  ;;  %v12651_v57 = vld [vmem:[#allocation23 + $0x1cc] ss:$16 sps:$4 sm:$0xff]   ;;  %v12646_v58 = vld [vmem:[#allocation23 + $0x1c0] ss:$16 sps:$4 sm:$0xff]   ;;  %v12649_v51 = vld [vmem:[#allocation23 + $0x1c8] ss:$16 sps:$4 sm:$0xff]  }
0x18a6   :  { %7569 = vmatprep.subr.bf16.mxu0 %v12570_v59  ;;  %7692 = vmatprep.subr.bf16.mxu1 %v12573_v60  ;;  %v12654_v59 = vld [vmem:[#allocation23 + $0x1e4] ss:$16 sps:$4 sm:$0xff]   ;;  %v12657_v60 = vld [vmem:[#allocation23 + $0x1ec] ss:$16 sps:$4 sm:$0xff]  }
0x18a7   :  { %7599 = vmatprep.mubr.bf16.mxu0 %v6591_v61  ;;  %7722 = vmatprep.mubr.bf16.mxu1 %v6591_v61  ;;  %v6576_v61 = vcombine.high %v14449_v44, %v14449_v44 }
0x18a9   :  { %7570 = vmatpush1.bf16.msra.mxu0 %v12568_v45  ;;  %7693 = vmatpush1.bf16.msra.mxu1 %v12571_v62  ;;  %v12652_v45 = vld [vmem:[#allocation23 + $0x1e0] ss:$16 sps:$4 sm:$0xff]   ;;  %v12655_v62 = vld [vmem:[#allocation23 + $0x1e8] ss:$16 sps:$4 sm:$0xff]  }
0x18aa   :  { %7571 = vmatprep.subr.bf16.mxu0 %v12576_v63  ;;  %7694 = vmatprep.subr.bf16.mxu1 %v12579_v0  ;;  %v12660_v63 = vld [vmem:[#allocation23 + $0x204] ss:$16 sps:$4 sm:$0xff]   ;;  %v12663_v0 = vld [vmem:[#allocation23 + $0x20c] ss:$16 sps:$4 sm:$0xff]  }
0x18ad   :  { %7572 = vmatpush1.bf16.msra.mxu0 %v12574_v1  ;;  %7695 = vmatpush1.bf16.msra.mxu1 %v12577_v2  ;;  %v14462_v1 = vrot.slane %v6576_v61, %v14445_v22  ;;  %v12658_v2 = vld [vmem:[#allocation23 + $0x200] ss:$16 sps:$4 sm:$0xff]   ;;  %v12667_v22 = vld [vmem:[#allocation23 + $0x228] ss:$16 sps:$4 sm:$0xff]  }
0x18ae   :  { %7573 = vmatprep.subr.bf16.mxu0 %v12582_v3  ;;  %7696 = vmatprep.subr.bf16.mxu1 %v12585_v4  ;;  %v12661_v3 = vld [vmem:[#allocation23 + $0x208] ss:$16 sps:$4 sm:$0xff]   ;;  %v12666_v4 = vld [vmem:[#allocation23 + $0x224] ss:$16 sps:$4 sm:$0xff]  }
0x18af   :  { %v6592_v44 = vcombine.high %v14462_v1, %v14462_v1  ;;  %v12739_v61 = vld [vmem:[#allocation23 + $0x3a8] ss:$16 sps:$4 sm:$0xff]  }
0x18b1   :  { %7574 = vmatpush1.bf16.msra.mxu0 %v12580_v5  ;;  %7697 = vmatpush1.bf16.msra.mxu1 %v12583_v33  ;;  %v12669_v5 = vld [vmem:[#allocation23 + $0x22c] ss:$16 sps:$4 sm:$0xff]   ;;  %v12664_v33 = vld [vmem:[#allocation23 + $0x220] ss:$16 sps:$4 sm:$0xff]  }
0x18b2   :  { %7575 = vmatprep.subr.bf16.mxu0 %v12588_v6  ;;  %7698 = vmatprep.subr.bf16.mxu1 %v12591_v47  ;;  %v12672_v6 = vld [vmem:[#allocation23 + $0x244] ss:$16 sps:$4 sm:$0xff]   ;;  %v12675_v47 = vld [vmem:[#allocation23 + $0x24c] ss:$16 sps:$4 sm:$0xff]  }
0x18b5   :  { %7576 = vmatpush1.bf16.msra.mxu0 %v12586_v8  ;;  %7699 = vmatpush1.bf16.msra.mxu1 %v12589_v14  ;;  %v12670_v8 = vld [vmem:[#allocation23 + $0x240] ss:$16 sps:$4 sm:$0xff]   ;;  %v12673_v14 = vld [vmem:[#allocation23 + $0x248] ss:$16 sps:$4 sm:$0xff]  }
0x18b6   :  { %7577 = vmatprep.subr.bf16.mxu0 %v12594_v15  ;;  %7700 = vmatprep.subr.bf16.mxu1 %v12597_v17  ;;  %v12678_v15 = vld [vmem:[#allocation23 + $0x264] ss:$16 sps:$4 sm:$0xff]   ;;  %v12681_v17 = vld [vmem:[#allocation23 + $0x26c] ss:$16 sps:$4 sm:$0xff]  }
0x18b9   :  { %7578 = vmatpush1.bf16.msra.mxu0 %v12592_v30  ;;  %7701 = vmatpush1.bf16.msra.mxu1 %v12595_v32  ;;  %v12679_v30 = vld [vmem:[#allocation23 + $0x268] ss:$16 sps:$4 sm:$0xff]   ;;  %v12684_v32 = vld [vmem:[#allocation23 + $0x284] ss:$16 sps:$4 sm:$0xff]  }
0x18ba   :  { %7579 = vmatprep.subr.bf16.mxu0 %v12600_v19  ;;  %7702 = vmatprep.subr.bf16.mxu1 %v12603_v20  ;;  %v12687_v19 = vld [vmem:[#allocation23 + $0x28c] ss:$16 sps:$4 sm:$0xff]   ;;  %v12682_v20 = vld [vmem:[#allocation23 + $0x280] ss:$16 sps:$4 sm:$0xff]  }
0x18bd   :  { %7580 = vmatpush1.bf16.msra.mxu0 %v12598_v24  ;;  %7703 = vmatpush1.bf16.msra.mxu1 %v12601_v23  ;;  %v12685_v24 = vld [vmem:[#allocation23 + $0x288] ss:$16 sps:$4 sm:$0xff]   ;;  %v12690_v23 = vld [vmem:[#allocation23 + $0x2a4] ss:$16 sps:$4 sm:$0xff]  }
0x18be   :  { %7581 = vmatprep.subr.bf16.mxu0 %v12606_v25  ;;  %7704 = vmatprep.subr.bf16.mxu1 %v12609_v28  ;;  %v12693_v25 = vld [vmem:[#allocation23 + $0x2ac] ss:$16 sps:$4 sm:$0xff]   ;;  %v12688_v28 = vld [vmem:[#allocation23 + $0x2a0] ss:$16 sps:$4 sm:$0xff]  }
0x18c1   :  { %7582 = vmatpush1.bf16.msra.mxu0 %v12604_v36  ;;  %7705 = vmatpush1.bf16.msra.mxu1 %v12607_v29  ;;  %v12691_v36 = vld [vmem:[#allocation23 + $0x2a8] ss:$16 sps:$4 sm:$0xff]   ;;  %v12696_v29 = vld [vmem:[#allocation23 + $0x2c4] ss:$16 sps:$4 sm:$0xff]  }
0x18c2   :  { %7583 = vmatprep.subr.bf16.mxu0 %v12612_v31  ;;  %7706 = vmatprep.subr.bf16.mxu1 %v12615_v35  ;;  %v12699_v31 = vld [vmem:[#allocation23 + $0x2cc] ss:$16 sps:$4 sm:$0xff]   ;;  %v12694_v35 = vld [vmem:[#allocation23 + $0x2c0] ss:$16 sps:$4 sm:$0xff]  }
0x18c5   :  { %7584 = vmatpush1.bf16.msra.mxu0 %v12610_v11  ;;  %7707 = vmatpush1.bf16.msra.mxu1 %v12613_v21  ;;  %v12697_v11 = vld [vmem:[#allocation23 + $0x2c8] ss:$16 sps:$4 sm:$0xff]   ;;  %v12702_v21 = vld [vmem:[#allocation23 + $0x2e4] ss:$16 sps:$4 sm:$0xff]  }
0x18c6   :  { %7585 = vmatprep.subr.bf16.mxu0 %v12618_v7  ;;  %7708 = vmatprep.subr.bf16.mxu1 %v12621_v34  ;;  %v12705_v7 = vld [vmem:[#allocation23 + $0x2ec] ss:$16 sps:$4 sm:$0xff]   ;;  %v12700_v34 = vld [vmem:[#allocation23 + $0x2e0] ss:$16 sps:$4 sm:$0xff]  }
0x18c9   :  { %7586 = vmatpush1.bf16.msra.mxu0 %v12616_v26  ;;  %7709 = vmatpush1.bf16.msra.mxu1 %v12619_v40  ;;  %v12703_v26 = vld [vmem:[#allocation23 + $0x2e8] ss:$16 sps:$4 sm:$0xff]   ;;  %v12708_v40 = vld [vmem:[#allocation23 + $0x304] ss:$16 sps:$4 sm:$0xff]  }
0x18ca   :  { %7587 = vmatprep.subr.bf16.mxu0 %v12624_v39  ;;  %7710 = vmatprep.subr.bf16.mxu1 %v12627_v41  ;;  %v12711_v39 = vld [vmem:[#allocation23 + $0x30c] ss:$16 sps:$4 sm:$0xff]   ;;  %v12706_v41 = vld [vmem:[#allocation23 + $0x300] ss:$16 sps:$4 sm:$0xff]  }
0x18cd   :  { %7588 = vmatpush1.bf16.msra.mxu0 %v12622_v42  ;;  %7711 = vmatpush1.bf16.msra.mxu1 %v12625_v18  ;;  %v12709_v42 = vld [vmem:[#allocation23 + $0x308] ss:$16 sps:$4 sm:$0xff]   ;;  %v12714_v18 = vld [vmem:[#allocation23 + $0x324] ss:$16 sps:$4 sm:$0xff]  }
0x18ce   :  { %7589 = vmatprep.subr.bf16.mxu0 %v12630_v43  ;;  %7712 = vmatprep.subr.bf16.mxu1 %v12633_v46  ;;  %v12717_v43 = vld [vmem:[#allocation23 + $0x32c] ss:$16 sps:$4 sm:$0xff]   ;;  %v12712_v46 = vld [vmem:[#allocation23 + $0x320] ss:$16 sps:$4 sm:$0xff]  }
0x18d1   :  { %7590 = vmatpush1.bf16.msra.mxu0 %v12628_v48  ;;  %7713 = vmatpush1.bf16.msra.mxu1 %v12631_v37  ;;  %v12715_v48 = vld [vmem:[#allocation23 + $0x328] ss:$16 sps:$4 sm:$0xff]   ;;  %v12720_v37 = vld [vmem:[#allocation23 + $0x344] ss:$16 sps:$4 sm:$0xff]  }
0x18d2   :  { %7591 = vmatprep.subr.bf16.mxu0 %v12636_v49  ;;  %7714 = vmatprep.subr.bf16.mxu1 %v12639_v50  ;;  %v12723_v49 = vld [vmem:[#allocation23 + $0x34c] ss:$16 sps:$4 sm:$0xff]   ;;  %v12718_v50 = vld [vmem:[#allocation23 + $0x340] ss:$16 sps:$4 sm:$0xff]  }
0x18d5   :  { %7592 = vmatpush1.bf16.msra.mxu0 %v12634_v52  ;;  %7715 = vmatpush1.bf16.msra.mxu1 %v12637_v16  ;;  %v12721_v52 = vld [vmem:[#allocation23 + $0x348] ss:$16 sps:$4 sm:$0xff]   ;;  %v12726_v16 = vld [vmem:[#allocation23 + $0x364] ss:$16 sps:$4 sm:$0xff]  }
0x18d6   :  { %7593 = vmatprep.subr.bf16.mxu0 %v12642_v9  ;;  %7716 = vmatprep.subr.bf16.mxu1 %v12645_v54  ;;  %v12729_v9 = vld [vmem:[#allocation23 + $0x36c] ss:$16 sps:$4 sm:$0xff]   ;;  %v12724_v54 = vld [vmem:[#allocation23 + $0x360] ss:$16 sps:$4 sm:$0xff]  }
0x18d9   :  { %7594 = vmatpush1.bf16.msra.mxu0 %v12640_v55  ;;  %7717 = vmatpush1.bf16.msra.mxu1 %v12643_v38  ;;  %v12727_v55 = vld [vmem:[#allocation23 + $0x368] ss:$16 sps:$4 sm:$0xff]   ;;  %v12732_v38 = vld [vmem:[#allocation23 + $0x384] ss:$16 sps:$4 sm:$0xff]  }
0x18da   :  { %7595 = vmatprep.subr.bf16.mxu0 %v12648_v56  ;;  %7718 = vmatprep.subr.bf16.mxu1 %v12651_v57  ;;  %v12735_v56 = vld [vmem:[#allocation23 + $0x38c] ss:$16 sps:$4 sm:$0xff]   ;;  %v12730_v57 = vld [vmem:[#allocation23 + $0x380] ss:$16 sps:$4 sm:$0xff]  }
0x18dd   :  { %7596 = vmatpush1.bf16.msra.mxu0 %v12646_v58  ;;  %7719 = vmatpush1.bf16.msra.mxu1 %v12649_v51  ;;  %v12733_v58 = vld [vmem:[#allocation23 + $0x388] ss:$16 sps:$4 sm:$0xff]   ;;  %v12738_v51 = vld [vmem:[#allocation23 + $0x3a4] ss:$16 sps:$4 sm:$0xff]  }
0x18de   :  { %7597 = vmatprep.subr.bf16.mxu0 %v12654_v59  ;;  %7720 = vmatprep.subr.bf16.mxu1 %v12657_v60  ;;  %v12741_v59 = vld [vmem:[#allocation23 + $0x3ac] ss:$16 sps:$4 sm:$0xff]   ;;  %v12736_v60 = vld [vmem:[#allocation23 + $0x3a0] ss:$16 sps:$4 sm:$0xff]  }
0x18e1   :  { %7598 = vmatpush1.bf16.msra.mxu0 %v12652_v45  ;;  %7721 = vmatpush1.bf16.msra.mxu1 %v12655_v62  ;;  %v12744_v45 = vld [vmem:[#allocation23 + $0x3c4] ss:$16 sps:$4 sm:$0xff]   ;;  %v12747_v62 = vld [vmem:[#allocation23 + $0x3cc] ss:$16 sps:$4 sm:$0xff]  }
0x18e2   :  { %7608 = vmatprep.subr.bf16.mxu0 %v12660_v63  ;;  %7731 = vmatprep.subr.bf16.mxu1 %v12663_v0  ;;  %v12742_v63 = vld [vmem:[#allocation23 + $0x3c0] ss:$16 sps:$4 sm:$0xff]   ;;  %v12745_v0 = vld [vmem:[#allocation23 + $0x3c8] ss:$16 sps:$4 sm:$0xff]  }
0x18e4   :  { %7600 = vmatmul.mubr.bf16.vlgmr.msra.gmra.mrb[56].mxu0 %v14453_v53  ;;  %7723 = vmatmul.mubr.bf16.vlgmr.msra.gmra.mrb[56].mxu1 %v14453_v53  ;;  %v12676_v53 = vld [vmem:[#allocation23 + $0x260] ss:$16 sps:$4 sm:$0xff]  }
0x18e5   :  { %7609 = vmatpush1.bf16.msra.mxu0 %v12658_v2  ;;  %7732 = vmatpush1.bf16.msra.mxu1 %v12661_v3  ;;  %v12750_v2 = vld [vmem:[#allocation23 + $0x3e4] ss:$16 sps:$4 sm:$0xff]   ;;  %v12753_v3 = vld [vmem:[#allocation23 + $0x3ec] ss:$16 sps:$4 sm:$0xff]  }
0x18e6   :  { %7610 = vmatprep.subr.bf16.mxu0 %v12666_v4  ;;  %7733 = vmatprep.subr.bf16.mxu1 %v12669_v5  ;;  %v12748_v4 = vld [vmem:[#allocation23 + $0x3e0] ss:$16 sps:$4 sm:$0xff]   ;;  %v12751_v5 = vld [vmem:[#allocation23 + $0x3e8] ss:$16 sps:$4 sm:$0xff]  }
0x18e7   :  { %7640 = vmatprep.mubr.bf16.mxu0 %v6592_v44  ;;  %7763 = vmatprep.mubr.bf16.mxu1 %v6592_v44  ;;  %v12757_v44 = vld [vmem:[#allocation23 + $0x404] ss:$16 sps:$4 sm:$0xff]  }
0x18e9   :  { %7611 = vmatpush1.bf16.msra.mxu0 %v12664_v33  ;;  %7734 = vmatpush1.bf16.msra.mxu1 %v12667_v22  ;;  %v12760_v33 = vld [vmem:[#allocation23 + $0x40c] ss:$16 sps:$4 sm:$0xff]   ;;  %v14468_v22 = vld.sshfl [vmem:[#allocation6 + $0x8] sm:$0x33 pattern:$0x76325410] }
0x18ea   :  { %7612 = vmatprep.subr.bf16.mxu0 %v12672_v6  ;;  %7735 = vmatprep.subr.bf16.mxu1 %v12675_v47  ;;  %v12755_v6 = vld [vmem:[#allocation23 + $0x400] ss:$16 sps:$4 sm:$0xff]   ;;  %v12758_v47 = vld [vmem:[#allocation23 + $0x408] ss:$16 sps:$4 sm:$0xff]  }
0x18ed   :  { %7613 = vmatpush1.bf16.msra.mxu0 %v12670_v8  ;;  %7736 = vmatpush1.bf16.msra.mxu1 %v12673_v14  ;;  %v12763_v8 = vld [vmem:[#allocation23 + $0x424] ss:$16 sps:$4 sm:$0xff]   ;;  %v12766_v14 = vld [vmem:[#allocation23 + $0x42c] ss:$16 sps:$4 sm:$0xff]  }
0x18ee   :  { %7614 = vmatprep.subr.bf16.mxu0 %v12678_v15  ;;  %7737 = vmatprep.subr.bf16.mxu1 %v12681_v17  ;;  %v6600_v15 = vcombine.high %v14468_v22, %v14468_v22  ;;  %v12761_v17 = vld [vmem:[#allocation23 + $0x420] ss:$16 sps:$4 sm:$0xff]  }
0x18f1   :  { %7615 = vmatpush1.bf16.msra.mxu0 %v12676_v53  ;;  %7738 = vmatpush1.bf16.msra.mxu1 %v12679_v30  ;;  %v12764_v53 = vld [vmem:[#allocation23 + $0x428] ss:$16 sps:$4 sm:$0xff]   ;;  %v12769_v30 = vld [vmem:[#allocation23 + $0x444] ss:$16 sps:$4 sm:$0xff]  }
0x18f2   :  { %7616 = vmatprep.subr.bf16.mxu0 %v12684_v32  ;;  %7739 = vmatprep.subr.bf16.mxu1 %v12687_v19  ;;  %v12772_v32 = vld [vmem:[#allocation23 + $0x44c] ss:$16 sps:$4 sm:$0xff]   ;;  %v12767_v19 = vld [vmem:[#allocation23 + $0x440] ss:$16 sps:$4 sm:$0xff]  }
0x18f5   :  { %7617 = vmatpush1.bf16.msra.mxu0 %v12682_v20  ;;  %7740 = vmatpush1.bf16.msra.mxu1 %v12685_v24  ;;  %v12770_v20 = vld [vmem:[#allocation23 + $0x448] ss:$16 sps:$4 sm:$0xff]   ;;  %v12775_v24 = vld [vmem:[#allocation23 + $0x464] ss:$16 sps:$4 sm:$0xff]  }
0x18f6   :  { %7618 = vmatprep.subr.bf16.mxu0 %v12690_v23  ;;  %7741 = vmatprep.subr.bf16.mxu1 %v12693_v25  ;;  %v12778_v23 = vld [vmem:[#allocation23 + $0x46c] ss:$16 sps:$4 sm:$0xff]   ;;  %v12776_v25 = vld [vmem:[#allocation23 + $0x468] ss:$16 sps:$4 sm:$0xff]  }
0x18f9   :  { %7619 = vmatpush1.bf16.msra.mxu0 %v12688_v28  ;;  %7742 = vmatpush1.bf16.msra.mxu1 %v12691_v36  ;;  %v12781_v28 = vld [vmem:[#allocation23 + $0x484] ss:$16 sps:$4 sm:$0xff]   ;;  %v12784_v36 = vld [vmem:[#allocation23 + $0x48c] ss:$16 sps:$4 sm:$0xff]  }
0x18fa   :  { %7620 = vmatprep.subr.bf16.mxu0 %v12696_v29  ;;  %7743 = vmatprep.subr.bf16.mxu1 %v12699_v31  ;;  %v12779_v29 = vld [vmem:[#allocation23 + $0x480] ss:$16 sps:$4 sm:$0xff]   ;;  %v12782_v31 = vld [vmem:[#allocation23 + $0x488] ss:$16 sps:$4 sm:$0xff]  }
0x18fd   :  { %7621 = vmatpush1.bf16.msra.mxu0 %v12694_v35  ;;  %7744 = vmatpush1.bf16.msra.mxu1 %v12697_v11  ;;  %v12787_v35 = vld [vmem:[#allocation23 + $0x4a4] ss:$16 sps:$4 sm:$0xff]   ;;  %v12790_v11 = vld [vmem:[#allocation23 + $0x4ac] ss:$16 sps:$4 sm:$0xff]  }
0x18fe   :  { %7622 = vmatprep.subr.bf16.mxu0 %v12702_v21  ;;  %7745 = vmatprep.subr.bf16.mxu1 %v12705_v7  ;;  %v12785_v21 = vld [vmem:[#allocation23 + $0x4a0] ss:$16 sps:$4 sm:$0xff]   ;;  %v12788_v7 = vld [vmem:[#allocation23 + $0x4a8] ss:$16 sps:$4 sm:$0xff]  }
0x1901   :  { %7623 = vmatpush1.bf16.msra.mxu0 %v12700_v34  ;;  %7746 = vmatpush1.bf16.msra.mxu1 %v12703_v26  ;;  %v12793_v34 = vld [vmem:[#allocation23 + $0x4c4] ss:$16 sps:$4 sm:$0xff]   ;;  %v12796_v26 = vld [vmem:[#allocation23 + $0x4cc] ss:$16 sps:$4 sm:$0xff]  }
0x1902   :  { %7624 = vmatprep.subr.bf16.mxu0 %v12708_v40  ;;  %7747 = vmatprep.subr.bf16.mxu1 %v12711_v39  ;;  %v12791_v40 = vld [vmem:[#allocation23 + $0x4c0] ss:$16 sps:$4 sm:$0xff]   ;;  %v12794_v39 = vld [vmem:[#allocation23 + $0x4c8] ss:$16 sps:$4 sm:$0xff]  }
0x1905   :  { %7625 = vmatpush1.bf16.msra.mxu0 %v12706_v41  ;;  %7748 = vmatpush1.bf16.msra.mxu1 %v12709_v42  ;;  %v12799_v41 = vld [vmem:[#allocation23 + $0x4e4] ss:$16 sps:$4 sm:$0xff]   ;;  %v12802_v42 = vld [vmem:[#allocation23 + $0x4ec] ss:$16 sps:$4 sm:$0xff]  }
0x1906   :  { %7626 = vmatprep.subr.bf16.mxu0 %v12714_v18  ;;  %7749 = vmatprep.subr.bf16.mxu1 %v12717_v43  ;;  %v12797_v18 = vld [vmem:[#allocation23 + $0x4e0] ss:$16 sps:$4 sm:$0xff]   ;;  %v12800_v43 = vld [vmem:[#allocation23 + $0x4e8] ss:$16 sps:$4 sm:$0xff]  }
0x1909   :  { %7627 = vmatpush1.bf16.msra.mxu0 %v12712_v46  ;;  %7750 = vmatpush1.bf16.msra.mxu1 %v12715_v48  ;;  %v12805_v46 = vld [vmem:[#allocation23 + $0x504] ss:$16 sps:$4 sm:$0xff]   ;;  %v12808_v48 = vld [vmem:[#allocation23 + $0x50c] ss:$16 sps:$4 sm:$0xff]  }
0x190a   :  { %7628 = vmatprep.subr.bf16.mxu0 %v12720_v37  ;;  %7751 = vmatprep.subr.bf16.mxu1 %v12723_v49  ;;  %v12803_v37 = vld [vmem:[#allocation23 + $0x500] ss:$16 sps:$4 sm:$0xff]   ;;  %v12806_v49 = vld [vmem:[#allocation23 + $0x508] ss:$16 sps:$4 sm:$0xff]  }
0x190d   :  { %7629 = vmatpush1.bf16.msra.mxu0 %v12718_v50  ;;  %7752 = vmatpush1.bf16.msra.mxu1 %v12721_v52  ;;  %v12811_v50 = vld [vmem:[#allocation23 + $0x524] ss:$16 sps:$4 sm:$0xff]   ;;  %v12814_v52 = vld [vmem:[#allocation23 + $0x52c] ss:$16 sps:$4 sm:$0xff]  }
0x190e   :  { %7630 = vmatprep.subr.bf16.mxu0 %v12726_v16  ;;  %7753 = vmatprep.subr.bf16.mxu1 %v12729_v9  ;;  %v12809_v16 = vld [vmem:[#allocation23 + $0x520] ss:$16 sps:$4 sm:$0xff]   ;;  %v12812_v9 = vld [vmem:[#allocation23 + $0x528] ss:$16 sps:$4 sm:$0xff]  }
0x1911   :  { %7631 = vmatpush1.bf16.msra.mxu0 %v12724_v54  ;;  %7754 = vmatpush1.bf16.msra.mxu1 %v12727_v55  ;;  %v12817_v54 = vld [vmem:[#allocation23 + $0x544] ss:$16 sps:$4 sm:$0xff]   ;;  %v12820_v55 = vld [vmem:[#allocation23 + $0x54c] ss:$16 sps:$4 sm:$0xff]  }
0x1912   :  { %7632 = vmatprep.subr.bf16.mxu0 %v12732_v38  ;;  %7755 = vmatprep.subr.bf16.mxu1 %v12735_v56  ;;  %v12815_v38 = vld [vmem:[#allocation23 + $0x540] ss:$16 sps:$4 sm:$0xff]   ;;  %v12818_v56 = vld [vmem:[#allocation23 + $0x548] ss:$16 sps:$4 sm:$0xff]  }
0x1915   :  { %7633 = vmatpush1.bf16.msra.mxu0 %v12730_v57  ;;  %7756 = vmatpush1.bf16.msra.mxu1 %v12733_v58  ;;  %v12823_v57 = vld [vmem:[#allocation23 + $0x564] ss:$16 sps:$4 sm:$0xff]   ;;  %v12826_v58 = vld [vmem:[#allocation23 + $0x56c] ss:$16 sps:$4 sm:$0xff]  }
0x1916   :  { %7634 = vmatprep.subr.bf16.mxu0 %v12738_v51  ;;  %7757 = vmatprep.subr.bf16.mxu1 %v12741_v59  ;;  %v12821_v51 = vld [vmem:[#allocation23 + $0x560] ss:$16 sps:$4 sm:$0xff]   ;;  %v12824_v59 = vld [vmem:[#allocation23 + $0x568] ss:$16 sps:$4 sm:$0xff]  }
0x1919   :  { %7635 = vmatpush1.bf16.msra.mxu0 %v12736_v60  ;;  %7758 = vmatpush1.bf16.msra.mxu1 %v12739_v61  ;;  %v12829_v60 = vld [vmem:[#allocation23 + $0x584] ss:$16 sps:$4 sm:$0xff]   ;;  %v12832_v61 = vld [vmem:[#allocation23 + $0x58c] ss:$16 sps:$4 sm:$0xff]  }
0x191a   :  { %7636 = vmatprep.subr.bf16.mxu0 %v12744_v45  ;;  %7759 = vmatprep.subr.bf16.mxu1 %v12747_v62  ;;  %v12827_v45 = vld [vmem:[#allocation23 + $0x580] ss:$16 sps:$4 sm:$0xff]   ;;  %v12830_v62 = vld [vmem:[#allocation23 + $0x588] ss:$16 sps:$4 sm:$0xff]  }
0x191d   :  { %7637 = vmatpush1.bf16.msra.mxu0 %v12742_v63  ;;  %7760 = vmatpush1.bf16.msra.mxu1 %v12745_v0  ;;  %v12835_v63 = vld [vmem:[#allocation23 + $0x5a4] ss:$16 sps:$4 sm:$0xff]   ;;  %v12838_v0 = vld [vmem:[#allocation23 + $0x5ac] ss:$16 sps:$4 sm:$0xff]  }
0x191e   :  { %7638 = vmatprep.subr.bf16.mxu0 %v12750_v2  ;;  %7761 = vmatprep.subr.bf16.mxu1 %v12753_v3  ;;  %v12833_v2 = vld [vmem:[#allocation23 + $0x5a0] ss:$16 sps:$4 sm:$0xff]   ;;  %v12836_v3 = vld [vmem:[#allocation23 + $0x5a8] ss:$16 sps:$4 sm:$0xff]  }
0x1921   :  { %7639 = vmatpush1.bf16.msra.mxu0 %v12748_v4  ;;  %7762 = vmatpush1.bf16.msra.mxu1 %v12751_v5  ;;  %v12841_v4 = vld [vmem:[#allocation23 + $0x5c4] ss:$16 sps:$4 sm:$0xff]   ;;  %v12844_v5 = vld [vmem:[#allocation23 + $0x5cc] ss:$16 sps:$4 sm:$0xff]  }
0x1922   :  { %7649 = vmatprep.subr.bf16.mxu0 %v12757_v44  ;;  %7772 = vmatprep.subr.bf16.mxu1 %v12760_v33  ;;  %v12839_v44 = vld [vmem:[#allocation23 + $0x5c0] ss:$16 sps:$4 sm:$0xff]   ;;  %v12842_v33 = vld [vmem:[#allocation23 + $0x5c8] ss:$16 sps:$4 sm:$0xff]  }
0x1924   :  { %7641 = vmatmul.mubr.bf16.vlgmr.msra.gmra.mrb[56].mxu0 %v14462_v1  ;;  %7764 = vmatmul.mubr.bf16.vlgmr.msra.gmra.mrb[56].mxu1 %v14462_v1  ;;  %v12773_v1 = vld [vmem:[#allocation23 + $0x460] ss:$16 sps:$4 sm:$0xff]  }
0x1925   :  { %7650 = vmatpush1.bf16.msra.mxu0 %v12755_v6  ;;  %7773 = vmatpush1.bf16.msra.mxu1 %v12758_v47  ;;  %v12847_v6 = vld [vmem:[#allocation23 + $0x5e4] ss:$16 sps:$4 sm:$0xff]   ;;  %v12850_v47 = vld [vmem:[#allocation23 + $0x5ec] ss:$16 sps:$4 sm:$0xff]  }
0x1926   :  { %7651 = vmatprep.subr.bf16.mxu0 %v12763_v8  ;;  %7774 = vmatprep.subr.bf16.mxu1 %v12766_v14  ;;  %v12845_v8 = vld [vmem:[#allocation23 + $0x5e0] ss:$16 sps:$4 sm:$0xff]   ;;  %v12848_v14 = vld [vmem:[#allocation23 + $0x5e8] ss:$16 sps:$4 sm:$0xff]  }
0x1927   :  { %7681 = vmatprep.mubr.bf16.mxu0 %v6600_v15  ;;  %7804 = vmatprep.mubr.bf16.mxu1 %v6600_v15  ;;  %v12853_v15 = vld [vmem:[#allocation27 + $0x4] ss:$16 sps:$4 sm:$0xff]  }
0x1929   :  { %7652 = vmatpush1.bf16.msra.mxu0 %v12761_v17  ;;  %7775 = vmatpush1.bf16.msra.mxu1 %v12764_v53  ;;  %v12856_v17 = vld [vmem:[#allocation27 + $0x204] ss:$16 sps:$4 sm:$0xff]   ;;  %v12851_v53 = vld [vmem:[#allocation27] ss:$16 sps:$4 sm:$0xff]  }
0x192a   :  { %7653 = vmatprep.subr.bf16.mxu0 %v12769_v30  ;;  %7776 = vmatprep.subr.bf16.mxu1 %v12772_v32  ;;  %v12854_v30 = vld [vmem:[#allocation27 + $0x200] ss:$16 sps:$4 sm:$0xff]   ;;  %v12859_v32 = vld [vmem:[#allocation27 + $0x24] ss:$16 sps:$4 sm:$0xff]  }
0x192d   :  { %7654 = vmatpush1.bf16.msra.mxu0 %v12767_v19  ;;  %7777 = vmatpush1.bf16.msra.mxu1 %v12770_v20  ;;  %v12862_v19 = vld [vmem:[#allocation27 + $0x224] ss:$16 sps:$4 sm:$0xff]   ;;  %v12857_v20 = vld [vmem:[#allocation27 + $0x20] ss:$16 sps:$4 sm:$0xff]  }
0x192e   :  { %7655 = vmatprep.subr.bf16.mxu0 %v12775_v24  ;;  %7778 = vmatprep.subr.bf16.mxu1 %v12778_v23  ;;  %v12860_v24 = vld [vmem:[#allocation27 + $0x220] ss:$16 sps:$4 sm:$0xff]   ;;  %v12865_v23 = vld [vmem:[#allocation27 + $0x44] ss:$16 sps:$4 sm:$0xff]  }
0x1931   :  { %7656 = vmatpush1.bf16.msra.mxu0 %v12773_v1  ;;  %7779 = vmatpush1.bf16.msra.mxu1 %v12776_v25  ;;  %v12868_v1 = vld [vmem:[#allocation27 + $0x244] ss:$16 sps:$4 sm:$0xff]   ;;  %v12863_v25 = vld [vmem:[#allocation27 + $0x40] ss:$16 sps:$4 sm:$0xff]  }
0x1932   :  { %7657 = vmatprep.subr.bf16.mxu0 %v12781_v28  ;;  %7780 = vmatprep.subr.bf16.mxu1 %v12784_v36  ;;  %v12866_v28 = vld [vmem:[#allocation27 + $0x240] ss:$16 sps:$4 sm:$0xff]   ;;  %v12871_v36 = vld [vmem:[#allocation27 + $0x64] ss:$16 sps:$4 sm:$0xff]  }
0x1935   :  { %7658 = vmatpush1.bf16.msra.mxu0 %v12779_v29  ;;  %7781 = vmatpush1.bf16.msra.mxu1 %v12782_v31  ;;  %v12874_v29 = vld [vmem:[#allocation27 + $0x264] ss:$16 sps:$4 sm:$0xff]   ;;  %v12869_v31 = vld [vmem:[#allocation27 + $0x60] ss:$16 sps:$4 sm:$0xff]  }
0x1936   :  { %7659 = vmatprep.subr.bf16.mxu0 %v12787_v35  ;;  %7782 = vmatprep.subr.bf16.mxu1 %v12790_v11 }
0x1939   :  { %7660 = vmatpush1.bf16.msra.mxu0 %v12785_v21  ;;  %7783 = vmatpush1.bf16.msra.mxu1 %v12788_v7 }
0x193a   :  { %7661 = vmatprep.subr.bf16.mxu0 %v12793_v34  ;;  %7784 = vmatprep.subr.bf16.mxu1 %v12796_v26 }
0x193d   :  { %7662 = vmatpush1.bf16.msra.mxu0 %v12791_v40  ;;  %7785 = vmatpush1.bf16.msra.mxu1 %v12794_v39 }
0x193e   :  { %7663 = vmatprep.subr.bf16.mxu0 %v12799_v41  ;;  %7786 = vmatprep.subr.bf16.mxu1 %v12802_v42 }
0x1941   :  { %7664 = vmatpush1.bf16.msra.mxu0 %v12797_v18  ;;  %7787 = vmatpush1.bf16.msra.mxu1 %v12800_v43  ;;  %v12877_v43 = vld [vmem:[#allocation27 + $0x84] ss:$16 sps:$4 sm:$0xff]  }
0x1942   :  { %7665 = vmatprep.subr.bf16.mxu0 %v12805_v46  ;;  %7788 = vmatprep.subr.bf16.mxu1 %v12808_v48  ;;  %v12880_v46 = vld [vmem:[#allocation27 + $0x284] ss:$16 sps:$4 sm:$0xff]   ;;  %v12875_v48 = vld [vmem:[#allocation27 + $0x80] ss:$16 sps:$4 sm:$0xff]  }
0x1945   :  { %7666 = vmatpush1.bf16.msra.mxu0 %v12803_v37  ;;  %7789 = vmatpush1.bf16.msra.mxu1 %v12806_v49  ;;  %v12878_v37 = vld [vmem:[#allocation27 + $0x280] ss:$16 sps:$4 sm:$0xff]   ;;  %v12883_v49 = vld [vmem:[#allocation27 + $0xa4] ss:$16 sps:$4 sm:$0xff]  }
0x1946   :  { %7667 = vmatprep.subr.bf16.mxu0 %v12811_v50  ;;  %7790 = vmatprep.subr.bf16.mxu1 %v12814_v52  ;;  %v12881_v50 = vld [vmem:[#allocation27 + $0xa0] ss:$16 sps:$4 sm:$0xff]  }
0x1947   :  { %v12884_v52 = vld [vmem:[#allocation27 + $0x2a0] ss:$16 sps:$4 sm:$0xff]  }
0x1949   :  { %7668 = vmatpush1.bf16.msra.mxu0 %v12809_v16  ;;  %7791 = vmatpush1.bf16.msra.mxu1 %v12812_v9  ;;  %v12886_v16 = vld [vmem:[#allocation27 + $0x2a4] ss:$16 sps:$4 sm:$0xff]  }
0x194a   :  { %7669 = vmatprep.subr.bf16.mxu0 %v12817_v54  ;;  %7792 = vmatprep.subr.bf16.mxu1 %v12820_v55  ;;  %v12889_v9 = vld [vmem:[#allocation27 + $0xc4] ss:$16 sps:$4 sm:$0xff]   ;;  %v12887_v55 = vld [vmem:[#allocation27 + $0xc0] ss:$16 sps:$4 sm:$0xff]  }
0x194b   :  { %v12892_v54 = vld [vmem:[#allocation27 + $0x2c4] ss:$16 sps:$4 sm:$0xff]  }
0x194d   :  { %7670 = vmatpush1.bf16.msra.mxu0 %v12815_v38  ;;  %7793 = vmatpush1.bf16.msra.mxu1 %v12818_v56  ;;  %v12890_v38 = vld [vmem:[#allocation27 + $0x2c0] ss:$16 sps:$4 sm:$0xff]   ;;  %v12895_v56 = vld [vmem:[#allocation27 + $0xe4] ss:$16 sps:$4 sm:$0xff]  }
0x194e   :  { %7671 = vmatprep.subr.bf16.mxu0 %v12823_v57  ;;  %7794 = vmatprep.subr.bf16.mxu1 %v12826_v58  ;;  %v12898_v57 = vld [vmem:[#allocation27 + $0x2e4] ss:$16 sps:$4 sm:$0xff]   ;;  %v12893_v58 = vld [vmem:[#allocation27 + $0xe0] ss:$16 sps:$4 sm:$0xff]  }
0x1951   :  { %7672 = vmatpush1.bf16.msra.mxu0 %v12821_v51  ;;  %7795 = vmatpush1.bf16.msra.mxu1 %v12824_v59  ;;  %v12896_v51 = vld [vmem:[#allocation27 + $0x2e0] ss:$16 sps:$4 sm:$0xff]   ;;  %v12901_v59 = vld [vmem:[#allocation27 + $0x104] ss:$16 sps:$4 sm:$0xff]  }
0x1952   :  { %7673 = vmatprep.subr.bf16.mxu0 %v12829_v60  ;;  %7796 = vmatprep.subr.bf16.mxu1 %v12832_v61  ;;  %v12904_v60 = vld [vmem:[#allocation27 + $0x304] ss:$16 sps:$4 sm:$0xff]   ;;  %v12899_v61 = vld [vmem:[#allocation27 + $0x100] ss:$16 sps:$4 sm:$0xff]  }
0x1955   :  { %7674 = vmatpush1.bf16.msra.mxu0 %v12827_v45  ;;  %7797 = vmatpush1.bf16.msra.mxu1 %v12830_v62  ;;  %v12902_v45 = vld [vmem:[#allocation27 + $0x300] ss:$16 sps:$4 sm:$0xff]   ;;  %v12907_v62 = vld [vmem:[#allocation27 + $0x124] ss:$16 sps:$4 sm:$0xff]  }
0x1956   :  { %7675 = vmatprep.subr.bf16.mxu0 %v12835_v63  ;;  %7798 = vmatprep.subr.bf16.mxu1 %v12838_v0  ;;  %v12910_v63 = vld [vmem:[#allocation27 + $0x324] ss:$16 sps:$4 sm:$0xff]   ;;  %v12905_v0 = vld [vmem:[#allocation27 + $0x120] ss:$16 sps:$4 sm:$0xff]  }
0x1959   :  { %7676 = vmatpush1.bf16.msra.mxu0 %v12833_v2  ;;  %7799 = vmatpush1.bf16.msra.mxu1 %v12836_v3  ;;  %v12908_v2 = vld [vmem:[#allocation27 + $0x320] ss:$16 sps:$4 sm:$0xff]   ;;  %v12913_v3 = vld [vmem:[#allocation27 + $0x144] ss:$16 sps:$4 sm:$0xff]  }
0x195a   :  { %7677 = vmatprep.subr.bf16.mxu0 %v12841_v4  ;;  %7800 = vmatprep.subr.bf16.mxu1 %v12844_v5  ;;  %v12916_v4 = vld [vmem:[#allocation27 + $0x344] ss:$16 sps:$4 sm:$0xff]   ;;  %v12911_v5 = vld [vmem:[#allocation27 + $0x140] ss:$16 sps:$4 sm:$0xff]  }
0x195d   :  { %7678 = vmatpush1.bf16.msra.mxu0 %v12839_v44  ;;  %7801 = vmatpush1.bf16.msra.mxu1 %v12842_v33  ;;  %v12914_v44 = vld [vmem:[#allocation27 + $0x340] ss:$16 sps:$4 sm:$0xff]   ;;  %v12919_v33 = vld [vmem:[#allocation27 + $0x164] ss:$16 sps:$4 sm:$0xff]  }
0x195e   :  { %7679 = vmatprep.subr.bf16.mxu0 %v12847_v6  ;;  %7802 = vmatprep.subr.bf16.mxu1 %v12850_v47  ;;  %v12922_v6 = vld [vmem:[#allocation27 + $0x364] ss:$16 sps:$4 sm:$0xff]   ;;  %v12917_v47 = vld [vmem:[#allocation27 + $0x160] ss:$16 sps:$4 sm:$0xff]  }
0x1961   :  { %7680 = vmatpush1.bf16.msra.mxu0 %v12845_v8  ;;  %7803 = vmatpush1.bf16.msra.mxu1 %v12848_v14  ;;  %v12920_v8 = vld [vmem:[#allocation27 + $0x360] ss:$16 sps:$4 sm:$0xff]   ;;  %v12925_v14 = vld [vmem:[#allocation27 + $0x184] ss:$16 sps:$4 sm:$0xff]  }
0x1962   :  { %8721 = vmatprep.subr.bf16.mxu0 %v12853_v15  ;;  %8762 = vmatprep.subr.bf16.mxu1 %v12856_v17  ;;  %v12928_v15 = vld [vmem:[#allocation27 + $0x384] ss:$16 sps:$4 sm:$0xff]   ;;  %v12923_v17 = vld [vmem:[#allocation27 + $0x180] ss:$16 sps:$4 sm:$0xff]  }
0x1964   :  { %7682 = vmatmul.mubr.bf16.vlgmr.msra.gmra.mrb[56].mxu0 %v14468_v22  ;;  %7805 = vmatmul.mubr.bf16.vlgmr.msra.gmra.mrb[56].mxu1 %v14468_v22  ;;  %v12872_v22 = vld [vmem:[#allocation27 + $0x260] ss:$16 sps:$4 sm:$0xff]  }
0x1965   :  { %8722 = vmatpush1.bf16.msra.mxu0 %v12851_v53  ;;  %8763 = vmatpush1.bf16.msra.mxu1 %v12854_v30  ;;  %v12926_v53 = vld [vmem:[#allocation27 + $0x380] ss:$16 sps:$4 sm:$0xff]   ;;  %v12931_v30 = vld [vmem:[#allocation27 + $0x1a4] ss:$16 sps:$4 sm:$0xff]  }
0x1966   :  { %8723 = vmatprep.subr.bf16.mxu0 %v12859_v32  ;;  %8764 = vmatprep.subr.bf16.mxu1 %v12862_v19  ;;  %v12934_v32 = vld [vmem:[#allocation27 + $0x3a4] ss:$16 sps:$4 sm:$0xff]   ;;  %v12929_v19 = vld [vmem:[#allocation27 + $0x1a0] ss:$16 sps:$4 sm:$0xff]  }
0x1969   :  { %8724 = vmatpush1.bf16.msra.mxu0 %v12857_v20  ;;  %8765 = vmatpush1.bf16.msra.mxu1 %v12860_v24  ;;  %v12932_v20 = vld [vmem:[#allocation27 + $0x3a0] ss:$16 sps:$4 sm:$0xff]   ;;  %v12937_v24 = vld [vmem:[#allocation27 + $0x1c4] ss:$16 sps:$4 sm:$0xff]  }
0x196a   :  { %8725 = vmatprep.subr.bf16.mxu0 %v12865_v23  ;;  %8766 = vmatprep.subr.bf16.mxu1 %v12868_v1  ;;  %v12940_v23 = vld [vmem:[#allocation27 + $0x3c4] ss:$16 sps:$4 sm:$0xff]   ;;  %v12935_v1 = vld [vmem:[#allocation27 + $0x1c0] ss:$16 sps:$4 sm:$0xff]  }
0x196d   :  { %8726 = vmatpush1.bf16.msra.mxu0 %v12863_v25  ;;  %8767 = vmatpush1.bf16.msra.mxu1 %v12866_v28  ;;  %v12938_v25 = vld [vmem:[#allocation27 + $0x3c0] ss:$16 sps:$4 sm:$0xff]   ;;  %v12943_v28 = vld [vmem:[#allocation27 + $0x1e4] ss:$16 sps:$4 sm:$0xff]  }
0x196e   :  { %8727 = vmatprep.subr.bf16.mxu0 %v12871_v36  ;;  %8768 = vmatprep.subr.bf16.mxu1 %v12874_v29  ;;  %v12946_v36 = vld [vmem:[#allocation27 + $0x3e4] ss:$16 sps:$4 sm:$0xff]   ;;  %v12941_v29 = vld [vmem:[#allocation27 + $0x1e0] ss:$16 sps:$4 sm:$0xff]  }
0x1971   :  { %8728 = vmatpush1.bf16.msra.mxu0 %v12869_v31  ;;  %8769 = vmatpush1.bf16.msra.mxu1 %v12872_v22  ;;  %v12944_v31 = vld [vmem:[#allocation27 + $0x3e0] ss:$16 sps:$4 sm:$0xff]   ;;  %v12949_v22 = vld [vmem:[#allocation27 + $0xc] ss:$16 sps:$4 sm:$0xff]  }
0x1972   :  { %8729 = vmatprep.subr.bf16.mxu0 %v12877_v43  ;;  %8770 = vmatprep.subr.bf16.mxu1 %v12880_v46 }
0x1975   :  { %8730 = vmatpush1.bf16.msra.mxu0 %v12875_v48  ;;  %8771 = vmatpush1.bf16.msra.mxu1 %v12878_v37 }
0x1976   :  { %v14476_v35 = vpop.f32.mrb[52].mxu0  ;;  %8731 = vmatprep.subr.bf16.mxu0 %v12883_v49  ;;  %8772 = vmatprep.subr.bf16.mxu1 %v12886_v16  ;;  %v6552_v16 = vld [vmem:[#allocation24] sm:$0xf] }
0x1977   :  { %v6271_v11 = vsel %vm4364_vm1, %v14476_v35, 0.0  ;;  %v14480_v21 = vpop.f32.mrb[53].mxu0  ;;  %v14482_v7 = vpop.f32.mrb[52].mxu1 }
0x1978   :  { %v6272_v34 = vsel %vm4364_vm1, %v14480_v21, 0.0  ;;  %v6274_v26 = vsel %vm4364_vm1, %v14482_v7, 0.0  ;;  %v14488_v40 = vpop.f32.mrb[53].mxu1 }
0x1979   :  { %v6273_v39 = vadd.f32 %v6272_v34, %v6271_v11  ;;  %v6276_v42 = vsel %vm4364_vm1, %v14488_v40, 0.0  ;;  %8732 = vmatpush1.bf16.msra.mxu0 %v12881_v50  ;;  %8773 = vmatpush1.bf16.msra.mxu1 %v12884_v52  ;;  %v12952_v11 = vld [vmem:[#allocation27 + $0x20c] ss:$16 sps:$4 sm:$0xff]  }
0x197a   :  { %8733 = vmatprep.subr.bf16.mxu0 %v12889_v9  ;;  %8774 = vmatprep.subr.bf16.mxu1 %v12892_v54  ;;  %v6557_v9 = vrot.slane %v6552_v16, %v14146_v10  ;;  %v6565_v54 = vrot.slane %v6552_v16, %v14177_v27 }
0x197b   :  { %v6275_v41 = vadd.f32 %v6274_v26, %v6273_v39 }
0x197d   :  { %v6277_v18 = vadd.f32 %v6276_v42, %v6275_v41  ;;  %8734 = vmatpush1.bf16.msra.mxu0 %v12887_v55  ;;  %8775 = vmatpush1.bf16.msra.mxu1 %v12890_v38  ;;  %v6561_v55 = vrot.slane %v6552_v16, %v14151_v12  ;;  %v6569_v38 = vrot.slane %v6552_v16, %v14154_v13  ;;  %v13000_v16 = vld [vmem:[#allocation27 + $0x30c] ss:$16 sps:$4 sm:$0xff]  }
0x197e   :  { %8735 = vmatprep.subr.bf16.mxu0 %v12895_v56  ;;  %8776 = vmatprep.subr.bf16.mxu1 %v12898_v57 }
0x197f   :  { %6278 = vadd.xlane.f32.xlu0 %v6277_v18 }
0x1981   :  { %8736 = vmatpush1.bf16.msra.mxu0 %v12893_v58  ;;  %8777 = vmatpush1.bf16.msra.mxu1 %v12896_v51 }
0x1982   :  { %8737 = vmatprep.subr.bf16.mxu0 %v12901_v59  ;;  %8778 = vmatprep.subr.bf16.mxu1 %v12904_v60 }
0x1985   :  { %8738 = vmatpush1.bf16.msra.mxu0 %v12899_v61  ;;  %8779 = vmatpush1.bf16.msra.mxu1 %v12902_v45 }
0x1986   :  { %8739 = vmatprep.subr.bf16.mxu0 %v12907_v62  ;;  %8780 = vmatprep.subr.bf16.mxu1 %v12910_v63 }
0x1989   :  { %8740 = vmatpush1.bf16.msra.mxu0 %v12905_v0  ;;  %8781 = vmatpush1.bf16.msra.mxu1 %v12908_v2 }
0x198a   :  { %8741 = vmatprep.subr.bf16.mxu0 %v12913_v3  ;;  %8782 = vmatprep.subr.bf16.mxu1 %v12916_v4 }
0x198d   :  { %8742 = vmatpush1.bf16.msra.mxu0 %v12911_v5  ;;  %8783 = vmatpush1.bf16.msra.mxu1 %v12914_v44 }
0x198e   :  { %8743 = vmatprep.subr.bf16.mxu0 %v12919_v33  ;;  %8784 = vmatprep.subr.bf16.mxu1 %v12922_v6 }
0x1991   :  { %8744 = vmatpush1.bf16.msra.mxu0 %v12917_v47  ;;  %8785 = vmatpush1.bf16.msra.mxu1 %v12920_v8  ;;  %v12947_v47 = vld [vmem:[#allocation27 + $0x8] ss:$16 sps:$4 sm:$0xff]  }
0x1992   :  { %8745 = vmatprep.subr.bf16.mxu0 %v12925_v14  ;;  %8786 = vmatprep.subr.bf16.mxu1 %v12928_v15  ;;  %v12950_v8 = vld [vmem:[#allocation27 + $0x208] ss:$16 sps:$4 sm:$0xff]  }
0x1995   :  { %8746 = vmatpush1.bf16.msra.mxu0 %v12923_v17  ;;  %8787 = vmatpush1.bf16.msra.mxu1 %v12926_v53  ;;  %v12955_v17 = vld [vmem:[#allocation27 + $0x2c] ss:$16 sps:$4 sm:$0xff]  }
0x1996   :  { %8747 = vmatprep.subr.bf16.mxu0 %v12931_v30  ;;  %8788 = vmatprep.subr.bf16.mxu1 %v12934_v32  ;;  %v12958_v53 = vld [vmem:[#allocation27 + $0x22c] ss:$16 sps:$4 sm:$0xff]   ;;  %v12953_v30 = vld [vmem:[#allocation27 + $0x28] ss:$16 sps:$4 sm:$0xff]  }
0x1997   :  { %v12956_v32 = vld [vmem:[#allocation27 + $0x228] ss:$16 sps:$4 sm:$0xff]  }
0x1999   :  { %8748 = vmatpush1.bf16.msra.mxu0 %v12929_v19  ;;  %8789 = vmatpush1.bf16.msra.mxu1 %v12932_v20  ;;  %v12961_v19 = vld [vmem:[#allocation27 + $0x4c] ss:$16 sps:$4 sm:$0xff]  }
0x199a   :  { %8749 = vmatprep.subr.bf16.mxu0 %v12937_v24  ;;  %8790 = vmatprep.subr.bf16.mxu1 %v12940_v23  ;;  %v12964_v20 = vld [vmem:[#allocation27 + $0x24c] ss:$16 sps:$4 sm:$0xff]   ;;  %v12959_v24 = vld [vmem:[#allocation27 + $0x48] ss:$16 sps:$4 sm:$0xff]  }
0x199b   :  { %v12962_v23 = vld [vmem:[#allocation27 + $0x248] ss:$16 sps:$4 sm:$0xff]  }
0x199d   :  { %8750 = vmatpush1.bf16.msra.mxu0 %v12935_v1  ;;  %8791 = vmatpush1.bf16.msra.mxu1 %v12938_v25  ;;  %v12967_v1 = vld [vmem:[#allocation27 + $0x6c] ss:$16 sps:$4 sm:$0xff]  }
0x199e   :  { %8751 = vmatprep.subr.bf16.mxu0 %v12943_v28  ;;  %8792 = vmatprep.subr.bf16.mxu1 %v12946_v36  ;;  %v12970_v25 = vld [vmem:[#allocation27 + $0x26c] ss:$16 sps:$4 sm:$0xff]   ;;  %v12965_v28 = vld [vmem:[#allocation27 + $0x68] ss:$16 sps:$4 sm:$0xff]  }
0x199f   :  { %v12968_v36 = vld [vmem:[#allocation27 + $0x268] ss:$16 sps:$4 sm:$0xff]  }
0x19a1   :  { %8752 = vmatpush1.bf16.msra.mxu0 %v12941_v29  ;;  %8793 = vmatpush1.bf16.msra.mxu1 %v12944_v31  ;;  %v12973_v29 = vld [vmem:[#allocation27 + $0x8c] ss:$16 sps:$4 sm:$0xff]  }
0x19a2   :  { %8803 = vmatprep.subr.bf16.mxu0 %v12949_v22  ;;  %8844 = vmatprep.subr.bf16.mxu1 %v12952_v11  ;;  %v12976_v31 = vld [vmem:[#allocation27 + $0x28c] ss:$16 sps:$4 sm:$0xff]   ;;  %v12971_v22 = vld [vmem:[#allocation27 + $0x88] ss:$16 sps:$4 sm:$0xff]  }
0x19a3   :  { %v12974_v11 = vld [vmem:[#allocation27 + $0x288] ss:$16 sps:$4 sm:$0xff]  }
0x1a0c   :  { %v6279_v34 = vpop.xlane.xlu0 %6278 }
0x1a0d   :  { %v6281_v26 = vmul.f32 0.001953125, %v6279_v34  ;;  %v12979_v34 = vld [vmem:[#allocation27 + $0xac] ss:$16 sps:$4 sm:$0xff]  }
0x1a0f   :  { %v14493_v39 = vsub.f32 %v14476_v35, %v6281_v26  ;;  %v14496_v41 = vsub.f32 %v14480_v21, %v6281_v26  ;;  %v14499_v42 = vsub.f32 %v14482_v7, %v6281_v26  ;;  %v14502_v18 = vsub.f32 %v14488_v40, %v6281_v26  ;;  %v12982_v26 = vld [vmem:[#allocation27 + $0x2ac] ss:$16 sps:$4 sm:$0xff]  }
0x1a11   :  { %v6286_v43 = vmul.f32 %v14493_v39, %v14493_v39  ;;  %v6287_v46 = vmul.f32 %v14496_v41, %v14496_v41  ;;  %v6288_v48 = vmul.f32 %v14499_v42, %v14499_v42  ;;  %v6289_v35 = vmul.f32 %v14502_v18, %v14502_v18 }
0x1a13   :  { %v6290_v21 = vsel %vm4364_vm1, %v6286_v43, 0.0  ;;  %v6291_v7 = vsel %vm4364_vm1, %v6287_v46, 0.0  ;;  %v6293_v40 = vsel %vm4364_vm1, %v6288_v48, 0.0  ;;  %v6295_v50 = vsel %vm4364_vm1, %v6289_v35, 0.0  ;;  %v12977_v43 = vld [vmem:[#allocation27 + $0xa8] ss:$16 sps:$4 sm:$0xff]  }
0x1a14   :  { %v6292_v37 = vadd.f32 %v6291_v7, %v6290_v21  ;;  %v12980_v46 = vld [vmem:[#allocation27 + $0x2a8] ss:$16 sps:$4 sm:$0xff]   ;;  %v12985_v48 = vld [vmem:[#allocation27 + $0xcc] ss:$16 sps:$4 sm:$0xff]  }
0x1a15   :  { %v12988_v35 = vld [vmem:[#allocation27 + $0x2cc] ss:$16 sps:$4 sm:$0xff]   ;;  %v12983_v21 = vld [vmem:[#allocation27 + $0xc8] ss:$16 sps:$4 sm:$0xff]  }
0x1a16   :  { %v6294_v49 = vadd.f32 %v6293_v40, %v6292_v37  ;;  %v12986_v7 = vld [vmem:[#allocation27 + $0x2c8] ss:$16 sps:$4 sm:$0xff]   ;;  %v12991_v37 = vld [vmem:[#allocation27 + $0xec] ss:$16 sps:$4 sm:$0xff]  }
0x1a17   :  { %v12994_v40 = vld [vmem:[#allocation27 + $0x2ec] ss:$16 sps:$4 sm:$0xff]  }
0x1a18   :  { %v6296_v52 = vadd.f32 %v6295_v50, %v6294_v49  ;;  %v12989_v49 = vld [vmem:[#allocation27 + $0xe8] ss:$16 sps:$4 sm:$0xff]  }
0x1a19   :  { %v12992_v50 = vld [vmem:[#allocation27 + $0x2e8] ss:$16 sps:$4 sm:$0xff]  }
0x1a1a   :  { %6297 = vadd.xlane.f32.xlu1 %v6296_v52  ;;  %v12997_v52 = vld [vmem:[#allocation27 + $0x10c] ss:$16 sps:$4 sm:$0xff]  }
0x1a37   :  { %v7683_v56 = vpop.f32.mrb[56].mxu0  ;;  %v7806_v57 = vpop.f32.mrb[56].mxu1 }
0x1a38   :  { %v11499_v58 = vadd.f32 %v7683_v56, %v6557_v9  ;;  %v11501_v51 = vadd.f32 %v7806_v57, %v6565_v54  ;;  %v7685_v59 = vpop.f32.mrb[57].mxu0  ;;  %v7808_v60 = vpop.f32.mrb[57].mxu1  ;;  %v12995_v9 = vld [vmem:[#allocation27 + $0x108] ss:$16 sps:$4 sm:$0xff]  }
0x1a39   :  { %v11500_v61 = vadd.f32 %v7685_v59, %v6561_v55  ;;  %v11502_v45 = vadd.f32 %v7808_v60, %v6569_v38  ;;  %v7687_v62 = vpop.f32.mrb[58].mxu0  ;;  %v7810_v63 = vpop.f32.mrb[58].mxu1  ;;  %v12998_v54 = vld [vmem:[#allocation27 + $0x308] ss:$16 sps:$4 sm:$0xff]   ;;  %v13003_v55 = vld [vmem:[#allocation27 + $0x12c] ss:$16 sps:$4 sm:$0xff]  }
0x1a3a   :  { %v7813_v0 = vmax.f32 %v11499_v58, 0.0  ;;  %v7815_v2 = vmax.f32 %v11501_v51, 0.0  ;;  %v7688_v3 = vpop.f32.mrb[59].mxu0  ;;  %v7811_v4 = vpop.f32.mrb[59].mxu1  ;;  %v13006_v38 = vld [vmem:[#allocation27 + $0x32c] ss:$16 sps:$4 sm:$0xff]  }
0x1a3b   :  { %v7814_v5 = vmax.f32 %v11500_v61, 0.0  ;;  %v7816_v44 = vmax.f32 %v11502_v45, 0.0  ;;  %v13001_v56 = vld [vmem:[#allocation27 + $0x128] ss:$16 sps:$4 sm:$0xff]   ;;  %v13009_v58 = vld [vmem:[#allocation27 + $0x14c] ss:$16 sps:$4 sm:$0xff]  }
0x1a3c   :  { %v14520_v14 = vpack.c.bf16 %v7813_v0, %v7813_v0  ;;  %v14522_v15 = vpack.c.bf16 %v7815_v2, %v7815_v2  ;;  %v13004_v57 = vld [vmem:[#allocation27 + $0x328] ss:$16 sps:$4 sm:$0xff]   ;;  %v13012_v51 = vld [vmem:[#allocation27 + $0x34c] ss:$16 sps:$4 sm:$0xff]  }
0x1a3d   :  { %v7950_v33 = vpack.c.bf16 %v7814_v5, %v7814_v5  ;;  %v7952_v6 = vpack.c.bf16 %v7816_v44, %v7816_v44  ;;  %v13007_v59 = vld [vmem:[#allocation27 + $0x148] ss:$16 sps:$4 sm:$0xff]   ;;  %v13015_v61 = vld [vmem:[#allocation27 + $0x16c] ss:$16 sps:$4 sm:$0xff]  }
0x1a3e   :  { %v13010_v60 = vld [vmem:[#allocation27 + $0x348] ss:$16 sps:$4 sm:$0xff]   ;;  %v13018_v45 = vld [vmem:[#allocation27 + $0x36c] ss:$16 sps:$4 sm:$0xff]  }
0x1a3f   :  { %8753 = vmatprep.mubr.bf16.mxu0 %v7950_v33  ;;  %8794 = vmatprep.mubr.bf16.mxu1 %v7952_v6  ;;  %v13013_v62 = vld [vmem:[#allocation27 + $0x168] ss:$16 sps:$4 sm:$0xff]   ;;  %v13021_v0 = vld [vmem:[#allocation27 + $0x18c] ss:$16 sps:$4 sm:$0xff]  }
0x1a40   :  { %8754 = vmatmul.mubr.bf16.vlgmr.msra.gmra.mrb[60].mxu0 %v14520_v14  ;;  %8795 = vmatmul.mubr.bf16.vlgmr.msra.gmra.mrb[60].mxu1 %v14522_v15  ;;  %v13016_v63 = vld [vmem:[#allocation27 + $0x368] ss:$16 sps:$4 sm:$0xff]   ;;  %v13024_v2 = vld [vmem:[#allocation27 + $0x38c] ss:$16 sps:$4 sm:$0xff]  }
0x1a41   :  { %8804 = vmatpush1.bf16.msra.mxu0 %v12947_v47  ;;  %8845 = vmatpush1.bf16.msra.mxu1 %v12950_v8  ;;  %v13019_v3 = vld [vmem:[#allocation27 + $0x188] ss:$16 sps:$4 sm:$0xff]   ;;  %v13027_v5 = vld [vmem:[#allocation27 + $0x1ac] ss:$16 sps:$4 sm:$0xff]  }
0x1a42   :  { %8835 = vmatprep.mubr.bf16.mxu0 %v7950_v33  ;;  %8876 = vmatprep.mubr.bf16.mxu1 %v7952_v6  ;;  %v13022_v4 = vld [vmem:[#allocation27 + $0x388] ss:$16 sps:$4 sm:$0xff]   ;;  %v13030_v44 = vld [vmem:[#allocation27 + $0x3ac] ss:$16 sps:$4 sm:$0xff]  }
0x1a43   :  { %8805 = vmatprep.subr.bf16.mxu0 %v12955_v17  ;;  %8846 = vmatprep.subr.bf16.mxu1 %v12958_v53  ;;  %v13025_v33 = vld [vmem:[#allocation27 + $0x1a8] ss:$16 sps:$4 sm:$0xff]   ;;  %v13033_v47 = vld [vmem:[#allocation27 + $0x1cc] ss:$16 sps:$4 sm:$0xff]  }
0x1a44   :  { %v13028_v6 = vld [vmem:[#allocation27 + $0x3a8] ss:$16 sps:$4 sm:$0xff]   ;;  %v13036_v8 = vld [vmem:[#allocation27 + $0x3cc] ss:$16 sps:$4 sm:$0xff]  }
0x1a45   :  { %8806 = vmatpush1.bf16.msra.mxu0 %v12953_v30  ;;  %8847 = vmatpush1.bf16.msra.mxu1 %v12956_v32  ;;  %v13031_v17 = vld [vmem:[#allocation27 + $0x1c8] ss:$16 sps:$4 sm:$0xff]   ;;  %v13039_v30 = vld [vmem:[#allocation27 + $0x1ec] ss:$16 sps:$4 sm:$0xff]  }
0x1a46   :  { %8807 = vmatprep.subr.bf16.mxu0 %v12961_v19  ;;  %8848 = vmatprep.subr.bf16.mxu1 %v12964_v20  ;;  %v13034_v53 = vld [vmem:[#allocation27 + $0x3c8] ss:$16 sps:$4 sm:$0xff]   ;;  %v13042_v32 = vld [vmem:[#allocation27 + $0x3ec] ss:$16 sps:$4 sm:$0xff]  }
0x1a47   :  { %v13037_v19 = vld [vmem:[#allocation27 + $0x1e8] ss:$16 sps:$4 sm:$0xff]  }
0x1a48   :  { %v13040_v20 = vld [vmem:[#allocation27 + $0x3e8] ss:$16 sps:$4 sm:$0xff]  }
0x1a49   :  { %8808 = vmatpush1.bf16.msra.mxu0 %v12959_v24  ;;  %8849 = vmatpush1.bf16.msra.mxu1 %v12962_v23  ;;  %v13045_v24 = vld [vmem:[#allocation26 + $0x4] ss:$16 sps:$4 sm:$0xff]  }
0x1a4a   :  { %8809 = vmatprep.subr.bf16.mxu0 %v12967_v1  ;;  %8850 = vmatprep.subr.bf16.mxu1 %v12970_v25  ;;  %v13048_v23 = vld [vmem:[#allocation26 + $0x204] ss:$16 sps:$4 sm:$0xff]   ;;  %v13043_v1 = vld [vmem:[#allocation26] ss:$16 sps:$4 sm:$0xff]  }
0x1a4b   :  { %v13046_v25 = vld [vmem:[#allocation26 + $0x200] ss:$16 sps:$4 sm:$0xff]  }
0x1a4d   :  { %8810 = vmatpush1.bf16.msra.mxu0 %v12965_v28  ;;  %8851 = vmatpush1.bf16.msra.mxu1 %v12968_v36  ;;  %v13051_v28 = vld [vmem:[#allocation26 + $0x24] ss:$16 sps:$4 sm:$0xff]  }
0x1a4e   :  { %8811 = vmatprep.subr.bf16.mxu0 %v12973_v29  ;;  %8852 = vmatprep.subr.bf16.mxu1 %v12976_v31  ;;  %v13054_v36 = vld [vmem:[#allocation26 + $0x224] ss:$16 sps:$4 sm:$0xff]   ;;  %v13049_v29 = vld [vmem:[#allocation26 + $0x20] ss:$16 sps:$4 sm:$0xff]  }
0x1a4f   :  { %v13052_v31 = vld [vmem:[#allocation26 + $0x220] ss:$16 sps:$4 sm:$0xff]  }
0x1a51   :  { %8812 = vmatpush1.bf16.msra.mxu0 %v12971_v22  ;;  %8853 = vmatpush1.bf16.msra.mxu1 %v12974_v11  ;;  %v13057_v22 = vld [vmem:[#allocation26 + $0x44] ss:$16 sps:$4 sm:$0xff]  }
0x1a52   :  { %8813 = vmatprep.subr.bf16.mxu0 %v12979_v34  ;;  %8854 = vmatprep.subr.bf16.mxu1 %v12982_v26  ;;  %v13060_v11 = vld [vmem:[#allocation26 + $0x244] ss:$16 sps:$4 sm:$0xff]   ;;  %v13055_v34 = vld [vmem:[#allocation26 + $0x40] ss:$16 sps:$4 sm:$0xff]  }
0x1a53   :  { %v13058_v26 = vld [vmem:[#allocation26 + $0x240] ss:$16 sps:$4 sm:$0xff]  }
0x1a55   :  { %8814 = vmatpush1.bf16.msra.mxu0 %v12977_v43  ;;  %8855 = vmatpush1.bf16.msra.mxu1 %v12980_v46  ;;  %v13063_v43 = vld [vmem:[#allocation26 + $0x64] ss:$16 sps:$4 sm:$0xff]  }
0x1a56   :  { %8815 = vmatprep.subr.bf16.mxu0 %v12985_v48  ;;  %8856 = vmatprep.subr.bf16.mxu1 %v12988_v35  ;;  %v13066_v46 = vld [vmem:[#allocation26 + $0x264] ss:$16 sps:$4 sm:$0xff]  }
0x1a57   :  { %v13069_v48 = vld [vmem:[#allocation26 + $0x84] ss:$16 sps:$4 sm:$0xff]  }
0x1a58   :  { %v13072_v35 = vld [vmem:[#allocation26 + $0x284] ss:$16 sps:$4 sm:$0xff]  }
0x1a59   :  { %8816 = vmatpush1.bf16.msra.mxu0 %v12983_v21  ;;  %8857 = vmatpush1.bf16.msra.mxu1 %v12986_v7  ;;  %v13067_v21 = vld [vmem:[#allocation26 + $0x80] ss:$16 sps:$4 sm:$0xff]  }
0x1a5a   :  { %8817 = vmatprep.subr.bf16.mxu0 %v12991_v37  ;;  %8858 = vmatprep.subr.bf16.mxu1 %v12994_v40  ;;  %v13070_v7 = vld [vmem:[#allocation26 + $0x280] ss:$16 sps:$4 sm:$0xff]   ;;  %v13075_v37 = vld [vmem:[#allocation26 + $0xa4] ss:$16 sps:$4 sm:$0xff]  }
0x1a5b   :  { %v13078_v40 = vld [vmem:[#allocation26 + $0x2a4] ss:$16 sps:$4 sm:$0xff]  }
0x1a5d   :  { %8818 = vmatpush1.bf16.msra.mxu0 %v12989_v49  ;;  %8859 = vmatpush1.bf16.msra.mxu1 %v12992_v50  ;;  %v13073_v49 = vld [vmem:[#allocation26 + $0xa0] ss:$16 sps:$4 sm:$0xff]  }
0x1a5e   :  { %8819 = vmatprep.subr.bf16.mxu0 %v12997_v52  ;;  %8860 = vmatprep.subr.bf16.mxu1 %v13000_v16  ;;  %v13076_v50 = vld [vmem:[#allocation26 + $0x2a0] ss:$16 sps:$4 sm:$0xff]   ;;  %v13081_v52 = vld [vmem:[#allocation26 + $0xc4] ss:$16 sps:$4 sm:$0xff]  }
0x1a5f   :  { %v13084_v16 = vld [vmem:[#allocation26 + $0x2c4] ss:$16 sps:$4 sm:$0xff]  }
0x1a61   :  { %8820 = vmatpush1.bf16.msra.mxu0 %v12995_v9  ;;  %8861 = vmatpush1.bf16.msra.mxu1 %v12998_v54  ;;  %v13079_v9 = vld [vmem:[#allocation26 + $0xc0] ss:$16 sps:$4 sm:$0xff]  }
0x1a62   :  { %8821 = vmatprep.subr.bf16.mxu0 %v13003_v55  ;;  %8862 = vmatprep.subr.bf16.mxu1 %v13006_v38  ;;  %v13082_v54 = vld [vmem:[#allocation26 + $0x2c0] ss:$16 sps:$4 sm:$0xff]   ;;  %v13087_v55 = vld [vmem:[#allocation26 + $0xe4] ss:$16 sps:$4 sm:$0xff]  }
0x1a63   :  { %v13090_v38 = vld [vmem:[#allocation26 + $0x2e4] ss:$16 sps:$4 sm:$0xff]  }
0x1a65   :  { %8822 = vmatpush1.bf16.msra.mxu0 %v13001_v56  ;;  %8863 = vmatpush1.bf16.msra.mxu1 %v13004_v57  ;;  %v13085_v56 = vld [vmem:[#allocation26 + $0xe0] ss:$16 sps:$4 sm:$0xff]  }
0x1a66   :  { %8823 = vmatprep.subr.bf16.mxu0 %v13009_v58  ;;  %8864 = vmatprep.subr.bf16.mxu1 %v13012_v51  ;;  %v13088_v57 = vld [vmem:[#allocation26 + $0x2e0] ss:$16 sps:$4 sm:$0xff]   ;;  %v13093_v58 = vld [vmem:[#allocation26 + $0x104] ss:$16 sps:$4 sm:$0xff]  }
0x1a67   :  { %v13096_v51 = vld [vmem:[#allocation26 + $0x304] ss:$16 sps:$4 sm:$0xff]  }
0x1a69   :  { %8824 = vmatpush1.bf16.msra.mxu0 %v13007_v59  ;;  %8865 = vmatpush1.bf16.msra.mxu1 %v13010_v60  ;;  %v13091_v59 = vld [vmem:[#allocation26 + $0x100] ss:$16 sps:$4 sm:$0xff]  }
0x1a6a   :  { %8825 = vmatprep.subr.bf16.mxu0 %v13015_v61  ;;  %8866 = vmatprep.subr.bf16.mxu1 %v13018_v45  ;;  %v13094_v60 = vld [vmem:[#allocation26 + $0x300] ss:$16 sps:$4 sm:$0xff]   ;;  %v13099_v61 = vld [vmem:[#allocation26 + $0x124] ss:$16 sps:$4 sm:$0xff]  }
0x1a6b   :  { %v13102_v45 = vld [vmem:[#allocation26 + $0x324] ss:$16 sps:$4 sm:$0xff]  }
0x1a6d   :  { %8826 = vmatpush1.bf16.msra.mxu0 %v13013_v62  ;;  %8867 = vmatpush1.bf16.msra.mxu1 %v13016_v63  ;;  %v13097_v62 = vld [vmem:[#allocation26 + $0x120] ss:$16 sps:$4 sm:$0xff]  }
0x1a6e   :  { %8827 = vmatprep.subr.bf16.mxu0 %v13021_v0  ;;  %8868 = vmatprep.subr.bf16.mxu1 %v13024_v2  ;;  %v13100_v63 = vld [vmem:[#allocation26 + $0x320] ss:$16 sps:$4 sm:$0xff]   ;;  %v13105_v0 = vld [vmem:[#allocation26 + $0x144] ss:$16 sps:$4 sm:$0xff]  }
0x1a6f   :  { %v13108_v2 = vld [vmem:[#allocation26 + $0x344] ss:$16 sps:$4 sm:$0xff]  }
0x1a71   :  { %8828 = vmatpush1.bf16.msra.mxu0 %v13019_v3  ;;  %8869 = vmatpush1.bf16.msra.mxu1 %v13022_v4  ;;  %v13103_v3 = vld [vmem:[#allocation26 + $0x140] ss:$16 sps:$4 sm:$0xff]  }
0x1a72   :  { %8829 = vmatprep.subr.bf16.mxu0 %v13027_v5  ;;  %8870 = vmatprep.subr.bf16.mxu1 %v13030_v44  ;;  %v13106_v4 = vld [vmem:[#allocation26 + $0x340] ss:$16 sps:$4 sm:$0xff]   ;;  %v13111_v5 = vld [vmem:[#allocation26 + $0x164] ss:$16 sps:$4 sm:$0xff]  }
0x1a73   :  { %v13114_v44 = vld [vmem:[#allocation26 + $0x364] ss:$16 sps:$4 sm:$0xff]  }
0x1a75   :  { %8830 = vmatpush1.bf16.msra.mxu0 %v13025_v33  ;;  %8871 = vmatpush1.bf16.msra.mxu1 %v13028_v6 }
0x1a76   :  { %8831 = vmatprep.subr.bf16.mxu0 %v13033_v47  ;;  %8872 = vmatprep.subr.bf16.mxu1 %v13036_v8  ;;  %v13109_v47 = vld [vmem:[#allocation26 + $0x160] ss:$16 sps:$4 sm:$0xff]  }
0x1a77   :  { %v13112_v8 = vld [vmem:[#allocation26 + $0x360] ss:$16 sps:$4 sm:$0xff]  }
0x1a79   :  { %8832 = vmatpush1.bf16.msra.mxu0 %v13031_v17  ;;  %8873 = vmatpush1.bf16.msra.mxu1 %v13034_v53  ;;  %v13117_v53 = vld [vmem:[#allocation26 + $0x184] ss:$16 sps:$4 sm:$0xff]  }
0x1a7a   :  { %8833 = vmatprep.subr.bf16.mxu0 %v13039_v30  ;;  %8874 = vmatprep.subr.bf16.mxu1 %v13042_v32  ;;  %v13120_v30 = vld [vmem:[#allocation26 + $0x384] ss:$16 sps:$4 sm:$0xff]   ;;  %v13115_v32 = vld [vmem:[#allocation26 + $0x180] ss:$16 sps:$4 sm:$0xff]  }
0x1a7d   :  { %8834 = vmatpush1.bf16.msra.mxu0 %v13037_v19  ;;  %8875 = vmatpush1.bf16.msra.mxu1 %v13040_v20  ;;  %v13118_v19 = vld [vmem:[#allocation26 + $0x380] ss:$16 sps:$4 sm:$0xff]   ;;  %v13123_v20 = vld [vmem:[#allocation26 + $0x1a4] ss:$16 sps:$4 sm:$0xff]  }
0x1a7e   :  { %9525 = vmatprep.subr.bf16.mxu0 %v13045_v24  ;;  %9566 = vmatprep.subr.bf16.mxu1 %v13048_v23  ;;  %v13126_v24 = vld [vmem:[#allocation26 + $0x3a4] ss:$16 sps:$4 sm:$0xff]   ;;  %v13121_v23 = vld [vmem:[#allocation26 + $0x1a0] ss:$16 sps:$4 sm:$0xff]  }
0x1a80   :  { %8836 = vmatmul.mubr.bf16.vlgmr.msra.gmra.mrb[64].mxu0 %v14520_v14  ;;  %8877 = vmatmul.mubr.bf16.vlgmr.msra.gmra.mrb[64].mxu1 %v14522_v15  ;;  %v13061_v14 = vld [vmem:[#allocation26 + $0x60] ss:$16 sps:$4 sm:$0xff]  }
0x1a81   :  { %9526 = vmatpush1.bf16.msra.mxu0 %v13043_v1  ;;  %9567 = vmatpush1.bf16.msra.mxu1 %v13046_v25  ;;  %v13064_v15 = vld [vmem:[#allocation26 + $0x260] ss:$16 sps:$4 sm:$0xff]   ;;  %v6306_v25 = vld [vmem:[#allocation20] sm:$0xf] }
0x1a82   :  { %9527 = vmatprep.subr.bf16.mxu0 %v13051_v28  ;;  %9568 = vmatprep.subr.bf16.mxu1 %v13054_v36  ;;  %v13124_v1 = vld [vmem:[#allocation26 + $0x3a0] ss:$16 sps:$4 sm:$0xff]   ;;  %v13129_v28 = vld [vmem:[#allocation26 + $0x1c4] ss:$16 sps:$4 sm:$0xff]  }
0x1a83   :  { %v13132_v36 = vld [vmem:[#allocation26 + $0x3c4] ss:$16 sps:$4 sm:$0xff]  }
0x1a85   :  { %9528 = vmatpush1.bf16.msra.mxu0 %v13049_v29  ;;  %9569 = vmatpush1.bf16.msra.mxu1 %v13052_v31  ;;  %v6332_v29 = vld [vmem:[#allocation21] sm:$0xf]  ;;  %v6315_v31 = vrot.slane %v6306_v25, %v14151_v12 }
0x1a86   :  { %9529 = vmatprep.subr.bf16.mxu0 %v13057_v22  ;;  %9570 = vmatprep.subr.bf16.mxu1 %v13060_v11  ;;  %v13127_v22 = vld [vmem:[#allocation26 + $0x1c0] ss:$16 sps:$4 sm:$0xff]  }
0x1a87   :  { %v13130_v11 = vld [vmem:[#allocation26 + $0x3c0] ss:$16 sps:$4 sm:$0xff]  }
0x1a89   :  { %9530 = vmatpush1.bf16.msra.mxu0 %v13055_v34  ;;  %9571 = vmatpush1.bf16.msra.mxu1 %v13058_v26  ;;  %v6323_v34 = vrot.slane %v6306_v25, %v14154_v13  ;;  %v6311_v26 = vrot.slane %v6306_v25, %v14146_v10 }
0x1a8a   :  { %9531 = vmatprep.subr.bf16.mxu0 %v13063_v43  ;;  %9572 = vmatprep.subr.bf16.mxu1 %v13066_v46  ;;  %v6319_v43 = vrot.slane %v6306_v25, %v14177_v27  ;;  %v13180_v25 = vld [vmem:[#allocation26 + $0x2cc] ss:$16 sps:$4 sm:$0xff]  }
0x1a8d   :  { %9532 = vmatpush1.bf16.msra.mxu0 %v13061_v14  ;;  %9573 = vmatpush1.bf16.msra.mxu1 %v13064_v15  ;;  %v13135_v14 = vld [vmem:[#allocation26 + $0x1e4] ss:$16 sps:$4 sm:$0xff]  }
0x1a8e   :  { %9533 = vmatprep.subr.bf16.mxu0 %v13069_v48  ;;  %9574 = vmatprep.subr.bf16.mxu1 %v13072_v35  ;;  %v13138_v15 = vld [vmem:[#allocation26 + $0x3e4] ss:$16 sps:$4 sm:$0xff]   ;;  %v6341_v48 = vrot.slane %v6332_v29, %v14151_v12  ;;  %v6349_v35 = vrot.slane %v6332_v29, %v14154_v13 }
0x1a91   :  { %9534 = vmatpush1.bf16.msra.mxu0 %v13067_v21  ;;  %9575 = vmatpush1.bf16.msra.mxu1 %v13070_v7  ;;  %v6337_v21 = vrot.slane %v6332_v29, %v14146_v10 }
0x1a92   :  { %9535 = vmatprep.subr.bf16.mxu0 %v13075_v37  ;;  %9576 = vmatprep.subr.bf16.mxu1 %v13078_v40 }
0x1a95   :  { %9536 = vmatpush1.bf16.msra.mxu0 %v13073_v49  ;;  %9577 = vmatpush1.bf16.msra.mxu1 %v13076_v50  ;;  %v6345_v50 = vrot.slane %v6332_v29, %v14177_v27  ;;  %v13183_v29 = vld [vmem:[#allocation26 + $0xec] ss:$16 sps:$4 sm:$0xff]  }
0x1a96   :  { %9537 = vmatprep.subr.bf16.mxu0 %v13081_v52  ;;  %9578 = vmatprep.subr.bf16.mxu1 %v13084_v16  ;;  %v13133_v52 = vld [vmem:[#allocation26 + $0x1e0] ss:$16 sps:$4 sm:$0xff]  }
0x1a97   :  { %v13136_v16 = vld [vmem:[#allocation26 + $0x3e0] ss:$16 sps:$4 sm:$0xff]  }
0x1a99   :  { %9538 = vmatpush1.bf16.msra.mxu0 %v13079_v9  ;;  %9579 = vmatpush1.bf16.msra.mxu1 %v13082_v54 }
0x1a9a   :  { %9539 = vmatprep.subr.bf16.mxu0 %v13087_v55  ;;  %9580 = vmatprep.subr.bf16.mxu1 %v13090_v38  ;;  %v13141_v38 = vld [vmem:[#allocation26 + $0xc] ss:$16 sps:$4 sm:$0xff]  }
0x1a9d   :  { %9540 = vmatpush1.bf16.msra.mxu0 %v13085_v56  ;;  %9581 = vmatpush1.bf16.msra.mxu1 %v13088_v57  ;;  %v13144_v56 = vld [vmem:[#allocation26 + $0x20c] ss:$16 sps:$4 sm:$0xff]  }
0x1a9e   :  { %9541 = vmatprep.subr.bf16.mxu0 %v13093_v58  ;;  %9582 = vmatprep.subr.bf16.mxu1 %v13096_v51 }
0x1aa1   :  { %9542 = vmatpush1.bf16.msra.mxu0 %v13091_v59  ;;  %9583 = vmatpush1.bf16.msra.mxu1 %v13094_v60  ;;  %v13139_v59 = vld [vmem:[#allocation26 + $0x8] ss:$16 sps:$4 sm:$0xff]  }
0x1aa2   :  { %9543 = vmatprep.subr.bf16.mxu0 %v13099_v61  ;;  %9584 = vmatprep.subr.bf16.mxu1 %v13102_v45  ;;  %v13142_v60 = vld [vmem:[#allocation26 + $0x208] ss:$16 sps:$4 sm:$0xff]  }
0x1aa5   :  { %9544 = vmatpush1.bf16.msra.mxu0 %v13097_v62  ;;  %9585 = vmatpush1.bf16.msra.mxu1 %v13100_v63  ;;  %v13147_v62 = vld [vmem:[#allocation26 + $0x2c] ss:$16 sps:$4 sm:$0xff]  }
0x1aa6   :  { %9545 = vmatprep.subr.bf16.mxu0 %v13105_v0  ;;  %9586 = vmatprep.subr.bf16.mxu1 %v13108_v2  ;;  %v13150_v63 = vld [vmem:[#allocation26 + $0x22c] ss:$16 sps:$4 sm:$0xff]   ;;  %v13145_v0 = vld [vmem:[#allocation26 + $0x28] ss:$16 sps:$4 sm:$0xff]  }
0x1aa7   :  { %v6298_v33 = vpop.xlane.xlu1 %6297  ;;  %v13148_v2 = vld [vmem:[#allocation26 + $0x228] ss:$16 sps:$4 sm:$0xff]  }
0x1aa8   :  { %v6299_v6 = vmul.f32 0.001953125, %v6298_v33  ;;  %v13159_v33 = vld [vmem:[#allocation26 + $0x6c] ss:$16 sps:$4 sm:$0xff]  }
0x1aa9   :  { %9546 = vmatpush1.bf16.msra.mxu0 %v13103_v3  ;;  %9587 = vmatpush1.bf16.msra.mxu1 %v13106_v4  ;;  %v13153_v3 = vld [vmem:[#allocation26 + $0x4c] ss:$16 sps:$4 sm:$0xff]  }
0x1aaa   :  { %v6300_v17 = vadd.f32 1e-05, %v6299_v6  ;;  %9547 = vmatprep.subr.bf16.mxu0 %v13111_v5  ;;  %9588 = vmatprep.subr.bf16.mxu1 %v13114_v44  ;;  %v13156_v4 = vld [vmem:[#allocation26 + $0x24c] ss:$16 sps:$4 sm:$0xff]   ;;  %v13151_v5 = vld [vmem:[#allocation26 + $0x48] ss:$16 sps:$4 sm:$0xff]  }
0x1aab   :  { %v13154_v44 = vld [vmem:[#allocation26 + $0x248] ss:$16 sps:$4 sm:$0xff]   ;;  %v13162_v6 = vld [vmem:[#allocation26 + $0x26c] ss:$16 sps:$4 sm:$0xff]  }
0x1aac   :  { %13299 = vrsqrt.f32 %v6300_v17  ;;  %v13165_v17 = vld [vmem:[#allocation26 + $0x8c] ss:$16 sps:$4 sm:$0xff]  }
0x1aad   :  { %9548 = vmatpush1.bf16.msra.mxu0 %v13109_v47  ;;  %9589 = vmatpush1.bf16.msra.mxu1 %v13112_v8  ;;  %v13157_v47 = vld [vmem:[#allocation26 + $0x68] ss:$16 sps:$4 sm:$0xff]  }
0x1aae   :  { %9549 = vmatprep.subr.bf16.mxu0 %v13117_v53  ;;  %9590 = vmatprep.subr.bf16.mxu1 %v13120_v30  ;;  %v13160_v8 = vld [vmem:[#allocation26 + $0x268] ss:$16 sps:$4 sm:$0xff]   ;;  %v13168_v53 = vld [vmem:[#allocation26 + $0x28c] ss:$16 sps:$4 sm:$0xff]  }
0x1aaf   :  { %v13163_v30 = vld [vmem:[#allocation26 + $0x88] ss:$16 sps:$4 sm:$0xff]  }
0x1ab1   :  { %9550 = vmatpush1.bf16.msra.mxu0 %v13115_v32  ;;  %9591 = vmatpush1.bf16.msra.mxu1 %v13118_v19  ;;  %v13166_v32 = vld [vmem:[#allocation26 + $0x288] ss:$16 sps:$4 sm:$0xff]   ;;  %v13171_v19 = vld [vmem:[#allocation26 + $0xac] ss:$16 sps:$4 sm:$0xff]  }
0x1ab2   :  { %9551 = vmatprep.subr.bf16.mxu0 %v13123_v20  ;;  %9592 = vmatprep.subr.bf16.mxu1 %v13126_v24  ;;  %v13174_v20 = vld [vmem:[#allocation26 + $0x2ac] ss:$16 sps:$4 sm:$0xff]   ;;  %v13169_v24 = vld [vmem:[#allocation26 + $0xa8] ss:$16 sps:$4 sm:$0xff]  }
0x1ab5   :  { %9552 = vmatpush1.bf16.msra.mxu0 %v13121_v23  ;;  %9593 = vmatpush1.bf16.msra.mxu1 %v13124_v1  ;;  %v13172_v23 = vld [vmem:[#allocation26 + $0x2a8] ss:$16 sps:$4 sm:$0xff]   ;;  %v13177_v1 = vld [vmem:[#allocation26 + $0xcc] ss:$16 sps:$4 sm:$0xff]  }
0x1ab6   :  { %v13300_v46 = vpop.eup %13299  ;;  %9553 = vmatprep.subr.bf16.mxu0 %v13129_v28  ;;  %9594 = vmatprep.subr.bf16.mxu1 %v13132_v36  ;;  %v13175_v28 = vld [vmem:[#allocation26 + $0xc8] ss:$16 sps:$4 sm:$0xff]  }
0x1ab7   :  { %v6303_v7 = vmul.f32 %v13300_v46, %v14496_v41  ;;  %v6305_v37 = vmul.f32 %v13300_v46, %v14502_v18  ;;  %v6302_v40 = vmul.f32 %v13300_v46, %v14493_v39  ;;  %v6304_v49 = vmul.f32 %v13300_v46, %v14499_v42  ;;  %v13178_v36 = vld [vmem:[#allocation26 + $0x2c8] ss:$16 sps:$4 sm:$0xff]  }
0x1ab8   :  { %v13190_v46 = vld [vmem:[#allocation26 + $0x308] ss:$16 sps:$4 sm:$0xff]  }
0x1ab9   :  { %9554 = vmatpush1.bf16.msra.mxu0 %v13127_v22  ;;  %9595 = vmatpush1.bf16.msra.mxu1 %v13130_v11  ;;  %v6329_v9 = vmul.f32 %v6315_v31, %v6303_v7  ;;  %v6331_v54 = vmul.f32 %v6323_v34, %v6305_v37  ;;  %v6328_v55 = vmul.f32 %v6311_v26, %v6302_v40  ;;  %v13186_v31 = vld [vmem:[#allocation26 + $0x2ec] ss:$16 sps:$4 sm:$0xff]   ;;  %v13181_v22 = vld [vmem:[#allocation26 + $0xe8] ss:$16 sps:$4 sm:$0xff]  }
0x1aba   :  { %9555 = vmatprep.subr.bf16.mxu0 %v13135_v14  ;;  %9596 = vmatprep.subr.bf16.mxu1 %v13138_v15  ;;  %v6330_v41 = vmul.f32 %v6319_v43, %v6304_v49  ;;  %v13184_v11 = vld [vmem:[#allocation26 + $0x2e8] ss:$16 sps:$4 sm:$0xff]   ;;  %v13189_v34 = vld [vmem:[#allocation26 + $0x10c] ss:$16 sps:$4 sm:$0xff]  }
0x1abb   :  { %v6355_v57 = vadd.f32 %v6341_v48, %v6329_v9  ;;  %v6357_v18 = vadd.f32 %v6349_v35, %v6331_v54  ;;  %v6354_v58 = vadd.f32 %v6337_v21, %v6328_v55  ;;  %v13192_v26 = vld [vmem:[#allocation26 + $0x30c] ss:$16 sps:$4 sm:$0xff]   ;;  %v13187_v43 = vld [vmem:[#allocation26 + $0x108] ss:$16 sps:$4 sm:$0xff]  }
0x1abc   :  { %v6356_v39 = vadd.f32 %v6345_v50, %v6330_v41  ;;  %v13195_v14 = vld [vmem:[#allocation26 + $0x12c] ss:$16 sps:$4 sm:$0xff]   ;;  %v13193_v48 = vld [vmem:[#allocation26 + $0x128] ss:$16 sps:$4 sm:$0xff]  }
0x1abd   :  { %9556 = vmatpush1.bf16.msra.mxu0 %v13133_v52  ;;  %9597 = vmatpush1.bf16.msra.mxu1 %v13136_v16  ;;  %v7818_v42 = vpack.c.bf16 %v6355_v57, %v6355_v57  ;;  %v7820_v51 = vpack.c.bf16 %v6357_v18, %v6357_v18  ;;  %v14540_v61 = vpack.c.bf16 %v6354_v58, %v6354_v58  ;;  %v13198_v15 = vld [vmem:[#allocation26 + $0x32c] ss:$16 sps:$4 sm:$0xff]   ;;  %v13196_v35 = vld [vmem:[#allocation26 + $0x328] ss:$16 sps:$4 sm:$0xff]  }
0x1abe   :  { %9607 = vmatprep.subr.bf16.mxu0 %v13141_v38  ;;  %9648 = vmatprep.subr.bf16.mxu1 %v13144_v56  ;;  %v14542_v45 = vpack.c.bf16 %v6356_v39, %v6356_v39  ;;  %v13201_v21 = vld [vmem:[#allocation26 + $0x14c] ss:$16 sps:$4 sm:$0xff]   ;;  %v13199_v37 = vld [vmem:[#allocation26 + $0x148] ss:$16 sps:$4 sm:$0xff]  }
0x1abf   :  { %9557 = vmatprep.mubr.bf16.mxu0 %v7818_v42  ;;  %9598 = vmatprep.mubr.bf16.mxu1 %v7820_v51  ;;  %v13204_v7 = vld [vmem:[#allocation26 + $0x34c] ss:$16 sps:$4 sm:$0xff]   ;;  %v13202_v40 = vld [vmem:[#allocation26 + $0x348] ss:$16 sps:$4 sm:$0xff]  }
0x1ac0   :  { %9558 = vmatmul.mubr.bf16.vlgmr.msra.gmra.mrb[68].mxu0 %v14540_v61  ;;  %9599 = vmatmul.mubr.bf16.vlgmr.msra.gmra.mrb[68].mxu1 %v14542_v45  ;;  %v13207_v49 = vld [vmem:[#allocation26 + $0x16c] ss:$16 sps:$4 sm:$0xff]   ;;  %v13205_v52 = vld [vmem:[#allocation26 + $0x168] ss:$16 sps:$4 sm:$0xff]  }
0x1ac1   :  { %9608 = vmatpush1.bf16.msra.mxu0 %v13139_v59  ;;  %9649 = vmatpush1.bf16.msra.mxu1 %v13142_v60  ;;  %v13210_v50 = vld [vmem:[#allocation26 + $0x36c] ss:$16 sps:$4 sm:$0xff]   ;;  %v13208_v16 = vld [vmem:[#allocation26 + $0x368] ss:$16 sps:$4 sm:$0xff]  }
0x1ac2   :  { %9639 = vmatprep.mubr.bf16.mxu0 %v7818_v42  ;;  %9680 = vmatprep.mubr.bf16.mxu1 %v7820_v51  ;;  %v13213_v9 = vld [vmem:[#allocation26 + $0x18c] ss:$16 sps:$4 sm:$0xff]   ;;  %v13211_v55 = vld [vmem:[#allocation26 + $0x188] ss:$16 sps:$4 sm:$0xff]  }
0x1ac3   :  { %9609 = vmatprep.subr.bf16.mxu0 %v13147_v62  ;;  %9650 = vmatprep.subr.bf16.mxu1 %v13150_v63  ;;  %v13216_v54 = vld [vmem:[#allocation26 + $0x38c] ss:$16 sps:$4 sm:$0xff]   ;;  %v13214_v38 = vld [vmem:[#allocation26 + $0x388] ss:$16 sps:$4 sm:$0xff]  }
0x1ac4   :  { %v13219_v56 = vld [vmem:[#allocation26 + $0x1ac] ss:$16 sps:$4 sm:$0xff]   ;;  %v13217_v57 = vld [vmem:[#allocation26 + $0x1a8] ss:$16 sps:$4 sm:$0xff]  }
0x1ac5   :  { %9610 = vmatpush1.bf16.msra.mxu0 %v13145_v0  ;;  %9651 = vmatpush1.bf16.msra.mxu1 %v13148_v2  ;;  %v13222_v41 = vld [vmem:[#allocation26 + $0x3ac] ss:$16 sps:$4 sm:$0xff]   ;;  %v13220_v18 = vld [vmem:[#allocation26 + $0x3a8] ss:$16 sps:$4 sm:$0xff]  }
0x1ac6   :  { %9611 = vmatprep.subr.bf16.mxu0 %v13153_v3  ;;  %9652 = vmatprep.subr.bf16.mxu1 %v13156_v4  ;;  %v13225_v58 = vld [vmem:[#allocation26 + $0x1cc] ss:$16 sps:$4 sm:$0xff]   ;;  %v13223_v42 = vld [vmem:[#allocation26 + $0x1c8] ss:$16 sps:$4 sm:$0xff]  }
0x1ac7   :  { %v13228_v39 = vld [vmem:[#allocation26 + $0x3cc] ss:$16 sps:$4 sm:$0xff]   ;;  %v13226_v51 = vld [vmem:[#allocation26 + $0x3c8] ss:$16 sps:$4 sm:$0xff]  }
0x1ac8   :  { %v13231_v59 = vld [vmem:[#allocation26 + $0x1ec] ss:$16 sps:$4 sm:$0xff]   ;;  %v13229_v62 = vld [vmem:[#allocation26 + $0x1e8] ss:$16 sps:$4 sm:$0xff]  }
0x1ac9   :  { %9612 = vmatpush1.bf16.msra.mxu0 %v13151_v5  ;;  %9653 = vmatpush1.bf16.msra.mxu1 %v13154_v44  ;;  %v13234_v60 = vld [vmem:[#allocation26 + $0x3ec] ss:$16 sps:$4 sm:$0xff]   ;;  %v13232_v63 = vld [vmem:[#allocation26 + $0x3e8] ss:$16 sps:$4 sm:$0xff]  }
0x1aca   :  { %9613 = vmatprep.subr.bf16.mxu0 %v13159_v33  ;;  %9654 = vmatprep.subr.bf16.mxu1 %v13162_v6  ;;  %v13235_v0 = vld [vmem:[#allocation30 + $0x40] sm:$0xff]   ;;  %v13237_v3 = vld [vmem:[#allocation30 + $0x48] sm:$0xff]   ;;  %v13239_v5 = vld [vmem:[#allocation30 + $0x50] sm:$0xff]  }
0x1acb   :  { %v13236_v2 = vld [vmem:[#allocation30] sm:$0xff]   ;;  %v13238_v4 = vld [vmem:[#allocation30 + $0x8] sm:$0xff]   ;;  %v13240_v44 = vld [vmem:[#allocation30 + $0x10] sm:$0xff]  }
0x1acc   :  { %v13241_v33 = vld [vmem:[#allocation30 + $0x58] sm:$0xff]  }
0x1acd   :  { %9614 = vmatpush1.bf16.msra.mxu0 %v13157_v47  ;;  %9655 = vmatpush1.bf16.msra.mxu1 %v13160_v8  ;;  %v13242_v6 = vld [vmem:[#allocation30 + $0x18] sm:$0xff]   ;;  %v13243_v47 = vld [vmem:[#allocation30 + $0x60] sm:$0xff]  }
0x1ace   :  { %9615 = vmatprep.subr.bf16.mxu0 %v13165_v17  ;;  %9656 = vmatprep.subr.bf16.mxu1 %v13168_v53  ;;  %v13244_v8 = vld [vmem:[#allocation30 + $0x20] sm:$0xff]  }
0x1ad1   :  { %9616 = vmatpush1.bf16.msra.mxu0 %v13163_v30  ;;  %9657 = vmatpush1.bf16.msra.mxu1 %v13166_v32  ;;  %v13245_v32 = vld [vmem:[#allocation30 + $0x68] sm:$0xff]  }
0x1ad2   :  { %9617 = vmatprep.subr.bf16.mxu0 %v13171_v19  ;;  %9658 = vmatprep.subr.bf16.mxu1 %v13174_v20 }
0x1ad5   :  { %9618 = vmatpush1.bf16.msra.mxu0 %v13169_v24  ;;  %9659 = vmatpush1.bf16.msra.mxu1 %v13172_v23  ;;  %v13246_v23 = vld [vmem:[#allocation30 + $0x28] sm:$0xff]  }
0x1ad6   :  { %9619 = vmatprep.subr.bf16.mxu0 %v13177_v1  ;;  %9660 = vmatprep.subr.bf16.mxu1 %v13180_v25 }
0x1ad9   :  { %9620 = vmatpush1.bf16.msra.mxu0 %v13175_v28  ;;  %9661 = vmatpush1.bf16.msra.mxu1 %v13178_v36  ;;  %v13247_v28 = vld [vmem:[#allocation30 + $0x70] sm:$0xff]  }
0x1ada   :  { %9621 = vmatprep.subr.bf16.mxu0 %v13183_v29  ;;  %9662 = vmatprep.subr.bf16.mxu1 %v13186_v31  ;;  %v13248_v36 = vld [vmem:[#allocation30 + $0x30] sm:$0xff]   ;;  %v13249_v29 = vld [vmem:[#allocation30 + $0x78] sm:$0xff]  }
0x1adb   :  { %v13250_v31 = vld [vmem:[#allocation30 + $0x38] sm:$0xff]  }
0x1add   :  { %9622 = vmatpush1.bf16.msra.mxu0 %v13181_v22  ;;  %9663 = vmatpush1.bf16.msra.mxu1 %v13184_v11  ;;  %v13251_v22 = vld [vmem:[#allocation30 + $0xc0] sm:$0xff]  }
0x1ade   :  { %9623 = vmatprep.subr.bf16.mxu0 %v13189_v34  ;;  %9664 = vmatprep.subr.bf16.mxu1 %v13192_v26  ;;  %v13252_v11 = vld [vmem:[#allocation30 + $0x80] sm:$0xff]   ;;  %v13253_v34 = vld [vmem:[#allocation30 + $0xc8] sm:$0xff]  }
0x1adf   :  { %v13254_v26 = vld [vmem:[#allocation30 + $0x88] sm:$0xff]  }
0x1ae1   :  { %9624 = vmatpush1.bf16.msra.mxu0 %v13187_v43  ;;  %9665 = vmatpush1.bf16.msra.mxu1 %v13190_v46  ;;  %v13255_v43 = vld [vmem:[#allocation30 + $0xd0] sm:$0xff]  }
0x1ae2   :  { %9625 = vmatprep.subr.bf16.mxu0 %v13195_v14  ;;  %9666 = vmatprep.subr.bf16.mxu1 %v13198_v15  ;;  %v13256_v46 = vld [vmem:[#allocation30 + $0x90] sm:$0xff]   ;;  %v13257_v14 = vld [vmem:[#allocation30 + $0xd8] sm:$0xff]  }
0x1ae3   :  { %v13258_v15 = vld [vmem:[#allocation30 + $0x98] sm:$0xff]  }
0x1ae5   :  { %9626 = vmatpush1.bf16.msra.mxu0 %v13193_v48  ;;  %9667 = vmatpush1.bf16.msra.mxu1 %v13196_v35  ;;  %v13259_v48 = vld [vmem:[#allocation30 + $0xe0] sm:$0xff]  }
0x1ae6   :  { %9627 = vmatprep.subr.bf16.mxu0 %v13201_v21  ;;  %9668 = vmatprep.subr.bf16.mxu1 %v13204_v7  ;;  %v13260_v35 = vld [vmem:[#allocation30 + $0xa0] sm:$0xff]  }
0x1ae9   :  { %9628 = vmatpush1.bf16.msra.mxu0 %v13199_v37  ;;  %9669 = vmatpush1.bf16.msra.mxu1 %v13202_v40  ;;  %v13261_v37 = vld [vmem:[#allocation30 + $0xe8] sm:$0xff]  }
0x1aea   :  { %9629 = vmatprep.subr.bf16.mxu0 %v13207_v49  ;;  %9670 = vmatprep.subr.bf16.mxu1 %v13210_v50 }
0x1aed   :  { %9630 = vmatpush1.bf16.msra.mxu0 %v13205_v52  ;;  %9671 = vmatpush1.bf16.msra.mxu1 %v13208_v16  ;;  %v13262_v52 = vld [vmem:[#allocation30 + $0xa8] sm:$0xff]  }
0x1aee   :  { %9631 = vmatprep.subr.bf16.mxu0 %v13213_v9  ;;  %9672 = vmatprep.subr.bf16.mxu1 %v13216_v54 }
0x1af1   :  { %9632 = vmatpush1.bf16.msra.mxu0 %v13211_v55  ;;  %9673 = vmatpush1.bf16.msra.mxu1 %v13214_v38 }
0x1af2   :  { %9633 = vmatprep.subr.bf16.mxu0 %v13219_v56  ;;  %9674 = vmatprep.subr.bf16.mxu1 %v13222_v41  ;;  %v13263_v56 = vld [vmem:[#allocation30 + $0xf0] sm:$0xff]  }
0x1af3   :  { %v13264_v41 = vld [vmem:[#allocation30 + $0xb0] sm:$0xff]  }
0x1af5   :  { %9634 = vmatpush1.bf16.msra.mxu0 %v13217_v57  ;;  %9675 = vmatpush1.bf16.msra.mxu1 %v13220_v18  ;;  %v13265_v57 = vld [vmem:[#allocation30 + $0xf8] sm:$0xff]  }
0x1af6   :  { %9635 = vmatprep.subr.bf16.mxu0 %v13225_v58  ;;  %9676 = vmatprep.subr.bf16.mxu1 %v13228_v39  ;;  %v13266_v18 = vld [vmem:[#allocation30 + $0xb8] sm:$0xff]  }
0x1af7   :  { %v9689_v58 = vld [vmem:[#allocation29] sm:$0xf] }
0x1af9   :  { %9636 = vmatpush1.bf16.msra.mxu0 %v13223_v42  ;;  %9677 = vmatpush1.bf16.msra.mxu1 %v13226_v51 }
0x1afa   :  { %9637 = vmatprep.subr.bf16.mxu0 %v13231_v59  ;;  %9678 = vmatprep.subr.bf16.mxu1 %v13234_v60  ;;  %v9694_v59 = vrot.slane %v9689_v58, %v14146_v10 }
0x1afd   :  { %9638 = vmatpush1.bf16.msra.mxu0 %v13229_v62  ;;  %9679 = vmatpush1.bf16.msra.mxu1 %v13232_v63 }
0x1afe   :  { %11291 = vmatprep.subr.bf16.mxu0 %v13235_v0  ;;  %11313 = vmatprep.subr.bf16.mxu1 %v13251_v22  ;;  %v9698_v0 = vrot.slane %v9689_v58, %v14151_v12 }
0x1b00   :  { %9640 = vmatmul.mubr.bf16.vlgmr.msra.gmra.mrb[72].mxu0 %v14540_v61  ;;  %9681 = vmatmul.mubr.bf16.vlgmr.msra.gmra.mrb[72].mxu1 %v14542_v45 }
0x1b01   :  { %11292 = vmatpush3.bf16.msra.mxu0 %v13236_v2  ;;  %11314 = vmatpush3.bf16.msra.mxu1 %v13252_v11 }
0x1b02   :  { %11293 = vmatprep.subr.bf16.mxu0 %v13237_v3  ;;  %11315 = vmatprep.subr.bf16.mxu1 %v13253_v34 }
0x1b05   :  { %11294 = vmatpush3.bf16.msra.mxu0 %v13238_v4  ;;  %11316 = vmatpush3.bf16.msra.mxu1 %v13254_v26 }
0x1b06   :  { %11295 = vmatprep.subr.bf16.mxu0 %v13239_v5  ;;  %11317 = vmatprep.subr.bf16.mxu1 %v13255_v43 }
0x1b09   :  { %11296 = vmatpush3.bf16.msra.mxu0 %v13240_v44  ;;  %11318 = vmatpush3.bf16.msra.mxu1 %v13256_v46 }
0x1b0a   :  { %11297 = vmatprep.subr.bf16.mxu0 %v13241_v33  ;;  %11319 = vmatprep.subr.bf16.mxu1 %v13257_v14 }
0x1b0d   :  { %11298 = vmatpush3.bf16.msra.mxu0 %v13242_v6  ;;  %11320 = vmatpush3.bf16.msra.mxu1 %v13258_v15 }
0x1b0e   :  { %11299 = vmatprep.subr.bf16.mxu0 %v13243_v47  ;;  %11321 = vmatprep.subr.bf16.mxu1 %v13259_v48 }
0x1b11   :  { %11300 = vmatpush3.bf16.msra.mxu0 %v13244_v8  ;;  %11322 = vmatpush3.bf16.msra.mxu1 %v13260_v35 }
0x1b12   :  { %11301 = vmatprep.subr.bf16.mxu0 %v13245_v32  ;;  %11323 = vmatprep.subr.bf16.mxu1 %v13261_v37  ;;  %v9702_v32 = vrot.slane %v9689_v58, %v14177_v27 }
0x1b13   :  { %v8755_v17 = vpop.f32.mrb[60].mxu0  ;;  %v8796_v61 = vpop.f32.mrb[60].mxu1 }
0x1b14   :  { %v14548_v53 = vadd.f32 %v8796_v61, %v8755_v17  ;;  %v8757_v45 = vpop.f32.mrb[61].mxu0  ;;  %v8798_v30 = vpop.f32.mrb[61].mxu1 }
0x1b15   :  { %v14550_v19 = vadd.f32 %v8798_v30, %v8757_v45  ;;  %v8759_v20 = vpop.f32.mrb[62].mxu0  ;;  %v8800_v24 = vpop.f32.mrb[62].mxu1  ;;  %11302 = vmatpush3.bf16.msra.mxu0 %v13246_v23  ;;  %11324 = vmatpush3.bf16.msra.mxu1 %v13262_v52 }
0x1b16   :  { %v8760_v1 = vpop.f32.mrb[63].mxu0  ;;  %v8801_v25 = vpop.f32.mrb[63].mxu1  ;;  %11303 = vmatprep.subr.bf16.mxu0 %v13247_v28  ;;  %11325 = vmatprep.subr.bf16.mxu1 %v13263_v56  ;;  %v9706_v24 = vrot.slane %v9689_v58, %v14154_v13  ;;  %v11202_v13 = vld [vmem:[#allocation32] ss:$0 sm:$0xff] }
0x1b19   :  { %11304 = vmatpush3.bf16.msra.mxu0 %v13248_v36  ;;  %11326 = vmatpush3.bf16.msra.mxu1 %v13264_v41 }
0x1b1a   :  { %11305 = vmatprep.subr.bf16.mxu0 %v13249_v29  ;;  %11327 = vmatprep.subr.bf16.mxu1 %v13265_v57 }
0x1b1d   :  { %11306 = vmatpush3.bf16.msra.mxu0 %v13250_v31  ;;  %11328 = vmatpush3.bf16.msra.mxu1 %v13266_v18 }
0x1b53   :  { %v8837_v21 = vpop.f32.mrb[64].mxu0  ;;  %v8878_v7 = vpop.f32.mrb[64].mxu1 }
0x1b54   :  { %v8879_v40 = vadd.f32 %v8878_v7, %v8837_v21  ;;  %v8839_v49 = vpop.f32.mrb[65].mxu0  ;;  %v8880_v50 = vpop.f32.mrb[65].mxu1 }
0x1b55   :  { %v8881_v16 = vadd.f32 %v8880_v50, %v8839_v49  ;;  %v8841_v9 = vpop.f32.mrb[66].mxu0  ;;  %v8882_v54 = vpop.f32.mrb[66].mxu1 }
0x1b56   :  { %v8842_v55 = vpop.f32.mrb[67].mxu0  ;;  %v8883_v38 = vpop.f32.mrb[67].mxu1 }
0x1b93   :  { %v9559_v39 = vpop.f32.mrb[68].mxu0  ;;  %v9600_v42 = vpop.f32.mrb[68].mxu1 }
0x1b94   :  { %v9560_v51 = vadd.f32 %v9559_v39, %v14548_v53  ;;  %v9561_v60 = vpop.f32.mrb[69].mxu0  ;;  %v9602_v62 = vpop.f32.mrb[69].mxu1 }
0x1b95   :  { %v9562_v63 = vadd.f32 %v9561_v60, %v14550_v19  ;;  %v9563_v2 = vpop.f32.mrb[70].mxu0  ;;  %v9604_v3 = vpop.f32.mrb[70].mxu1 }
0x1b96   :  { %v9601_v4 = vadd.f32 %v9600_v42, %v9560_v51  ;;  %v9564_v5 = vpop.f32.mrb[71].mxu0  ;;  %v9605_v44 = vpop.f32.mrb[71].mxu1 }
0x1b97   :  { %v9603_v33 = vadd.f32 %v9602_v62, %v9562_v63 }
0x1b98   :  { %v9711_v6 = vadd.f32 %v9694_v59, %v9601_v4 }
0x1b99   :  { %v9712_v47 = vadd.f32 %v9698_v0, %v9603_v33 }
0x1b9a   :  { %v9715_v8 = vmax.f32 %v9711_v6, 0.0 }
0x1b9b   :  { %v9716_v17 = vmax.f32 %v9712_v47, 0.0 }
0x1b9c   :  { %v9719_v53 = vpack.c.bf16 %v9715_v8, %v9715_v8 }
0x1b9d   :  { %v9720_v61 = vpack.c.bf16 %v9716_v17, %v9716_v17 }
0x1b9f   :  { %10018 = vmatprep.mubr.bf16.mxu0 %v9720_v61 }
0x1ba0   :  { %10019 = vmatmul.mubr.bf16.vlgmr.msra.gmra.mrb[76].mxu0 %v9719_v53 }
0x1bd3   :  { %v9641_v10 = vpop.f32.mrb[72].mxu0  ;;  %v9682_v45 = vpop.f32.mrb[72].mxu1 }
0x1bd4   :  { %v9642_v30 = vadd.f32 %v9641_v10, %v8879_v40  ;;  %v9643_v12 = vpop.f32.mrb[73].mxu0  ;;  %v9684_v19 = vpop.f32.mrb[73].mxu1 }
0x1bd5   :  { %v9644_v20 = vadd.f32 %v9643_v12, %v8881_v16  ;;  %v9645_v23 = vpop.f32.mrb[74].mxu0  ;;  %v9686_v1 = vpop.f32.mrb[74].mxu1 }
0x1bd6   :  { %v9683_v25 = vadd.f32 %v9682_v45, %v9642_v30  ;;  %v9646_v28 = vpop.f32.mrb[75].mxu0  ;;  %v9687_v36 = vpop.f32.mrb[75].mxu1 }
0x1bd7   :  { %v9685_v29 = vadd.f32 %v9684_v19, %v9644_v20 }
0x1bd8   :  { %v9713_v31 = vadd.f32 %v9702_v32, %v9683_v25 }
0x1bd9   :  { %v9714_v22 = vadd.f32 %v9706_v24, %v9685_v29 }
0x1bda   :  { %v9717_v11 = vmax.f32 %v9713_v31, 0.0 }
0x1bdb   :  { %v9718_v34 = vmax.f32 %v9714_v22, 0.0 }
0x1bdc   :  { %v9721_v43 = vpack.c.bf16 %v9717_v11, %v9717_v11 }
0x1bdd   :  { %v9722_v26 = vpack.c.bf16 %v9718_v34, %v9718_v34 }
0x1bdf   :  { %10058 = vmatprep.mubr.bf16.mxu1 %v9722_v26 }
0x1be0   :  { %10059 = vmatmul.mubr.bf16.vlgmr.msra.gmra.mrb[76].mxu1 %v9721_v43 }
0x1c73   :  { %v11307_v27 = vpop.f32.mrb[76].mxu0 }
0x1c74   :  { %v11308_v46 = vpop.f32.mrb[77].mxu0 }
0x1c75   :  { %v11309_v14 = vadd.f32 %v11308_v46, %v11307_v27  ;;  %v11310_v15 = vpop.f32.mrb[78].mxu0 }
0x1c76   :  { %v11311_v48 = vpop.f32.mrb[79].mxu0 }
0x1c77   :  { %v10021_v7 = vadd.f32 %v11309_v14, %v11202_v13 }
0x1cb3   :  { %v11329_v35 = vpop.f32.mrb[76].mxu1 }
0x1cb4   :  { %v11330_v21 = vpop.f32.mrb[77].mxu1 }
0x1cb5   :  { %v11331_v37 = vadd.f32 %v11330_v21, %v11329_v35  ;;  %v11332_v40 = vpop.f32.mrb[78].mxu1 }
0x1cb6   :  { %v11333_v49 = vpop.f32.mrb[79].mxu1 }
0x1cb7   :  { %v10061_v50 = vadd.f32 %v11331_v37, %v10021_v7 }
0x1cb9   :  { %10066 = vst [vmem:[#allocation33] sm:$0xf] %v10061_v50 }
0x1cba   :  { %13730 = shalt.err (!%p13727_p2)
}
0x1cbb   :  { %s13731_s29 = scalar_lea.hbm %s14589_s19, 64 }
0x1cbc   :  { %p13732_p3 = scmp.ne.s32.totalorder %s14589_s19, %s13731_s29  ;;  %p13735_p4 = scmp.lt.u32.totalorder %s13731_s29, %s14589_s19 }
0x1cbe   :  { %p13737_p5 = pnand %p13735_p4, %p13732_p3 }
0x1cc0   :  { %13740 = shalt.err (!%p13737_p5)
}
0x1cc1   :  { %10076 = dma.vmem_to_hbm [thread:$0]  %s10074_s15, 64, %s14589_s19, [#allocation5]  }
0x1cc2   :  { %13761 = dma.done.wait [#allocation5], 64  }
0x1cc3   :  { %13762 = vsyncadd [#allocation5], 4294967232 }
0x1cc4   :  { %10080 = vsyncpa [#allocation4], 1 }
0x1cc5   :  { %10081 = vsyncpa [#allocation7], 1 }
0x1cc6   :  { %10082 = vsyncpa [#allocation10], 1 }
0x1cc7   :  { %10083 = vsyncpa [#allocation13], 1 }
0x1cc8   :  { %10084 = vsyncpa [#allocation16], 1 }
0x1cc9   :  { %10085 = vsyncpa [#allocation19], 1 }
0x1cca   :  { %10086 = vsyncpa [#allocation22], 1 }
0x1ccb   :  { %10087 = vsyncpa [#allocation25], 1 }
0x1ccc   :  { %10088 = vsyncpa [#allocation28], 1 }
0x1ccd   :  { %10089 = vsyncpa [#allocation31], 1 }
0x1cce   :  { %10090 = vsyncpa [#allocation5], 1 }

</bundles_post_ra>
